<compile_context>
chip_gen: v7x
topology: tpu7x:2x2x1
jax: 0.10.0
libtpu: 0.0.40
codegen_flags: <defaults>
</compile_context>

<pallas_src>
import numpy as np
import jax
import jax.numpy as jnp
from jax.experimental import pallas as pl
from jax.experimental.pallas import tpu as pltpu

# ---------------------------------------------------------------------------
# Config consistent with SynthesisNetworkDepth(w_dim=32, img_resolution=16,
# img_channels=3, channel_base=256, channel_max=32), batch = 2.
# ---------------------------------------------------------------------------
W_DIM = 32
IMG_RESOLUTION = 16
IMG_CHANNELS = 3
CHANNEL_BASE = 256
CHANNEL_MAX = 32
BATCH = 2

IMG_RES_LOG2 = int(np.log2(IMG_RESOLUTION))
BLOCK_RESOLUTIONS = [2 ** i for i in range(2, IMG_RES_LOG2 + 1)]          # [4, 8, 16]
CHANNELS = {res: min(CHANNEL_BASE // res, CHANNEL_MAX) for res in BLOCK_RESOLUTIONS}
NUM_WS = sum((1 if res == 4 else 2) + 1 for res in BLOCK_RESOLUTIONS)      # 8

LRELU_GAIN = float(np.sqrt(2.0))     # bias_act def_gain for 'lrelu'
EPS = 1e-8

_F1 = np.array([1.0, 3.0, 3.0, 1.0], np.float32)
_F2 = np.outer(_F1, _F1)
RESAMPLE_FILTER = (_F2 / _F2.sum()).astype(np.float32)   # normalized [1,3,3,1] FIR
F4 = RESAMPLE_FILTER * 4.0                               # FIR including up**2 gain


# ---------------------------------------------------------------------------
# Host-side (numpy) constant builders for the padded-flat spatial layout
# ---------------------------------------------------------------------------
def _padded_size(res):
    return (res + 2) * (res + 2)


def _build_mask(res):
    m = np.zeros((res + 2, res + 2), np.float32)
    m[1:-1, 1:-1] = 1.0
    return m.reshape(1, -1)


def _build_phase_scatter(res_lo):
    # 0/1 matrices placing per-phase up-conv outputs (low-res padded-flat layout)
    # at interleaved interior positions of the 2x-res padded-flat layout.
    wp_lo = res_lo + 2
    wp_hi = 2 * res_lo + 2
    out = np.zeros((4, wp_lo * wp_lo, wp_hi * wp_hi), np.float32)
    for a in range(2):
        for b in range(2):
            ph = 2 * a + b
            for i in range(res_lo):
                for j in range(res_lo):
                    out[ph,
                        (1 + i) * wp_lo + (1 + j),
                        (1 + 2 * i + a) * wp_hi + (1 + 2 * j + b)] = 1.0
    return out


def _build_upsample_matrix(res_lo):
    # upfirdn2d.upsample2d(img, [1,3,3,1]) (zero-insert, pad (2,1), FIR, gain 4)
    # expressed as one per-channel spatial matrix acting on the padded-flat layout.
    wp_lo = res_lo + 2
    res_hi = 2 * res_lo
    wp_hi = res_hi + 2
    U = np.zeros((wp_lo * wp_lo, wp_hi * wp_hi), np.float32)
    for i in range(res_lo):
        for j in range(res_lo):
            for s in range(res_hi):
                for t in range(res_hi):
                    p, q = 2 * i + 2 - s, 2 * j + 2 - t
                    if 0 <= p < 4 and 0 <= q < 4:
                        U[(1 + i) * wp_lo + (1 + j),
                          (1 + s) * wp_hi + (1 + t)] = F4[p, q]
    return U


def _build_f4_patch():
    # F4_PATCH[m, n, d, e] = F4[m-2+d, n-2+e] (0 outside) so that the 6x6 kernel of
    # (stride-2 transposed 3x3 conv o 4-tap FIR) is einsum('mnde,oide->oimn', ., W).
    out = np.zeros((6, 6, 3, 3), np.float32)
    for m in range(6):
        for n in range(6):
            for d in range(3):
                for e in range(3):
                    p, q = m - 2 + d, n - 2 + e
                    if 0 <= p < 4 and 0 <= q < 4:
                        out[m, n, d, e] = F4[p, q]
    return out


S4, S8, S16 = _padded_size(4), _padded_size(8), _padded_size(16)   # 36, 100, 324
MASK4, MASK8, MASK16 = _build_mask(4), _build_mask(8), _build_mask(16)
SCATTER_4_8 = _build_phase_scatter(4)        # [4, 36, 100]
SCATTER_8_16 = _build_phase_scatter(8)       # [4, 100, 324]
UP_4_8 = _build_upsample_matrix(4)           # [36, 100]
UP_8_16 = _build_upsample_matrix(8)          # [100, 324]
F4_PATCH = _build_f4_patch()

# Per-w-index affine layout: (block, layer, style_dim, extra_gain)   (ToRGB folds
# in its weight_gain = 1/sqrt(in_channels)).
AFFINE_LAYOUT = [
    ("b4", "conv1", CHANNELS[4], 1.0),
    ("b4", "torgb", CHANNELS[4], 1.0 / np.sqrt(CHANNELS[4])),
    ("b8", "conv0", CHANNELS[4], 1.0),
    ("b8", "conv1", CHANNELS[8], 1.0),
    ("b8", "torgb", CHANNELS[8], 1.0 / np.sqrt(CHANNELS[8])),
    ("b16", "conv0", CHANNELS[8], 1.0),
    ("b16", "conv1", CHANNELS[16], 1.0),
    ("b16", "torgb", CHANNELS[16], 1.0 / np.sqrt(CHANNELS[16])),
]
STYLE_SIZES = [c for _, _, c, _ in AFFINE_LAYOUT]
STYLE_OFFSETS = [int(o) for o in np.cumsum([0] + STYLE_SIZES)[:-1]]
TOTAL_STYLE = int(sum(STYLE_SIZES))          # 224


# ---------------------------------------------------------------------------
# In-kernel helpers (traced inside the Pallas kernel)
# ---------------------------------------------------------------------------
def _tap_slices(x, res):
    """9 spatially shifted views of a padded-flat [C, (res+2)^2] activation."""
    wp = res + 2
    s = wp * wp
    g = wp + 1
    pad = jnp.zeros((x.shape[0], g), x.dtype)
    xm = jnp.concatenate([pad, x, pad], axis=1)
    return [xm[:, g + dy * wp + dx: g + dy * wp + dx + s]
            for dy in (-1, 0, 1) for dx in (-1, 0, 1)]


def _lrelu(y):
    return jnp.where(y >= 0.0, y, 0.2 * y) * LRELU_GAIN


def _demod(sq_ref, style):
    # rsqrt(sum_{cin,kh,kw} (W * style)^2 + eps), per output channel. w*w is hoisted
    # to the wrapper (sq_ref holds sum_{kh,kw} W^2).
    return jax.lax.rsqrt(
        jnp.dot(sq_ref[...], style * style, preferred_element_type=jnp.float32) + EPS)


def _conv3x3(x, style, tap_ref, sq_ref, nz_ref, b_ref, mask_ref, res):
    """Modulated 3x3 conv (9 tap matmuls) + demod + noise + bias + lrelu."""
    xm = (x * style).astype(jnp.bfloat16)
    sl = _tap_slices(xm, res)
    cout = tap_ref.shape[1]
    acc = jnp.zeros((cout, sl[0].shape[1]), jnp.float32)
    for t in range(9):
        acc = acc + jnp.dot(tap_ref[t], sl[t], preferred_element_type=jnp.float32)
    y = acc * _demod(sq_ref, style) + nz_ref[...] + b_ref[...]
    return _lrelu(y) * mask_ref[...]


def _upconv3x3(x, style, ptap_ref, sq_ref, sc_ref, nz_ref, b_ref, mask_ref, res_lo):
    """Modulated up=2 conv: stride-2 transposed 3x3 conv + [1,3,3,1] FIR, both folded
    into 4 per-output-phase 3x3 kernels; phases placed via a 0/1 scatter matmul.
    Per-channel demodulation commutes with the depthwise FIR, so it uses the
    ORIGINAL weight's sum of squares (sq_ref)."""
    xm = (x * style).astype(jnp.bfloat16)
    sl = _tap_slices(xm, res_lo)
    cout = ptap_ref.shape[1]
    acc_hi = jnp.zeros((cout, sc_ref.shape[2]), jnp.float32)
    for ph in range(4):
        acc = jnp.zeros((cout, sl[0].shape[1]), jnp.float32)
        for t in range(9):
            acc = acc + jnp.dot(ptap_ref[ph * 9 + t], sl[t],
                                preferred_element_type=jnp.float32)
        acc_hi = acc_hi + jnp.dot(acc, sc_ref[ph], preferred_element_type=jnp.float32)
    y = acc_hi * _demod(sq_ref, style) + nz_ref[...] + b_ref[...]
    return _lrelu(y) * mask_ref[...]


def _torgb(x, style, w_ref, b_ref, mask_ref):
    y = jnp.dot(w_ref[...], x * style, preferred_element_type=jnp.float32) + b_ref[...]
    return y * mask_ref[...]


# ---------------------------------------------------------------------------
# The fused whole-network kernel (one grid step == one sample)
# ---------------------------------------------------------------------------
def _synthesis_kernel(
        ws_ref, aff_ref, affb_ref, x0_ref,
        b4c1_w, b4c1_sq, b4c1_nz, b4c1_b, b4rgb_w, b4rgb_b, m4,
        b8c0_w, b8c0_sq, b8c0_sc, b8c0_nz, b8c0_b,
        b8c1_w, b8c1_sq, b8c1_nz, b8c1_b, b8rgb_w, b8rgb_b, m8, up48,
        b16c0_w, b16c0_sq, b16c0_sc, b16c0_nz, b16c0_b,
        b16c1_w, b16c1_sq, b16c1_nz, b16c1_b, b16rgb_w, b16rgb_b, m16, up816,
        out_ref):
    # All 8 layer affines as one block-diagonal matmul (FC weight gain folded in).
    styles = (jnp.dot(aff_ref[...], ws_ref[0], preferred_element_type=jnp.float32)
              + affb_ref[...])                                    # [TOTAL_STYLE, 1]

    def sty(k):
        o = STYLE_OFFSETS[k]
        return styles[o:o + STYLE_SIZES[k]]

    # ---- b4 ----
    x = _conv3x3(x0_ref[...], sty(0), b4c1_w, b4c1_sq, b4c1_nz, b4c1_b, m4, 4)
    img = _torgb(x, sty(1), b4rgb_w, b4rgb_b, m4)

    # ---- b8 ----
    x = _upconv3x3(x, sty(2), b8c0_w, b8c0_sq, b8c0_sc, b8c0_nz, b8c0_b, m8, 4)
    x = _conv3x3(x, sty(3), b8c1_w, b8c1_sq, b8c1_nz, b8c1_b, m8, 8)
    img = (jnp.dot(img, up48[...], preferred_element_type=jnp.float32)
           + _torgb(x, sty(4), b8rgb_w, b8rgb_b, m8))

    # ---- b16 ----
    x = _upconv3x3(x, sty(5), b16c0_w, b16c0_sq, b16c0_sc, b16c0_nz, b16c0_b, m16, 8)
    x = _conv3x3(x, sty(6), b16c1_w, b16c1_sq, b16c1_nz, b16c1_b, m16, 16)
    img = (jnp.dot(img, up816[...], preferred_element_type=jnp.float32)
           + _torgb(x, sty(7), b16rgb_w, b16rgb_b, m16))

    out_ref[0] = img


# ---------------------------------------------------------------------------
# Wrapper-side weight preprocessing (pure XLA, tiny)
# ---------------------------------------------------------------------------
def _conv_tap_weights(w):
    cout, cin = w.shape[0], w.shape[1]
    return jnp.transpose(w, (2, 3, 0, 1)).reshape(9, cout, cin).astype(jnp.bfloat16)


def _phase_tap_weights(w):
    # Fold the [1,3,3,1] FIR (gain 4) into the transposed-conv weight and extract the
    # four sub-pixel phase 3x3 kernels (output phase (a,b) <- m in {1,3,5}/{0,2,4}).
    cout, cin = w.shape[0], w.shape[1]
    g2 = jnp.einsum('mnde,oide->oimn', F4_PATCH, w)       # [cout, cin, 6, 6]
    midx = np.array([[1, 3, 5], [0, 2, 4]])
    phases = []
    for a in range(2):
        for b in range(2):
            pw = g2[:, :, midx[a], :][:, :, :, midx[b]]    # [cout, cin, 3, 3]
            phases.append(jnp.transpose(pw, (2, 3, 0, 1)).reshape(9, cout, cin))
    return jnp.stack(phases, axis=0).reshape(36, cout, cin).astype(jnp.bfloat16)


def _wsq(w):
    return jnp.sum(w * w, axis=(2, 3))                    # [cout, cin], f32


def _noise_row(p):
    nz = p["noise_const"] * p["noise_strength"]
    return jnp.pad(nz, 1).reshape(1, -1)                  # padded-flat [1, S]


def _bias_col(b):
    return b.reshape(-1, 1)


def _build_affine(params):
    a = jnp.zeros((TOTAL_STYLE, NUM_WS * W_DIM), jnp.float32)
    b = jnp.zeros((TOTAL_STYLE, 1), jnp.float32)
    for li, (blk, layer, c, extra) in enumerate(AFFINE_LAYOUT):
        p = params[blk][layer]
        row = STYLE_OFFSETS[li]
        a = a.at[row:row + c, li * W_DIM:(li + 1) * W_DIM].set(
            p["aff_w"].T * (extra / np.sqrt(W_DIM)))
        b = b.at[row:row + c, 0].set(p["aff_b"] * extra)
    return a, b


def _shared_spec(shape):
    nd = len(shape)
    return pl.BlockSpec(tuple(shape), lambda i: (0,) * nd)


# ---------------------------------------------------------------------------
# Network forward: one pallas_call for the whole synthesis network
# ---------------------------------------------------------------------------
def synthesis_forward(ws, params):
    ws = ws.astype(jnp.float32)
    n = ws.shape[0]

    inputs, in_specs = [], []

    def add(x, spec=None):
        x = jnp.asarray(x)
        inputs.append(x)
        in_specs.append(spec if spec is not None else _shared_spec(x.shape))

    add(ws.reshape(n, NUM_WS * W_DIM, 1),
        pl.BlockSpec((1, NUM_WS * W_DIM, 1), lambda i: (i, 0, 0)))
    aff_a, aff_b = _build_affine(params)
    add(aff_a)
    add(aff_b)
    add(jnp.pad(params["b4"]["const"], ((0, 0), (1, 1), (1, 1))).reshape(CHANNELS[4], S4))

    # b4
    p = params["b4"]["conv1"]
    add(_conv_tap_weights(p["weight"])); add(_wsq(p["weight"]))
    add(_noise_row(p)); add(_bias_col(p["bias"]))
    t = params["b4"]["torgb"]
    add(t["weight"].reshape(IMG_CHANNELS, CHANNELS[4])); add(_bias_col(t["bias"]))
    add(MASK4)

    # b8
    p = params["b8"]["conv0"]
    add(_phase_tap_weights(p["weight"])); add(_wsq(p["weight"])); add(SCATTER_4_8)
    add(_noise_row(p)); add(_bias_col(p["bias"]))
    p = params["b8"]["conv1"]
    add(_conv_tap_weights(p["weight"])); add(_wsq(p["weight"]))
    add(_noise_row(p)); add(_bias_col(p["bias"]))
    t = params["b8"]["torgb"]
    add(t["weight"].reshape(IMG_CHANNELS, CHANNELS[8])); add(_bias_col(t["bias"]))
    add(MASK8); add(UP_4_8)

    # b16
    p = params["b16"]["conv0"]
    add(_phase_tap_weights(p["weight"])); add(_wsq(p["weight"])); add(SCATTER_8_16)
    add(_noise_row(p)); add(_bias_col(p["bias"]))
    p = params["b16"]["conv1"]
    add(_conv_tap_weights(p["weight"])); add(_wsq(p["weight"]))
    add(_noise_row(p)); add(_bias_col(p["bias"]))
    t = params["b16"]["torgb"]
    add(t["weight"].reshape(IMG_CHANNELS, CHANNELS[16])); add(_bias_col(t["bias"]))
    add(MASK16); add(UP_8_16)

    out = pl.pallas_call(
        _synthesis_kernel,
        grid=(n,),
        in_specs=in_specs,
        out_specs=pl.BlockSpec((1, IMG_CHANNELS, S16), lambda i: (i, 0, 0)),
        out_shape=jax.ShapeDtypeStruct((n, IMG_CHANNELS, S16), jnp.float32),
        compiler_params=pltpu.CompilerParams(dimension_semantics=("parallel",)),
    )(*inputs)

    out = out.reshape(n, IMG_CHANNELS, IMG_RESOLUTION + 2, IMG_RESOLUTION + 2)
    return out[:, :, 1:-1, 1:-1]


# ---------------------------------------------------------------------------
# Pure-XLA reference of the same module (used only for numerical cross-check)
# ---------------------------------------------------------------------------
def _reference_forward(ws, params):
    ws = ws.astype(jnp.float32)
    n = ws.shape[0]
    dn = ('NCHW', 'OIHW', 'NCHW')
    fir = jnp.asarray(F4)

    def affine(p, w, extra=1.0):
        return (w @ (p["aff_w"] * (1.0 / np.sqrt(W_DIM))) + p["aff_b"]) * extra

    def depthwise_fir(x, pad_h, pad_w):
        c = x.shape[1]
        xp = jnp.pad(x, ((0, 0), (0, 0), pad_h, pad_w))
        k = jnp.zeros((c, 1, 4, 4), jnp.float32).at[:, 0].set(fir)
        return jax.lax.conv_general_dilated(xp, k, (1, 1), 'VALID',
                                            feature_group_count=c,
                                            dimension_numbers=dn)

    def modconv(x, styles, weight, demodulate, up):
        cin, h = x.shape[1], x.shape[2]
        xm = x * styles[:, :, None, None]
        if up:
            z = jnp.zeros((n, cin, 2 * h - 1, 2 * h - 1), x.dtype)
            z = z.at[:, :, ::2, ::2].set(xm)
            zp = jnp.pad(z, ((0, 0), (0, 0), (2, 2), (2, 2)))
            y = jax.lax.conv_general_dilated(zp, jnp.flip(weight, (2, 3)), (1, 1),
                                             'VALID', dimension_numbers=dn)
            y = depthwise_fir(y, (1, 1), (1, 1))
        else:
            pad = weight.shape[-1] // 2
            xp = jnp.pad(xm, ((0, 0), (0, 0), (pad, pad), (pad, pad)))
            y = jax.lax.conv_general_dilated(xp, weight, (1, 1), 'VALID',
                                             dimension_numbers=dn)
        if demodulate:
            dc = jax.lax.rsqrt(jnp.einsum('nc,ochw->no', styles ** 2, weight ** 2) + EPS)
            y = y * dc[:, :, None, None]
        return y

    def conv_layer(x, w, p, up):
        y = modconv(x, affine(p, w), p["weight"], True, up)
        y = y + (p["noise_const"] * p["noise_strength"])[None, None]
        y = y + p["bias"][None, :, None, None]
        return jnp.where(y >= 0, y, 0.2 * y) * LRELU_GAIN

    def torgb(x, w, p):
        s = affine(p, w, extra=1.0 / np.sqrt(x.shape[1]))
        return modconv(x, s, p["weight"], False, False) + p["bias"][None, :, None, None]

    def upsample(img):
        c, h = img.shape[1], img.shape[2]
        z = jnp.zeros((n, c, 2 * h, 2 * h), img.dtype).at[:, :, ::2, ::2].set(img)
        return depthwise_fir(z, (2, 1), (2, 1))

    x = jnp.broadcast_to(params["b4"]["const"][None], (n,) + params["b4"]["const"].shape)
    x = conv_layer(x, ws[:, 0], params["b4"]["conv1"], up=False)
    img = torgb(x, ws[:, 1], params["b4"]["torgb"])
    x = conv_layer(x, ws[:, 2], params["b8"]["conv0"], up=True)
    x = conv_layer(x, ws[:, 3], params["b8"]["conv1"], up=False)
    img = upsample(img) + torgb(x, ws[:, 4], params["b8"]["torgb"])
    x = conv_layer(x, ws[:, 5], params["b16"]["conv0"], up=True)
    x = conv_layer(x, ws[:, 6], params["b16"]["conv1"], up=False)
    img = upsample(img) + torgb(x, ws[:, 7], params["b16"]["torgb"])
    return img


# ---------------------------------------------------------------------------
# Deterministic synthetic parameter init (shapes match the PyTorch module)
# ---------------------------------------------------------------------------
def init_params(key):
    keys = iter(jax.random.split(key, 128))
    nrm = lambda shape: jax.random.normal(next(keys), shape, jnp.float32)
    params = {}
    for res in BLOCK_RESOLUTIONS:
        cin = 0 if res == 4 else CHANNELS[res // 2]
        cout = CHANNELS[res]
        blk = {}
        if res == 4:
            blk["const"] = nrm((cout, 4, 4))
        else:
            blk["conv0"] = dict(
                aff_w=nrm((W_DIM, cin)), aff_b=jnp.ones((cin,), jnp.float32),
                weight=nrm((cout, cin, 3, 3)), bias=jnp.zeros((cout,), jnp.float32),
                noise_const=nrm((res, res)),
                noise_strength=jnp.zeros((), jnp.float32))
        blk["conv1"] = dict(
            aff_w=nrm((W_DIM, cout)), aff_b=jnp.ones((cout,), jnp.float32),
            weight=nrm((cout, cout, 3, 3)), bias=jnp.zeros((cout,), jnp.float32),
            noise_const=nrm((res, res)),
            noise_strength=jnp.zeros((), jnp.float32))
        blk["torgb"] = dict(
            aff_w=nrm((W_DIM, cout)), aff_b=jnp.ones((cout,), jnp.float32),
            weight=nrm((IMG_CHANNELS, cout, 1, 1)),
            bias=jnp.zeros((IMG_CHANNELS,), jnp.float32))
        params[f"b{res}"] = blk
    return params


if __name__ == "__main__":
    key = jax.random.PRNGKey(0)
    k_ws, k_params = jax.random.split(key)
    params = init_params(k_params)
    ws = jax.random.normal(k_ws, (BATCH, NUM_WS, W_DIM), jnp.float32)

    img = jax.jit(synthesis_forward)(ws, params)
    img = jax.block_until_ready(img)

    assert img.shape == (BATCH, IMG_CHANNELS, IMG_RESOLUTION, IMG_RESOLUTION), img.shape
    assert img.dtype == jnp.float32
    assert bool(jnp.all(jnp.isfinite(img)))

    # Numerical cross-check against a pure-XLA reference (bf16 MXU inputs in the
    # kernel -> loose tolerance).
    ref = jax.block_until_ready(jax.jit(_reference_forward)(ws, params))
    err = float(jnp.max(jnp.abs(img - ref)))
    scale = float(jnp.max(jnp.abs(ref)))
    assert err <= 0.1 * max(scale, 1.0) + 0.1, (err, scale)

    print("KERNEL_OK")
</pallas_src>

<mosaic_0001>
module attributes {stable_mosaic.version = 11 : i64} {
  func.func @_synthesis_kernel(%arg0: i32, %arg1: memref<1x256x1xf32, #tpu.memory_space<vmem>>, %arg2: memref<224x256xf32, #tpu.memory_space<vmem>>, %arg3: memref<224x1xf32, #tpu.memory_space<vmem>>, %arg4: memref<32x36xf32, #tpu.memory_space<vmem>>, %arg5: memref<9x32x32xbf16, #tpu.memory_space<vmem>>, %arg6: memref<32x32xf32, #tpu.memory_space<vmem>>, %arg7: memref<1x36xf32, #tpu.memory_space<vmem>>, %arg8: memref<32x1xf32, #tpu.memory_space<vmem>>, %arg9: memref<3x32xf32, #tpu.memory_space<vmem>>, %arg10: memref<3x1xf32, #tpu.memory_space<vmem>>, %arg11: memref<1x36xf32, #tpu.memory_space<vmem>>, %arg12: memref<36x32x32xbf16, #tpu.memory_space<vmem>>, %arg13: memref<32x32xf32, #tpu.memory_space<vmem>>, %arg14: memref<4x36x100xf32, #tpu.memory_space<vmem>>, %arg15: memref<1x100xf32, #tpu.memory_space<vmem>>, %arg16: memref<32x1xf32, #tpu.memory_space<vmem>>, %arg17: memref<9x32x32xbf16, #tpu.memory_space<vmem>>, %arg18: memref<32x32xf32, #tpu.memory_space<vmem>>, %arg19: memref<1x100xf32, #tpu.memory_space<vmem>>, %arg20: memref<32x1xf32, #tpu.memory_space<vmem>>, %arg21: memref<3x32xf32, #tpu.memory_space<vmem>>, %arg22: memref<3x1xf32, #tpu.memory_space<vmem>>, %arg23: memref<1x100xf32, #tpu.memory_space<vmem>>, %arg24: memref<36x100xf32, #tpu.memory_space<vmem>>, %arg25: memref<36x16x32xbf16, #tpu.memory_space<vmem>>, %arg26: memref<16x32xf32, #tpu.memory_space<vmem>>, %arg27: memref<4x100x324xf32, #tpu.memory_space<vmem>>, %arg28: memref<1x324xf32, #tpu.memory_space<vmem>>, %arg29: memref<16x1xf32, #tpu.memory_space<vmem>>, %arg30: memref<9x16x16xbf16, #tpu.memory_space<vmem>>, %arg31: memref<16x16xf32, #tpu.memory_space<vmem>>, %arg32: memref<1x324xf32, #tpu.memory_space<vmem>>, %arg33: memref<16x1xf32, #tpu.memory_space<vmem>>, %arg34: memref<3x16xf32, #tpu.memory_space<vmem>>, %arg35: memref<3x1xf32, #tpu.memory_space<vmem>>, %arg36: memref<1x324xf32, #tpu.memory_space<vmem>>, %arg37: memref<100x324xf32, #tpu.memory_space<vmem>>, %arg38: memref<1x3x324xf32, #tpu.memory_space<vmem>>) attributes {dimension_semantics = [#tpu.dimension_semantics<parallel>], iteration_bounds = array<i64: 2>, scalar_prefetch = 0 : i64, scratch_operands = 0 : i64, tpu.core_type = #tpu.core_type<tc>, window_params = [{transform_indices = @transform_0, window_bounds = array<i64: 1, 256, 1>}, {pipeline_mode = #tpu.pipeline_mode<synchronous>, transform_indices = @transform_1, window_bounds = array<i64: 224, 256>}, {pipeline_mode = #tpu.pipeline_mode<synchronous>, transform_indices = @transform_2, window_bounds = array<i64: 224, 1>}, {pipeline_mode = #tpu.pipeline_mode<synchronous>, transform_indices = @transform_3, window_bounds = array<i64: 32, 36>}, {pipeline_mode = #tpu.pipeline_mode<synchronous>, transform_indices = @transform_4, window_bounds = array<i64: 9, 32, 32>}, {pipeline_mode = #tpu.pipeline_mode<synchronous>, transform_indices = @transform_5, window_bounds = array<i64: 32, 32>}, {pipeline_mode = #tpu.pipeline_mode<synchronous>, transform_indices = @transform_6, window_bounds = array<i64: 1, 36>}, {pipeline_mode = #tpu.pipeline_mode<synchronous>, transform_indices = @transform_7, window_bounds = array<i64: 32, 1>}, {pipeline_mode = #tpu.pipeline_mode<synchronous>, transform_indices = @transform_8, window_bounds = array<i64: 3, 32>}, {pipeline_mode = #tpu.pipeline_mode<synchronous>, transform_indices = @transform_9, window_bounds = array<i64: 3, 1>}, {pipeline_mode = #tpu.pipeline_mode<synchronous>, transform_indices = @transform_10, window_bounds = array<i64: 1, 36>}, {pipeline_mode = #tpu.pipeline_mode<synchronous>, transform_indices = @transform_11, window_bounds = array<i64: 36, 32, 32>}, {pipeline_mode = #tpu.pipeline_mode<synchronous>, transform_indices = @transform_12, window_bounds = array<i64: 32, 32>}, {pipeline_mode = #tpu.pipeline_mode<synchronous>, transform_indices = @transform_13, window_bounds = array<i64: 4, 36, 100>}, {pipeline_mode = #tpu.pipeline_mode<synchronous>, transform_indices = @transform_14, window_bounds = array<i64: 1, 100>}, {pipeline_mode = #tpu.pipeline_mode<synchronous>, transform_indices = @transform_15, window_bounds = array<i64: 32, 1>}, {pipeline_mode = #tpu.pipeline_mode<synchronous>, transform_indices = @transform_16, window_bounds = array<i64: 9, 32, 32>}, {pipeline_mode = #tpu.pipeline_mode<synchronous>, transform_indices = @transform_17, window_bounds = array<i64: 32, 32>}, {pipeline_mode = #tpu.pipeline_mode<synchronous>, transform_indices = @transform_18, window_bounds = array<i64: 1, 100>}, {pipeline_mode = #tpu.pipeline_mode<synchronous>, transform_indices = @transform_19, window_bounds = array<i64: 32, 1>}, {pipeline_mode = #tpu.pipeline_mode<synchronous>, transform_indices = @transform_20, window_bounds = array<i64: 3, 32>}, {pipeline_mode = #tpu.pipeline_mode<synchronous>, transform_indices = @transform_21, window_bounds = array<i64: 3, 1>}, {pipeline_mode = #tpu.pipeline_mode<synchronous>, transform_indices = @transform_22, window_bounds = array<i64: 1, 100>}, {pipeline_mode = #tpu.pipeline_mode<synchronous>, transform_indices = @transform_23, window_bounds = array<i64: 36, 100>}, {pipeline_mode = #tpu.pipeline_mode<synchronous>, transform_indices = @transform_24, window_bounds = array<i64: 36, 16, 32>}, {pipeline_mode = #tpu.pipeline_mode<synchronous>, transform_indices = @transform_25, window_bounds = array<i64: 16, 32>}, {pipeline_mode = #tpu.pipeline_mode<synchronous>, transform_indices = @transform_26, window_bounds = array<i64: 4, 100, 324>}, {pipeline_mode = #tpu.pipeline_mode<synchronous>, transform_indices = @transform_27, window_bounds = array<i64: 1, 324>}, {pipeline_mode = #tpu.pipeline_mode<synchronous>, transform_indices = @transform_28, window_bounds = array<i64: 16, 1>}, {pipeline_mode = #tpu.pipeline_mode<synchronous>, transform_indices = @transform_29, window_bounds = array<i64: 9, 16, 16>}, {pipeline_mode = #tpu.pipeline_mode<synchronous>, transform_indices = @transform_30, window_bounds = array<i64: 16, 16>}, {pipeline_mode = #tpu.pipeline_mode<synchronous>, transform_indices = @transform_31, window_bounds = array<i64: 1, 324>}, {pipeline_mode = #tpu.pipeline_mode<synchronous>, transform_indices = @transform_32, window_bounds = array<i64: 16, 1>}, {pipeline_mode = #tpu.pipeline_mode<synchronous>, transform_indices = @transform_33, window_bounds = array<i64: 3, 16>}, {pipeline_mode = #tpu.pipeline_mode<synchronous>, transform_indices = @transform_34, window_bounds = array<i64: 3, 1>}, {pipeline_mode = #tpu.pipeline_mode<synchronous>, transform_indices = @transform_35, window_bounds = array<i64: 1, 324>}, {pipeline_mode = #tpu.pipeline_mode<synchronous>, transform_indices = @transform_36, window_bounds = array<i64: 100, 324>}, {transform_indices = @transform_37, window_bounds = array<i64: 1, 3, 324>}]} {
    %c0 = arith.constant 0 : index
    %c0_0 = arith.constant 0 : index
    %0 = vector.load %arg2[%c0, %c0_0] : memref<224x256xf32, #tpu.memory_space<vmem>>, vector<224x256xf32>
    %c0_1 = arith.constant 0 : index
    %c0_2 = arith.constant 0 : index
    %c0_3 = arith.constant 0 : index
    %1 = vector.load %arg1[%c0_1, %c0_2, %c0_3] : memref<1x256x1xf32, #tpu.memory_space<vmem>>, vector<1x256x1xf32>
    %2 = vector.shape_cast %1 : vector<1x256x1xf32> to vector<256x1xf32>
    %cst = arith.constant dense<0.000000e+00> : vector<224x1xf32>
    %3 = tpu.matmul %0, %2, %cst {dimension_numbers = #tpu.dot_dimension_numbers<[1], [0], [0], [1], [0, 0, 1, 1], [], []>} : vector<224x256xf32>, vector<256x1xf32>, vector<224x1xf32> -> vector<224x1xf32>
    %c0_4 = arith.constant 0 : index
    %c0_5 = arith.constant 0 : index
    %4 = vector.load %arg3[%c0_4, %c0_5] : memref<224x1xf32, #tpu.memory_space<vmem>>, vector<224x1xf32>
    %5 = arith.addf %3, %4 : vector<224x1xf32>
    %c0_6 = arith.constant 0 : index
    %c0_7 = arith.constant 0 : index
    %6 = vector.load %arg4[%c0_6, %c0_7] : memref<32x36xf32, #tpu.memory_space<vmem>>, vector<32x36xf32>
    %7 = vector.extract_strided_slice %5 {offsets = [0, 0], sizes = [32, 1], strides = [1, 1]} : vector<224x1xf32> to vector<32x1xf32>
    %8 = vector.broadcast %7 : vector<32x1xf32> to vector<32x36xf32>
    %9 = arith.mulf %6, %8 : vector<32x36xf32>
    %10 = arith.truncf %9 : vector<32x36xf32> to vector<32x36xbf16>
    %cst_8 = arith.constant 0.000000e+00 : bf16
    %11 = vector.broadcast %cst_8 : bf16 to vector<32x7xbf16>
    %12 = tpu.concatenate %11, %10, %11 in 1 : vector<32x7xbf16>, vector<32x36xbf16>, vector<32x7xbf16> -> vector<32x50xbf16>
    %13 = vector.extract_strided_slice %12 {offsets = [0, 0], sizes = [32, 36], strides = [1, 1]} : vector<32x50xbf16> to vector<32x36xbf16>
    %14 = vector.extract_strided_slice %12 {offsets = [0, 1], sizes = [32, 36], strides = [1, 1]} : vector<32x50xbf16> to vector<32x36xbf16>
    %15 = vector.extract_strided_slice %12 {offsets = [0, 2], sizes = [32, 36], strides = [1, 1]} : vector<32x50xbf16> to vector<32x36xbf16>
    %16 = vector.extract_strided_slice %12 {offsets = [0, 6], sizes = [32, 36], strides = [1, 1]} : vector<32x50xbf16> to vector<32x36xbf16>
    %17 = vector.extract_strided_slice %12 {offsets = [0, 7], sizes = [32, 36], strides = [1, 1]} : vector<32x50xbf16> to vector<32x36xbf16>
    %18 = vector.extract_strided_slice %12 {offsets = [0, 8], sizes = [32, 36], strides = [1, 1]} : vector<32x50xbf16> to vector<32x36xbf16>
    %19 = vector.extract_strided_slice %12 {offsets = [0, 12], sizes = [32, 36], strides = [1, 1]} : vector<32x50xbf16> to vector<32x36xbf16>
    %20 = vector.extract_strided_slice %12 {offsets = [0, 13], sizes = [32, 36], strides = [1, 1]} : vector<32x50xbf16> to vector<32x36xbf16>
    %21 = vector.extract_strided_slice %12 {offsets = [0, 14], sizes = [32, 36], strides = [1, 1]} : vector<32x50xbf16> to vector<32x36xbf16>
    %cst_9 = arith.constant 0.000000e+00 : f32
    %22 = vector.broadcast %cst_9 : f32 to vector<32x36xf32>
    %c0_10 = arith.constant 0 : index
    %c0_11 = arith.constant 0 : index
    %c0_12 = arith.constant 0 : index
    %23 = vector.load %arg5[%c0_10, %c0_11, %c0_12] : memref<9x32x32xbf16, #tpu.memory_space<vmem>>, vector<1x32x32xbf16>
    %24 = vector.shape_cast %23 : vector<1x32x32xbf16> to vector<32x32xbf16>
    %cst_13 = arith.constant dense<0.000000e+00> : vector<32x36xf32>
    %25 = tpu.matmul %24, %13, %cst_13 {dimension_numbers = #tpu.dot_dimension_numbers<[1], [0], [0], [1], [0, 0, 1, 1], [], []>} : vector<32x32xbf16>, vector<32x36xbf16>, vector<32x36xf32> -> vector<32x36xf32>
    %26 = arith.addf %22, %25 : vector<32x36xf32>
    %c1 = arith.constant 1 : index
    %c0_14 = arith.constant 0 : index
    %c0_15 = arith.constant 0 : index
    %27 = vector.load %arg5[%c1, %c0_14, %c0_15] : memref<9x32x32xbf16, #tpu.memory_space<vmem>>, vector<1x32x32xbf16>
    %28 = vector.shape_cast %27 : vector<1x32x32xbf16> to vector<32x32xbf16>
    %cst_16 = arith.constant dense<0.000000e+00> : vector<32x36xf32>
    %29 = tpu.matmul %28, %14, %cst_16 {dimension_numbers = #tpu.dot_dimension_numbers<[1], [0], [0], [1], [0, 0, 1, 1], [], []>} : vector<32x32xbf16>, vector<32x36xbf16>, vector<32x36xf32> -> vector<32x36xf32>
    %30 = arith.addf %26, %29 : vector<32x36xf32>
    %c2 = arith.constant 2 : index
    %c0_17 = arith.constant 0 : index
    %c0_18 = arith.constant 0 : index
    %31 = vector.load %arg5[%c2, %c0_17, %c0_18] : memref<9x32x32xbf16, #tpu.memory_space<vmem>>, vector<1x32x32xbf16>
    %32 = vector.shape_cast %31 : vector<1x32x32xbf16> to vector<32x32xbf16>
    %cst_19 = arith.constant dense<0.000000e+00> : vector<32x36xf32>
    %33 = tpu.matmul %32, %15, %cst_19 {dimension_numbers = #tpu.dot_dimension_numbers<[1], [0], [0], [1], [0, 0, 1, 1], [], []>} : vector<32x32xbf16>, vector<32x36xbf16>, vector<32x36xf32> -> vector<32x36xf32>
    %34 = arith.addf %30, %33 : vector<32x36xf32>
    %c3 = arith.constant 3 : index
    %c0_20 = arith.constant 0 : index
    %c0_21 = arith.constant 0 : index
    %35 = vector.load %arg5[%c3, %c0_20, %c0_21] : memref<9x32x32xbf16, #tpu.memory_space<vmem>>, vector<1x32x32xbf16>
    %36 = vector.shape_cast %35 : vector<1x32x32xbf16> to vector<32x32xbf16>
    %cst_22 = arith.constant dense<0.000000e+00> : vector<32x36xf32>
    %37 = tpu.matmul %36, %16, %cst_22 {dimension_numbers = #tpu.dot_dimension_numbers<[1], [0], [0], [1], [0, 0, 1, 1], [], []>} : vector<32x32xbf16>, vector<32x36xbf16>, vector<32x36xf32> -> vector<32x36xf32>
    %38 = arith.addf %34, %37 : vector<32x36xf32>
    %c4 = arith.constant 4 : index
    %c0_23 = arith.constant 0 : index
    %c0_24 = arith.constant 0 : index
    %39 = vector.load %arg5[%c4, %c0_23, %c0_24] : memref<9x32x32xbf16, #tpu.memory_space<vmem>>, vector<1x32x32xbf16>
    %40 = vector.shape_cast %39 : vector<1x32x32xbf16> to vector<32x32xbf16>
    %cst_25 = arith.constant dense<0.000000e+00> : vector<32x36xf32>
    %41 = tpu.matmul %40, %17, %cst_25 {dimension_numbers = #tpu.dot_dimension_numbers<[1], [0], [0], [1], [0, 0, 1, 1], [], []>} : vector<32x32xbf16>, vector<32x36xbf16>, vector<32x36xf32> -> vector<32x36xf32>
    %42 = arith.addf %38, %41 : vector<32x36xf32>
    %c5 = arith.constant 5 : index
    %c0_26 = arith.constant 0 : index
    %c0_27 = arith.constant 0 : index
    %43 = vector.load %arg5[%c5, %c0_26, %c0_27] : memref<9x32x32xbf16, #tpu.memory_space<vmem>>, vector<1x32x32xbf16>
    %44 = vector.shape_cast %43 : vector<1x32x32xbf16> to vector<32x32xbf16>
    %cst_28 = arith.constant dense<0.000000e+00> : vector<32x36xf32>
    %45 = tpu.matmul %44, %18, %cst_28 {dimension_numbers = #tpu.dot_dimension_numbers<[1], [0], [0], [1], [0, 0, 1, 1], [], []>} : vector<32x32xbf16>, vector<32x36xbf16>, vector<32x36xf32> -> vector<32x36xf32>
    %46 = arith.addf %42, %45 : vector<32x36xf32>
    %c6 = arith.constant 6 : index
    %c0_29 = arith.constant 0 : index
    %c0_30 = arith.constant 0 : index
    %47 = vector.load %arg5[%c6, %c0_29, %c0_30] : memref<9x32x32xbf16, #tpu.memory_space<vmem>>, vector<1x32x32xbf16>
    %48 = vector.shape_cast %47 : vector<1x32x32xbf16> to vector<32x32xbf16>
    %cst_31 = arith.constant dense<0.000000e+00> : vector<32x36xf32>
    %49 = tpu.matmul %48, %19, %cst_31 {dimension_numbers = #tpu.dot_dimension_numbers<[1], [0], [0], [1], [0, 0, 1, 1], [], []>} : vector<32x32xbf16>, vector<32x36xbf16>, vector<32x36xf32> -> vector<32x36xf32>
    %50 = arith.addf %46, %49 : vector<32x36xf32>
    %c7 = arith.constant 7 : index
    %c0_32 = arith.constant 0 : index
    %c0_33 = arith.constant 0 : index
    %51 = vector.load %arg5[%c7, %c0_32, %c0_33] : memref<9x32x32xbf16, #tpu.memory_space<vmem>>, vector<1x32x32xbf16>
    %52 = vector.shape_cast %51 : vector<1x32x32xbf16> to vector<32x32xbf16>
    %cst_34 = arith.constant dense<0.000000e+00> : vector<32x36xf32>
    %53 = tpu.matmul %52, %20, %cst_34 {dimension_numbers = #tpu.dot_dimension_numbers<[1], [0], [0], [1], [0, 0, 1, 1], [], []>} : vector<32x32xbf16>, vector<32x36xbf16>, vector<32x36xf32> -> vector<32x36xf32>
    %54 = arith.addf %50, %53 : vector<32x36xf32>
    %c8 = arith.constant 8 : index
    %c0_35 = arith.constant 0 : index
    %c0_36 = arith.constant 0 : index
    %55 = vector.load %arg5[%c8, %c0_35, %c0_36] : memref<9x32x32xbf16, #tpu.memory_space<vmem>>, vector<1x32x32xbf16>
    %56 = vector.shape_cast %55 : vector<1x32x32xbf16> to vector<32x32xbf16>
    %cst_37 = arith.constant dense<0.000000e+00> : vector<32x36xf32>
    %57 = tpu.matmul %56, %21, %cst_37 {dimension_numbers = #tpu.dot_dimension_numbers<[1], [0], [0], [1], [0, 0, 1, 1], [], []>} : vector<32x32xbf16>, vector<32x36xbf16>, vector<32x36xf32> -> vector<32x36xf32>
    %58 = arith.addf %54, %57 : vector<32x36xf32>
    %c0_38 = arith.constant 0 : index
    %c0_39 = arith.constant 0 : index
    %59 = vector.load %arg6[%c0_38, %c0_39] : memref<32x32xf32, #tpu.memory_space<vmem>>, vector<32x32xf32>
    %60 = arith.mulf %7, %7 : vector<32x1xf32>
    %cst_40 = arith.constant dense<0.000000e+00> : vector<32x1xf32>
    %61 = tpu.matmul %59, %60, %cst_40 {dimension_numbers = #tpu.dot_dimension_numbers<[1], [0], [0], [1], [0, 0, 1, 1], [], []>} : vector<32x32xf32>, vector<32x1xf32>, vector<32x1xf32> -> vector<32x1xf32>
    %cst_41 = arith.constant 9.99999993E-9 : f32
    %62 = vector.broadcast %cst_41 : f32 to vector<32x1xf32>
    %63 = arith.addf %61, %62 : vector<32x1xf32>
    %64 = math.rsqrt %63 : vector<32x1xf32>
    %65 = vector.broadcast %64 : vector<32x1xf32> to vector<32x36xf32>
    %66 = arith.mulf %58, %65 : vector<32x36xf32>
    %c0_42 = arith.constant 0 : index
    %c0_43 = arith.constant 0 : index
    %67 = vector.load %arg7[%c0_42, %c0_43] : memref<1x36xf32, #tpu.memory_space<vmem>>, vector<1x36xf32>
    %68 = vector.broadcast %67 : vector<1x36xf32> to vector<32x36xf32>
    %69 = arith.addf %66, %68 : vector<32x36xf32>
    %c0_44 = arith.constant 0 : index
    %c0_45 = arith.constant 0 : index
    %70 = vector.load %arg8[%c0_44, %c0_45] : memref<32x1xf32, #tpu.memory_space<vmem>>, vector<32x1xf32>
    %71 = vector.broadcast %70 : vector<32x1xf32> to vector<32x36xf32>
    %72 = arith.addf %69, %71 : vector<32x36xf32>
    %cst_46 = arith.constant 0.000000e+00 : f32
    %73 = vector.broadcast %cst_46 : f32 to vector<32x36xf32>
    %74 = arith.cmpf oge, %72, %73 : vector<32x36xf32>
    %cst_47 = arith.constant 2.000000e-01 : f32
    %75 = vector.broadcast %cst_47 : f32 to vector<32x36xf32>
    %76 = arith.mulf %75, %72 : vector<32x36xf32>
    %77 = arith.select %74, %72, %76 : vector<32x36xi1>, vector<32x36xf32>
    %cst_48 = arith.constant 1.41421354 : f32
    %78 = vector.broadcast %cst_48 : f32 to vector<32x36xf32>
    %79 = arith.mulf %77, %78 : vector<32x36xf32>
    %c0_49 = arith.constant 0 : index
    %c0_50 = arith.constant 0 : index
    %80 = vector.load %arg11[%c0_49, %c0_50] : memref<1x36xf32, #tpu.memory_space<vmem>>, vector<1x36xf32>
    %81 = vector.broadcast %80 : vector<1x36xf32> to vector<32x36xf32>
    %82 = arith.mulf %79, %81 : vector<32x36xf32>
    %83 = vector.extract_strided_slice %5 {offsets = [32, 0], sizes = [32, 1], strides = [1, 1]} : vector<224x1xf32> to vector<32x1xf32>
    %c0_51 = arith.constant 0 : index
    %c0_52 = arith.constant 0 : index
    %84 = vector.load %arg9[%c0_51, %c0_52] : memref<3x32xf32, #tpu.memory_space<vmem>>, vector<3x32xf32>
    %85 = vector.broadcast %83 : vector<32x1xf32> to vector<32x36xf32>
    %86 = arith.mulf %82, %85 : vector<32x36xf32>
    %cst_53 = arith.constant dense<0.000000e+00> : vector<3x36xf32>
    %87 = tpu.matmul %84, %86, %cst_53 {dimension_numbers = #tpu.dot_dimension_numbers<[1], [0], [0], [1], [0, 0, 1, 1], [], []>} : vector<3x32xf32>, vector<32x36xf32>, vector<3x36xf32> -> vector<3x36xf32>
    %c0_54 = arith.constant 0 : index
    %c0_55 = arith.constant 0 : index
    %88 = vector.load %arg10[%c0_54, %c0_55] : memref<3x1xf32, #tpu.memory_space<vmem>>, vector<3x1xf32>
    %89 = vector.broadcast %88 : vector<3x1xf32> to vector<3x36xf32>
    %90 = arith.addf %87, %89 : vector<3x36xf32>
    %c0_56 = arith.constant 0 : index
    %c0_57 = arith.constant 0 : index
    %91 = vector.load %arg11[%c0_56, %c0_57] : memref<1x36xf32, #tpu.memory_space<vmem>>, vector<1x36xf32>
    %92 = vector.broadcast %91 : vector<1x36xf32> to vector<3x36xf32>
    %93 = arith.mulf %90, %92 : vector<3x36xf32>
    %94 = vector.extract_strided_slice %5 {offsets = [64, 0], sizes = [32, 1], strides = [1, 1]} : vector<224x1xf32> to vector<32x1xf32>
    %95 = vector.broadcast %94 : vector<32x1xf32> to vector<32x36xf32>
    %96 = arith.mulf %82, %95 : vector<32x36xf32>
    %97 = arith.truncf %96 : vector<32x36xf32> to vector<32x36xbf16>
    %cst_58 = arith.constant 0.000000e+00 : bf16
    %98 = vector.broadcast %cst_58 : bf16 to vector<32x7xbf16>
    %99 = tpu.concatenate %98, %97, %98 in 1 : vector<32x7xbf16>, vector<32x36xbf16>, vector<32x7xbf16> -> vector<32x50xbf16>
    %100 = vector.extract_strided_slice %99 {offsets = [0, 0], sizes = [32, 36], strides = [1, 1]} : vector<32x50xbf16> to vector<32x36xbf16>
    %101 = vector.extract_strided_slice %99 {offsets = [0, 1], sizes = [32, 36], strides = [1, 1]} : vector<32x50xbf16> to vector<32x36xbf16>
    %102 = vector.extract_strided_slice %99 {offsets = [0, 2], sizes = [32, 36], strides = [1, 1]} : vector<32x50xbf16> to vector<32x36xbf16>
    %103 = vector.extract_strided_slice %99 {offsets = [0, 6], sizes = [32, 36], strides = [1, 1]} : vector<32x50xbf16> to vector<32x36xbf16>
    %104 = vector.extract_strided_slice %99 {offsets = [0, 7], sizes = [32, 36], strides = [1, 1]} : vector<32x50xbf16> to vector<32x36xbf16>
    %105 = vector.extract_strided_slice %99 {offsets = [0, 8], sizes = [32, 36], strides = [1, 1]} : vector<32x50xbf16> to vector<32x36xbf16>
    %106 = vector.extract_strided_slice %99 {offsets = [0, 12], sizes = [32, 36], strides = [1, 1]} : vector<32x50xbf16> to vector<32x36xbf16>
    %107 = vector.extract_strided_slice %99 {offsets = [0, 13], sizes = [32, 36], strides = [1, 1]} : vector<32x50xbf16> to vector<32x36xbf16>
    %108 = vector.extract_strided_slice %99 {offsets = [0, 14], sizes = [32, 36], strides = [1, 1]} : vector<32x50xbf16> to vector<32x36xbf16>
    %cst_59 = arith.constant 0.000000e+00 : f32
    %109 = vector.broadcast %cst_59 : f32 to vector<32x100xf32>
    %cst_60 = arith.constant 0.000000e+00 : f32
    %110 = vector.broadcast %cst_60 : f32 to vector<32x36xf32>
    %c0_61 = arith.constant 0 : index
    %c0_62 = arith.constant 0 : index
    %c0_63 = arith.constant 0 : index
    %111 = vector.load %arg12[%c0_61, %c0_62, %c0_63] : memref<36x32x32xbf16, #tpu.memory_space<vmem>>, vector<1x32x32xbf16>
    %112 = vector.shape_cast %111 : vector<1x32x32xbf16> to vector<32x32xbf16>
    %cst_64 = arith.constant dense<0.000000e+00> : vector<32x36xf32>
    %113 = tpu.matmul %112, %100, %cst_64 {dimension_numbers = #tpu.dot_dimension_numbers<[1], [0], [0], [1], [0, 0, 1, 1], [], []>} : vector<32x32xbf16>, vector<32x36xbf16>, vector<32x36xf32> -> vector<32x36xf32>
    %114 = arith.addf %110, %113 : vector<32x36xf32>
    %c1_65 = arith.constant 1 : index
    %c0_66 = arith.constant 0 : index
    %c0_67 = arith.constant 0 : index
    %115 = vector.load %arg12[%c1_65, %c0_66, %c0_67] : memref<36x32x32xbf16, #tpu.memory_space<vmem>>, vector<1x32x32xbf16>
    %116 = vector.shape_cast %115 : vector<1x32x32xbf16> to vector<32x32xbf16>
    %cst_68 = arith.constant dense<0.000000e+00> : vector<32x36xf32>
    %117 = tpu.matmul %116, %101, %cst_68 {dimension_numbers = #tpu.dot_dimension_numbers<[1], [0], [0], [1], [0, 0, 1, 1], [], []>} : vector<32x32xbf16>, vector<32x36xbf16>, vector<32x36xf32> -> vector<32x36xf32>
    %118 = arith.addf %114, %117 : vector<32x36xf32>
    %c2_69 = arith.constant 2 : index
    %c0_70 = arith.constant 0 : index
    %c0_71 = arith.constant 0 : index
    %119 = vector.load %arg12[%c2_69, %c0_70, %c0_71] : memref<36x32x32xbf16, #tpu.memory_space<vmem>>, vector<1x32x32xbf16>
    %120 = vector.shape_cast %119 : vector<1x32x32xbf16> to vector<32x32xbf16>
    %cst_72 = arith.constant dense<0.000000e+00> : vector<32x36xf32>
    %121 = tpu.matmul %120, %102, %cst_72 {dimension_numbers = #tpu.dot_dimension_numbers<[1], [0], [0], [1], [0, 0, 1, 1], [], []>} : vector<32x32xbf16>, vector<32x36xbf16>, vector<32x36xf32> -> vector<32x36xf32>
    %122 = arith.addf %118, %121 : vector<32x36xf32>
    %c3_73 = arith.constant 3 : index
    %c0_74 = arith.constant 0 : index
    %c0_75 = arith.constant 0 : index
    %123 = vector.load %arg12[%c3_73, %c0_74, %c0_75] : memref<36x32x32xbf16, #tpu.memory_space<vmem>>, vector<1x32x32xbf16>
    %124 = vector.shape_cast %123 : vector<1x32x32xbf16> to vector<32x32xbf16>
    %cst_76 = arith.constant dense<0.000000e+00> : vector<32x36xf32>
    %125 = tpu.matmul %124, %103, %cst_76 {dimension_numbers = #tpu.dot_dimension_numbers<[1], [0], [0], [1], [0, 0, 1, 1], [], []>} : vector<32x32xbf16>, vector<32x36xbf16>, vector<32x36xf32> -> vector<32x36xf32>
    %126 = arith.addf %122, %125 : vector<32x36xf32>
    %c4_77 = arith.constant 4 : index
    %c0_78 = arith.constant 0 : index
    %c0_79 = arith.constant 0 : index
    %127 = vector.load %arg12[%c4_77, %c0_78, %c0_79] : memref<36x32x32xbf16, #tpu.memory_space<vmem>>, vector<1x32x32xbf16>
    %128 = vector.shape_cast %127 : vector<1x32x32xbf16> to vector<32x32xbf16>
    %cst_80 = arith.constant dense<0.000000e+00> : vector<32x36xf32>
    %129 = tpu.matmul %128, %104, %cst_80 {dimension_numbers = #tpu.dot_dimension_numbers<[1], [0], [0], [1], [0, 0, 1, 1], [], []>} : vector<32x32xbf16>, vector<32x36xbf16>, vector<32x36xf32> -> vector<32x36xf32>
    %130 = arith.addf %126, %129 : vector<32x36xf32>
    %c5_81 = arith.constant 5 : index
    %c0_82 = arith.constant 0 : index
    %c0_83 = arith.constant 0 : index
    %131 = vector.load %arg12[%c5_81, %c0_82, %c0_83] : memref<36x32x32xbf16, #tpu.memory_space<vmem>>, vector<1x32x32xbf16>
    %132 = vector.shape_cast %131 : vector<1x32x32xbf16> to vector<32x32xbf16>
    %cst_84 = arith.constant dense<0.000000e+00> : vector<32x36xf32>
    %133 = tpu.matmul %132, %105, %cst_84 {dimension_numbers = #tpu.dot_dimension_numbers<[1], [0], [0], [1], [0, 0, 1, 1], [], []>} : vector<32x32xbf16>, vector<32x36xbf16>, vector<32x36xf32> -> vector<32x36xf32>
    %134 = arith.addf %130, %133 : vector<32x36xf32>
    %c6_85 = arith.constant 6 : index
    %c0_86 = arith.constant 0 : index
    %c0_87 = arith.constant 0 : index
    %135 = vector.load %arg12[%c6_85, %c0_86, %c0_87] : memref<36x32x32xbf16, #tpu.memory_space<vmem>>, vector<1x32x32xbf16>
    %136 = vector.shape_cast %135 : vector<1x32x32xbf16> to vector<32x32xbf16>
    %cst_88 = arith.constant dense<0.000000e+00> : vector<32x36xf32>
    %137 = tpu.matmul %136, %106, %cst_88 {dimension_numbers = #tpu.dot_dimension_numbers<[1], [0], [0], [1], [0, 0, 1, 1], [], []>} : vector<32x32xbf16>, vector<32x36xbf16>, vector<32x36xf32> -> vector<32x36xf32>
    %138 = arith.addf %134, %137 : vector<32x36xf32>
    %c7_89 = arith.constant 7 : index
    %c0_90 = arith.constant 0 : index
    %c0_91 = arith.constant 0 : index
    %139 = vector.load %arg12[%c7_89, %c0_90, %c0_91] : memref<36x32x32xbf16, #tpu.memory_space<vmem>>, vector<1x32x32xbf16>
    %140 = vector.shape_cast %139 : vector<1x32x32xbf16> to vector<32x32xbf16>
    %cst_92 = arith.constant dense<0.000000e+00> : vector<32x36xf32>
    %141 = tpu.matmul %140, %107, %cst_92 {dimension_numbers = #tpu.dot_dimension_numbers<[1], [0], [0], [1], [0, 0, 1, 1], [], []>} : vector<32x32xbf16>, vector<32x36xbf16>, vector<32x36xf32> -> vector<32x36xf32>
    %142 = arith.addf %138, %141 : vector<32x36xf32>
    %c8_93 = arith.constant 8 : index
    %c0_94 = arith.constant 0 : index
    %c0_95 = arith.constant 0 : index
    %143 = vector.load %arg12[%c8_93, %c0_94, %c0_95] : memref<36x32x32xbf16, #tpu.memory_space<vmem>>, vector<1x32x32xbf16>
    %144 = vector.shape_cast %143 : vector<1x32x32xbf16> to vector<32x32xbf16>
    %cst_96 = arith.constant dense<0.000000e+00> : vector<32x36xf32>
    %145 = tpu.matmul %144, %108, %cst_96 {dimension_numbers = #tpu.dot_dimension_numbers<[1], [0], [0], [1], [0, 0, 1, 1], [], []>} : vector<32x32xbf16>, vector<32x36xbf16>, vector<32x36xf32> -> vector<32x36xf32>
    %146 = arith.addf %142, %145 : vector<32x36xf32>
    %c0_97 = arith.constant 0 : index
    %c0_98 = arith.constant 0 : index
    %c0_99 = arith.constant 0 : index
    %147 = vector.load %arg14[%c0_97, %c0_98, %c0_99] : memref<4x36x100xf32, #tpu.memory_space<vmem>>, vector<1x36x100xf32>
    %148 = vector.shape_cast %147 : vector<1x36x100xf32> to vector<36x100xf32>
    %cst_100 = arith.constant dense<0.000000e+00> : vector<32x100xf32>
    %149 = tpu.matmul %146, %148, %cst_100 {dimension_numbers = #tpu.dot_dimension_numbers<[1], [0], [0], [1], [0, 0, 1, 1], [], []>} : vector<32x36xf32>, vector<36x100xf32>, vector<32x100xf32> -> vector<32x100xf32>
    %150 = arith.addf %109, %149 : vector<32x100xf32>
    %cst_101 = arith.constant 0.000000e+00 : f32
    %151 = vector.broadcast %cst_101 : f32 to vector<32x36xf32>
    %c9 = arith.constant 9 : index
    %c0_102 = arith.constant 0 : index
    %c0_103 = arith.constant 0 : index
    %152 = vector.load %arg12[%c9, %c0_102, %c0_103] : memref<36x32x32xbf16, #tpu.memory_space<vmem>>, vector<1x32x32xbf16>
    %153 = vector.shape_cast %152 : vector<1x32x32xbf16> to vector<32x32xbf16>
    %cst_104 = arith.constant dense<0.000000e+00> : vector<32x36xf32>
    %154 = tpu.matmul %153, %100, %cst_104 {dimension_numbers = #tpu.dot_dimension_numbers<[1], [0], [0], [1], [0, 0, 1, 1], [], []>} : vector<32x32xbf16>, vector<32x36xbf16>, vector<32x36xf32> -> vector<32x36xf32>
    %155 = arith.addf %151, %154 : vector<32x36xf32>
    %c10 = arith.constant 10 : index
    %c0_105 = arith.constant 0 : index
    %c0_106 = arith.constant 0 : index
    %156 = vector.load %arg12[%c10, %c0_105, %c0_106] : memref<36x32x32xbf16, #tpu.memory_space<vmem>>, vector<1x32x32xbf16>
    %157 = vector.shape_cast %156 : vector<1x32x32xbf16> to vector<32x32xbf16>
    %cst_107 = arith.constant dense<0.000000e+00> : vector<32x36xf32>
    %158 = tpu.matmul %157, %101, %cst_107 {dimension_numbers = #tpu.dot_dimension_numbers<[1], [0], [0], [1], [0, 0, 1, 1], [], []>} : vector<32x32xbf16>, vector<32x36xbf16>, vector<32x36xf32> -> vector<32x36xf32>
    %159 = arith.addf %155, %158 : vector<32x36xf32>
    %c11 = arith.constant 11 : index
    %c0_108 = arith.constant 0 : index
    %c0_109 = arith.constant 0 : index
    %160 = vector.load %arg12[%c11, %c0_108, %c0_109] : memref<36x32x32xbf16, #tpu.memory_space<vmem>>, vector<1x32x32xbf16>
    %161 = vector.shape_cast %160 : vector<1x32x32xbf16> to vector<32x32xbf16>
    %cst_110 = arith.constant dense<0.000000e+00> : vector<32x36xf32>
    %162 = tpu.matmul %161, %102, %cst_110 {dimension_numbers = #tpu.dot_dimension_numbers<[1], [0], [0], [1], [0, 0, 1, 1], [], []>} : vector<32x32xbf16>, vector<32x36xbf16>, vector<32x36xf32> -> vector<32x36xf32>
    %163 = arith.addf %159, %162 : vector<32x36xf32>
    %c12 = arith.constant 12 : index
    %c0_111 = arith.constant 0 : index
    %c0_112 = arith.constant 0 : index
    %164 = vector.load %arg12[%c12, %c0_111, %c0_112] : memref<36x32x32xbf16, #tpu.memory_space<vmem>>, vector<1x32x32xbf16>
    %165 = vector.shape_cast %164 : vector<1x32x32xbf16> to vector<32x32xbf16>
    %cst_113 = arith.constant dense<0.000000e+00> : vector<32x36xf32>
    %166 = tpu.matmul %165, %103, %cst_113 {dimension_numbers = #tpu.dot_dimension_numbers<[1], [0], [0], [1], [0, 0, 1, 1], [], []>} : vector<32x32xbf16>, vector<32x36xbf16>, vector<32x36xf32> -> vector<32x36xf32>
    %167 = arith.addf %163, %166 : vector<32x36xf32>
    %c13 = arith.constant 13 : index
    %c0_114 = arith.constant 0 : index
    %c0_115 = arith.constant 0 : index
    %168 = vector.load %arg12[%c13, %c0_114, %c0_115] : memref<36x32x32xbf16, #tpu.memory_space<vmem>>, vector<1x32x32xbf16>
    %169 = vector.shape_cast %168 : vector<1x32x32xbf16> to vector<32x32xbf16>
    %cst_116 = arith.constant dense<0.000000e+00> : vector<32x36xf32>
    %170 = tpu.matmul %169, %104, %cst_116 {dimension_numbers = #tpu.dot_dimension_numbers<[1], [0], [0], [1], [0, 0, 1, 1], [], []>} : vector<32x32xbf16>, vector<32x36xbf16>, vector<32x36xf32> -> vector<32x36xf32>
    %171 = arith.addf %167, %170 : vector<32x36xf32>
    %c14 = arith.constant 14 : index
    %c0_117 = arith.constant 0 : index
    %c0_118 = arith.constant 0 : index
    %172 = vector.load %arg12[%c14, %c0_117, %c0_118] : memref<36x32x32xbf16, #tpu.memory_space<vmem>>, vector<1x32x32xbf16>
    %173 = vector.shape_cast %172 : vector<1x32x32xbf16> to vector<32x32xbf16>
    %cst_119 = arith.constant dense<0.000000e+00> : vector<32x36xf32>
    %174 = tpu.matmul %173, %105, %cst_119 {dimension_numbers = #tpu.dot_dimension_numbers<[1], [0], [0], [1], [0, 0, 1, 1], [], []>} : vector<32x32xbf16>, vector<32x36xbf16>, vector<32x36xf32> -> vector<32x36xf32>
    %175 = arith.addf %171, %174 : vector<32x36xf32>
    %c15 = arith.constant 15 : index
    %c0_120 = arith.constant 0 : index
    %c0_121 = arith.constant 0 : index
    %176 = vector.load %arg12[%c15, %c0_120, %c0_121] : memref<36x32x32xbf16, #tpu.memory_space<vmem>>, vector<1x32x32xbf16>
    %177 = vector.shape_cast %176 : vector<1x32x32xbf16> to vector<32x32xbf16>
    %cst_122 = arith.constant dense<0.000000e+00> : vector<32x36xf32>
    %178 = tpu.matmul %177, %106, %cst_122 {dimension_numbers = #tpu.dot_dimension_numbers<[1], [0], [0], [1], [0, 0, 1, 1], [], []>} : vector<32x32xbf16>, vector<32x36xbf16>, vector<32x36xf32> -> vector<32x36xf32>
    %179 = arith.addf %175, %178 : vector<32x36xf32>
    %c16 = arith.constant 16 : index
    %c0_123 = arith.constant 0 : index
    %c0_124 = arith.constant 0 : index
    %180 = vector.load %arg12[%c16, %c0_123, %c0_124] : memref<36x32x32xbf16, #tpu.memory_space<vmem>>, vector<1x32x32xbf16>
    %181 = vector.shape_cast %180 : vector<1x32x32xbf16> to vector<32x32xbf16>
    %cst_125 = arith.constant dense<0.000000e+00> : vector<32x36xf32>
    %182 = tpu.matmul %181, %107, %cst_125 {dimension_numbers = #tpu.dot_dimension_numbers<[1], [0], [0], [1], [0, 0, 1, 1], [], []>} : vector<32x32xbf16>, vector<32x36xbf16>, vector<32x36xf32> -> vector<32x36xf32>
    %183 = arith.addf %179, %182 : vector<32x36xf32>
    %c17 = arith.constant 17 : index
    %c0_126 = arith.constant 0 : index
    %c0_127 = arith.constant 0 : index
    %184 = vector.load %arg12[%c17, %c0_126, %c0_127] : memref<36x32x32xbf16, #tpu.memory_space<vmem>>, vector<1x32x32xbf16>
    %185 = vector.shape_cast %184 : vector<1x32x32xbf16> to vector<32x32xbf16>
    %cst_128 = arith.constant dense<0.000000e+00> : vector<32x36xf32>
    %186 = tpu.matmul %185, %108, %cst_128 {dimension_numbers = #tpu.dot_dimension_numbers<[1], [0], [0], [1], [0, 0, 1, 1], [], []>} : vector<32x32xbf16>, vector<32x36xbf16>, vector<32x36xf32> -> vector<32x36xf32>
    %187 = arith.addf %183, %186 : vector<32x36xf32>
    %c1_129 = arith.constant 1 : index
    %c0_130 = arith.constant 0 : index
    %c0_131 = arith.constant 0 : index
    %188 = vector.load %arg14[%c1_129, %c0_130, %c0_131] : memref<4x36x100xf32, #tpu.memory_space<vmem>>, vector<1x36x100xf32>
    %189 = vector.shape_cast %188 : vector<1x36x100xf32> to vector<36x100xf32>
    %cst_132 = arith.constant dense<0.000000e+00> : vector<32x100xf32>
    %190 = tpu.matmul %187, %189, %cst_132 {dimension_numbers = #tpu.dot_dimension_numbers<[1], [0], [0], [1], [0, 0, 1, 1], [], []>} : vector<32x36xf32>, vector<36x100xf32>, vector<32x100xf32> -> vector<32x100xf32>
    %191 = arith.addf %150, %190 : vector<32x100xf32>
    %cst_133 = arith.constant 0.000000e+00 : f32
    %192 = vector.broadcast %cst_133 : f32 to vector<32x36xf32>
    %c18 = arith.constant 18 : index
    %c0_134 = arith.constant 0 : index
    %c0_135 = arith.constant 0 : index
    %193 = vector.load %arg12[%c18, %c0_134, %c0_135] : memref<36x32x32xbf16, #tpu.memory_space<vmem>>, vector<1x32x32xbf16>
    %194 = vector.shape_cast %193 : vector<1x32x32xbf16> to vector<32x32xbf16>
    %cst_136 = arith.constant dense<0.000000e+00> : vector<32x36xf32>
    %195 = tpu.matmul %194, %100, %cst_136 {dimension_numbers = #tpu.dot_dimension_numbers<[1], [0], [0], [1], [0, 0, 1, 1], [], []>} : vector<32x32xbf16>, vector<32x36xbf16>, vector<32x36xf32> -> vector<32x36xf32>
    %196 = arith.addf %192, %195 : vector<32x36xf32>
    %c19 = arith.constant 19 : index
    %c0_137 = arith.constant 0 : index
    %c0_138 = arith.constant 0 : index
    %197 = vector.load %arg12[%c19, %c0_137, %c0_138] : memref<36x32x32xbf16, #tpu.memory_space<vmem>>, vector<1x32x32xbf16>
    %198 = vector.shape_cast %197 : vector<1x32x32xbf16> to vector<32x32xbf16>
    %cst_139 = arith.constant dense<0.000000e+00> : vector<32x36xf32>
    %199 = tpu.matmul %198, %101, %cst_139 {dimension_numbers = #tpu.dot_dimension_numbers<[1], [0], [0], [1], [0, 0, 1, 1], [], []>} : vector<32x32xbf16>, vector<32x36xbf16>, vector<32x36xf32> -> vector<32x36xf32>
    %200 = arith.addf %196, %199 : vector<32x36xf32>
    %c20 = arith.constant 20 : index
    %c0_140 = arith.constant 0 : index
    %c0_141 = arith.constant 0 : index
    %201 = vector.load %arg12[%c20, %c0_140, %c0_141] : memref<36x32x32xbf16, #tpu.memory_space<vmem>>, vector<1x32x32xbf16>
    %202 = vector.shape_cast %201 : vector<1x32x32xbf16> to vector<32x32xbf16>
    %cst_142 = arith.constant dense<0.000000e+00> : vector<32x36xf32>
    %203 = tpu.matmul %202, %102, %cst_142 {dimension_numbers = #tpu.dot_dimension_numbers<[1], [0], [0], [1], [0, 0, 1, 1], [], []>} : vector<32x32xbf16>, vector<32x36xbf16>, vector<32x36xf32> -> vector<32x36xf32>
    %204 = arith.addf %200, %203 : vector<32x36xf32>
    %c21 = arith.constant 21 : index
    %c0_143 = arith.constant 0 : index
    %c0_144 = arith.constant 0 : index
    %205 = vector.load %arg12[%c21, %c0_143, %c0_144] : memref<36x32x32xbf16, #tpu.memory_space<vmem>>, vector<1x32x32xbf16>
    %206 = vector.shape_cast %205 : vector<1x32x32xbf16> to vector<32x32xbf16>
    %cst_145 = arith.constant dense<0.000000e+00> : vector<32x36xf32>
    %207 = tpu.matmul %206, %103, %cst_145 {dimension_numbers = #tpu.dot_dimension_numbers<[1], [0], [0], [1], [0, 0, 1, 1], [], []>} : vector<32x32xbf16>, vector<32x36xbf16>, vector<32x36xf32> -> vector<32x36xf32>
    %208 = arith.addf %204, %207 : vector<32x36xf32>
    %c22 = arith.constant 22 : index
    %c0_146 = arith.constant 0 : index
    %c0_147 = arith.constant 0 : index
    %209 = vector.load %arg12[%c22, %c0_146, %c0_147] : memref<36x32x32xbf16, #tpu.memory_space<vmem>>, vector<1x32x32xbf16>
    %210 = vector.shape_cast %209 : vector<1x32x32xbf16> to vector<32x32xbf16>
    %cst_148 = arith.constant dense<0.000000e+00> : vector<32x36xf32>
    %211 = tpu.matmul %210, %104, %cst_148 {dimension_numbers = #tpu.dot_dimension_numbers<[1], [0], [0], [1], [0, 0, 1, 1], [], []>} : vector<32x32xbf16>, vector<32x36xbf16>, vector<32x36xf32> -> vector<32x36xf32>
    %212 = arith.addf %208, %211 : vector<32x36xf32>
    %c23 = arith.constant 23 : index
    %c0_149 = arith.constant 0 : index
    %c0_150 = arith.constant 0 : index
    %213 = vector.load %arg12[%c23, %c0_149, %c0_150] : memref<36x32x32xbf16, #tpu.memory_space<vmem>>, vector<1x32x32xbf16>
    %214 = vector.shape_cast %213 : vector<1x32x32xbf16> to vector<32x32xbf16>
    %cst_151 = arith.constant dense<0.000000e+00> : vector<32x36xf32>
    %215 = tpu.matmul %214, %105, %cst_151 {dimension_numbers = #tpu.dot_dimension_numbers<[1], [0], [0], [1], [0, 0, 1, 1], [], []>} : vector<32x32xbf16>, vector<32x36xbf16>, vector<32x36xf32> -> vector<32x36xf32>
    %216 = arith.addf %212, %215 : vector<32x36xf32>
    %c24 = arith.constant 24 : index
    %c0_152 = arith.constant 0 : index
    %c0_153 = arith.constant 0 : index
    %217 = vector.load %arg12[%c24, %c0_152, %c0_153] : memref<36x32x32xbf16, #tpu.memory_space<vmem>>, vector<1x32x32xbf16>
    %218 = vector.shape_cast %217 : vector<1x32x32xbf16> to vector<32x32xbf16>
    %cst_154 = arith.constant dense<0.000000e+00> : vector<32x36xf32>
    %219 = tpu.matmul %218, %106, %cst_154 {dimension_numbers = #tpu.dot_dimension_numbers<[1], [0], [0], [1], [0, 0, 1, 1], [], []>} : vector<32x32xbf16>, vector<32x36xbf16>, vector<32x36xf32> -> vector<32x36xf32>
    %220 = arith.addf %216, %219 : vector<32x36xf32>
    %c25 = arith.constant 25 : index
    %c0_155 = arith.constant 0 : index
    %c0_156 = arith.constant 0 : index
    %221 = vector.load %arg12[%c25, %c0_155, %c0_156] : memref<36x32x32xbf16, #tpu.memory_space<vmem>>, vector<1x32x32xbf16>
    %222 = vector.shape_cast %221 : vector<1x32x32xbf16> to vector<32x32xbf16>
    %cst_157 = arith.constant dense<0.000000e+00> : vector<32x36xf32>
    %223 = tpu.matmul %222, %107, %cst_157 {dimension_numbers = #tpu.dot_dimension_numbers<[1], [0], [0], [1], [0, 0, 1, 1], [], []>} : vector<32x32xbf16>, vector<32x36xbf16>, vector<32x36xf32> -> vector<32x36xf32>
    %224 = arith.addf %220, %223 : vector<32x36xf32>
    %c26 = arith.constant 26 : index
    %c0_158 = arith.constant 0 : index
    %c0_159 = arith.constant 0 : index
    %225 = vector.load %arg12[%c26, %c0_158, %c0_159] : memref<36x32x32xbf16, #tpu.memory_space<vmem>>, vector<1x32x32xbf16>
    %226 = vector.shape_cast %225 : vector<1x32x32xbf16> to vector<32x32xbf16>
    %cst_160 = arith.constant dense<0.000000e+00> : vector<32x36xf32>
    %227 = tpu.matmul %226, %108, %cst_160 {dimension_numbers = #tpu.dot_dimension_numbers<[1], [0], [0], [1], [0, 0, 1, 1], [], []>} : vector<32x32xbf16>, vector<32x36xbf16>, vector<32x36xf32> -> vector<32x36xf32>
    %228 = arith.addf %224, %227 : vector<32x36xf32>
    %c2_161 = arith.constant 2 : index
    %c0_162 = arith.constant 0 : index
    %c0_163 = arith.constant 0 : index
    %229 = vector.load %arg14[%c2_161, %c0_162, %c0_163] : memref<4x36x100xf32, #tpu.memory_space<vmem>>, vector<1x36x100xf32>
    %230 = vector.shape_cast %229 : vector<1x36x100xf32> to vector<36x100xf32>
    %cst_164 = arith.constant dense<0.000000e+00> : vector<32x100xf32>
    %231 = tpu.matmul %228, %230, %cst_164 {dimension_numbers = #tpu.dot_dimension_numbers<[1], [0], [0], [1], [0, 0, 1, 1], [], []>} : vector<32x36xf32>, vector<36x100xf32>, vector<32x100xf32> -> vector<32x100xf32>
    %232 = arith.addf %191, %231 : vector<32x100xf32>
    %cst_165 = arith.constant 0.000000e+00 : f32
    %233 = vector.broadcast %cst_165 : f32 to vector<32x36xf32>
    %c27 = arith.constant 27 : index
    %c0_166 = arith.constant 0 : index
    %c0_167 = arith.constant 0 : index
    %234 = vector.load %arg12[%c27, %c0_166, %c0_167] : memref<36x32x32xbf16, #tpu.memory_space<vmem>>, vector<1x32x32xbf16>
    %235 = vector.shape_cast %234 : vector<1x32x32xbf16> to vector<32x32xbf16>
    %cst_168 = arith.constant dense<0.000000e+00> : vector<32x36xf32>
    %236 = tpu.matmul %235, %100, %cst_168 {dimension_numbers = #tpu.dot_dimension_numbers<[1], [0], [0], [1], [0, 0, 1, 1], [], []>} : vector<32x32xbf16>, vector<32x36xbf16>, vector<32x36xf32> -> vector<32x36xf32>
    %237 = arith.addf %233, %236 : vector<32x36xf32>
    %c28 = arith.constant 28 : index
    %c0_169 = arith.constant 0 : index
    %c0_170 = arith.constant 0 : index
    %238 = vector.load %arg12[%c28, %c0_169, %c0_170] : memref<36x32x32xbf16, #tpu.memory_space<vmem>>, vector<1x32x32xbf16>
    %239 = vector.shape_cast %238 : vector<1x32x32xbf16> to vector<32x32xbf16>
    %cst_171 = arith.constant dense<0.000000e+00> : vector<32x36xf32>
    %240 = tpu.matmul %239, %101, %cst_171 {dimension_numbers = #tpu.dot_dimension_numbers<[1], [0], [0], [1], [0, 0, 1, 1], [], []>} : vector<32x32xbf16>, vector<32x36xbf16>, vector<32x36xf32> -> vector<32x36xf32>
    %241 = arith.addf %237, %240 : vector<32x36xf32>
    %c29 = arith.constant 29 : index
    %c0_172 = arith.constant 0 : index
    %c0_173 = arith.constant 0 : index
    %242 = vector.load %arg12[%c29, %c0_172, %c0_173] : memref<36x32x32xbf16, #tpu.memory_space<vmem>>, vector<1x32x32xbf16>
    %243 = vector.shape_cast %242 : vector<1x32x32xbf16> to vector<32x32xbf16>
    %cst_174 = arith.constant dense<0.000000e+00> : vector<32x36xf32>
    %244 = tpu.matmul %243, %102, %cst_174 {dimension_numbers = #tpu.dot_dimension_numbers<[1], [0], [0], [1], [0, 0, 1, 1], [], []>} : vector<32x32xbf16>, vector<32x36xbf16>, vector<32x36xf32> -> vector<32x36xf32>
    %245 = arith.addf %241, %244 : vector<32x36xf32>
    %c30 = arith.constant 30 : index
    %c0_175 = arith.constant 0 : index
    %c0_176 = arith.constant 0 : index
    %246 = vector.load %arg12[%c30, %c0_175, %c0_176] : memref<36x32x32xbf16, #tpu.memory_space<vmem>>, vector<1x32x32xbf16>
    %247 = vector.shape_cast %246 : vector<1x32x32xbf16> to vector<32x32xbf16>
    %cst_177 = arith.constant dense<0.000000e+00> : vector<32x36xf32>
    %248 = tpu.matmul %247, %103, %cst_177 {dimension_numbers = #tpu.dot_dimension_numbers<[1], [0], [0], [1], [0, 0, 1, 1], [], []>} : vector<32x32xbf16>, vector<32x36xbf16>, vector<32x36xf32> -> vector<32x36xf32>
    %249 = arith.addf %245, %248 : vector<32x36xf32>
    %c31 = arith.constant 31 : index
    %c0_178 = arith.constant 0 : index
    %c0_179 = arith.constant 0 : index
    %250 = vector.load %arg12[%c31, %c0_178, %c0_179] : memref<36x32x32xbf16, #tpu.memory_space<vmem>>, vector<1x32x32xbf16>
    %251 = vector.shape_cast %250 : vector<1x32x32xbf16> to vector<32x32xbf16>
    %cst_180 = arith.constant dense<0.000000e+00> : vector<32x36xf32>
    %252 = tpu.matmul %251, %104, %cst_180 {dimension_numbers = #tpu.dot_dimension_numbers<[1], [0], [0], [1], [0, 0, 1, 1], [], []>} : vector<32x32xbf16>, vector<32x36xbf16>, vector<32x36xf32> -> vector<32x36xf32>
    %253 = arith.addf %249, %252 : vector<32x36xf32>
    %c32 = arith.constant 32 : index
    %c0_181 = arith.constant 0 : index
    %c0_182 = arith.constant 0 : index
    %254 = vector.load %arg12[%c32, %c0_181, %c0_182] : memref<36x32x32xbf16, #tpu.memory_space<vmem>>, vector<1x32x32xbf16>
    %255 = vector.shape_cast %254 : vector<1x32x32xbf16> to vector<32x32xbf16>
    %cst_183 = arith.constant dense<0.000000e+00> : vector<32x36xf32>
    %256 = tpu.matmul %255, %105, %cst_183 {dimension_numbers = #tpu.dot_dimension_numbers<[1], [0], [0], [1], [0, 0, 1, 1], [], []>} : vector<32x32xbf16>, vector<32x36xbf16>, vector<32x36xf32> -> vector<32x36xf32>
    %257 = arith.addf %253, %256 : vector<32x36xf32>
    %c33 = arith.constant 33 : index
    %c0_184 = arith.constant 0 : index
    %c0_185 = arith.constant 0 : index
    %258 = vector.load %arg12[%c33, %c0_184, %c0_185] : memref<36x32x32xbf16, #tpu.memory_space<vmem>>, vector<1x32x32xbf16>
    %259 = vector.shape_cast %258 : vector<1x32x32xbf16> to vector<32x32xbf16>
    %cst_186 = arith.constant dense<0.000000e+00> : vector<32x36xf32>
    %260 = tpu.matmul %259, %106, %cst_186 {dimension_numbers = #tpu.dot_dimension_numbers<[1], [0], [0], [1], [0, 0, 1, 1], [], []>} : vector<32x32xbf16>, vector<32x36xbf16>, vector<32x36xf32> -> vector<32x36xf32>
    %261 = arith.addf %257, %260 : vector<32x36xf32>
    %c34 = arith.constant 34 : index
    %c0_187 = arith.constant 0 : index
    %c0_188 = arith.constant 0 : index
    %262 = vector.load %arg12[%c34, %c0_187, %c0_188] : memref<36x32x32xbf16, #tpu.memory_space<vmem>>, vector<1x32x32xbf16>
    %263 = vector.shape_cast %262 : vector<1x32x32xbf16> to vector<32x32xbf16>
    %cst_189 = arith.constant dense<0.000000e+00> : vector<32x36xf32>
    %264 = tpu.matmul %263, %107, %cst_189 {dimension_numbers = #tpu.dot_dimension_numbers<[1], [0], [0], [1], [0, 0, 1, 1], [], []>} : vector<32x32xbf16>, vector<32x36xbf16>, vector<32x36xf32> -> vector<32x36xf32>
    %265 = arith.addf %261, %264 : vector<32x36xf32>
    %c35 = arith.constant 35 : index
    %c0_190 = arith.constant 0 : index
    %c0_191 = arith.constant 0 : index
    %266 = vector.load %arg12[%c35, %c0_190, %c0_191] : memref<36x32x32xbf16, #tpu.memory_space<vmem>>, vector<1x32x32xbf16>
    %267 = vector.shape_cast %266 : vector<1x32x32xbf16> to vector<32x32xbf16>
    %cst_192 = arith.constant dense<0.000000e+00> : vector<32x36xf32>
    %268 = tpu.matmul %267, %108, %cst_192 {dimension_numbers = #tpu.dot_dimension_numbers<[1], [0], [0], [1], [0, 0, 1, 1], [], []>} : vector<32x32xbf16>, vector<32x36xbf16>, vector<32x36xf32> -> vector<32x36xf32>
    %269 = arith.addf %265, %268 : vector<32x36xf32>
    %c3_193 = arith.constant 3 : index
    %c0_194 = arith.constant 0 : index
    %c0_195 = arith.constant 0 : index
    %270 = vector.load %arg14[%c3_193, %c0_194, %c0_195] : memref<4x36x100xf32, #tpu.memory_space<vmem>>, vector<1x36x100xf32>
    %271 = vector.shape_cast %270 : vector<1x36x100xf32> to vector<36x100xf32>
    %cst_196 = arith.constant dense<0.000000e+00> : vector<32x100xf32>
    %272 = tpu.matmul %269, %271, %cst_196 {dimension_numbers = #tpu.dot_dimension_numbers<[1], [0], [0], [1], [0, 0, 1, 1], [], []>} : vector<32x36xf32>, vector<36x100xf32>, vector<32x100xf32> -> vector<32x100xf32>
    %273 = arith.addf %232, %272 : vector<32x100xf32>
    %c0_197 = arith.constant 0 : index
    %c0_198 = arith.constant 0 : index
    %274 = vector.load %arg13[%c0_197, %c0_198] : memref<32x32xf32, #tpu.memory_space<vmem>>, vector<32x32xf32>
    %275 = arith.mulf %94, %94 : vector<32x1xf32>
    %cst_199 = arith.constant dense<0.000000e+00> : vector<32x1xf32>
    %276 = tpu.matmul %274, %275, %cst_199 {dimension_numbers = #tpu.dot_dimension_numbers<[1], [0], [0], [1], [0, 0, 1, 1], [], []>} : vector<32x32xf32>, vector<32x1xf32>, vector<32x1xf32> -> vector<32x1xf32>
    %cst_200 = arith.constant 9.99999993E-9 : f32
    %277 = vector.broadcast %cst_200 : f32 to vector<32x1xf32>
    %278 = arith.addf %276, %277 : vector<32x1xf32>
    %279 = math.rsqrt %278 : vector<32x1xf32>
    %280 = vector.broadcast %279 : vector<32x1xf32> to vector<32x100xf32>
    %281 = arith.mulf %273, %280 : vector<32x100xf32>
    %c0_201 = arith.constant 0 : index
    %c0_202 = arith.constant 0 : index
    %282 = vector.load %arg15[%c0_201, %c0_202] : memref<1x100xf32, #tpu.memory_space<vmem>>, vector<1x100xf32>
    %283 = vector.broadcast %282 : vector<1x100xf32> to vector<32x100xf32>
    %284 = arith.addf %281, %283 : vector<32x100xf32>
    %c0_203 = arith.constant 0 : index
    %c0_204 = arith.constant 0 : index
    %285 = vector.load %arg16[%c0_203, %c0_204] : memref<32x1xf32, #tpu.memory_space<vmem>>, vector<32x1xf32>
    %286 = vector.broadcast %285 : vector<32x1xf32> to vector<32x100xf32>
    %287 = arith.addf %284, %286 : vector<32x100xf32>
    %cst_205 = arith.constant 0.000000e+00 : f32
    %288 = vector.broadcast %cst_205 : f32 to vector<32x100xf32>
    %289 = arith.cmpf oge, %287, %288 : vector<32x100xf32>
    %cst_206 = arith.constant 2.000000e-01 : f32
    %290 = vector.broadcast %cst_206 : f32 to vector<32x100xf32>
    %291 = arith.mulf %290, %287 : vector<32x100xf32>
    %292 = arith.select %289, %287, %291 : vector<32x100xi1>, vector<32x100xf32>
    %cst_207 = arith.constant 1.41421354 : f32
    %293 = vector.broadcast %cst_207 : f32 to vector<32x100xf32>
    %294 = arith.mulf %292, %293 : vector<32x100xf32>
    %c0_208 = arith.constant 0 : index
    %c0_209 = arith.constant 0 : index
    %295 = vector.load %arg23[%c0_208, %c0_209] : memref<1x100xf32, #tpu.memory_space<vmem>>, vector<1x100xf32>
    %296 = vector.broadcast %295 : vector<1x100xf32> to vector<32x100xf32>
    %297 = arith.mulf %294, %296 : vector<32x100xf32>
    %298 = vector.extract_strided_slice %5 {offsets = [96, 0], sizes = [32, 1], strides = [1, 1]} : vector<224x1xf32> to vector<32x1xf32>
    %299 = vector.broadcast %298 : vector<32x1xf32> to vector<32x100xf32>
    %300 = arith.mulf %297, %299 : vector<32x100xf32>
    %301 = arith.truncf %300 : vector<32x100xf32> to vector<32x100xbf16>
    %cst_210 = arith.constant 0.000000e+00 : bf16
    %302 = vector.broadcast %cst_210 : bf16 to vector<32x11xbf16>
    %303 = tpu.concatenate %302, %301, %302 in 1 : vector<32x11xbf16>, vector<32x100xbf16>, vector<32x11xbf16> -> vector<32x122xbf16>
    %304 = vector.extract_strided_slice %303 {offsets = [0, 0], sizes = [32, 100], strides = [1, 1]} : vector<32x122xbf16> to vector<32x100xbf16>
    %305 = vector.extract_strided_slice %303 {offsets = [0, 1], sizes = [32, 100], strides = [1, 1]} : vector<32x122xbf16> to vector<32x100xbf16>
    %306 = vector.extract_strided_slice %303 {offsets = [0, 2], sizes = [32, 100], strides = [1, 1]} : vector<32x122xbf16> to vector<32x100xbf16>
    %307 = vector.extract_strided_slice %303 {offsets = [0, 10], sizes = [32, 100], strides = [1, 1]} : vector<32x122xbf16> to vector<32x100xbf16>
    %308 = vector.extract_strided_slice %303 {offsets = [0, 11], sizes = [32, 100], strides = [1, 1]} : vector<32x122xbf16> to vector<32x100xbf16>
    %309 = vector.extract_strided_slice %303 {offsets = [0, 12], sizes = [32, 100], strides = [1, 1]} : vector<32x122xbf16> to vector<32x100xbf16>
    %310 = vector.extract_strided_slice %303 {offsets = [0, 20], sizes = [32, 100], strides = [1, 1]} : vector<32x122xbf16> to vector<32x100xbf16>
    %311 = vector.extract_strided_slice %303 {offsets = [0, 21], sizes = [32, 100], strides = [1, 1]} : vector<32x122xbf16> to vector<32x100xbf16>
    %312 = vector.extract_strided_slice %303 {offsets = [0, 22], sizes = [32, 100], strides = [1, 1]} : vector<32x122xbf16> to vector<32x100xbf16>
    %cst_211 = arith.constant 0.000000e+00 : f32
    %313 = vector.broadcast %cst_211 : f32 to vector<32x100xf32>
    %c0_212 = arith.constant 0 : index
    %c0_213 = arith.constant 0 : index
    %c0_214 = arith.constant 0 : index
    %314 = vector.load %arg17[%c0_212, %c0_213, %c0_214] : memref<9x32x32xbf16, #tpu.memory_space<vmem>>, vector<1x32x32xbf16>
    %315 = vector.shape_cast %314 : vector<1x32x32xbf16> to vector<32x32xbf16>
    %cst_215 = arith.constant dense<0.000000e+00> : vector<32x100xf32>
    %316 = tpu.matmul %315, %304, %cst_215 {dimension_numbers = #tpu.dot_dimension_numbers<[1], [0], [0], [1], [0, 0, 1, 1], [], []>} : vector<32x32xbf16>, vector<32x100xbf16>, vector<32x100xf32> -> vector<32x100xf32>
    %317 = arith.addf %313, %316 : vector<32x100xf32>
    %c1_216 = arith.constant 1 : index
    %c0_217 = arith.constant 0 : index
    %c0_218 = arith.constant 0 : index
    %318 = vector.load %arg17[%c1_216, %c0_217, %c0_218] : memref<9x32x32xbf16, #tpu.memory_space<vmem>>, vector<1x32x32xbf16>
    %319 = vector.shape_cast %318 : vector<1x32x32xbf16> to vector<32x32xbf16>
    %cst_219 = arith.constant dense<0.000000e+00> : vector<32x100xf32>
    %320 = tpu.matmul %319, %305, %cst_219 {dimension_numbers = #tpu.dot_dimension_numbers<[1], [0], [0], [1], [0, 0, 1, 1], [], []>} : vector<32x32xbf16>, vector<32x100xbf16>, vector<32x100xf32> -> vector<32x100xf32>
    %321 = arith.addf %317, %320 : vector<32x100xf32>
    %c2_220 = arith.constant 2 : index
    %c0_221 = arith.constant 0 : index
    %c0_222 = arith.constant 0 : index
    %322 = vector.load %arg17[%c2_220, %c0_221, %c0_222] : memref<9x32x32xbf16, #tpu.memory_space<vmem>>, vector<1x32x32xbf16>
    %323 = vector.shape_cast %322 : vector<1x32x32xbf16> to vector<32x32xbf16>
    %cst_223 = arith.constant dense<0.000000e+00> : vector<32x100xf32>
    %324 = tpu.matmul %323, %306, %cst_223 {dimension_numbers = #tpu.dot_dimension_numbers<[1], [0], [0], [1], [0, 0, 1, 1], [], []>} : vector<32x32xbf16>, vector<32x100xbf16>, vector<32x100xf32> -> vector<32x100xf32>
    %325 = arith.addf %321, %324 : vector<32x100xf32>
    %c3_224 = arith.constant 3 : index
    %c0_225 = arith.constant 0 : index
    %c0_226 = arith.constant 0 : index
    %326 = vector.load %arg17[%c3_224, %c0_225, %c0_226] : memref<9x32x32xbf16, #tpu.memory_space<vmem>>, vector<1x32x32xbf16>
    %327 = vector.shape_cast %326 : vector<1x32x32xbf16> to vector<32x32xbf16>
    %cst_227 = arith.constant dense<0.000000e+00> : vector<32x100xf32>
    %328 = tpu.matmul %327, %307, %cst_227 {dimension_numbers = #tpu.dot_dimension_numbers<[1], [0], [0], [1], [0, 0, 1, 1], [], []>} : vector<32x32xbf16>, vector<32x100xbf16>, vector<32x100xf32> -> vector<32x100xf32>
    %329 = arith.addf %325, %328 : vector<32x100xf32>
    %c4_228 = arith.constant 4 : index
    %c0_229 = arith.constant 0 : index
    %c0_230 = arith.constant 0 : index
    %330 = vector.load %arg17[%c4_228, %c0_229, %c0_230] : memref<9x32x32xbf16, #tpu.memory_space<vmem>>, vector<1x32x32xbf16>
    %331 = vector.shape_cast %330 : vector<1x32x32xbf16> to vector<32x32xbf16>
    %cst_231 = arith.constant dense<0.000000e+00> : vector<32x100xf32>
    %332 = tpu.matmul %331, %308, %cst_231 {dimension_numbers = #tpu.dot_dimension_numbers<[1], [0], [0], [1], [0, 0, 1, 1], [], []>} : vector<32x32xbf16>, vector<32x100xbf16>, vector<32x100xf32> -> vector<32x100xf32>
    %333 = arith.addf %329, %332 : vector<32x100xf32>
    %c5_232 = arith.constant 5 : index
    %c0_233 = arith.constant 0 : index
    %c0_234 = arith.constant 0 : index
    %334 = vector.load %arg17[%c5_232, %c0_233, %c0_234] : memref<9x32x32xbf16, #tpu.memory_space<vmem>>, vector<1x32x32xbf16>
    %335 = vector.shape_cast %334 : vector<1x32x32xbf16> to vector<32x32xbf16>
    %cst_235 = arith.constant dense<0.000000e+00> : vector<32x100xf32>
    %336 = tpu.matmul %335, %309, %cst_235 {dimension_numbers = #tpu.dot_dimension_numbers<[1], [0], [0], [1], [0, 0, 1, 1], [], []>} : vector<32x32xbf16>, vector<32x100xbf16>, vector<32x100xf32> -> vector<32x100xf32>
    %337 = arith.addf %333, %336 : vector<32x100xf32>
    %c6_236 = arith.constant 6 : index
    %c0_237 = arith.constant 0 : index
    %c0_238 = arith.constant 0 : index
    %338 = vector.load %arg17[%c6_236, %c0_237, %c0_238] : memref<9x32x32xbf16, #tpu.memory_space<vmem>>, vector<1x32x32xbf16>
    %339 = vector.shape_cast %338 : vector<1x32x32xbf16> to vector<32x32xbf16>
    %cst_239 = arith.constant dense<0.000000e+00> : vector<32x100xf32>
    %340 = tpu.matmul %339, %310, %cst_239 {dimension_numbers = #tpu.dot_dimension_numbers<[1], [0], [0], [1], [0, 0, 1, 1], [], []>} : vector<32x32xbf16>, vector<32x100xbf16>, vector<32x100xf32> -> vector<32x100xf32>
    %341 = arith.addf %337, %340 : vector<32x100xf32>
    %c7_240 = arith.constant 7 : index
    %c0_241 = arith.constant 0 : index
    %c0_242 = arith.constant 0 : index
    %342 = vector.load %arg17[%c7_240, %c0_241, %c0_242] : memref<9x32x32xbf16, #tpu.memory_space<vmem>>, vector<1x32x32xbf16>
    %343 = vector.shape_cast %342 : vector<1x32x32xbf16> to vector<32x32xbf16>
    %cst_243 = arith.constant dense<0.000000e+00> : vector<32x100xf32>
    %344 = tpu.matmul %343, %311, %cst_243 {dimension_numbers = #tpu.dot_dimension_numbers<[1], [0], [0], [1], [0, 0, 1, 1], [], []>} : vector<32x32xbf16>, vector<32x100xbf16>, vector<32x100xf32> -> vector<32x100xf32>
    %345 = arith.addf %341, %344 : vector<32x100xf32>
    %c8_244 = arith.constant 8 : index
    %c0_245 = arith.constant 0 : index
    %c0_246 = arith.constant 0 : index
    %346 = vector.load %arg17[%c8_244, %c0_245, %c0_246] : memref<9x32x32xbf16, #tpu.memory_space<vmem>>, vector<1x32x32xbf16>
    %347 = vector.shape_cast %346 : vector<1x32x32xbf16> to vector<32x32xbf16>
    %cst_247 = arith.constant dense<0.000000e+00> : vector<32x100xf32>
    %348 = tpu.matmul %347, %312, %cst_247 {dimension_numbers = #tpu.dot_dimension_numbers<[1], [0], [0], [1], [0, 0, 1, 1], [], []>} : vector<32x32xbf16>, vector<32x100xbf16>, vector<32x100xf32> -> vector<32x100xf32>
    %349 = arith.addf %345, %348 : vector<32x100xf32>
    %c0_248 = arith.constant 0 : index
    %c0_249 = arith.constant 0 : index
    %350 = vector.load %arg18[%c0_248, %c0_249] : memref<32x32xf32, #tpu.memory_space<vmem>>, vector<32x32xf32>
    %351 = arith.mulf %298, %298 : vector<32x1xf32>
    %cst_250 = arith.constant dense<0.000000e+00> : vector<32x1xf32>
    %352 = tpu.matmul %350, %351, %cst_250 {dimension_numbers = #tpu.dot_dimension_numbers<[1], [0], [0], [1], [0, 0, 1, 1], [], []>} : vector<32x32xf32>, vector<32x1xf32>, vector<32x1xf32> -> vector<32x1xf32>
    %cst_251 = arith.constant 9.99999993E-9 : f32
    %353 = vector.broadcast %cst_251 : f32 to vector<32x1xf32>
    %354 = arith.addf %352, %353 : vector<32x1xf32>
    %355 = math.rsqrt %354 : vector<32x1xf32>
    %356 = vector.broadcast %355 : vector<32x1xf32> to vector<32x100xf32>
    %357 = arith.mulf %349, %356 : vector<32x100xf32>
    %c0_252 = arith.constant 0 : index
    %c0_253 = arith.constant 0 : index
    %358 = vector.load %arg19[%c0_252, %c0_253] : memref<1x100xf32, #tpu.memory_space<vmem>>, vector<1x100xf32>
    %359 = vector.broadcast %358 : vector<1x100xf32> to vector<32x100xf32>
    %360 = arith.addf %357, %359 : vector<32x100xf32>
    %c0_254 = arith.constant 0 : index
    %c0_255 = arith.constant 0 : index
    %361 = vector.load %arg20[%c0_254, %c0_255] : memref<32x1xf32, #tpu.memory_space<vmem>>, vector<32x1xf32>
    %362 = vector.broadcast %361 : vector<32x1xf32> to vector<32x100xf32>
    %363 = arith.addf %360, %362 : vector<32x100xf32>
    %cst_256 = arith.constant 0.000000e+00 : f32
    %364 = vector.broadcast %cst_256 : f32 to vector<32x100xf32>
    %365 = arith.cmpf oge, %363, %364 : vector<32x100xf32>
    %cst_257 = arith.constant 2.000000e-01 : f32
    %366 = vector.broadcast %cst_257 : f32 to vector<32x100xf32>
    %367 = arith.mulf %366, %363 : vector<32x100xf32>
    %368 = arith.select %365, %363, %367 : vector<32x100xi1>, vector<32x100xf32>
    %cst_258 = arith.constant 1.41421354 : f32
    %369 = vector.broadcast %cst_258 : f32 to vector<32x100xf32>
    %370 = arith.mulf %368, %369 : vector<32x100xf32>
    %c0_259 = arith.constant 0 : index
    %c0_260 = arith.constant 0 : index
    %371 = vector.load %arg23[%c0_259, %c0_260] : memref<1x100xf32, #tpu.memory_space<vmem>>, vector<1x100xf32>
    %372 = vector.broadcast %371 : vector<1x100xf32> to vector<32x100xf32>
    %373 = arith.mulf %370, %372 : vector<32x100xf32>
    %c0_261 = arith.constant 0 : index
    %c0_262 = arith.constant 0 : index
    %374 = vector.load %arg24[%c0_261, %c0_262] : memref<36x100xf32, #tpu.memory_space<vmem>>, vector<36x100xf32>
    %cst_263 = arith.constant dense<0.000000e+00> : vector<3x100xf32>
    %375 = tpu.matmul %93, %374, %cst_263 {dimension_numbers = #tpu.dot_dimension_numbers<[1], [0], [0], [1], [0, 0, 1, 1], [], []>} : vector<3x36xf32>, vector<36x100xf32>, vector<3x100xf32> -> vector<3x100xf32>
    %376 = vector.extract_strided_slice %5 {offsets = [128, 0], sizes = [32, 1], strides = [1, 1]} : vector<224x1xf32> to vector<32x1xf32>
    %c0_264 = arith.constant 0 : index
    %c0_265 = arith.constant 0 : index
    %377 = vector.load %arg21[%c0_264, %c0_265] : memref<3x32xf32, #tpu.memory_space<vmem>>, vector<3x32xf32>
    %378 = vector.broadcast %376 : vector<32x1xf32> to vector<32x100xf32>
    %379 = arith.mulf %373, %378 : vector<32x100xf32>
    %cst_266 = arith.constant dense<0.000000e+00> : vector<3x100xf32>
    %380 = tpu.matmul %377, %379, %cst_266 {dimension_numbers = #tpu.dot_dimension_numbers<[1], [0], [0], [1], [0, 0, 1, 1], [], []>} : vector<3x32xf32>, vector<32x100xf32>, vector<3x100xf32> -> vector<3x100xf32>
    %c0_267 = arith.constant 0 : index
    %c0_268 = arith.constant 0 : index
    %381 = vector.load %arg22[%c0_267, %c0_268] : memref<3x1xf32, #tpu.memory_space<vmem>>, vector<3x1xf32>
    %382 = vector.broadcast %381 : vector<3x1xf32> to vector<3x100xf32>
    %383 = arith.addf %380, %382 : vector<3x100xf32>
    %c0_269 = arith.constant 0 : index
    %c0_270 = arith.constant 0 : index
    %384 = vector.load %arg23[%c0_269, %c0_270] : memref<1x100xf32, #tpu.memory_space<vmem>>, vector<1x100xf32>
    %385 = vector.broadcast %384 : vector<1x100xf32> to vector<3x100xf32>
    %386 = arith.mulf %383, %385 : vector<3x100xf32>
    %387 = arith.addf %375, %386 : vector<3x100xf32>
    %388 = vector.extract_strided_slice %5 {offsets = [160, 0], sizes = [32, 1], strides = [1, 1]} : vector<224x1xf32> to vector<32x1xf32>
    %389 = vector.broadcast %388 : vector<32x1xf32> to vector<32x100xf32>
    %390 = arith.mulf %373, %389 : vector<32x100xf32>
    %391 = arith.truncf %390 : vector<32x100xf32> to vector<32x100xbf16>
    %cst_271 = arith.constant 0.000000e+00 : bf16
    %392 = vector.broadcast %cst_271 : bf16 to vector<32x11xbf16>
    %393 = tpu.concatenate %392, %391, %392 in 1 : vector<32x11xbf16>, vector<32x100xbf16>, vector<32x11xbf16> -> vector<32x122xbf16>
    %394 = vector.extract_strided_slice %393 {offsets = [0, 0], sizes = [32, 100], strides = [1, 1]} : vector<32x122xbf16> to vector<32x100xbf16>
    %395 = vector.extract_strided_slice %393 {offsets = [0, 1], sizes = [32, 100], strides = [1, 1]} : vector<32x122xbf16> to vector<32x100xbf16>
    %396 = vector.extract_strided_slice %393 {offsets = [0, 2], sizes = [32, 100], strides = [1, 1]} : vector<32x122xbf16> to vector<32x100xbf16>
    %397 = vector.extract_strided_slice %393 {offsets = [0, 10], sizes = [32, 100], strides = [1, 1]} : vector<32x122xbf16> to vector<32x100xbf16>
    %398 = vector.extract_strided_slice %393 {offsets = [0, 11], sizes = [32, 100], strides = [1, 1]} : vector<32x122xbf16> to vector<32x100xbf16>
    %399 = vector.extract_strided_slice %393 {offsets = [0, 12], sizes = [32, 100], strides = [1, 1]} : vector<32x122xbf16> to vector<32x100xbf16>
    %400 = vector.extract_strided_slice %393 {offsets = [0, 20], sizes = [32, 100], strides = [1, 1]} : vector<32x122xbf16> to vector<32x100xbf16>
    %401 = vector.extract_strided_slice %393 {offsets = [0, 21], sizes = [32, 100], strides = [1, 1]} : vector<32x122xbf16> to vector<32x100xbf16>
    %402 = vector.extract_strided_slice %393 {offsets = [0, 22], sizes = [32, 100], strides = [1, 1]} : vector<32x122xbf16> to vector<32x100xbf16>
    %cst_272 = arith.constant 0.000000e+00 : f32
    %403 = vector.broadcast %cst_272 : f32 to vector<16x324xf32>
    %cst_273 = arith.constant 0.000000e+00 : f32
    %404 = vector.broadcast %cst_273 : f32 to vector<16x100xf32>
    %c0_274 = arith.constant 0 : index
    %c0_275 = arith.constant 0 : index
    %c0_276 = arith.constant 0 : index
    %405 = vector.load %arg25[%c0_274, %c0_275, %c0_276] : memref<36x16x32xbf16, #tpu.memory_space<vmem>>, vector<1x16x32xbf16>
    %406 = vector.shape_cast %405 : vector<1x16x32xbf16> to vector<16x32xbf16>
    %cst_277 = arith.constant dense<0.000000e+00> : vector<16x100xf32>
    %407 = tpu.matmul %406, %394, %cst_277 {dimension_numbers = #tpu.dot_dimension_numbers<[1], [0], [0], [1], [0, 0, 1, 1], [], []>} : vector<16x32xbf16>, vector<32x100xbf16>, vector<16x100xf32> -> vector<16x100xf32>
    %408 = arith.addf %404, %407 : vector<16x100xf32>
    %c1_278 = arith.constant 1 : index
    %c0_279 = arith.constant 0 : index
    %c0_280 = arith.constant 0 : index
    %409 = vector.load %arg25[%c1_278, %c0_279, %c0_280] : memref<36x16x32xbf16, #tpu.memory_space<vmem>>, vector<1x16x32xbf16>
    %410 = vector.shape_cast %409 : vector<1x16x32xbf16> to vector<16x32xbf16>
    %cst_281 = arith.constant dense<0.000000e+00> : vector<16x100xf32>
    %411 = tpu.matmul %410, %395, %cst_281 {dimension_numbers = #tpu.dot_dimension_numbers<[1], [0], [0], [1], [0, 0, 1, 1], [], []>} : vector<16x32xbf16>, vector<32x100xbf16>, vector<16x100xf32> -> vector<16x100xf32>
    %412 = arith.addf %408, %411 : vector<16x100xf32>
    %c2_282 = arith.constant 2 : index
    %c0_283 = arith.constant 0 : index
    %c0_284 = arith.constant 0 : index
    %413 = vector.load %arg25[%c2_282, %c0_283, %c0_284] : memref<36x16x32xbf16, #tpu.memory_space<vmem>>, vector<1x16x32xbf16>
    %414 = vector.shape_cast %413 : vector<1x16x32xbf16> to vector<16x32xbf16>
    %cst_285 = arith.constant dense<0.000000e+00> : vector<16x100xf32>
    %415 = tpu.matmul %414, %396, %cst_285 {dimension_numbers = #tpu.dot_dimension_numbers<[1], [0], [0], [1], [0, 0, 1, 1], [], []>} : vector<16x32xbf16>, vector<32x100xbf16>, vector<16x100xf32> -> vector<16x100xf32>
    %416 = arith.addf %412, %415 : vector<16x100xf32>
    %c3_286 = arith.constant 3 : index
    %c0_287 = arith.constant 0 : index
    %c0_288 = arith.constant 0 : index
    %417 = vector.load %arg25[%c3_286, %c0_287, %c0_288] : memref<36x16x32xbf16, #tpu.memory_space<vmem>>, vector<1x16x32xbf16>
    %418 = vector.shape_cast %417 : vector<1x16x32xbf16> to vector<16x32xbf16>
    %cst_289 = arith.constant dense<0.000000e+00> : vector<16x100xf32>
    %419 = tpu.matmul %418, %397, %cst_289 {dimension_numbers = #tpu.dot_dimension_numbers<[1], [0], [0], [1], [0, 0, 1, 1], [], []>} : vector<16x32xbf16>, vector<32x100xbf16>, vector<16x100xf32> -> vector<16x100xf32>
    %420 = arith.addf %416, %419 : vector<16x100xf32>
    %c4_290 = arith.constant 4 : index
    %c0_291 = arith.constant 0 : index
    %c0_292 = arith.constant 0 : index
    %421 = vector.load %arg25[%c4_290, %c0_291, %c0_292] : memref<36x16x32xbf16, #tpu.memory_space<vmem>>, vector<1x16x32xbf16>
    %422 = vector.shape_cast %421 : vector<1x16x32xbf16> to vector<16x32xbf16>
    %cst_293 = arith.constant dense<0.000000e+00> : vector<16x100xf32>
    %423 = tpu.matmul %422, %398, %cst_293 {dimension_numbers = #tpu.dot_dimension_numbers<[1], [0], [0], [1], [0, 0, 1, 1], [], []>} : vector<16x32xbf16>, vector<32x100xbf16>, vector<16x100xf32> -> vector<16x100xf32>
    %424 = arith.addf %420, %423 : vector<16x100xf32>
    %c5_294 = arith.constant 5 : index
    %c0_295 = arith.constant 0 : index
    %c0_296 = arith.constant 0 : index
    %425 = vector.load %arg25[%c5_294, %c0_295, %c0_296] : memref<36x16x32xbf16, #tpu.memory_space<vmem>>, vector<1x16x32xbf16>
    %426 = vector.shape_cast %425 : vector<1x16x32xbf16> to vector<16x32xbf16>
    %cst_297 = arith.constant dense<0.000000e+00> : vector<16x100xf32>
    %427 = tpu.matmul %426, %399, %cst_297 {dimension_numbers = #tpu.dot_dimension_numbers<[1], [0], [0], [1], [0, 0, 1, 1], [], []>} : vector<16x32xbf16>, vector<32x100xbf16>, vector<16x100xf32> -> vector<16x100xf32>
    %428 = arith.addf %424, %427 : vector<16x100xf32>
    %c6_298 = arith.constant 6 : index
    %c0_299 = arith.constant 0 : index
    %c0_300 = arith.constant 0 : index
    %429 = vector.load %arg25[%c6_298, %c0_299, %c0_300] : memref<36x16x32xbf16, #tpu.memory_space<vmem>>, vector<1x16x32xbf16>
    %430 = vector.shape_cast %429 : vector<1x16x32xbf16> to vector<16x32xbf16>
    %cst_301 = arith.constant dense<0.000000e+00> : vector<16x100xf32>
    %431 = tpu.matmul %430, %400, %cst_301 {dimension_numbers = #tpu.dot_dimension_numbers<[1], [0], [0], [1], [0, 0, 1, 1], [], []>} : vector<16x32xbf16>, vector<32x100xbf16>, vector<16x100xf32> -> vector<16x100xf32>
    %432 = arith.addf %428, %431 : vector<16x100xf32>
    %c7_302 = arith.constant 7 : index
    %c0_303 = arith.constant 0 : index
    %c0_304 = arith.constant 0 : index
    %433 = vector.load %arg25[%c7_302, %c0_303, %c0_304] : memref<36x16x32xbf16, #tpu.memory_space<vmem>>, vector<1x16x32xbf16>
    %434 = vector.shape_cast %433 : vector<1x16x32xbf16> to vector<16x32xbf16>
    %cst_305 = arith.constant dense<0.000000e+00> : vector<16x100xf32>
    %435 = tpu.matmul %434, %401, %cst_305 {dimension_numbers = #tpu.dot_dimension_numbers<[1], [0], [0], [1], [0, 0, 1, 1], [], []>} : vector<16x32xbf16>, vector<32x100xbf16>, vector<16x100xf32> -> vector<16x100xf32>
    %436 = arith.addf %432, %435 : vector<16x100xf32>
    %c8_306 = arith.constant 8 : index
    %c0_307 = arith.constant 0 : index
    %c0_308 = arith.constant 0 : index
    %437 = vector.load %arg25[%c8_306, %c0_307, %c0_308] : memref<36x16x32xbf16, #tpu.memory_space<vmem>>, vector<1x16x32xbf16>
    %438 = vector.shape_cast %437 : vector<1x16x32xbf16> to vector<16x32xbf16>
    %cst_309 = arith.constant dense<0.000000e+00> : vector<16x100xf32>
    %439 = tpu.matmul %438, %402, %cst_309 {dimension_numbers = #tpu.dot_dimension_numbers<[1], [0], [0], [1], [0, 0, 1, 1], [], []>} : vector<16x32xbf16>, vector<32x100xbf16>, vector<16x100xf32> -> vector<16x100xf32>
    %440 = arith.addf %436, %439 : vector<16x100xf32>
    %c0_310 = arith.constant 0 : index
    %c0_311 = arith.constant 0 : index
    %c0_312 = arith.constant 0 : index
    %441 = vector.load %arg27[%c0_310, %c0_311, %c0_312] : memref<4x100x324xf32, #tpu.memory_space<vmem>>, vector<1x100x324xf32>
    %442 = vector.shape_cast %441 : vector<1x100x324xf32> to vector<100x324xf32>
    %cst_313 = arith.constant dense<0.000000e+00> : vector<16x324xf32>
    %443 = tpu.matmul %440, %442, %cst_313 {dimension_numbers = #tpu.dot_dimension_numbers<[1], [0], [0], [1], [0, 0, 1, 1], [], []>} : vector<16x100xf32>, vector<100x324xf32>, vector<16x324xf32> -> vector<16x324xf32>
    %444 = arith.addf %403, %443 : vector<16x324xf32>
    %cst_314 = arith.constant 0.000000e+00 : f32
    %445 = vector.broadcast %cst_314 : f32 to vector<16x100xf32>
    %c9_315 = arith.constant 9 : index
    %c0_316 = arith.constant 0 : index
    %c0_317 = arith.constant 0 : index
    %446 = vector.load %arg25[%c9_315, %c0_316, %c0_317] : memref<36x16x32xbf16, #tpu.memory_space<vmem>>, vector<1x16x32xbf16>
    %447 = vector.shape_cast %446 : vector<1x16x32xbf16> to vector<16x32xbf16>
    %cst_318 = arith.constant dense<0.000000e+00> : vector<16x100xf32>
    %448 = tpu.matmul %447, %394, %cst_318 {dimension_numbers = #tpu.dot_dimension_numbers<[1], [0], [0], [1], [0, 0, 1, 1], [], []>} : vector<16x32xbf16>, vector<32x100xbf16>, vector<16x100xf32> -> vector<16x100xf32>
    %449 = arith.addf %445, %448 : vector<16x100xf32>
    %c10_319 = arith.constant 10 : index
    %c0_320 = arith.constant 0 : index
    %c0_321 = arith.constant 0 : index
    %450 = vector.load %arg25[%c10_319, %c0_320, %c0_321] : memref<36x16x32xbf16, #tpu.memory_space<vmem>>, vector<1x16x32xbf16>
    %451 = vector.shape_cast %450 : vector<1x16x32xbf16> to vector<16x32xbf16>
    %cst_322 = arith.constant dense<0.000000e+00> : vector<16x100xf32>
    %452 = tpu.matmul %451, %395, %cst_322 {dimension_numbers = #tpu.dot_dimension_numbers<[1], [0], [0], [1], [0, 0, 1, 1], [], []>} : vector<16x32xbf16>, vector<32x100xbf16>, vector<16x100xf32> -> vector<16x100xf32>
    %453 = arith.addf %449, %452 : vector<16x100xf32>
    %c11_323 = arith.constant 11 : index
    %c0_324 = arith.constant 0 : index
    %c0_325 = arith.constant 0 : index
    %454 = vector.load %arg25[%c11_323, %c0_324, %c0_325] : memref<36x16x32xbf16, #tpu.memory_space<vmem>>, vector<1x16x32xbf16>
    %455 = vector.shape_cast %454 : vector<1x16x32xbf16> to vector<16x32xbf16>
    %cst_326 = arith.constant dense<0.000000e+00> : vector<16x100xf32>
    %456 = tpu.matmul %455, %396, %cst_326 {dimension_numbers = #tpu.dot_dimension_numbers<[1], [0], [0], [1], [0, 0, 1, 1], [], []>} : vector<16x32xbf16>, vector<32x100xbf16>, vector<16x100xf32> -> vector<16x100xf32>
    %457 = arith.addf %453, %456 : vector<16x100xf32>
    %c12_327 = arith.constant 12 : index
    %c0_328 = arith.constant 0 : index
    %c0_329 = arith.constant 0 : index
    %458 = vector.load %arg25[%c12_327, %c0_328, %c0_329] : memref<36x16x32xbf16, #tpu.memory_space<vmem>>, vector<1x16x32xbf16>
    %459 = vector.shape_cast %458 : vector<1x16x32xbf16> to vector<16x32xbf16>
    %cst_330 = arith.constant dense<0.000000e+00> : vector<16x100xf32>
    %460 = tpu.matmul %459, %397, %cst_330 {dimension_numbers = #tpu.dot_dimension_numbers<[1], [0], [0], [1], [0, 0, 1, 1], [], []>} : vector<16x32xbf16>, vector<32x100xbf16>, vector<16x100xf32> -> vector<16x100xf32>
    %461 = arith.addf %457, %460 : vector<16x100xf32>
    %c13_331 = arith.constant 13 : index
    %c0_332 = arith.constant 0 : index
    %c0_333 = arith.constant 0 : index
    %462 = vector.load %arg25[%c13_331, %c0_332, %c0_333] : memref<36x16x32xbf16, #tpu.memory_space<vmem>>, vector<1x16x32xbf16>
    %463 = vector.shape_cast %462 : vector<1x16x32xbf16> to vector<16x32xbf16>
    %cst_334 = arith.constant dense<0.000000e+00> : vector<16x100xf32>
    %464 = tpu.matmul %463, %398, %cst_334 {dimension_numbers = #tpu.dot_dimension_numbers<[1], [0], [0], [1], [0, 0, 1, 1], [], []>} : vector<16x32xbf16>, vector<32x100xbf16>, vector<16x100xf32> -> vector<16x100xf32>
    %465 = arith.addf %461, %464 : vector<16x100xf32>
    %c14_335 = arith.constant 14 : index
    %c0_336 = arith.constant 0 : index
    %c0_337 = arith.constant 0 : index
    %466 = vector.load %arg25[%c14_335, %c0_336, %c0_337] : memref<36x16x32xbf16, #tpu.memory_space<vmem>>, vector<1x16x32xbf16>
    %467 = vector.shape_cast %466 : vector<1x16x32xbf16> to vector<16x32xbf16>
    %cst_338 = arith.constant dense<0.000000e+00> : vector<16x100xf32>
    %468 = tpu.matmul %467, %399, %cst_338 {dimension_numbers = #tpu.dot_dimension_numbers<[1], [0], [0], [1], [0, 0, 1, 1], [], []>} : vector<16x32xbf16>, vector<32x100xbf16>, vector<16x100xf32> -> vector<16x100xf32>
    %469 = arith.addf %465, %468 : vector<16x100xf32>
    %c15_339 = arith.constant 15 : index
    %c0_340 = arith.constant 0 : index
    %c0_341 = arith.constant 0 : index
    %470 = vector.load %arg25[%c15_339, %c0_340, %c0_341] : memref<36x16x32xbf16, #tpu.memory_space<vmem>>, vector<1x16x32xbf16>
    %471 = vector.shape_cast %470 : vector<1x16x32xbf16> to vector<16x32xbf16>
    %cst_342 = arith.constant dense<0.000000e+00> : vector<16x100xf32>
    %472 = tpu.matmul %471, %400, %cst_342 {dimension_numbers = #tpu.dot_dimension_numbers<[1], [0], [0], [1], [0, 0, 1, 1], [], []>} : vector<16x32xbf16>, vector<32x100xbf16>, vector<16x100xf32> -> vector<16x100xf32>
    %473 = arith.addf %469, %472 : vector<16x100xf32>
    %c16_343 = arith.constant 16 : index
    %c0_344 = arith.constant 0 : index
    %c0_345 = arith.constant 0 : index
    %474 = vector.load %arg25[%c16_343, %c0_344, %c0_345] : memref<36x16x32xbf16, #tpu.memory_space<vmem>>, vector<1x16x32xbf16>
    %475 = vector.shape_cast %474 : vector<1x16x32xbf16> to vector<16x32xbf16>
    %cst_346 = arith.constant dense<0.000000e+00> : vector<16x100xf32>
    %476 = tpu.matmul %475, %401, %cst_346 {dimension_numbers = #tpu.dot_dimension_numbers<[1], [0], [0], [1], [0, 0, 1, 1], [], []>} : vector<16x32xbf16>, vector<32x100xbf16>, vector<16x100xf32> -> vector<16x100xf32>
    %477 = arith.addf %473, %476 : vector<16x100xf32>
    %c17_347 = arith.constant 17 : index
    %c0_348 = arith.constant 0 : index
    %c0_349 = arith.constant 0 : index
    %478 = vector.load %arg25[%c17_347, %c0_348, %c0_349] : memref<36x16x32xbf16, #tpu.memory_space<vmem>>, vector<1x16x32xbf16>
    %479 = vector.shape_cast %478 : vector<1x16x32xbf16> to vector<16x32xbf16>
    %cst_350 = arith.constant dense<0.000000e+00> : vector<16x100xf32>
    %480 = tpu.matmul %479, %402, %cst_350 {dimension_numbers = #tpu.dot_dimension_numbers<[1], [0], [0], [1], [0, 0, 1, 1], [], []>} : vector<16x32xbf16>, vector<32x100xbf16>, vector<16x100xf32> -> vector<16x100xf32>
    %481 = arith.addf %477, %480 : vector<16x100xf32>
    %c1_351 = arith.constant 1 : index
    %c0_352 = arith.constant 0 : index
    %c0_353 = arith.constant 0 : index
    %482 = vector.load %arg27[%c1_351, %c0_352, %c0_353] : memref<4x100x324xf32, #tpu.memory_space<vmem>>, vector<1x100x324xf32>
    %483 = vector.shape_cast %482 : vector<1x100x324xf32> to vector<100x324xf32>
    %cst_354 = arith.constant dense<0.000000e+00> : vector<16x324xf32>
    %484 = tpu.matmul %481, %483, %cst_354 {dimension_numbers = #tpu.dot_dimension_numbers<[1], [0], [0], [1], [0, 0, 1, 1], [], []>} : vector<16x100xf32>, vector<100x324xf32>, vector<16x324xf32> -> vector<16x324xf32>
    %485 = arith.addf %444, %484 : vector<16x324xf32>
    %cst_355 = arith.constant 0.000000e+00 : f32
    %486 = vector.broadcast %cst_355 : f32 to vector<16x100xf32>
    %c18_356 = arith.constant 18 : index
    %c0_357 = arith.constant 0 : index
    %c0_358 = arith.constant 0 : index
    %487 = vector.load %arg25[%c18_356, %c0_357, %c0_358] : memref<36x16x32xbf16, #tpu.memory_space<vmem>>, vector<1x16x32xbf16>
    %488 = vector.shape_cast %487 : vector<1x16x32xbf16> to vector<16x32xbf16>
    %cst_359 = arith.constant dense<0.000000e+00> : vector<16x100xf32>
    %489 = tpu.matmul %488, %394, %cst_359 {dimension_numbers = #tpu.dot_dimension_numbers<[1], [0], [0], [1], [0, 0, 1, 1], [], []>} : vector<16x32xbf16>, vector<32x100xbf16>, vector<16x100xf32> -> vector<16x100xf32>
    %490 = arith.addf %486, %489 : vector<16x100xf32>
    %c19_360 = arith.constant 19 : index
    %c0_361 = arith.constant 0 : index
    %c0_362 = arith.constant 0 : index
    %491 = vector.load %arg25[%c19_360, %c0_361, %c0_362] : memref<36x16x32xbf16, #tpu.memory_space<vmem>>, vector<1x16x32xbf16>
    %492 = vector.shape_cast %491 : vector<1x16x32xbf16> to vector<16x32xbf16>
    %cst_363 = arith.constant dense<0.000000e+00> : vector<16x100xf32>
    %493 = tpu.matmul %492, %395, %cst_363 {dimension_numbers = #tpu.dot_dimension_numbers<[1], [0], [0], [1], [0, 0, 1, 1], [], []>} : vector<16x32xbf16>, vector<32x100xbf16>, vector<16x100xf32> -> vector<16x100xf32>
    %494 = arith.addf %490, %493 : vector<16x100xf32>
    %c20_364 = arith.constant 20 : index
    %c0_365 = arith.constant 0 : index
    %c0_366 = arith.constant 0 : index
    %495 = vector.load %arg25[%c20_364, %c0_365, %c0_366] : memref<36x16x32xbf16, #tpu.memory_space<vmem>>, vector<1x16x32xbf16>
    %496 = vector.shape_cast %495 : vector<1x16x32xbf16> to vector<16x32xbf16>
    %cst_367 = arith.constant dense<0.000000e+00> : vector<16x100xf32>
    %497 = tpu.matmul %496, %396, %cst_367 {dimension_numbers = #tpu.dot_dimension_numbers<[1], [0], [0], [1], [0, 0, 1, 1], [], []>} : vector<16x32xbf16>, vector<32x100xbf16>, vector<16x100xf32> -> vector<16x100xf32>
    %498 = arith.addf %494, %497 : vector<16x100xf32>
    %c21_368 = arith.constant 21 : index
    %c0_369 = arith.constant 0 : index
    %c0_370 = arith.constant 0 : index
    %499 = vector.load %arg25[%c21_368, %c0_369, %c0_370] : memref<36x16x32xbf16, #tpu.memory_space<vmem>>, vector<1x16x32xbf16>
    %500 = vector.shape_cast %499 : vector<1x16x32xbf16> to vector<16x32xbf16>
    %cst_371 = arith.constant dense<0.000000e+00> : vector<16x100xf32>
    %501 = tpu.matmul %500, %397, %cst_371 {dimension_numbers = #tpu.dot_dimension_numbers<[1], [0], [0], [1], [0, 0, 1, 1], [], []>} : vector<16x32xbf16>, vector<32x100xbf16>, vector<16x100xf32> -> vector<16x100xf32>
    %502 = arith.addf %498, %501 : vector<16x100xf32>
    %c22_372 = arith.constant 22 : index
    %c0_373 = arith.constant 0 : index
    %c0_374 = arith.constant 0 : index
    %503 = vector.load %arg25[%c22_372, %c0_373, %c0_374] : memref<36x16x32xbf16, #tpu.memory_space<vmem>>, vector<1x16x32xbf16>
    %504 = vector.shape_cast %503 : vector<1x16x32xbf16> to vector<16x32xbf16>
    %cst_375 = arith.constant dense<0.000000e+00> : vector<16x100xf32>
    %505 = tpu.matmul %504, %398, %cst_375 {dimension_numbers = #tpu.dot_dimension_numbers<[1], [0], [0], [1], [0, 0, 1, 1], [], []>} : vector<16x32xbf16>, vector<32x100xbf16>, vector<16x100xf32> -> vector<16x100xf32>
    %506 = arith.addf %502, %505 : vector<16x100xf32>
    %c23_376 = arith.constant 23 : index
    %c0_377 = arith.constant 0 : index
    %c0_378 = arith.constant 0 : index
    %507 = vector.load %arg25[%c23_376, %c0_377, %c0_378] : memref<36x16x32xbf16, #tpu.memory_space<vmem>>, vector<1x16x32xbf16>
    %508 = vector.shape_cast %507 : vector<1x16x32xbf16> to vector<16x32xbf16>
    %cst_379 = arith.constant dense<0.000000e+00> : vector<16x100xf32>
    %509 = tpu.matmul %508, %399, %cst_379 {dimension_numbers = #tpu.dot_dimension_numbers<[1], [0], [0], [1], [0, 0, 1, 1], [], []>} : vector<16x32xbf16>, vector<32x100xbf16>, vector<16x100xf32> -> vector<16x100xf32>
    %510 = arith.addf %506, %509 : vector<16x100xf32>
    %c24_380 = arith.constant 24 : index
    %c0_381 = arith.constant 0 : index
    %c0_382 = arith.constant 0 : index
    %511 = vector.load %arg25[%c24_380, %c0_381, %c0_382] : memref<36x16x32xbf16, #tpu.memory_space<vmem>>, vector<1x16x32xbf16>
    %512 = vector.shape_cast %511 : vector<1x16x32xbf16> to vector<16x32xbf16>
    %cst_383 = arith.constant dense<0.000000e+00> : vector<16x100xf32>
    %513 = tpu.matmul %512, %400, %cst_383 {dimension_numbers = #tpu.dot_dimension_numbers<[1], [0], [0], [1], [0, 0, 1, 1], [], []>} : vector<16x32xbf16>, vector<32x100xbf16>, vector<16x100xf32> -> vector<16x100xf32>
    %514 = arith.addf %510, %513 : vector<16x100xf32>
    %c25_384 = arith.constant 25 : index
    %c0_385 = arith.constant 0 : index
    %c0_386 = arith.constant 0 : index
    %515 = vector.load %arg25[%c25_384, %c0_385, %c0_386] : memref<36x16x32xbf16, #tpu.memory_space<vmem>>, vector<1x16x32xbf16>
    %516 = vector.shape_cast %515 : vector<1x16x32xbf16> to vector<16x32xbf16>
    %cst_387 = arith.constant dense<0.000000e+00> : vector<16x100xf32>
    %517 = tpu.matmul %516, %401, %cst_387 {dimension_numbers = #tpu.dot_dimension_numbers<[1], [0], [0], [1], [0, 0, 1, 1], [], []>} : vector<16x32xbf16>, vector<32x100xbf16>, vector<16x100xf32> -> vector<16x100xf32>
    %518 = arith.addf %514, %517 : vector<16x100xf32>
    %c26_388 = arith.constant 26 : index
    %c0_389 = arith.constant 0 : index
    %c0_390 = arith.constant 0 : index
    %519 = vector.load %arg25[%c26_388, %c0_389, %c0_390] : memref<36x16x32xbf16, #tpu.memory_space<vmem>>, vector<1x16x32xbf16>
    %520 = vector.shape_cast %519 : vector<1x16x32xbf16> to vector<16x32xbf16>
    %cst_391 = arith.constant dense<0.000000e+00> : vector<16x100xf32>
    %521 = tpu.matmul %520, %402, %cst_391 {dimension_numbers = #tpu.dot_dimension_numbers<[1], [0], [0], [1], [0, 0, 1, 1], [], []>} : vector<16x32xbf16>, vector<32x100xbf16>, vector<16x100xf32> -> vector<16x100xf32>
    %522 = arith.addf %518, %521 : vector<16x100xf32>
    %c2_392 = arith.constant 2 : index
    %c0_393 = arith.constant 0 : index
    %c0_394 = arith.constant 0 : index
    %523 = vector.load %arg27[%c2_392, %c0_393, %c0_394] : memref<4x100x324xf32, #tpu.memory_space<vmem>>, vector<1x100x324xf32>
    %524 = vector.shape_cast %523 : vector<1x100x324xf32> to vector<100x324xf32>
    %cst_395 = arith.constant dense<0.000000e+00> : vector<16x324xf32>
    %525 = tpu.matmul %522, %524, %cst_395 {dimension_numbers = #tpu.dot_dimension_numbers<[1], [0], [0], [1], [0, 0, 1, 1], [], []>} : vector<16x100xf32>, vector<100x324xf32>, vector<16x324xf32> -> vector<16x324xf32>
    %526 = arith.addf %485, %525 : vector<16x324xf32>
    %cst_396 = arith.constant 0.000000e+00 : f32
    %527 = vector.broadcast %cst_396 : f32 to vector<16x100xf32>
    %c27_397 = arith.constant 27 : index
    %c0_398 = arith.constant 0 : index
    %c0_399 = arith.constant 0 : index
    %528 = vector.load %arg25[%c27_397, %c0_398, %c0_399] : memref<36x16x32xbf16, #tpu.memory_space<vmem>>, vector<1x16x32xbf16>
    %529 = vector.shape_cast %528 : vector<1x16x32xbf16> to vector<16x32xbf16>
    %cst_400 = arith.constant dense<0.000000e+00> : vector<16x100xf32>
    %530 = tpu.matmul %529, %394, %cst_400 {dimension_numbers = #tpu.dot_dimension_numbers<[1], [0], [0], [1], [0, 0, 1, 1], [], []>} : vector<16x32xbf16>, vector<32x100xbf16>, vector<16x100xf32> -> vector<16x100xf32>
    %531 = arith.addf %527, %530 : vector<16x100xf32>
    %c28_401 = arith.constant 28 : index
    %c0_402 = arith.constant 0 : index
    %c0_403 = arith.constant 0 : index
    %532 = vector.load %arg25[%c28_401, %c0_402, %c0_403] : memref<36x16x32xbf16, #tpu.memory_space<vmem>>, vector<1x16x32xbf16>
    %533 = vector.shape_cast %532 : vector<1x16x32xbf16> to vector<16x32xbf16>
    %cst_404 = arith.constant dense<0.000000e+00> : vector<16x100xf32>
    %534 = tpu.matmul %533, %395, %cst_404 {dimension_numbers = #tpu.dot_dimension_numbers<[1], [0], [0], [1], [0, 0, 1, 1], [], []>} : vector<16x32xbf16>, vector<32x100xbf16>, vector<16x100xf32> -> vector<16x100xf32>
    %535 = arith.addf %531, %534 : vector<16x100xf32>
    %c29_405 = arith.constant 29 : index
    %c0_406 = arith.constant 0 : index
    %c0_407 = arith.constant 0 : index
    %536 = vector.load %arg25[%c29_405, %c0_406, %c0_407] : memref<36x16x32xbf16, #tpu.memory_space<vmem>>, vector<1x16x32xbf16>
    %537 = vector.shape_cast %536 : vector<1x16x32xbf16> to vector<16x32xbf16>
    %cst_408 = arith.constant dense<0.000000e+00> : vector<16x100xf32>
    %538 = tpu.matmul %537, %396, %cst_408 {dimension_numbers = #tpu.dot_dimension_numbers<[1], [0], [0], [1], [0, 0, 1, 1], [], []>} : vector<16x32xbf16>, vector<32x100xbf16>, vector<16x100xf32> -> vector<16x100xf32>
    %539 = arith.addf %535, %538 : vector<16x100xf32>
    %c30_409 = arith.constant 30 : index
    %c0_410 = arith.constant 0 : index
    %c0_411 = arith.constant 0 : index
    %540 = vector.load %arg25[%c30_409, %c0_410, %c0_411] : memref<36x16x32xbf16, #tpu.memory_space<vmem>>, vector<1x16x32xbf16>
    %541 = vector.shape_cast %540 : vector<1x16x32xbf16> to vector<16x32xbf16>
    %cst_412 = arith.constant dense<0.000000e+00> : vector<16x100xf32>
    %542 = tpu.matmul %541, %397, %cst_412 {dimension_numbers = #tpu.dot_dimension_numbers<[1], [0], [0], [1], [0, 0, 1, 1], [], []>} : vector<16x32xbf16>, vector<32x100xbf16>, vector<16x100xf32> -> vector<16x100xf32>
    %543 = arith.addf %539, %542 : vector<16x100xf32>
    %c31_413 = arith.constant 31 : index
    %c0_414 = arith.constant 0 : index
    %c0_415 = arith.constant 0 : index
    %544 = vector.load %arg25[%c31_413, %c0_414, %c0_415] : memref<36x16x32xbf16, #tpu.memory_space<vmem>>, vector<1x16x32xbf16>
    %545 = vector.shape_cast %544 : vector<1x16x32xbf16> to vector<16x32xbf16>
    %cst_416 = arith.constant dense<0.000000e+00> : vector<16x100xf32>
    %546 = tpu.matmul %545, %398, %cst_416 {dimension_numbers = #tpu.dot_dimension_numbers<[1], [0], [0], [1], [0, 0, 1, 1], [], []>} : vector<16x32xbf16>, vector<32x100xbf16>, vector<16x100xf32> -> vector<16x100xf32>
    %547 = arith.addf %543, %546 : vector<16x100xf32>
    %c32_417 = arith.constant 32 : index
    %c0_418 = arith.constant 0 : index
    %c0_419 = arith.constant 0 : index
    %548 = vector.load %arg25[%c32_417, %c0_418, %c0_419] : memref<36x16x32xbf16, #tpu.memory_space<vmem>>, vector<1x16x32xbf16>
    %549 = vector.shape_cast %548 : vector<1x16x32xbf16> to vector<16x32xbf16>
    %cst_420 = arith.constant dense<0.000000e+00> : vector<16x100xf32>
    %550 = tpu.matmul %549, %399, %cst_420 {dimension_numbers = #tpu.dot_dimension_numbers<[1], [0], [0], [1], [0, 0, 1, 1], [], []>} : vector<16x32xbf16>, vector<32x100xbf16>, vector<16x100xf32> -> vector<16x100xf32>
    %551 = arith.addf %547, %550 : vector<16x100xf32>
    %c33_421 = arith.constant 33 : index
    %c0_422 = arith.constant 0 : index
    %c0_423 = arith.constant 0 : index
    %552 = vector.load %arg25[%c33_421, %c0_422, %c0_423] : memref<36x16x32xbf16, #tpu.memory_space<vmem>>, vector<1x16x32xbf16>
    %553 = vector.shape_cast %552 : vector<1x16x32xbf16> to vector<16x32xbf16>
    %cst_424 = arith.constant dense<0.000000e+00> : vector<16x100xf32>
    %554 = tpu.matmul %553, %400, %cst_424 {dimension_numbers = #tpu.dot_dimension_numbers<[1], [0], [0], [1], [0, 0, 1, 1], [], []>} : vector<16x32xbf16>, vector<32x100xbf16>, vector<16x100xf32> -> vector<16x100xf32>
    %555 = arith.addf %551, %554 : vector<16x100xf32>
    %c34_425 = arith.constant 34 : index
    %c0_426 = arith.constant 0 : index
    %c0_427 = arith.constant 0 : index
    %556 = vector.load %arg25[%c34_425, %c0_426, %c0_427] : memref<36x16x32xbf16, #tpu.memory_space<vmem>>, vector<1x16x32xbf16>
    %557 = vector.shape_cast %556 : vector<1x16x32xbf16> to vector<16x32xbf16>
    %cst_428 = arith.constant dense<0.000000e+00> : vector<16x100xf32>
    %558 = tpu.matmul %557, %401, %cst_428 {dimension_numbers = #tpu.dot_dimension_numbers<[1], [0], [0], [1], [0, 0, 1, 1], [], []>} : vector<16x32xbf16>, vector<32x100xbf16>, vector<16x100xf32> -> vector<16x100xf32>
    %559 = arith.addf %555, %558 : vector<16x100xf32>
    %c35_429 = arith.constant 35 : index
    %c0_430 = arith.constant 0 : index
    %c0_431 = arith.constant 0 : index
    %560 = vector.load %arg25[%c35_429, %c0_430, %c0_431] : memref<36x16x32xbf16, #tpu.memory_space<vmem>>, vector<1x16x32xbf16>
    %561 = vector.shape_cast %560 : vector<1x16x32xbf16> to vector<16x32xbf16>
    %cst_432 = arith.constant dense<0.000000e+00> : vector<16x100xf32>
    %562 = tpu.matmul %561, %402, %cst_432 {dimension_numbers = #tpu.dot_dimension_numbers<[1], [0], [0], [1], [0, 0, 1, 1], [], []>} : vector<16x32xbf16>, vector<32x100xbf16>, vector<16x100xf32> -> vector<16x100xf32>
    %563 = arith.addf %559, %562 : vector<16x100xf32>
    %c3_433 = arith.constant 3 : index
    %c0_434 = arith.constant 0 : index
    %c0_435 = arith.constant 0 : index
    %564 = vector.load %arg27[%c3_433, %c0_434, %c0_435] : memref<4x100x324xf32, #tpu.memory_space<vmem>>, vector<1x100x324xf32>
    %565 = vector.shape_cast %564 : vector<1x100x324xf32> to vector<100x324xf32>
    %cst_436 = arith.constant dense<0.000000e+00> : vector<16x324xf32>
    %566 = tpu.matmul %563, %565, %cst_436 {dimension_numbers = #tpu.dot_dimension_numbers<[1], [0], [0], [1], [0, 0, 1, 1], [], []>} : vector<16x100xf32>, vector<100x324xf32>, vector<16x324xf32> -> vector<16x324xf32>
    %567 = arith.addf %526, %566 : vector<16x324xf32>
    %c0_437 = arith.constant 0 : index
    %c0_438 = arith.constant 0 : index
    %568 = vector.load %arg26[%c0_437, %c0_438] : memref<16x32xf32, #tpu.memory_space<vmem>>, vector<16x32xf32>
    %569 = arith.mulf %388, %388 : vector<32x1xf32>
    %cst_439 = arith.constant dense<0.000000e+00> : vector<16x1xf32>
    %570 = tpu.matmul %568, %569, %cst_439 {dimension_numbers = #tpu.dot_dimension_numbers<[1], [0], [0], [1], [0, 0, 1, 1], [], []>} : vector<16x32xf32>, vector<32x1xf32>, vector<16x1xf32> -> vector<16x1xf32>
    %cst_440 = arith.constant 9.99999993E-9 : f32
    %571 = vector.broadcast %cst_440 : f32 to vector<16x1xf32>
    %572 = arith.addf %570, %571 : vector<16x1xf32>
    %573 = math.rsqrt %572 : vector<16x1xf32>
    %574 = vector.broadcast %573 : vector<16x1xf32> to vector<16x324xf32>
    %575 = arith.mulf %567, %574 : vector<16x324xf32>
    %c0_441 = arith.constant 0 : index
    %c0_442 = arith.constant 0 : index
    %576 = vector.load %arg28[%c0_441, %c0_442] : memref<1x324xf32, #tpu.memory_space<vmem>>, vector<1x324xf32>
    %577 = vector.broadcast %576 : vector<1x324xf32> to vector<16x324xf32>
    %578 = arith.addf %575, %577 : vector<16x324xf32>
    %c0_443 = arith.constant 0 : index
    %c0_444 = arith.constant 0 : index
    %579 = vector.load %arg29[%c0_443, %c0_444] : memref<16x1xf32, #tpu.memory_space<vmem>>, vector<16x1xf32>
    %580 = vector.broadcast %579 : vector<16x1xf32> to vector<16x324xf32>
    %581 = arith.addf %578, %580 : vector<16x324xf32>
    %cst_445 = arith.constant 0.000000e+00 : f32
    %582 = vector.broadcast %cst_445 : f32 to vector<16x324xf32>
    %583 = arith.cmpf oge, %581, %582 : vector<16x324xf32>
    %cst_446 = arith.constant 2.000000e-01 : f32
    %584 = vector.broadcast %cst_446 : f32 to vector<16x324xf32>
    %585 = arith.mulf %584, %581 : vector<16x324xf32>
    %586 = arith.select %583, %581, %585 : vector<16x324xi1>, vector<16x324xf32>
    %cst_447 = arith.constant 1.41421354 : f32
    %587 = vector.broadcast %cst_447 : f32 to vector<16x324xf32>
    %588 = arith.mulf %586, %587 : vector<16x324xf32>
    %c0_448 = arith.constant 0 : index
    %c0_449 = arith.constant 0 : index
    %589 = vector.load %arg36[%c0_448, %c0_449] : memref<1x324xf32, #tpu.memory_space<vmem>>, vector<1x324xf32>
    %590 = vector.broadcast %589 : vector<1x324xf32> to vector<16x324xf32>
    %591 = arith.mulf %588, %590 : vector<16x324xf32>
    %592 = vector.extract_strided_slice %5 {offsets = [192, 0], sizes = [16, 1], strides = [1, 1]} : vector<224x1xf32> to vector<16x1xf32>
    %593 = vector.broadcast %592 : vector<16x1xf32> to vector<16x324xf32>
    %594 = arith.mulf %591, %593 : vector<16x324xf32>
    %595 = arith.truncf %594 : vector<16x324xf32> to vector<16x324xbf16>
    %cst_450 = arith.constant 0.000000e+00 : bf16
    %596 = vector.broadcast %cst_450 : bf16 to vector<16x19xbf16>
    %597 = tpu.concatenate %596, %595, %596 in 1 : vector<16x19xbf16>, vector<16x324xbf16>, vector<16x19xbf16> -> vector<16x362xbf16>
    %598 = vector.extract_strided_slice %597 {offsets = [0, 0], sizes = [16, 324], strides = [1, 1]} : vector<16x362xbf16> to vector<16x324xbf16>
    %599 = vector.extract_strided_slice %597 {offsets = [0, 1], sizes = [16, 324], strides = [1, 1]} : vector<16x362xbf16> to vector<16x324xbf16>
    %600 = vector.extract_strided_slice %597 {offsets = [0, 2], sizes = [16, 324], strides = [1, 1]} : vector<16x362xbf16> to vector<16x324xbf16>
    %601 = vector.extract_strided_slice %597 {offsets = [0, 18], sizes = [16, 324], strides = [1, 1]} : vector<16x362xbf16> to vector<16x324xbf16>
    %602 = vector.extract_strided_slice %597 {offsets = [0, 19], sizes = [16, 324], strides = [1, 1]} : vector<16x362xbf16> to vector<16x324xbf16>
    %603 = vector.extract_strided_slice %597 {offsets = [0, 20], sizes = [16, 324], strides = [1, 1]} : vector<16x362xbf16> to vector<16x324xbf16>
    %604 = vector.extract_strided_slice %597 {offsets = [0, 36], sizes = [16, 324], strides = [1, 1]} : vector<16x362xbf16> to vector<16x324xbf16>
    %605 = vector.extract_strided_slice %597 {offsets = [0, 37], sizes = [16, 324], strides = [1, 1]} : vector<16x362xbf16> to vector<16x324xbf16>
    %606 = vector.extract_strided_slice %597 {offsets = [0, 38], sizes = [16, 324], strides = [1, 1]} : vector<16x362xbf16> to vector<16x324xbf16>
    %cst_451 = arith.constant 0.000000e+00 : f32
    %607 = vector.broadcast %cst_451 : f32 to vector<16x324xf32>
    %c0_452 = arith.constant 0 : index
    %c0_453 = arith.constant 0 : index
    %c0_454 = arith.constant 0 : index
    %608 = vector.load %arg30[%c0_452, %c0_453, %c0_454] : memref<9x16x16xbf16, #tpu.memory_space<vmem>>, vector<1x16x16xbf16>
    %609 = vector.shape_cast %608 : vector<1x16x16xbf16> to vector<16x16xbf16>
    %cst_455 = arith.constant dense<0.000000e+00> : vector<16x324xf32>
    %610 = tpu.matmul %609, %598, %cst_455 {dimension_numbers = #tpu.dot_dimension_numbers<[1], [0], [0], [1], [0, 0, 1, 1], [], []>} : vector<16x16xbf16>, vector<16x324xbf16>, vector<16x324xf32> -> vector<16x324xf32>
    %611 = arith.addf %607, %610 : vector<16x324xf32>
    %c1_456 = arith.constant 1 : index
    %c0_457 = arith.constant 0 : index
    %c0_458 = arith.constant 0 : index
    %612 = vector.load %arg30[%c1_456, %c0_457, %c0_458] : memref<9x16x16xbf16, #tpu.memory_space<vmem>>, vector<1x16x16xbf16>
    %613 = vector.shape_cast %612 : vector<1x16x16xbf16> to vector<16x16xbf16>
    %cst_459 = arith.constant dense<0.000000e+00> : vector<16x324xf32>
    %614 = tpu.matmul %613, %599, %cst_459 {dimension_numbers = #tpu.dot_dimension_numbers<[1], [0], [0], [1], [0, 0, 1, 1], [], []>} : vector<16x16xbf16>, vector<16x324xbf16>, vector<16x324xf32> -> vector<16x324xf32>
    %615 = arith.addf %611, %614 : vector<16x324xf32>
    %c2_460 = arith.constant 2 : index
    %c0_461 = arith.constant 0 : index
    %c0_462 = arith.constant 0 : index
    %616 = vector.load %arg30[%c2_460, %c0_461, %c0_462] : memref<9x16x16xbf16, #tpu.memory_space<vmem>>, vector<1x16x16xbf16>
    %617 = vector.shape_cast %616 : vector<1x16x16xbf16> to vector<16x16xbf16>
    %cst_463 = arith.constant dense<0.000000e+00> : vector<16x324xf32>
    %618 = tpu.matmul %617, %600, %cst_463 {dimension_numbers = #tpu.dot_dimension_numbers<[1], [0], [0], [1], [0, 0, 1, 1], [], []>} : vector<16x16xbf16>, vector<16x324xbf16>, vector<16x324xf32> -> vector<16x324xf32>
    %619 = arith.addf %615, %618 : vector<16x324xf32>
    %c3_464 = arith.constant 3 : index
    %c0_465 = arith.constant 0 : index
    %c0_466 = arith.constant 0 : index
    %620 = vector.load %arg30[%c3_464, %c0_465, %c0_466] : memref<9x16x16xbf16, #tpu.memory_space<vmem>>, vector<1x16x16xbf16>
    %621 = vector.shape_cast %620 : vector<1x16x16xbf16> to vector<16x16xbf16>
    %cst_467 = arith.constant dense<0.000000e+00> : vector<16x324xf32>
    %622 = tpu.matmul %621, %601, %cst_467 {dimension_numbers = #tpu.dot_dimension_numbers<[1], [0], [0], [1], [0, 0, 1, 1], [], []>} : vector<16x16xbf16>, vector<16x324xbf16>, vector<16x324xf32> -> vector<16x324xf32>
    %623 = arith.addf %619, %622 : vector<16x324xf32>
    %c4_468 = arith.constant 4 : index
    %c0_469 = arith.constant 0 : index
    %c0_470 = arith.constant 0 : index
    %624 = vector.load %arg30[%c4_468, %c0_469, %c0_470] : memref<9x16x16xbf16, #tpu.memory_space<vmem>>, vector<1x16x16xbf16>
    %625 = vector.shape_cast %624 : vector<1x16x16xbf16> to vector<16x16xbf16>
    %cst_471 = arith.constant dense<0.000000e+00> : vector<16x324xf32>
    %626 = tpu.matmul %625, %602, %cst_471 {dimension_numbers = #tpu.dot_dimension_numbers<[1], [0], [0], [1], [0, 0, 1, 1], [], []>} : vector<16x16xbf16>, vector<16x324xbf16>, vector<16x324xf32> -> vector<16x324xf32>
    %627 = arith.addf %623, %626 : vector<16x324xf32>
    %c5_472 = arith.constant 5 : index
    %c0_473 = arith.constant 0 : index
    %c0_474 = arith.constant 0 : index
    %628 = vector.load %arg30[%c5_472, %c0_473, %c0_474] : memref<9x16x16xbf16, #tpu.memory_space<vmem>>, vector<1x16x16xbf16>
    %629 = vector.shape_cast %628 : vector<1x16x16xbf16> to vector<16x16xbf16>
    %cst_475 = arith.constant dense<0.000000e+00> : vector<16x324xf32>
    %630 = tpu.matmul %629, %603, %cst_475 {dimension_numbers = #tpu.dot_dimension_numbers<[1], [0], [0], [1], [0, 0, 1, 1], [], []>} : vector<16x16xbf16>, vector<16x324xbf16>, vector<16x324xf32> -> vector<16x324xf32>
    %631 = arith.addf %627, %630 : vector<16x324xf32>
    %c6_476 = arith.constant 6 : index
    %c0_477 = arith.constant 0 : index
    %c0_478 = arith.constant 0 : index
    %632 = vector.load %arg30[%c6_476, %c0_477, %c0_478] : memref<9x16x16xbf16, #tpu.memory_space<vmem>>, vector<1x16x16xbf16>
    %633 = vector.shape_cast %632 : vector<1x16x16xbf16> to vector<16x16xbf16>
    %cst_479 = arith.constant dense<0.000000e+00> : vector<16x324xf32>
    %634 = tpu.matmul %633, %604, %cst_479 {dimension_numbers = #tpu.dot_dimension_numbers<[1], [0], [0], [1], [0, 0, 1, 1], [], []>} : vector<16x16xbf16>, vector<16x324xbf16>, vector<16x324xf32> -> vector<16x324xf32>
    %635 = arith.addf %631, %634 : vector<16x324xf32>
    %c7_480 = arith.constant 7 : index
    %c0_481 = arith.constant 0 : index
    %c0_482 = arith.constant 0 : index
    %636 = vector.load %arg30[%c7_480, %c0_481, %c0_482] : memref<9x16x16xbf16, #tpu.memory_space<vmem>>, vector<1x16x16xbf16>
    %637 = vector.shape_cast %636 : vector<1x16x16xbf16> to vector<16x16xbf16>
    %cst_483 = arith.constant dense<0.000000e+00> : vector<16x324xf32>
    %638 = tpu.matmul %637, %605, %cst_483 {dimension_numbers = #tpu.dot_dimension_numbers<[1], [0], [0], [1], [0, 0, 1, 1], [], []>} : vector<16x16xbf16>, vector<16x324xbf16>, vector<16x324xf32> -> vector<16x324xf32>
    %639 = arith.addf %635, %638 : vector<16x324xf32>
    %c8_484 = arith.constant 8 : index
    %c0_485 = arith.constant 0 : index
    %c0_486 = arith.constant 0 : index
    %640 = vector.load %arg30[%c8_484, %c0_485, %c0_486] : memref<9x16x16xbf16, #tpu.memory_space<vmem>>, vector<1x16x16xbf16>
    %641 = vector.shape_cast %640 : vector<1x16x16xbf16> to vector<16x16xbf16>
    %cst_487 = arith.constant dense<0.000000e+00> : vector<16x324xf32>
    %642 = tpu.matmul %641, %606, %cst_487 {dimension_numbers = #tpu.dot_dimension_numbers<[1], [0], [0], [1], [0, 0, 1, 1], [], []>} : vector<16x16xbf16>, vector<16x324xbf16>, vector<16x324xf32> -> vector<16x324xf32>
    %643 = arith.addf %639, %642 : vector<16x324xf32>
    %c0_488 = arith.constant 0 : index
    %c0_489 = arith.constant 0 : index
    %644 = vector.load %arg31[%c0_488, %c0_489] : memref<16x16xf32, #tpu.memory_space<vmem>>, vector<16x16xf32>
    %645 = arith.mulf %592, %592 : vector<16x1xf32>
    %cst_490 = arith.constant dense<0.000000e+00> : vector<16x1xf32>
    %646 = tpu.matmul %644, %645, %cst_490 {dimension_numbers = #tpu.dot_dimension_numbers<[1], [0], [0], [1], [0, 0, 1, 1], [], []>} : vector<16x16xf32>, vector<16x1xf32>, vector<16x1xf32> -> vector<16x1xf32>
    %cst_491 = arith.constant 9.99999993E-9 : f32
    %647 = vector.broadcast %cst_491 : f32 to vector<16x1xf32>
    %648 = arith.addf %646, %647 : vector<16x1xf32>
    %649 = math.rsqrt %648 : vector<16x1xf32>
    %650 = vector.broadcast %649 : vector<16x1xf32> to vector<16x324xf32>
    %651 = arith.mulf %643, %650 : vector<16x324xf32>
    %c0_492 = arith.constant 0 : index
    %c0_493 = arith.constant 0 : index
    %652 = vector.load %arg32[%c0_492, %c0_493] : memref<1x324xf32, #tpu.memory_space<vmem>>, vector<1x324xf32>
    %653 = vector.broadcast %652 : vector<1x324xf32> to vector<16x324xf32>
    %654 = arith.addf %651, %653 : vector<16x324xf32>
    %c0_494 = arith.constant 0 : index
    %c0_495 = arith.constant 0 : index
    %655 = vector.load %arg33[%c0_494, %c0_495] : memref<16x1xf32, #tpu.memory_space<vmem>>, vector<16x1xf32>
    %656 = vector.broadcast %655 : vector<16x1xf32> to vector<16x324xf32>
    %657 = arith.addf %654, %656 : vector<16x324xf32>
    %cst_496 = arith.constant 0.000000e+00 : f32
    %658 = vector.broadcast %cst_496 : f32 to vector<16x324xf32>
    %659 = arith.cmpf oge, %657, %658 : vector<16x324xf32>
    %cst_497 = arith.constant 2.000000e-01 : f32
    %660 = vector.broadcast %cst_497 : f32 to vector<16x324xf32>
    %661 = arith.mulf %660, %657 : vector<16x324xf32>
    %662 = arith.select %659, %657, %661 : vector<16x324xi1>, vector<16x324xf32>
    %cst_498 = arith.constant 1.41421354 : f32
    %663 = vector.broadcast %cst_498 : f32 to vector<16x324xf32>
    %664 = arith.mulf %662, %663 : vector<16x324xf32>
    %c0_499 = arith.constant 0 : index
    %c0_500 = arith.constant 0 : index
    %665 = vector.load %arg36[%c0_499, %c0_500] : memref<1x324xf32, #tpu.memory_space<vmem>>, vector<1x324xf32>
    %666 = vector.broadcast %665 : vector<1x324xf32> to vector<16x324xf32>
    %667 = arith.mulf %664, %666 : vector<16x324xf32>
    %c0_501 = arith.constant 0 : index
    %c0_502 = arith.constant 0 : index
    %668 = vector.load %arg37[%c0_501, %c0_502] : memref<100x324xf32, #tpu.memory_space<vmem>>, vector<100x324xf32>
    %cst_503 = arith.constant dense<0.000000e+00> : vector<3x324xf32>
    %669 = tpu.matmul %387, %668, %cst_503 {dimension_numbers = #tpu.dot_dimension_numbers<[1], [0], [0], [1], [0, 0, 1, 1], [], []>} : vector<3x100xf32>, vector<100x324xf32>, vector<3x324xf32> -> vector<3x324xf32>
    %670 = vector.extract_strided_slice %5 {offsets = [208, 0], sizes = [16, 1], strides = [1, 1]} : vector<224x1xf32> to vector<16x1xf32>
    %c0_504 = arith.constant 0 : index
    %c0_505 = arith.constant 0 : index
    %671 = vector.load %arg34[%c0_504, %c0_505] : memref<3x16xf32, #tpu.memory_space<vmem>>, vector<3x16xf32>
    %672 = vector.broadcast %670 : vector<16x1xf32> to vector<16x324xf32>
    %673 = arith.mulf %667, %672 : vector<16x324xf32>
    %cst_506 = arith.constant dense<0.000000e+00> : vector<3x324xf32>
    %674 = tpu.matmul %671, %673, %cst_506 {dimension_numbers = #tpu.dot_dimension_numbers<[1], [0], [0], [1], [0, 0, 1, 1], [], []>} : vector<3x16xf32>, vector<16x324xf32>, vector<3x324xf32> -> vector<3x324xf32>
    %c0_507 = arith.constant 0 : index
    %c0_508 = arith.constant 0 : index
    %675 = vector.load %arg35[%c0_507, %c0_508] : memref<3x1xf32, #tpu.memory_space<vmem>>, vector<3x1xf32>
    %676 = vector.broadcast %675 : vector<3x1xf32> to vector<3x324xf32>
    %677 = arith.addf %674, %676 : vector<3x324xf32>
    %c0_509 = arith.constant 0 : index
    %c0_510 = arith.constant 0 : index
    %678 = vector.load %arg36[%c0_509, %c0_510] : memref<1x324xf32, #tpu.memory_space<vmem>>, vector<1x324xf32>
    %679 = vector.broadcast %678 : vector<1x324xf32> to vector<3x324xf32>
    %680 = arith.mulf %677, %679 : vector<3x324xf32>
    %681 = arith.addf %669, %680 : vector<3x324xf32>
    %c0_511 = arith.constant 0 : index
    %c0_512 = arith.constant 0 : index
    %c0_513 = arith.constant 0 : index
    %682 = vector.load %arg38[%c0_511, %c0_512, %c0_513] : memref<1x3x324xf32, #tpu.memory_space<vmem>>, vector<1x3x324xf32>
    %683 = vector.shape_cast %682 : vector<1x3x324xf32> to vector<3x324xf32>
    %684 = vector.shape_cast %681 : vector<3x324xf32> to vector<1x3x324xf32>
    tpu.vector_store %arg38[%c0_511, %c0_512, %c0_513], %684 {strides = array<i32>} : memref<1x3x324xf32, #tpu.memory_space<vmem>>, vector<1x3x324xf32>,
    return
  }
  func.func @transform_0(%arg0: i32) -> (i32, i32, i32) {
    %c0_i32 = arith.constant 0 : i32
    %c0_i32_0 = arith.constant 0 : i32
    %c0_i32_1 = arith.constant 0 : i32
    return %arg0, %c0_i32, %c0_i32_0 : i32, i32, i32
  }
  func.func @transform_1(%arg0: i32) -> (i32, i32) {
    %c0_i32 = arith.constant 0 : i32
    %c0_i32_0 = arith.constant 0 : i32
    %c0_i32_1 = arith.constant 0 : i32
    return %c0_i32, %c0_i32_0 : i32, i32
  }
  func.func @transform_2(%arg0: i32) -> (i32, i32) {
    %c0_i32 = arith.constant 0 : i32
    %c0_i32_0 = arith.constant 0 : i32
    %c0_i32_1 = arith.constant 0 : i32
    return %c0_i32, %c0_i32_0 : i32, i32
  }
  func.func @transform_3(%arg0: i32) -> (i32, i32) {
    %c0_i32 = arith.constant 0 : i32
    %c0_i32_0 = arith.constant 0 : i32
    %c0_i32_1 = arith.constant 0 : i32
    return %c0_i32, %c0_i32_0 : i32, i32
  }
  func.func @transform_4(%arg0: i32) -> (i32, i32, i32) {
    %c0_i32 = arith.constant 0 : i32
    %c0_i32_0 = arith.constant 0 : i32
    %c0_i32_1 = arith.constant 0 : i32
    %c0_i32_2 = arith.constant 0 : i32
    return %c0_i32, %c0_i32_0, %c0_i32_1 : i32, i32, i32
  }
  func.func @transform_5(%arg0: i32) -> (i32, i32) {
    %c0_i32 = arith.constant 0 : i32
    %c0_i32_0 = arith.constant 0 : i32
    %c0_i32_1 = arith.constant 0 : i32
    return %c0_i32, %c0_i32_0 : i32, i32
  }
  func.func @transform_6(%arg0: i32) -> (i32, i32) {
    %c0_i32 = arith.constant 0 : i32
    %c0_i32_0 = arith.constant 0 : i32
    %c0_i32_1 = arith.constant 0 : i32
    return %c0_i32, %c0_i32_0 : i32, i32
  }
  func.func @transform_7(%arg0: i32) -> (i32, i32) {
    %c0_i32 = arith.constant 0 : i32
    %c0_i32_0 = arith.constant 0 : i32
    %c0_i32_1 = arith.constant 0 : i32
    return %c0_i32, %c0_i32_0 : i32, i32
  }
  func.func @transform_8(%arg0: i32) -> (i32, i32) {
    %c0_i32 = arith.constant 0 : i32
    %c0_i32_0 = arith.constant 0 : i32
    %c0_i32_1 = arith.constant 0 : i32
    return %c0_i32, %c0_i32_0 : i32, i32
  }
  func.func @transform_9(%arg0: i32) -> (i32, i32) {
    %c0_i32 = arith.constant 0 : i32
    %c0_i32_0 = arith.constant 0 : i32
    %c0_i32_1 = arith.constant 0 : i32
    return %c0_i32, %c0_i32_0 : i32, i32
  }
  func.func @transform_10(%arg0: i32) -> (i32, i32) {
    %c0_i32 = arith.constant 0 : i32
    %c0_i32_0 = arith.constant 0 : i32
    %c0_i32_1 = arith.constant 0 : i32
    return %c0_i32, %c0_i32_0 : i32, i32
  }
  func.func @transform_11(%arg0: i32) -> (i32, i32, i32) {
    %c0_i32 = arith.constant 0 : i32
    %c0_i32_0 = arith.constant 0 : i32
    %c0_i32_1 = arith.constant 0 : i32
    %c0_i32_2 = arith.constant 0 : i32
    return %c0_i32, %c0_i32_0, %c0_i32_1 : i32, i32, i32
  }
  func.func @transform_12(%arg0: i32) -> (i32, i32) {
    %c0_i32 = arith.constant 0 : i32
    %c0_i32_0 = arith.constant 0 : i32
    %c0_i32_1 = arith.constant 0 : i32
    return %c0_i32, %c0_i32_0 : i32, i32
  }
  func.func @transform_13(%arg0: i32) -> (i32, i32, i32) {
    %c0_i32 = arith.constant 0 : i32
    %c0_i32_0 = arith.constant 0 : i32
    %c0_i32_1 = arith.constant 0 : i32
    %c0_i32_2 = arith.constant 0 : i32
    return %c0_i32, %c0_i32_0, %c0_i32_1 : i32, i32, i32
  }
  func.func @transform_14(%arg0: i32) -> (i32, i32) {
    %c0_i32 = arith.constant 0 : i32
    %c0_i32_0 = arith.constant 0 : i32
    %c0_i32_1 = arith.constant 0 : i32
    return %c0_i32, %c0_i32_0 : i32, i32
  }
  func.func @transform_15(%arg0: i32) -> (i32, i32) {
    %c0_i32 = arith.constant 0 : i32
    %c0_i32_0 = arith.constant 0 : i32
    %c0_i32_1 = arith.constant 0 : i32
    return %c0_i32, %c0_i32_0 : i32, i32
  }
  func.func @transform_16(%arg0: i32) -> (i32, i32, i32) {
    %c0_i32 = arith.constant 0 : i32
    %c0_i32_0 = arith.constant 0 : i32
    %c0_i32_1 = arith.constant 0 : i32
    %c0_i32_2 = arith.constant 0 : i32
    return %c0_i32, %c0_i32_0, %c0_i32_1 : i32, i32, i32
  }
  func.func @transform_17(%arg0: i32) -> (i32, i32) {
    %c0_i32 = arith.constant 0 : i32
    %c0_i32_0 = arith.constant 0 : i32
    %c0_i32_1 = arith.constant 0 : i32
    return %c0_i32, %c0_i32_0 : i32, i32
  }
  func.func @transform_18(%arg0: i32) -> (i32, i32) {
    %c0_i32 = arith.constant 0 : i32
    %c0_i32_0 = arith.constant 0 : i32
    %c0_i32_1 = arith.constant 0 : i32
    return %c0_i32, %c0_i32_0 : i32, i32
  }
  func.func @transform_19(%arg0: i32) -> (i32, i32) {
    %c0_i32 = arith.constant 0 : i32
    %c0_i32_0 = arith.constant 0 : i32
    %c0_i32_1 = arith.constant 0 : i32
    return %c0_i32, %c0_i32_0 : i32, i32
  }
  func.func @transform_20(%arg0: i32) -> (i32, i32) {
    %c0_i32 = arith.constant 0 : i32
    %c0_i32_0 = arith.constant 0 : i32
    %c0_i32_1 = arith.constant 0 : i32
    return %c0_i32, %c0_i32_0 : i32, i32
  }
  func.func @transform_21(%arg0: i32) -> (i32, i32) {
    %c0_i32 = arith.constant 0 : i32
    %c0_i32_0 = arith.constant 0 : i32
    %c0_i32_1 = arith.constant 0 : i32
    return %c0_i32, %c0_i32_0 : i32, i32
  }
  func.func @transform_22(%arg0: i32) -> (i32, i32) {
    %c0_i32 = arith.constant 0 : i32
    %c0_i32_0 = arith.constant 0 : i32
    %c0_i32_1 = arith.constant 0 : i32
    return %c0_i32, %c0_i32_0 : i32, i32
  }
  func.func @transform_23(%arg0: i32) -> (i32, i32) {
    %c0_i32 = arith.constant 0 : i32
    %c0_i32_0 = arith.constant 0 : i32
    %c0_i32_1 = arith.constant 0 : i32
    return %c0_i32, %c0_i32_0 : i32, i32
  }
  func.func @transform_24(%arg0: i32) -> (i32, i32, i32) {
    %c0_i32 = arith.constant 0 : i32
    %c0_i32_0 = arith.constant 0 : i32
    %c0_i32_1 = arith.constant 0 : i32
    %c0_i32_2 = arith.constant 0 : i32
    return %c0_i32, %c0_i32_0, %c0_i32_1 : i32, i32, i32
  }
  func.func @transform_25(%arg0: i32) -> (i32, i32) {
    %c0_i32 = arith.constant 0 : i32
    %c0_i32_0 = arith.constant 0 : i32
    %c0_i32_1 = arith.constant 0 : i32
    return %c0_i32, %c0_i32_0 : i32, i32
  }
  func.func @transform_26(%arg0: i32) -> (i32, i32, i32) {
    %c0_i32 = arith.constant 0 : i32
    %c0_i32_0 = arith.constant 0 : i32
    %c0_i32_1 = arith.constant 0 : i32
    %c0_i32_2 = arith.constant 0 : i32
    return %c0_i32, %c0_i32_0, %c0_i32_1 : i32, i32, i32
  }
  func.func @transform_27(%arg0: i32) -> (i32, i32) {
    %c0_i32 = arith.constant 0 : i32
    %c0_i32_0 = arith.constant 0 : i32
    %c0_i32_1 = arith.constant 0 : i32
    return %c0_i32, %c0_i32_0 : i32, i32
  }
  func.func @transform_28(%arg0: i32) -> (i32, i32) {
    %c0_i32 = arith.constant 0 : i32
    %c0_i32_0 = arith.constant 0 : i32
    %c0_i32_1 = arith.constant 0 : i32
    return %c0_i32, %c0_i32_0 : i32, i32
  }
  func.func @transform_29(%arg0: i32) -> (i32, i32, i32) {
    %c0_i32 = arith.constant 0 : i32
    %c0_i32_0 = arith.constant 0 : i32
    %c0_i32_1 = arith.constant 0 : i32
    %c0_i32_2 = arith.constant 0 : i32
    return %c0_i32, %c0_i32_0, %c0_i32_1 : i32, i32, i32
  }
  func.func @transform_30(%arg0: i32) -> (i32, i32) {
    %c0_i32 = arith.constant 0 : i32
    %c0_i32_0 = arith.constant 0 : i32
    %c0_i32_1 = arith.constant 0 : i32
    return %c0_i32, %c0_i32_0 : i32, i32
  }
  func.func @transform_31(%arg0: i32) -> (i32, i32) {
    %c0_i32 = arith.constant 0 : i32
    %c0_i32_0 = arith.constant 0 : i32
    %c0_i32_1 = arith.constant 0 : i32
    return %c0_i32, %c0_i32_0 : i32, i32
  }
  func.func @transform_32(%arg0: i32) -> (i32, i32) {
    %c0_i32 = arith.constant 0 : i32
    %c0_i32_0 = arith.constant 0 : i32
    %c0_i32_1 = arith.constant 0 : i32
    return %c0_i32, %c0_i32_0 : i32, i32
  }
  func.func @transform_33(%arg0: i32) -> (i32, i32) {
    %c0_i32 = arith.constant 0 : i32
    %c0_i32_0 = arith.constant 0 : i32
    %c0_i32_1 = arith.constant 0 : i32
    return %c0_i32, %c0_i32_0 : i32, i32
  }
  func.func @transform_34(%arg0: i32) -> (i32, i32) {
    %c0_i32 = arith.constant 0 : i32
    %c0_i32_0 = arith.constant 0 : i32
    %c0_i32_1 = arith.constant 0 : i32
    return %c0_i32, %c0_i32_0 : i32, i32
  }
  func.func @transform_35(%arg0: i32) -> (i32, i32) {
    %c0_i32 = arith.constant 0 : i32
    %c0_i32_0 = arith.constant 0 : i32
    %c0_i32_1 = arith.constant 0 : i32
    return %c0_i32, %c0_i32_0 : i32, i32
  }
  func.func @transform_36(%arg0: i32) -> (i32, i32) {
    %c0_i32 = arith.constant 0 : i32
    %c0_i32_0 = arith.constant 0 : i32
    %c0_i32_1 = arith.constant 0 : i32
    return %c0_i32, %c0_i32_0 : i32, i32
  }
  func.func @transform_37(%arg0: i32) -> (i32, i32, i32) {
    %c0_i32 = arith.constant 0 : i32
    %c0_i32_0 = arith.constant 0 : i32
    %c0_i32_1 = arith.constant 0 : i32
    return %arg0, %c0_i32, %c0_i32_0 : i32, i32, i32
  }
}

</mosaic_0001>

<bundles_post_ra>
// kernel: synthesis_forward.1
= control target key start
LH: loop header
LB: loop body
LE: loop exit
PB: predicated region body
PF: predicated region fallthrough
CT: control target
= control target key end

     0   :  { %s15197_s6 = smov 1   ;;  %s15198_s10 = smov 2   ;;  %s17293_s0 = inlined_call_operand.smem [shape: u32[38], index: -1, kind: input, shape index: {}] }
   0x1   :  { %s15267_s5 = sld [smem:[%s17293_s0]]   ;;  %s15199_s14 = smov 3  }
   0x2   :  { %s15272_s9 = sld [smem:[%s17293_s0 + %s15197_s6]]   ;;  %s15200_s18 = smov 4  }
   0x3   :  { %s15277_s13 = sld [smem:[%s17293_s0 + %s15198_s10]]   ;;  %s15201_s22 = smov 5  }
   0x4   :  { %s15282_s17 = sld [smem:[%s17293_s0 + %s15199_s14]]   ;;  %s15202_s26 = smov 6  }
   0x5   :  { %s15287_s21 = sld [smem:[%s17293_s0 + %s15200_s18]]   ;;  %s15203_s30 = smov 7  }
   0x6   :  { %s15292_s25 = sld [smem:[%s17293_s0 + %s15201_s22]]   ;;  %s15204_s4 = smov 8  }
   0x7   :  { %17326 = sst [smem:[#allocation2_spill]] %s15267_s5  ;;  %s15205_s10 = smov 9  }
   0x8   :  { %s15297_s29 = sld [smem:[%s17293_s0 + %s15202_s26]]   ;;  %s15206_s15 = smov 10  }
   0x9   :  { %s15302_s3 = sld [smem:[%s17293_s0 + %s15203_s30]]   ;;  %s15207_s20 = smov 11  }
   0xa   :  { %s15307_s8 = sld [smem:[%s17293_s0 + %s15204_s4]]   ;;  %s15208_s26 = smov 12  }
   0xb   :  { %s15312_s14 = sld [smem:[%s17293_s0 + %s15205_s10]]   ;;  %s15209_s1 = smov 13  }
   0xc   :  { %s15317_s19 = sld [smem:[%s17293_s0 + %s15206_s15]]   ;;  %s15210_s7 = smov 14  }
   0xd   :  { %s15322_s24 = sld [smem:[%s17293_s0 + %s15207_s20]]   ;;  %s15211_s15 = smov 15  }
   0xe   :  { %s15327_s30 = sld [smem:[%s17293_s0 + %s15208_s26]]   ;;  %s15212_s22 = smov 16  }
   0xf   :  { %17327 = sst [smem:[#allocation3_spill]] %s15302_s3  ;;  %s15213_s28 = smov 17  }
  0x10   :  { %s15332_s6 = sld [smem:[%s17293_s0 + %s15209_s1]]  }
  0x11   :  { %17328 = sst [smem:[#allocation4_spill]] %s15312_s14 }
  0x12   :  { %s15337_s12 = sld [smem:[%s17293_s0 + %s15210_s7]]   ;;  %s15214_s7 = smov 18  }
  0x13   :  { %s15342_s20 = sld [smem:[%s17293_s0 + %s15211_s15]]   ;;  %s15215_s15 = smov 19  }
  0x14   :  { %s15347_s27 = sld [smem:[%s17293_s0 + %s15212_s22]]   ;;  %s15216_s22 = smov 20  }
  0x15   :  { %s15352_s4 = sld [smem:[%s17293_s0 + %s15213_s28]]   ;;  %s15217_s28 = smov 21  }
  0x16   :  { %s15357_s14 = sld [smem:[%s17293_s0 + %s15214_s7]]   ;;  %s15218_s7 = smov 22  }
  0x18   :  { %17329 = sst [smem:[#allocation5_spill]] %s15337_s12 }
  0x19   :  { %s15362_s12 = sld [smem:[%s17293_s0 + %s15215_s15]]   ;;  %s15219_s15 = smov 23  }
  0x1a   :  { %17330 = sst [smem:[#allocation6_spill]] %s15347_s27 }
  0x1b   :  { %17331 = sst [smem:[#allocation7_spill]] %s15352_s4 }
  0x1c   :  { %17332 = sst [smem:[#allocation8_spill]] %s15357_s14 }
  0x1d   :  { %s15367_s27 = sld [smem:[%s17293_s0 + %s15216_s22]]   ;;  %s15220_s22 = smov 24  }
  0x1e   :  { %s15372_s4 = sld [smem:[%s17293_s0 + %s15217_s28]]   ;;  %s15221_s28 = smov 25  }
  0x1f   :  { %17333 = sst [smem:[#allocation9_spill]] %s15362_s12 }
  0x20   :  { %s15377_s14 = sld [smem:[%s17293_s0 + %s15218_s7]]   ;;  %s15222_s7 = smov 26  }
  0x21   :  { %s15382_s12 = sld [smem:[%s17293_s0 + %s15219_s15]]   ;;  %s15223_s15 = smov 27  }
  0x23   :  { %17334 = sst [smem:[#allocation10_spill]] %s15367_s27 }
  0x24   :  { %17335 = sst [smem:[#allocation11_spill]] %s15372_s4 }
  0x25   :  { %s15387_s27 = sld [smem:[%s17293_s0 + %s15220_s22]]   ;;  %s15224_s22 = smov 28  }
  0x26   :  { %17336 = sst [smem:[#allocation12_spill]] %s15377_s14 }
  0x27   :  { %17337 = sst [smem:[#allocation13_spill]] %s15382_s12 }
  0x28   :  { %s15392_s4 = sld [smem:[%s17293_s0 + %s15221_s28]]   ;;  %s15225_s28 = smov 29  }
  0x29   :  { %s15397_s14 = sld [smem:[%s17293_s0 + %s15222_s7]]   ;;  %s15226_s7 = smov 30  }
  0x2a   :  { %s15402_s12 = sld [smem:[%s17293_s0 + %s15223_s15]]   ;;  %s15227_s15 = smov 31  }
  0x2b   :  { %17338 = sst [smem:[#allocation14_spill]] %s15387_s27 }
  0x2c   :  { %s15407_s27 = sld [smem:[%s17293_s0 + %s15224_s22]]   ;;  %s15228_s22 = smov 32  }
  0x2e   :  { %17339 = sst [smem:[#allocation15_spill]] %s15392_s4 }
  0x2f   :  { %17340 = sst [smem:[#allocation16_spill]] %s15397_s14 }
  0x30   :  { %17341 = sst [smem:[#allocation17_spill]] %s15402_s12 }
  0x31   :  { %s15412_s4 = sld [smem:[%s17293_s0 + %s15225_s28]]   ;;  %s15229_s28 = smov 33  }
  0x32   :  { %17342 = sst [smem:[#allocation18_spill]] %s15407_s27 }
  0x33   :  { %s15417_s14 = sld [smem:[%s17293_s0 + %s15226_s7]]   ;;  %s15230_s7 = smov 34  }
  0x34   :  { %s15422_s12 = sld [smem:[%s17293_s0 + %s15227_s15]]   ;;  %s15231_s15 = smov 35  }
  0x35   :  { %s15427_s27 = sld [smem:[%s17293_s0 + %s15228_s22]]   ;;  %s15232_s22 = smov 36  }
  0x37   :  { %17343 = sst [smem:[#allocation19_spill]] %s15412_s4 }
  0x38   :  { %s15432_s4 = sld [smem:[%s17293_s0 + %s15229_s28]]   ;;  %s15233_s28 = smov 37  }
  0x39   :  { %17344 = sst [smem:[#allocation20_spill]] %s15417_s14 }
  0x3a   :  { %17345 = sst [smem:[#allocation21_spill]] %s15422_s12 }
  0x3b   :  { %17346 = sst [smem:[#allocation22_spill]] %s15427_s27 }
  0x3c   :  { %s15437_s14 = sld [smem:[%s17293_s0 + %s15230_s7]]   ;;  %s15454_s7 = smov 0  }
  0x3d   :  { %s15442_s12 = sld [smem:[%s17293_s0 + %s15231_s15]]  }
  0x3e   :  { %17347 = sst [smem:[#allocation23_spill]] %s15432_s4 }
  0x3f   :  { %s15447_s27 = sld [smem:[%s17293_s0 + %s15232_s22]]  }
  0x40   :  { %s15452_s4 = sld [smem:[%s17293_s0 + %s15233_s28]]  }
  0x41 LB: > { %s17348_s3 = sld [smem:[#allocation3_spill]]  ;;  %s11708_s10 = sadd.s32 4294967295, %s15195_s7   ;;  %s15195_s7 = sphi %s15454_s7, %s85_s7  }
  0x42   : > { %p11712_p0 = scmp.ge.s32.totalorder %s15195_s7, 1  ;;  %p1025_p1 = scmp.lt.s32.totalorder %s15195_s7, 3 }
  0x44   : > { %p1026_p2 = pnand %p11712_p0, %p1025_p1 }
  0x45   : > { %p1117_p3 = scmp.lt.s32.totalorder (!%p1026_p2), %s11708_s10, 1  ;;  %s17349_s5 = sld [smem:[#allocation2_spill]] (!%p1026_p2)  ;;  %v1129_v0 = vld [vmem:[%s15272_s9 + $0x8] sm:$0xff] (!%p1026_p2)  ;;  %v15234_v1 = vmov (!%p1026_p2), 0.0|0.0   ;;  %v1128_v50 = vld [vmem:[%s15272_s9] sm:$0xff] (!%p1026_p2)  ;;  %v1131_v51 = vld [vmem:[%s15272_s9 + $0x18] sm:$0xff] (!%p1026_p2) }
  0x46   : > { %1029 = sbr.rel (%p1026_p2) target bundleno = 5246 (0x147e), region = 168  ;;  %14128 = vmatprep.subr.bf16.mxu0 (!%p1026_p2), %v15234_v1  ;;  %1308 = vmatprep.mubr.f32.mxu0 (!%p1026_p2), %v1129_v0  ;;  %v1130_v52 = vld [vmem:[%s15272_s9 + $0x10] sm:$0xff] (!%p1026_p2)  ;;  %v1133_v53 = vld [vmem:[%s15272_s9 + $0x28] sm:$0xff] (!%p1026_p2)  ;;  %v1132_v54 = vld [vmem:[%s15272_s9 + $0x20] sm:$0xff] (!%p1026_p2)  ;;  %v17306_v57 = vmov (!%p1026_p2), 0   ;;  %s15236_s15 = smov (!%p1026_p2), 7  }
  0x47   : > { %v1135_v55 = vld [vmem:[%s15272_s9 + $0x38] sm:$0xff] (!%p1026_p2)  ;;  %v1134_v56 = vld [vmem:[%s15272_s9 + $0x30] sm:$0xff] (!%p1026_p2)  ;;  %15000 = vset.pattern.permute.xlu0 (!%p1026_p2), %v17306_v57  ;;  %15001 = vset.pattern.permute.xlu1 (!%p1026_p2), %v17306_v57  ;;  %v1216_v58 = vld [vmem:[%s15277_s13] sm:$0xff] (!%p1026_p2)  ;;  %vm1485_vm0 = vcmask (!%p1026_p2), 56320   ;;  %vm1491_vm1 = vcmask (!%p1026_p2), 351232   ;;  %vm1523_vm2 = vcmask (!%p1026_p2), 261120  }
  0x48   : > { %v1217_v62 = vld [vmem:[%s15277_s13 + $0x8] sm:$0xff] (!%p1026_p2)  ;;  %s17320_s16 = smov (!%p1026_p2), 127   ;;  %s17316_s18 = smov (!%p1026_p2), 126   ;;  %vm3937_vm3 = vcmask (!%p1026_p2), 1043456   ;;  %vm15245_vm8 = vmmov (!%p1026_p2), 0   ;;  %vm3924_vm9 = vcmask (!%p1026_p2), 293888  }
  0x49   : > { %s15239_s22 = smov (!%p1026_p2), 122   ;;  %s15240_s23 = smov (!%p1026_p2), 121   ;;  %vm5893_vm14 = vcmask (!%p1026_p2), 89088   ;;  %vm5898_vm15 = vcmask (!%p1026_p2), 908288  }
  0x4a   : > { %s15241_s26 = smov (!%p1026_p2), 120   ;;  %s17312_s28 = smov (!%p1026_p2), 116  }
  0x4b   : > { %s15243_s1 = smov (!%p1026_p2), 115   ;;  %s15244_s2 = smov (!%p1026_p2), 114  }
  0x4d   : > { %s17379_s10 = smov (!%p1117_p3, %s11708_s10), 1 }
  0x4e   : > { %s12537_s0 = sshll.u32 %s17379_s10, 8 }
  0x4f   : > { %s15468_s11 = scalar_lea.vmem %s17349_s5, %s12537_s0  ;;  %s17350_s0 = sld [smem:[#allocation7_spill]] }
  0x50   : > { %v1184_v2 = vld [vmem:[%s15468_s11] sm:$0xff]  ;;  %v1185_v3 = vld [vmem:[%s15468_s11 + $0x8] sm:$0xff]  ;;  %v1186_v4 = vld [vmem:[%s15468_s11 + $0x10] sm:$0xff]  ;;  %s15257_s5 = smov 91  }
  0x51   : > { %v14129_v5 = vpack.c.bf16 %v1185_v3, %v1184_v2  ;;  %v1187_v6 = vld [vmem:[%s15468_s11 + $0x18] sm:$0xff]  ;;  %v1188_v8 = vld [vmem:[%s15468_s11 + $0x20] sm:$0xff]  ;;  %v1189_v9 = vld [vmem:[%s15468_s11 + $0x28] sm:$0xff] }
  0x52   : > { %v14132_v7 = vpack.c.bf16 %v1187_v6, %v1186_v4  ;;  %v14135_v10 = vpack.c.bf16 %v1189_v9, %v1188_v8  ;;  %v1190_v11 = vld [vmem:[%s15468_s11 + $0x30] sm:$0xff]  ;;  %v1191_v12 = vld [vmem:[%s15468_s11 + $0x38] sm:$0xff]  ;;  %v1192_v13 = vld [vmem:[%s15468_s11 + $0x40] sm:$0xff] }
  0x53   : > { %14130 = vmatpush1.bf16.msra.mxu0 %v14129_v5  ;;  %v1193_v14 = vld [vmem:[%s15468_s11 + $0x48] sm:$0xff]  ;;  %v14138_v15 = vpack.c.bf16 %v1191_v12, %v1190_v11  ;;  %v1194_v16 = vld [vmem:[%s15468_s11 + $0x50] sm:$0xff]  ;;  %v1195_v17 = vld [vmem:[%s15468_s11 + $0x58] sm:$0xff] }
  0x54   : > { %14131 = vmatprep.subr.bf16.mxu0 %v15234_v1  ;;  %v14141_v18 = vpack.c.bf16 %v1193_v14, %v1192_v13  ;;  %v1196_v19 = vld [vmem:[%s15468_s11 + $0x60] sm:$0xff]  ;;  %v1197_v20 = vld [vmem:[%s15468_s11 + $0x68] sm:$0xff]  ;;  %v14144_v21 = vpack.c.bf16 %v1195_v17, %v1194_v16  ;;  %v1198_v22 = vld [vmem:[%s15468_s11 + $0x70] sm:$0xff] }
  0x55   : > { %v1199_v23 = vld [vmem:[%s15468_s11 + $0x78] sm:$0xff]  ;;  %v14147_v24 = vpack.c.bf16 %v1197_v20, %v1196_v19  ;;  %v1200_v25 = vld [vmem:[%s15468_s11 + $0x80] sm:$0xff]  ;;  %v1201_v26 = vld [vmem:[%s15468_s11 + $0x88] sm:$0xff] }
  0x56   : > { %v14150_v27 = vpack.c.bf16 %v1199_v23, %v1198_v22  ;;  %v1202_v28 = vld [vmem:[%s15468_s11 + $0x90] sm:$0xff]  ;;  %v1203_v29 = vld [vmem:[%s15468_s11 + $0x98] sm:$0xff]  ;;  %v14153_v30 = vpack.c.bf16 %v1201_v26, %v1200_v25  ;;  %v1204_v31 = vld [vmem:[%s15468_s11 + $0xa0] sm:$0xff] }
  0x57   : > { %14133 = vmatpush1.bf16.msra.mxu0 %v14132_v7  ;;  %v1205_v32 = vld [vmem:[%s15468_s11 + $0xa8] sm:$0xff]  ;;  %v14156_v33 = vpack.c.bf16 %v1203_v29, %v1202_v28  ;;  %v1206_v34 = vld [vmem:[%s15468_s11 + $0xb0] sm:$0xff]  ;;  %v1207_v35 = vld [vmem:[%s15468_s11 + $0xb8] sm:$0xff] }
  0x58   : > { %14134 = vmatprep.subr.bf16.mxu0 %v15234_v1  ;;  %v14159_v36 = vpack.c.bf16 %v1205_v32, %v1204_v31  ;;  %v1208_v37 = vld [vmem:[%s15468_s11 + $0xc0] sm:$0xff]  ;;  %v1209_v38 = vld [vmem:[%s15468_s11 + $0xc8] sm:$0xff]  ;;  %v14162_v39 = vpack.c.bf16 %v1207_v35, %v1206_v34  ;;  %v1210_v40 = vld [vmem:[%s15468_s11 + $0xd0] sm:$0xff] }
  0x59   : > { %v1211_v41 = vld [vmem:[%s15468_s11 + $0xd8] sm:$0xff]  ;;  %v14165_v42 = vpack.c.bf16 %v1209_v38, %v1208_v37  ;;  %v1212_v43 = vld [vmem:[%s15468_s11 + $0xe0] sm:$0xff]  ;;  %v1213_v44 = vld [vmem:[%s15468_s11 + $0xe8] sm:$0xff] }
  0x5a   : > { %v14168_v45 = vpack.c.bf16 %v1211_v41, %v1210_v40  ;;  %v1214_v46 = vld [vmem:[%s15468_s11 + $0xf0] sm:$0xff]  ;;  %v1215_v47 = vld [vmem:[%s15468_s11 + $0xf8] sm:$0xff]  ;;  %v14171_v48 = vpack.c.bf16 %v1213_v44, %v1212_v43  ;;  %v1450_v19 = vld [vmem:[%s15282_s17 + $0x8] sm:$0xff]  ;;  %s17352_s11 = sld [smem:[#allocation5_spill]] }
  0x5b   : > { %14136 = vmatpush1.bf16.msra.mxu0 %v14135_v10  ;;  %v14174_v49 = vpack.c.bf16 %v1215_v47, %v1214_v46  ;;  %v1218_v3 = vld [vmem:[%s15277_s13 + $0x10] sm:$0xff]  ;;  %v1219_v10 = vld [vmem:[%s15277_s13 + $0x18] sm:$0xff]  ;;  %v2348_v38 = vld [vmem:[%s17348_s3] sm:$0xff] }
  0x5c   : > { %14137 = vmatprep.subr.bf16.mxu0 %v15234_v1  ;;  %v1451_v25 = vld [vmem:[%s15282_s17 + $0x10] sm:$0xff]  ;;  %v1452_v26 = vld [vmem:[%s15282_s17 + $0x18] sm:$0xff]  ;;  %v1137_v40 = vld [vmem:[%s15272_s9 + $0x48] sm:$0xff] }
  0x5d   : > { %v15002_v31 = vld [vmem:[%s15287_s21 + $0x10] sm:$0xff]   ;;  %v1136_v41 = vld [vmem:[%s15272_s9 + $0x40] sm:$0xff]  ;;  %v1141_v44 = vld [vmem:[%s15272_s9 + $0x68] sm:$0xff] }
  0x5e   : > { %13047 = vmatprep.mubr.msk.bf16.mxu1 %vm1523_vm2, %v15002_v31  ;;  %v1138_v43 = vld [vmem:[%s15272_s9 + $0x50] sm:$0xff]  ;;  %v1143_v46 = vld [vmem:[%s15272_s9 + $0x78] sm:$0xff] }
  0x5f   : > { %14139 = vmatpush1.bf16.msra.mxu0 %v14138_v15  ;;  %v1142_v47 = vld [vmem:[%s15272_s9 + $0x70] sm:$0xff] }
  0x60   : > { %14140 = vmatprep.subr.bf16.mxu0 %v15234_v1  ;;  %v2206_v31 = vld [vmem:[%s15292_s25 + $0x10] sm:$0xff] }
  0x63   : > { %14142 = vmatpush1.bf16.msra.mxu0 %v14141_v18  ;;  %v1449_v18 = vld [vmem:[%s15282_s17] sm:$0xff] }
  0x64   : > { %14143 = vmatprep.subr.bf16.mxu0 %v15234_v1 }
  0x67   : > { %14145 = vmatpush1.bf16.msra.mxu0 %v14144_v21 }
  0x68   : > { %14146 = vmatprep.subr.bf16.mxu0 %v15234_v1 }
  0x6b   : > { %14148 = vmatpush1.bf16.msra.mxu0 %v14147_v24 }
  0x6c   : > { %14149 = vmatprep.subr.bf16.mxu0 %v15234_v1 }
  0x6f   : > { %14151 = vmatpush1.bf16.msra.mxu0 %v14150_v27 }
  0x70   : > { %14152 = vmatprep.subr.bf16.mxu0 %v15234_v1 }
  0x73   : > { %14154 = vmatpush1.bf16.msra.mxu0 %v14153_v30 }
  0x74   : > { %14155 = vmatprep.subr.bf16.mxu0 %v15234_v1 }
  0x77   : > { %14157 = vmatpush1.bf16.msra.mxu0 %v14156_v33 }
  0x78   : > { %14158 = vmatprep.subr.bf16.mxu0 %v15234_v1 }
  0x7b   : > { %14160 = vmatpush1.bf16.msra.mxu0 %v14159_v36 }
  0x7c   : > { %14161 = vmatprep.subr.bf16.mxu0 %v15234_v1 }
  0x7f   : > { %14163 = vmatpush1.bf16.msra.mxu0 %v14162_v39  ;;  %v2349_v39 = vld [vmem:[%s17348_s3 + $0x8] sm:$0xff] }
  0x80   : > { %14164 = vmatprep.subr.bf16.mxu0 %v15234_v1 }
  0x83   : > { %14166 = vmatpush1.bf16.msra.mxu0 %v14165_v42  ;;  %v1139_v42 = vld [vmem:[%s15272_s9 + $0x58] sm:$0xff] }
  0x84   : > { %14167 = vmatprep.subr.bf16.mxu0 %v15234_v1 }
  0x87   : > { %14169 = vmatpush1.bf16.msra.mxu0 %v14168_v45  ;;  %v1140_v45 = vld [vmem:[%s15272_s9 + $0x60] sm:$0xff] }
  0x88   : > { %14170 = vmatprep.subr.bf16.mxu0 %v15234_v1 }
  0x8b   : > { %14172 = vmatpush1.bf16.msra.mxu0 %v14171_v48  ;;  %v1145_v48 = vld [vmem:[%s15272_s9 + $0x88] sm:$0xff] }
  0x8c   : > { %14173 = vmatprep.subr.bf16.mxu0 %v15234_v1 }
  0x8f   : > { %14175 = vmatpush1.bf16.msra.mxu0 %v14174_v49 }
  0x92   : > { %1309 = vmatmul.mubr.f32.vlgmr.msra.gmra.mrb[0].mxu0 %v1128_v50  ;;  %v1144_v50 = vld [vmem:[%s15272_s9 + $0x80] sm:$0xff] }
  0x93   : > { %1313 = vmatprep.mubr.f32.mxu0 %v1131_v51  ;;  %v1147_v51 = vld [vmem:[%s15272_s9 + $0x98] sm:$0xff] }
  0x96   : > { %1314 = vmatmul.mubr.f32.gmra.mrb[2].mxu0 %v1130_v52  ;;  %v1146_v52 = vld [vmem:[%s15272_s9 + $0x90] sm:$0xff] }
  0x97   : > { %1318 = vmatprep.mubr.f32.mxu0 %v1133_v53  ;;  %v1149_v53 = vld [vmem:[%s15272_s9 + $0xa8] sm:$0xff] }
  0x9a   : > { %1319 = vmatmul.mubr.f32.gmra.mrb[4].mxu0 %v1132_v54 }
  0x9b   : > { %1323 = vmatprep.mubr.f32.mxu0 %v1135_v55  ;;  %v1148_v55 = vld [vmem:[%s15272_s9 + $0xa0] sm:$0xff] }
  0x9e   : > { %1324 = vmatmul.mubr.f32.gmra.mrb[6].mxu0 %v1134_v56  ;;  %v15003_v56 = vld [vmem:[%s15287_s21 + $0x18] sm:$0xff]  }
  0x9f   : > { %1328 = vmatprep.mubr.f32.mxu0 %v1137_v40 }
  0xa2   : > { %1329 = vmatmul.mubr.f32.gmra.mrb[8].mxu0 %v1136_v41 }
  0xa3   : > { %1333 = vmatprep.mubr.f32.mxu0 %v1139_v42 }
  0xa6   : > { %1334 = vmatmul.mubr.f32.gmra.mrb[10].mxu0 %v1138_v43 }
  0xa7   : > { %1338 = vmatprep.mubr.f32.mxu0 %v1141_v44 }
  0xaa   : > { %1339 = vmatmul.mubr.f32.gmra.mrb[12].mxu0 %v1140_v45 }
  0xab   : > { %1343 = vmatprep.mubr.f32.mxu0 %v1143_v46 }
  0xae   : > { %1344 = vmatmul.mubr.f32.gmra.mrb[14].mxu0 %v1142_v47 }
  0xaf   : > { %1348 = vmatprep.mubr.f32.mxu0 %v1145_v48 }
  0xb2   : > { %1349 = vmatmul.mubr.f32.gmra.mrb[16].mxu0 %v1144_v50 }
  0xb3   : > { %1353 = vmatprep.mubr.f32.mxu0 %v1147_v51 }
  0xb6   : > { %1354 = vmatmul.mubr.f32.gmra.mrb[18].mxu0 %v1146_v52 }
  0xb7   : > { %1358 = vmatprep.mubr.f32.mxu0 %v1149_v53 }
  0xba   : > { %1359 = vmatmul.mubr.f32.gmra.mrb[20].mxu0 %v1148_v55 }
 0x165   : > { %v1310_v59 = vpop.f32.mrb[0].mxu0 }
 0x166   : > { %v1311_v60 = vadd.f32 %v1310_v59, %v1216_v58  ;;  %v1312_v61 = vpop.f32.mrb[1].mxu0  ;;  %v1151_v58 = vld [vmem:[%s15272_s9 + $0xb8] sm:$0xff]  ;;  %v15004_v59 = vld [vmem:[%s15287_s21] sm:$0xff]  }
 0x167   : > { %1363 = vmatprep.mubr.f32.mxu0 %v1151_v58 }
 0x168   : > { %1455 = vperm.xlu0 %15000, %v1311_v60   ;;  %v2208_v4 = vmul.f32 %v1311_v60, %v1311_v60  ;;  %v1150_v60 = vld [vmem:[%s15272_s9 + $0xb0] sm:$0xff] }
 0x169   : > { %v1315_v63 = vpop.f32.mrb[2].mxu0  ;;  %1364 = vmatmul.mubr.f32.gmra.mrb[22].mxu0 %v1150_v60 }
 0x16a   : > { %v1316_v0 = vadd.f32 %v1315_v63, %v1217_v62  ;;  %v1317_v2 = vpop.f32.mrb[3].mxu0  ;;  %v15005_v62 = vld [vmem:[%s15287_s21 + $0x8] sm:$0xff]   ;;  %v15006_v63 = vld [vmem:[%s15287_s21 + $0x20] sm:$0xff]  }
 0x16c   : > { %v2209_v5 = vmul.f32 %v1316_v0, %v1316_v0  ;;  %1460 = vperm.xlu0 %15000, %v1316_v0  }
 0x16d   : > { %v1320_v6 = vpop.f32.mrb[4].mxu0 }
 0x16e   : > { %v1321_v7 = vadd.f32 %v1320_v6, %v1218_v3  ;;  %v1322_v8 = vpop.f32.mrb[5].mxu0  ;;  %v15529_v9 = vpack.c.bf16 %v2209_v5, %v2208_v4  ;;  %v15007_v3 = vld [vmem:[%s15287_s21 + $0x28] sm:$0xff]   ;;  %v15008_v4 = vld [vmem:[%s15287_s21 + $0x30] sm:$0xff]  }
 0x16f   : > { %v15010_v8 = vld [vmem:[%s15287_s21 + $0x40] sm:$0xff]  }
 0x170   : > { %1465 = vperm.xlu1 %15001, %v1321_v7   ;;  %v2210_v14 = vmul.f32 %v1321_v7, %v1321_v7  ;;  %v15009_v7 = vld [vmem:[%s15287_s21 + $0x38] sm:$0xff]  }
 0x171   : > { %v1325_v11 = vpop.f32.mrb[6].mxu0 }
 0x172   : > { %v1326_v12 = vadd.f32 %v1325_v11, %v1219_v10  ;;  %v1327_v13 = vpop.f32.mrb[7].mxu0 }
 0x173   : > { %v15012_v13 = vld [vmem:[%s15287_s21 + $0x50] sm:$0xff]  }
 0x174   : > { %v2211_v15 = vmul.f32 %v1326_v12, %v1326_v12  ;;  %1470 = vperm.xlu1 %15001, %v1326_v12   ;;  %v15011_v12 = vld [vmem:[%s15287_s21 + $0x48] sm:$0xff]  }
 0x176   : > { %v15532_v16 = vpack.c.bf16 %v2211_v15, %v2210_v14 }
 0x1e7   : > { %v1456_v17 = vpop.permute.xlu0 %1455 }
 0x1e8   : > { %v1473_v21 = vmul.f32 %v1456_v17, %v1449_v18  ;;  %v15013_v17 = vld [vmem:[%s15287_s21 + $0x58] sm:$0xff]   ;;  %v15014_v18 = vld [vmem:[%s15287_s21 + $0x60] sm:$0xff]  }
 0x1eb   : > { %v1461_v20 = vpop.permute.xlu0 %1460 }
 0x1ec   : > { %v1474_v22 = vmul.f32 %v1461_v20, %v1450_v19 }
 0x1ee   : > { %v1477_v23 = vpack.c.bf16 %v1474_v22, %v1473_v21  ;;  %v15015_v21 = vld [vmem:[%s15287_s21 + $0x68] sm:$0xff]   ;;  %v15016_v22 = vld [vmem:[%s15287_s21 + $0x70] sm:$0xff]  }
 0x1ef   : > { %v1466_v24 = vpop.permute.xlu1 %1465 }
 0x1f0   : > { %1481 = vrot.lane.b32.xlu0 %v1477_v23, %s15236_s15  ;;  %v1475_v28 = vmul.f32 %v1466_v24, %v1451_v25  ;;  %v15017_v25 = vld [vmem:[%s15287_s21 + $0x78] sm:$0xff]  }
 0x1f3   : > { %v1471_v27 = vpop.permute.xlu1 %1470 }
 0x1f4   : > { %v1476_v29 = vmul.f32 %v1471_v27, %v1452_v26  ;;  %v15018_v26 = vld [vmem:[%s15287_s21 + $0x80] sm:$0xff]  }
 0x1f6   : > { %v1478_v30 = vpack.c.bf16 %v1476_v29, %v1475_v28  ;;  %v15019_v28 = vld [vmem:[%s15287_s21 + $0x88] sm:$0xff]   ;;  %v2204_v29 = vld [vmem:[%s15292_s25] sm:$0xff] }
 0x1f8   : > { %1483 = vrot.lane.b32.xlu1 %v1478_v30, %s15236_s15  ;;  %v2205_v30 = vld [vmem:[%s15292_s25 + $0x8] sm:$0xff] }
 0x262   : > { %v1482_v32 = vpop.permute.xlu0 %1481 }
 0x263   : > { %v15542_v33 = vsel %vm1485_vm0, 0, %v1482_v32  ;;  %v2207_v32 = vld [vmem:[%s15292_s25 + $0x18] sm:$0xff] }
 0x264   : > { %v15547_v34 = vsel %vm1491_vm1, %v15542_v33, 0 }
 0x265   : > { %1517 = vrot.lane.b32.xlu0 %v15547_v34, %s17320_s16 }
 0x269   : > { %1659 = vrot.lane.b32.xlu0 %v15547_v34, %s17316_s18 }
 0x26a   : > { %v1484_v35 = vpop.permute.xlu1 %1483 }
 0x26b   : > { %v15554_v36 = vsel %vm1485_vm0, 0, %v1484_v35 }
 0x26c   : > { %v15558_v37 = vsel %vm1491_vm1, %v15554_v36, 0 }
 0x26d   : > { %1519 = vrot.lane.b32.xlu1 %v15558_v37, %s17320_s16  ;;  %1739 = vrot.lane.b32.xlu0 %v15547_v34, %s15239_s22 }
 0x271   : > { %1661 = vrot.lane.b32.xlu1 %v15558_v37, %s17316_s18  ;;  %1819 = vrot.lane.b32.xlu0 %v15547_v34, %s15240_s23 }
 0x275   : > { %1741 = vrot.lane.b32.xlu1 %v15558_v37, %s15239_s22  ;;  %1899 = vrot.lane.b32.xlu0 %v15547_v34, %s15241_s26 }
 0x279   : > { %1821 = vrot.lane.b32.xlu1 %v15558_v37, %s15240_s23  ;;  %1979 = vrot.lane.b32.xlu0 %v15547_v34, %s17312_s28 }
 0x27d   : > { %1901 = vrot.lane.b32.xlu1 %v15558_v37, %s15241_s26  ;;  %2059 = vrot.lane.b32.xlu0 %v15547_v34, %s15243_s1 }
 0x281   : > { %1981 = vrot.lane.b32.xlu1 %v15558_v37, %s17312_s28  ;;  %2139 = vrot.lane.b32.xlu0 %v15547_v34, %s15244_s2 }
 0x285   : > { %2061 = vrot.lane.b32.xlu1 %v15558_v37, %s15243_s1  ;;  %2354 = vperm.xlu0 %15000, %v2348_v38  }
 0x289   : > { %2141 = vrot.lane.b32.xlu1 %v15558_v37, %s15244_s2 }
 0x28d   : > { %2359 = vperm.xlu1 %15001, %v2349_v39  }
 0x2d7   : > { %v1518_v49 = vpop.permute.xlu0 %1517 }
 0x2d8   : > { %13043 = vmatprep.subr.bf16.mxu1 %v1518_v49 }
 0x2d9   : > { %13044 = vmatpush3.bf16.msra.mxu1 %v1518_v49 }
 0x2db   : > { %v1660_v61 = vpop.permute.xlu0 %1659 }
 0x2df   : > { %v1520_v54 = vpop.permute.xlu1 %1519  ;;  %v1740_v2 = vpop.permute.xlu0 %1739 }
 0x2e0   : > { %13045 = vmatprep.subr.bf16.mxu1 %v1520_v54 }
 0x2e1   : > { %13046 = vmatpush3.bf16.msra.mxu1 %v1520_v54 }
 0x2e2   : > { %14917 = vmatprep.subr.msk.bf16.mxu1 %vm1491_vm1, %v15542_v33  ;;  %v15659_v33 = vpop.f32.mrb[8].mxu0 }
 0x2e3   : > { %v1662_v0 = vpop.permute.xlu1 %1661  ;;  %v1820_v6 = vpop.permute.xlu0 %1819 }
 0x2e4   : > { %13048 = vmatmul.mubr.msk.bf16.vlgmr.msra.gmra.mrb[0].mxu1 %vm1523_vm2, %v15003_v56 }
 0x2e5   : > { %13052 = vmatpush3.bf16.msra.mxu1 %v15547_v34  ;;  %13055 = vmatprep.mubr.msk.bf16.mxu1 %vm1523_vm2, %v15004_v59 }
 0x2e6   : > { %14918 = vmatprep.subr.msk.bf16.mxu1 %vm1491_vm1, %v15554_v36 }
 0x2e7   : > { %v1742_v5 = vpop.permute.xlu1 %1741  ;;  %v1900_v11 = vpop.permute.xlu0 %1899 }
 0x2e9   : > { %13054 = vmatpush3.bf16.msra.mxu1 %v15558_v37 }
 0x2ea   : > { %13059 = vmatprep.subr.bf16.mxu1 %v1660_v61 }
 0x2eb   : > { %v1822_v10 = vpop.permute.xlu1 %1821  ;;  %v1980_v15 = vpop.permute.xlu0 %1979 }
 0x2ef   : > { %v1902_v14 = vpop.permute.xlu1 %1901  ;;  %v2060_v20 = vpop.permute.xlu0 %2059 }
 0x2f0   : > { %13056 = vmatmul.mubr.msk.bf16.vlgmr.msra.gmra.mrb[0].mxu1 %vm1523_vm2, %v15005_v62 }
 0x2f1   : > { %13060 = vmatpush3.bf16.msra.mxu1 %v1660_v61  ;;  %13063 = vmatprep.mubr.msk.bf16.mxu1 %vm1523_vm2, %v15006_v63 }
 0x2f2   : > { %13061 = vmatprep.subr.bf16.mxu1 %v1662_v0 }
 0x2f3   : > { %v1982_v19 = vpop.permute.xlu1 %1981  ;;  %v2140_v24 = vpop.permute.xlu0 %2139 }
 0x2f5   : > { %13062 = vmatpush3.bf16.msra.mxu1 %v1662_v0  ;;  %v2351_v0 = vld [vmem:[%s17348_s3 + $0x18] sm:$0xff] }
 0x2f6   : > { %13067 = vmatprep.subr.bf16.mxu1 %v1740_v2 }
 0x2f7   : > { %v2062_v23 = vpop.permute.xlu1 %2061 }
 0x2fb   : > { %v2142_v27 = vpop.permute.xlu1 %2141 }
 0x2fc   : > { %13064 = vmatmul.mubr.msk.bf16.vlgmr.msra.gmra.mrb[0].mxu1 %vm1523_vm2, %v15007_v3  ;;  %v1225_v3 = vld [vmem:[%s15277_s13 + $0x48] sm:$0xff] }
 0x2fd   : > { %13068 = vmatpush3.bf16.msra.mxu1 %v1740_v2  ;;  %13071 = vmatprep.mubr.msk.bf16.mxu1 %vm1523_vm2, %v15008_v4  ;;  %v2350_v2 = vld [vmem:[%s17348_s3 + $0x10] sm:$0xff]  ;;  %v1224_v4 = vld [vmem:[%s15277_s13 + $0x40] sm:$0xff]  ;;  %s17372_s3 = smov 108  }
 0x2fe   : > { %13069 = vmatprep.subr.bf16.mxu1 %v1742_v5 }
 0x301   : > { %13070 = vmatpush3.bf16.msra.mxu1 %v1742_v5 }
 0x302   : > { %13075 = vmatprep.subr.bf16.mxu1 %v1820_v6 }
 0x308   : > { %13072 = vmatmul.mubr.msk.bf16.vlgmr.msra.gmra.mrb[0].mxu1 %vm1523_vm2, %v15009_v7  ;;  %v1227_v7 = vld [vmem:[%s15277_s13 + $0x58] sm:$0xff] }
 0x309   : > { %13076 = vmatpush3.bf16.msra.mxu1 %v1820_v6  ;;  %13079 = vmatprep.mubr.msk.bf16.mxu1 %vm1523_vm2, %v15010_v8  ;;  %v1226_v8 = vld [vmem:[%s15277_s13 + $0x50] sm:$0xff] }
 0x30a   : > { %13077 = vmatprep.subr.bf16.mxu1 %v1822_v10 }
 0x30d   : > { %13078 = vmatpush3.bf16.msra.mxu1 %v1822_v10 }
 0x30e   : > { %13083 = vmatprep.subr.bf16.mxu1 %v1900_v11 }
 0x314   : > { %13080 = vmatmul.mubr.msk.bf16.vlgmr.msra.gmra.mrb[0].mxu1 %vm1523_vm2, %v15011_v12  ;;  %v3255_v12 = vld [vmem:[%s15332_s6] sm:$0xff] }
 0x315   : > { %13084 = vmatpush3.bf16.msra.mxu1 %v1900_v11  ;;  %13087 = vmatprep.mubr.msk.bf16.mxu1 %vm1523_vm2, %v15012_v13  ;;  %v3256_v13 = vld [vmem:[%s15332_s6 + $0x8] sm:$0xff] }
 0x316   : > { %13085 = vmatprep.subr.bf16.mxu1 %v1902_v14 }
 0x319   : > { %13086 = vmatpush3.bf16.msra.mxu1 %v1902_v14  ;;  %v3257_v14 = vld [vmem:[%s15332_s6 + $0x10] sm:$0xff] }
 0x31a   : > { %13091 = vmatprep.subr.bf16.mxu1 %v1980_v15 }
 0x320   : > { %13088 = vmatmul.mubr.msk.bf16.vlgmr.msra.gmra.mrb[0].mxu1 %vm1523_vm2, %v15013_v17  ;;  %v3258_v17 = vld [vmem:[%s15332_s6 + $0x18] sm:$0xff] }
 0x321   : > { %13092 = vmatpush3.bf16.msra.mxu1 %v1980_v15  ;;  %13095 = vmatprep.mubr.msk.bf16.mxu1 %vm1523_vm2, %v15014_v18  ;;  %v14198_v15 = vpack.c.bf16 %v3256_v13, %v3255_v12  ;;  %v14202_v18 = vpack.c.bf16 %v3258_v17, %v3257_v14  ;;  %v1222_v17 = vld [vmem:[%s15277_s13 + $0x30] sm:$0xff] }
 0x322   : > { %13093 = vmatprep.subr.bf16.mxu1 %v1982_v19 }
 0x323   : > { %14199 = vmatprep.subr.bf16.mxu0 %v14198_v15 }
 0x324   : > { %14201 = vmatpush3.bf16.msra.mxu0 %v14198_v15  ;;  %v1221_v15 = vld [vmem:[%s15277_s13 + $0x28] sm:$0xff] }
 0x325   : > { %13094 = vmatpush3.bf16.msra.mxu1 %v1982_v19  ;;  %14203 = vmatprep.subr.bf16.mxu0 %v14202_v18  ;;  %v3259_v19 = vld [vmem:[%s15332_s6 + $0x20] sm:$0xf] }
 0x326   : > { %13099 = vmatprep.subr.bf16.mxu1 %v2060_v20 }
 0x328   : > { %14205 = vmatpush3.bf16.msra.mxu0 %v14202_v18 }
 0x329   : > { %13308 = vmatprep.subr.msk.mxu0 %vm3937_vm3, %v3259_v19 }
 0x32c   : > { %13096 = vmatmul.mubr.msk.bf16.vlgmr.msra.gmra.mrb[0].mxu1 %vm1523_vm2, %v15015_v21  ;;  %13309 = vmatpush3.msk.msra.mxu0 %vm3937_vm3, %v3259_v19  ;;  %v2355_v21 = vpop.permute.xlu0 %2354 }
 0x32d   : > { %13100 = vmatpush3.bf16.msra.mxu1 %v2060_v20  ;;  %13103 = vmatprep.mubr.msk.bf16.mxu1 %vm1523_vm2, %v15016_v22  ;;  %v2360_v20 = vpop.permute.xlu1 %2359  ;;  %v11788_v22 = vld [vmem:[%s15297_s29] ss:$0 sm:$0xff] }
 0x32e   : > { %13101 = vmatprep.subr.bf16.mxu1 %v2062_v23 }
 0x331   : > { %13102 = vmatpush3.bf16.msra.mxu1 %v2062_v23 }
 0x332   : > { %13107 = vmatprep.subr.bf16.mxu1 %v2140_v24 }
 0x338   : > { %13104 = vmatmul.mubr.msk.bf16.vlgmr.msra.gmra.mrb[0].mxu1 %vm1523_vm2, %v15017_v25 }
 0x339   : > { %13108 = vmatpush3.bf16.msra.mxu1 %v2140_v24  ;;  %13111 = vmatprep.mubr.msk.bf16.mxu1 %vm1523_vm2, %v15018_v26 }
 0x33a   : > { %13109 = vmatprep.subr.bf16.mxu1 %v2142_v27 }
 0x33d   : > { %13110 = vmatpush3.bf16.msra.mxu1 %v2142_v27 }
 0x33e   : > { %14177 = vmatprep.subr.bf16.mxu1 %v15529_v9 }
 0x344   : > { %13112 = vmatmul.mubr.msk.bf16.vlgmr.msra.gmra.mrb[0].mxu1 %vm1523_vm2, %v15019_v28 }
 0x345   : > { %14179 = vmatpush3.bf16.msra.mxu1 %v15529_v9  ;;  %13123 = vmatprep.mubr.msk.f32.mxu1 %vm1523_vm2, %v2204_v29  ;;  %v1332_v9 = vpop.f32.mrb[9].mxu0 }
 0x346   : > { %14181 = vmatprep.subr.bf16.mxu1 %v15532_v16  ;;  %v15661_v34 = vpop.f32.mrb[10].mxu0 }
 0x347   : > { %v1337_v35 = vpop.f32.mrb[11].mxu0  ;;  %v1336_v18 = vadd.f32 %v15661_v34, %v1221_v15  ;;  %v1153_v15 = vld [vmem:[%s15272_s9 + $0xc8] sm:$0xff] }
 0x348   : > { %v15663_v36 = vpop.f32.mrb[12].mxu0  ;;  %1368 = vmatprep.mubr.f32.mxu0 %v1153_v15  ;;  %v1178_v15 = vld [vmem:[%s15272_s9 + $0x190] sm:$0xff] }
 0x349   : > { %14183 = vmatpush3.bf16.msra.mxu1 %v15532_v16  ;;  %v1342_v16 = vpop.f32.mrb[13].mxu0  ;;  %v1341_v19 = vadd.f32 %v15663_v36, %v1222_v17  ;;  %v1152_v17 = vld [vmem:[%s15272_s9 + $0xc0] sm:$0xff] }
 0x34a   : > { %14184 = vmatprep.subr.bf16.mxu1 %v15234_v1  ;;  %v15665_v37 = vpop.f32.mrb[14].mxu0  ;;  %1369 = vmatmul.mubr.f32.gmra.mrb[24].mxu0 %v1152_v17  ;;  %v1181_v17 = vld [vmem:[%s15272_s9 + $0x1a8] sm:$0xff] }
 0x34b   : > { %v1347_v38 = vpop.f32.mrb[15].mxu0 }
 0x34c   : > { %13124 = vmatmul.mubr.msk.f32.vlgmr.msra.gmra.mrb[4].mxu1 %vm1523_vm2, %v2205_v30  ;;  %v1350_v39 = vpop.f32.mrb[16].mxu0 }
 0x34d   : > { %13126 = vmatprep.mubr.msk.f32.mxu1 %vm1523_vm2, %v2206_v31  ;;  %v1352_v40 = vpop.f32.mrb[17].mxu0  ;;  %v15677_v6 = vadd.f32 %v1350_v39, %v1224_v4 }
 0x34e   : > { %v1355_v41 = vpop.f32.mrb[18].mxu0 }
 0x34f   : > { %v1357_v42 = vpop.f32.mrb[19].mxu0  ;;  %v15675_v5 = vadd.f32 %v1355_v41, %v1225_v3 }
 0x350   : > { %13127 = vmatmul.mubr.msk.f32.gmra.mrb[6].mxu1 %vm1523_vm2, %v2207_v32  ;;  %v1360_v43 = vpop.f32.mrb[20].mxu0 }
 0x351   : > { %v1362_v44 = vpop.f32.mrb[21].mxu0  ;;  %v15685_v11 = vadd.f32 %v1360_v43, %v1226_v8 }
 0x352   : > { %v1365_v45 = vpop.f32.mrb[22].mxu0 }
 0x353   : > { %v1367_v46 = vpop.f32.mrb[23].mxu0  ;;  %v15683_v10 = vadd.f32 %v1365_v45, %v1227_v7  ;;  %v11789_v45 = vld [vmem:[%s15317_s19] ss:$0 sm:$0xff] }
 0x354   : > { %v1220_v7 = vld [vmem:[%s15277_s13 + $0x20] sm:$0xff] }
 0x355   : > { %v1331_v13 = vadd.f32 %v15659_v33, %v1220_v7  ;;  %v15034_v7 = vld [vmem:[%s15322_s24 + $0x70] sm:$0xff]  }
 0x417   : > { %v15667_v47 = vpop.f32.mrb[0].mxu1 }
 0x418   : > { %v2185_v48 = vpop.f32.mrb[1].mxu1 }
 0x419   : > { %v15669_v49 = vpop.f32.mrb[2].mxu1 }
 0x41a   : > { %v2188_v50 = vpop.f32.mrb[3].mxu1 }
 0x41f   : > { %v13125_v51 = vpop.f32.mrb[4].mxu1 }
 0x420   : > { %v2296_v52 = vadd.f32 1e-08, %v13125_v51  ;;  %v2290_v53 = vpop.f32.mrb[5].mxu1 }
 0x421   : > { %v2291_v54 = vadd.f32 1e-08, %v2290_v53 }
 0x422   : > { %15155 = vrsqrt.f32 %v2296_v52 }
 0x423   : > { %15157 = vrsqrt.f32 %v2291_v54  ;;  %v13128_v55 = vpop.f32.mrb[6].mxu1 }
 0x424   : > { %v2306_v56 = vadd.f32 1e-08, %v13128_v55  ;;  %v2300_v58 = vpop.f32.mrb[7].mxu1 }
 0x425   : > { %v2301_v59 = vadd.f32 1e-08, %v2300_v58 }
 0x426   : > { %15159 = vrsqrt.f32 %v2306_v56 }
 0x427   : > { %15161 = vrsqrt.f32 %v2301_v59 }
 0x42c   : > { %v15156_v60 = vpop.eup %15155 }
 0x42d   : > { %v15158_v61 = vpop.eup %15157  ;;  %2320 = vperm.xlu1 %15001, %v15156_v60  }
 0x42e   : > { %2315 = vperm.xlu0 %15000, %v15158_v61  }
 0x430   : > { %v15160_v62 = vpop.eup %15159 }
 0x431   : > { %v15162_v63 = vpop.eup %15161  ;;  %2330 = vperm.xlu1 %15001, %v15160_v62  }
 0x432   : > { %2325 = vperm.xlu0 %15000, %v15162_v63  }
 0x435   : > { %2369 = vperm.xlu1 %15001, %v2351_v0  }
 0x436   : > { %2364 = vperm.xlu0 %15000, %v2350_v2  }
 0x439   : > { %2515 = vperm.xlu1 %15001, %v15675_v5  }
 0x43a   : > { %2510 = vperm.xlu0 %15000, %v15677_v6  }
 0x43d   : > { %2525 = vperm.xlu1 %15001, %v15683_v10  }
 0x43e   : > { %2520 = vperm.xlu0 %15000, %v15685_v11  }
 0x4ac   : > { %v2321_v23 = vpop.permute.xlu1 %2320 }
 0x4ad   : > { %v2334_v24 = vmul.f32 %v2321_v23, %v2188_v50  ;;  %v2316_v25 = vpop.permute.xlu0 %2315 }
 0x4ae   : > { %v2333_v26 = vmul.f32 %v2316_v25, %v2185_v48 }
 0x4af   : > { %v2345_v27 = vadd.f32 %v11788_v22, %v2334_v24 }
 0x4b0   : > { %v2344_v28 = vadd.f32 %v11788_v22, %v2333_v26  ;;  %v2331_v29 = vpop.permute.xlu1 %2330 }
 0x4b1   : > { %v2373_v30 = vadd.f32 %v2360_v20, %v2345_v27  ;;  %v2336_v31 = vmul.f32 %v15669_v49, %v2331_v29  ;;  %v2326_v32 = vpop.permute.xlu0 %2325  ;;  %v1223_v20 = vld [vmem:[%s15277_s13 + $0x38] sm:$0xff] }
 0x4b2   : > { %v2372_v9 = vadd.f32 %v2355_v21, %v2344_v28  ;;  %v2335_v35 = vmul.f32 %v15667_v47, %v2326_v32  ;;  %v1346_v21 = vadd.f32 %v15665_v37, %v1223_v20  ;;  %v1154_v20 = vld [vmem:[%s15272_s9 + $0xd0] sm:$0xff] }
 0x4b3   : > { %v2381_v16 = vmul.f32 0.2, %v2373_v30  ;;  %v2347_v38 = vadd.f32 %v11788_v22, %v2336_v31  ;;  %vm2377_vm4 = vcmp.ge.f32.partialorder %v2373_v30, 0.0 }
 0x4b4   : > { %v2380_v39 = vmul.f32 0.2, %v2372_v9  ;;  %v2370_v40 = vpop.permute.xlu1 %2369  ;;  %v2346_v41 = vadd.f32 %v11788_v22, %v2335_v35  ;;  %vm2376_vm5 = vcmp.ge.f32.partialorder %v2372_v9, 0.0  ;;  %v17308_v22 = vmov 0.0  }
 0x4b5   : > { %v2375_v42 = vadd.f32 %v2370_v40, %v2347_v38  ;;  %v2365_v43 = vpop.permute.xlu0 %2364  ;;  %v2385_v44 = vsel %vm2377_vm4, %v2373_v30, %v2381_v16  ;;  %13137 = vmatprep.mubr.msk.f32.mxu1 %vm15245_vm8, %v17308_v22  ;;  %v2403_v16 = vld [vmem:[%s15307_s8] sm:$0x7]  ;;  %v15020_v38 = vld [vmem:[%s15322_s24 + $0x10] sm:$0xff]   ;;  %v5807_v40 = vld [vmem:[%s15342_s20 + $0x8] sm:$0xff] }
 0x4b6   : > { %v2374_v46 = vadd.f32 %v2365_v43, %v2346_v41  ;;  %v2389_v48 = vmul.f32 1.4142135, %v2385_v44  ;;  %v2384_v50 = vsel %vm2376_vm5, %v2372_v9, %v2380_v39  ;;  %v5806_v39 = vld [vmem:[%s15342_s20] sm:$0xff]  ;;  %v15021_v43 = vld [vmem:[%s15322_s24 + $0x18] sm:$0xff]  }
 0x4b7   : > { %vm2379_vm6 = vcmp.ge.f32.partialorder %v2375_v42, 0.0  ;;  %v2383_v49 = vmul.f32 0.2, %v2375_v42  ;;  %v2388_v51 = vmul.f32 1.4142135, %v2384_v50  ;;  %v15022_v44 = vld [vmem:[%s15322_s24] sm:$0xff]  }
 0x4b8   : > { %vm2378_vm7 = vcmp.ge.f32.partialorder %v2374_v46, 0.0  ;;  %v2382_v52 = vmul.f32 0.2, %v2374_v46  ;;  %v2400_v47 = vmul.f32 %v11789_v45, %v2389_v48  ;;  %v2516_v53 = vpop.permute.xlu1 %2515  ;;  %v15024_v48 = vld [vmem:[%s15322_s24 + $0x20] sm:$0xff]  }
 0x4b9   : > { %v2399_v54 = vmul.f32 %v11789_v45, %v2388_v51  ;;  %v2511_v55 = vpop.permute.xlu0 %2510  ;;  %v2387_v56 = vsel %vm2379_vm6, %v2375_v42, %v2383_v49  ;;  %v15025_v51 = vld [vmem:[%s15322_s24 + $0x28] sm:$0xff]   ;;  %vm8120_vm6 = vcmask 818176  }
 0x4ba   : > { %v2529_v58 = vmul.f32 %v2516_v53, %v2400_v47  ;;  %v2391_v59 = vmul.f32 1.4142135, %v2387_v56  ;;  %v2386_v60 = vsel %vm2378_vm7, %v2374_v46, %v2382_v52  ;;  %v15023_v46 = vld [vmem:[%s15322_s24 + $0x8] sm:$0xff]   ;;  %v15026_v52 = vld [vmem:[%s15322_s24 + $0x30] sm:$0xff]  }
 0x4bb   : > { %v2528_v61 = vmul.f32 %v2511_v55, %v2399_v54  ;;  %v2390_v62 = vmul.f32 1.4142135, %v2386_v60  ;;  %v15028_v55 = vld [vmem:[%s15322_s24 + $0x40] sm:$0xff]   ;;  %v15030_v60 = vld [vmem:[%s15322_s24 + $0x50] sm:$0xff]  }
 0x4bc   : > { %v2402_v63 = vmul.f32 %v11789_v45, %v2391_v59  ;;  %v2526_v0 = vpop.permute.xlu1 %2525  ;;  %v15029_v59 = vld [vmem:[%s15322_s24 + $0x48] sm:$0xff]  }
 0x4bd   : > { %v2532_v2 = vpack.c.bf16 %v2529_v58, %v2528_v61  ;;  %v2401_v3 = vmul.f32 %v11789_v45, %v2390_v62  ;;  %v2521_v4 = vpop.permute.xlu0 %2520 }
 0x4be   : > { %v2531_v8 = vmul.f32 %v2526_v0, %v2402_v63  ;;  %v15032_v0 = vld [vmem:[%s15322_s24 + $0x60] sm:$0xff]  }
 0x4bf   : > { %v2530_v12 = vmul.f32 %v2521_v4, %v2401_v3  ;;  %2536 = vrot.lane.b32.xlu0 %v2532_v2, %s15236_s15  ;;  %v15033_v4 = vld [vmem:[%s15322_s24 + $0x68] sm:$0xff]  }
 0x4c1   : > { %v2533_v14 = vpack.c.bf16 %v2531_v8, %v2530_v12 }
 0x4c3   : > { %2406 = vperm.xlu0 %15000, %v1331_v13   ;;  %2538 = vrot.lane.b32.xlu1 %v2533_v14, %s15236_s15  ;;  %v15035_v13 = vld [vmem:[%s15322_s24 + $0x78] sm:$0xff]   ;;  %v15036_v14 = vld [vmem:[%s15322_s24 + $0x80] sm:$0xff]   ;;  %s17353_s15 = sld [smem:[#allocation12_spill]] }
 0x4c7   : > { %2416 = vperm.xlu0 %15000, %v1341_v19   ;;  %2411 = vperm.xlu1 %15001, %v1336_v18   ;;  %v1155_v18 = vld [vmem:[%s15272_s9 + $0xd8] sm:$0xff] }
 0x4c8   : > { %1373 = vmatprep.mubr.f32.mxu0 %v1155_v18  ;;  %v15045_v18 = vld [vmem:[%s15322_s24 + $0xc8] sm:$0xff]  }
 0x4c9   : > { %1374 = vmatmul.mubr.f32.gmra.mrb[26].mxu0 %v1154_v20  ;;  %v15046_v20 = vld [vmem:[%s15322_s24 + $0xd0] sm:$0xff]  }
 0x4cb   : > { %2421 = vperm.xlu1 %15001, %v1346_v21   ;;  %v1157_v21 = vld [vmem:[%s15272_s9 + $0xe8] sm:$0xff] }
 0x4cc   : > { %1378 = vmatprep.mubr.f32.mxu0 %v1157_v21  ;;  %v1180_v21 = vld [vmem:[%s15272_s9 + $0x1a0] sm:$0xff] }
 0x531   : > { %v2537_v33 = vpop.permute.xlu0 %2536 }
 0x532   : > { %v15713_v23 = vsel %vm1485_vm0, 0, %v2537_v33  ;;  %v1156_v33 = vld [vmem:[%s15272_s9 + $0xe0] sm:$0xff] }
 0x533   : > { %v15717_v34 = vsel %vm1491_vm1, %v15713_v23, 0  ;;  %14923 = vmatprep.subr.msk.bf16.mxu0 %vm1491_vm1, %v15713_v23  ;;  %1379 = vmatmul.mubr.f32.gmra.mrb[28].mxu0 %v1156_v33  ;;  %v1183_v33 = vld [vmem:[%s15272_s9 + $0x1b8] sm:$0xff] }
 0x534   : > { %2569 = vrot.lane.b32.xlu0 %v15717_v34, %s17320_s16 }
 0x535   : > { %v2539_v36 = vpop.permute.xlu1 %2538 }
 0x536   : > { %v15724_v37 = vsel %vm1485_vm0, 0, %v2539_v36  ;;  %v1159_v36 = vld [vmem:[%s15272_s9 + $0xf8] sm:$0xff] }
 0x537   : > { %v15728_v24 = vsel %vm1491_vm1, %v15724_v37, 0  ;;  %1383 = vmatprep.mubr.f32.mxu0 %v1159_v36  ;;  %v1182_v36 = vld [vmem:[%s15272_s9 + $0x1b0] sm:$0xff] }
 0x538   : > { %2571 = vrot.lane.b32.xlu1 %v15728_v24, %s17320_s16  ;;  %2710 = vrot.lane.b32.xlu0 %v15717_v34, %s17316_s18 }
 0x53c   : > { %2712 = vrot.lane.b32.xlu1 %v15728_v24, %s17316_s18  ;;  %2790 = vrot.lane.b32.xlu0 %v15717_v34, %s15239_s22 }
 0x540   : > { %2792 = vrot.lane.b32.xlu1 %v15728_v24, %s15239_s22  ;;  %2870 = vrot.lane.b32.xlu0 %v15717_v34, %s15240_s23  ;;  %s17354_s22 = sld [smem:[#allocation6_spill]] }
 0x542   : > { %v2407_v25 = vpop.permute.xlu0 %2406 }
 0x543   : > { %v2424_v27 = vmul.f32 %v2407_v25, %v2399_v54  ;;  %v15027_v54 = vld [vmem:[%s15322_s24 + $0x38] sm:$0xff]   ;;  %v15037_v25 = vld [vmem:[%s15322_s24 + $0x88] sm:$0xff]  }
 0x544   : > { %2872 = vrot.lane.b32.xlu1 %v15728_v24, %s15240_s23  ;;  %2950 = vrot.lane.b32.xlu0 %v15717_v34, %s15241_s26  ;;  %s15247_s23 = smov 11  }
 0x546   : > { %v2412_v26 = vpop.permute.xlu1 %2411  ;;  %v2417_v29 = vpop.permute.xlu0 %2416 }
 0x547   : > { %v2425_v28 = vmul.f32 %v2412_v26, %v2400_v47  ;;  %v2426_v32 = vmul.f32 %v2417_v29, %v2401_v3  ;;  %v15038_v26 = vld [vmem:[%s15322_s24 + $0xa0] sm:$0xff]  }
 0x548   : > { %2952 = vrot.lane.b32.xlu1 %v15728_v24, %s15241_s26  ;;  %3030 = vrot.lane.b32.xlu0 %v15717_v34, %s17312_s28  ;;  %v1160_v29 = vld [vmem:[%s15272_s9 + $0x100] sm:$0xff]  ;;  %s15248_s26 = smov 118  }
 0x549   : > { %v14185_v30 = vpack.c.bf16 %v2425_v28, %v2424_v27  ;;  %v1158_v27 = vld [vmem:[%s15272_s9 + $0xf0] sm:$0xff]  ;;  %v1161_v28 = vld [vmem:[%s15272_s9 + $0x108] sm:$0xff] }
 0x54a   : > { %v2422_v31 = vpop.permute.xlu1 %2421  ;;  %1384 = vmatmul.mubr.f32.gmra.mrb[30].mxu0 %v1158_v27  ;;  %v15049_v27 = vld [vmem:[%s15322_s24 + $0xe8] sm:$0xff]  }
 0x54b   : > { %v2427_v9 = vmul.f32 %v2422_v31, %v2402_v63  ;;  %14186 = vmatpush3.bf16.msra.mxu1 %v14185_v30  ;;  %v15031_v63 = vld [vmem:[%s15322_s24 + $0x58] sm:$0xff]   ;;  %1388 = vmatprep.mubr.f32.mxu0 %v1161_v28  ;;  %v15039_v31 = vld [vmem:[%s15322_s24 + $0xa8] sm:$0xff]   ;;  %v15050_v28 = vld [vmem:[%s15322_s24 + $0xf0] sm:$0xff]  }
 0x54c   : > { %3032 = vrot.lane.b32.xlu1 %v15728_v24, %s17312_s28  ;;  %3110 = vrot.lane.b32.xlu0 %v15717_v34, %s15243_s1  ;;  %v1163_v30 = vld [vmem:[%s15272_s9 + $0x118] sm:$0xff] }
 0x54d   : > { %v14188_v35 = vpack.c.bf16 %v2427_v9, %v2426_v32  ;;  %14187 = vmatprep.subr.bf16.mxu1 %v15234_v1  ;;  %v15040_v32 = vld [vmem:[%s15322_s24 + $0x90] sm:$0xff]  }
 0x54e   : > { %1389 = vmatmul.mubr.f32.gmra.mrb[32].mxu0 %v1160_v29  ;;  %v1162_v9 = vld [vmem:[%s15272_s9 + $0x110] sm:$0xff]  ;;  %v15051_v29 = vld [vmem:[%s15322_s24 + $0xf8] sm:$0xff]  }
 0x54f   : > { %14189 = vmatpush3.bf16.msra.mxu1 %v14188_v35  ;;  %1393 = vmatprep.mubr.f32.mxu0 %v1163_v30  ;;  %v1165_v35 = vld [vmem:[%s15272_s9 + $0x128] sm:$0xff]  ;;  %v15052_v30 = vld [vmem:[%s15322_s24 + $0x100] sm:$0xff]  }
 0x550   : > { %3112 = vrot.lane.b32.xlu1 %v15728_v24, %s15243_s1  ;;  %3190 = vrot.lane.b32.xlu0 %v15717_v34, %s15244_s2  ;;  %s17310_s1 = smov 117  }
 0x552   : > { %13138 = vmatmul.mubr.msk.f32.vlgmr.msra.gmra.mrb[8].mxu1 %vm1523_vm2, %v2403_v16  ;;  %1394 = vmatmul.mubr.f32.gmra.mrb[34].mxu0 %v1162_v9  ;;  %v1164_v16 = vld [vmem:[%s15272_s9 + $0x120] sm:$0xff]  ;;  %v11931_v9 = vld [vmem:[%s15332_s6 + $0x28] sm:$0xff] }
 0x553   : > { %13144 = vmatprep.mubr.msk.bf16.mxu1 %vm1523_vm2, %v15020_v38  ;;  %1398 = vmatprep.mubr.f32.mxu0 %v1165_v35  ;;  %v1167_v38 = vld [vmem:[%s15272_s9 + $0x138] sm:$0xff]  ;;  %v11932_v35 = vld [vmem:[%s15332_s6 + $0x30] sm:$0xff] }
 0x554   : > { %3192 = vrot.lane.b32.xlu1 %v15728_v24, %s15244_s2  ;;  %5812 = vperm.xlu0 %15000, %v5806_v39   ;;  %v1166_v39 = vld [vmem:[%s15272_s9 + $0x130] sm:$0xff]  ;;  %s17318_s2 = smov 108  }
 0x556   : > { %1399 = vmatmul.mubr.f32.gmra.mrb[36].mxu0 %v1164_v16  ;;  %v14190_v16 = vpack.c.bf16 %v11932_v35, %v11931_v9 }
 0x557   : > { %1403 = vmatprep.mubr.f32.mxu0 %v1167_v38  ;;  %v11933_v38 = vld [vmem:[%s15332_s6 + $0x38] sm:$0xff] }
 0x558   : > { %5817 = vperm.xlu1 %15001, %v5807_v40   ;;  %v1169_v40 = vld [vmem:[%s15272_s9 + $0x148] sm:$0xff] }
 0x55a   : > { %1404 = vmatmul.mubr.f32.gmra.mrb[38].mxu0 %v1166_v39  ;;  %v11934_v39 = vld [vmem:[%s15332_s6 + $0x40] sm:$0xff] }
 0x55b   : > { %1408 = vmatprep.mubr.f32.mxu0 %v1169_v40  ;;  %v15055_v40 = vld [vmem:[%s15322_s24 + $0x118] sm:$0xff]  }
 0x5a6   : > { %v15767_v41 = vpop.permute.xlu0 %2569 }
 0x5a7   : > { %13140 = vmatprep.subr.bf16.mxu1 %v15767_v41 }
 0x5a8   : > { %13141 = vmatpush3.bf16.msra.mxu1 %v15767_v41 }
 0x5aa   : > { %v15771_v42 = vpop.permute.xlu1 %2571  ;;  %v15784_v45 = vpop.permute.xlu0 %2710 }
 0x5ab   : > { %13142 = vmatprep.subr.bf16.mxu1 %v15771_v42 }
 0x5ac   : > { %13143 = vmatpush3.bf16.msra.mxu1 %v15771_v42 }
 0x5ad   : > { %14919 = vmatprep.subr.msk.bf16.mxu1 %vm1491_vm1, %v15713_v23 }
 0x5ae   : > { %v15791_v50 = vpop.permute.xlu1 %2712  ;;  %v15796_v49 = vpop.permute.xlu0 %2790 }
 0x5af   : > { %13145 = vmatmul.mubr.msk.bf16.vlgmr.msra.gmra.mrb[12].mxu1 %vm1523_vm2, %v15021_v43  ;;  %v15041_v43 = vld [vmem:[%s15322_s24 + $0x98] sm:$0xff]  }
 0x5b0   : > { %13149 = vmatpush3.bf16.msra.mxu1 %v15717_v34  ;;  %13152 = vmatprep.mubr.msk.bf16.mxu1 %vm1523_vm2, %v15022_v44  ;;  %v15042_v44 = vld [vmem:[%s15322_s24 + $0xb0] sm:$0xff]  }
 0x5b1   : > { %14920 = vmatprep.subr.msk.bf16.mxu1 %vm1491_vm1, %v15724_v37 }
 0x5b2   : > { %v15803_v47 = vpop.permute.xlu1 %2792  ;;  %v15808_v53 = vpop.permute.xlu0 %2870 }
 0x5b4   : > { %13151 = vmatpush3.bf16.msra.mxu1 %v15728_v24 }
 0x5b5   : > { %13156 = vmatprep.subr.bf16.mxu1 %v15784_v45 }
 0x5b6   : > { %v15815_v56 = vpop.permute.xlu1 %2872  ;;  %v15820_v58 = vpop.permute.xlu0 %2950 }
 0x5ba   : > { %v15827_v61 = vpop.permute.xlu1 %2952  ;;  %v15832_v62 = vpop.permute.xlu0 %3030 }
 0x5bb   : > { %13153 = vmatmul.mubr.msk.bf16.vlgmr.msra.gmra.mrb[12].mxu1 %vm1523_vm2, %v15023_v46  ;;  %v1168_v46 = vld [vmem:[%s15272_s9 + $0x140] sm:$0xff] }
 0x5bc   : > { %13157 = vmatpush3.bf16.msra.mxu1 %v15784_v45  ;;  %13160 = vmatprep.mubr.msk.bf16.mxu1 %vm1523_vm2, %v15024_v48  ;;  %v1171_v48 = vld [vmem:[%s15272_s9 + $0x158] sm:$0xff] }
 0x5bd   : > { %13158 = vmatprep.subr.bf16.mxu1 %v15791_v50  ;;  %1409 = vmatmul.mubr.f32.gmra.mrb[40].mxu0 %v1168_v46  ;;  %v15987_v46 = vpop.f32.mrb[24].mxu0 }
 0x5be   : > { %v15839_v2 = vpop.permute.xlu1 %3032  ;;  %v15844_v3 = vpop.permute.xlu0 %3110  ;;  %1413 = vmatprep.mubr.f32.mxu0 %v1171_v48 }
 0x5bf   : > { %v1372_v48 = vpop.f32.mrb[25].mxu0 }
 0x5c0   : > { %13159 = vmatpush3.bf16.msra.mxu1 %v15791_v50 }
 0x5c1   : > { %13164 = vmatprep.subr.bf16.mxu1 %v15796_v49 }
 0x5c2   : > { %v15851_v8 = vpop.permute.xlu1 %3112  ;;  %v15856_v12 = vpop.permute.xlu0 %3190 }
 0x5c6   : > { %v15866_v19 = vpop.permute.xlu1 %3192 }
 0x5c7   : > { %13161 = vmatmul.mubr.msk.bf16.vlgmr.msra.gmra.mrb[12].mxu1 %vm1523_vm2, %v15025_v51  ;;  %v1170_v51 = vld [vmem:[%s15272_s9 + $0x150] sm:$0xff] }
 0x5c8   : > { %13165 = vmatpush3.bf16.msra.mxu1 %v15796_v49  ;;  %13168 = vmatprep.mubr.msk.bf16.mxu1 %vm1523_vm2, %v15026_v52 }
 0x5c9   : > { %13166 = vmatprep.subr.bf16.mxu1 %v15803_v47  ;;  %1414 = vmatmul.mubr.f32.gmra.mrb[42].mxu0 %v1170_v51 }
 0x5cc   : > { %13167 = vmatpush3.bf16.msra.mxu1 %v15803_v47 }
 0x5cd   : > { %13172 = vmatprep.subr.bf16.mxu1 %v15808_v53 }
 0x5d3   : > { %13169 = vmatmul.mubr.msk.bf16.vlgmr.msra.gmra.mrb[12].mxu1 %vm1523_vm2, %v15027_v54  ;;  %v1173_v54 = vld [vmem:[%s15272_s9 + $0x168] sm:$0xff] }
 0x5d4   : > { %13173 = vmatpush3.bf16.msra.mxu1 %v15808_v53  ;;  %13176 = vmatprep.mubr.msk.bf16.mxu1 %vm1523_vm2, %v15028_v55 }
 0x5d5   : > { %13174 = vmatprep.subr.bf16.mxu1 %v15815_v56  ;;  %1418 = vmatprep.mubr.f32.mxu0 %v1173_v54  ;;  %v15989_v54 = vpop.f32.mrb[26].mxu0 }
 0x5d8   : > { %13175 = vmatpush3.bf16.msra.mxu1 %v15815_v56 }
 0x5d9   : > { %13180 = vmatprep.subr.bf16.mxu1 %v15820_v58 }
 0x5df   : > { %13177 = vmatmul.mubr.msk.bf16.vlgmr.msra.gmra.mrb[12].mxu1 %vm1523_vm2, %v15029_v59  ;;  %v1172_v59 = vld [vmem:[%s15272_s9 + $0x160] sm:$0xff] }
 0x5e0   : > { %13181 = vmatpush3.bf16.msra.mxu1 %v15820_v58  ;;  %13184 = vmatprep.mubr.msk.bf16.mxu1 %vm1523_vm2, %v15030_v60  ;;  %v1175_v60 = vld [vmem:[%s15272_s9 + $0x178] sm:$0xff] }
 0x5e1   : > { %13182 = vmatprep.subr.bf16.mxu1 %v15827_v61  ;;  %1419 = vmatmul.mubr.f32.gmra.mrb[44].mxu0 %v1172_v59  ;;  %v1377_v59 = vpop.f32.mrb[27].mxu0 }
 0x5e2   : > { %1423 = vmatprep.mubr.f32.mxu0 %v1175_v60  ;;  %v15063_v59 = vld [vmem:[%s15322_s24 + $0x168] sm:$0xff]  }
 0x5e4   : > { %13183 = vmatpush3.bf16.msra.mxu1 %v15827_v61 }
 0x5e5   : > { %13188 = vmatprep.subr.bf16.mxu1 %v15832_v62 }
 0x5eb   : > { %13185 = vmatmul.mubr.msk.bf16.vlgmr.msra.gmra.mrb[12].mxu1 %vm1523_vm2, %v15031_v63  ;;  %v15043_v63 = vld [vmem:[%s15322_s24 + $0xb8] sm:$0xff]  }
 0x5ec   : > { %13189 = vmatpush3.bf16.msra.mxu1 %v15832_v62  ;;  %13192 = vmatprep.mubr.msk.bf16.mxu1 %vm1523_vm2, %v15032_v0  ;;  %v15044_v0 = vld [vmem:[%s15322_s24 + $0xc0] sm:$0xff]  }
 0x5ed   : > { %13190 = vmatprep.subr.bf16.mxu1 %v15839_v2 }
 0x5f0   : > { %13191 = vmatpush3.bf16.msra.mxu1 %v15839_v2 }
 0x5f1   : > { %13196 = vmatprep.subr.bf16.mxu1 %v15844_v3 }
 0x5f7   : > { %13193 = vmatmul.mubr.msk.bf16.vlgmr.msra.gmra.mrb[12].mxu1 %vm1523_vm2, %v15033_v4  ;;  %v1174_v4 = vld [vmem:[%s15272_s9 + $0x170] sm:$0xff] }
 0x5f8   : > { %13197 = vmatpush3.bf16.msra.mxu1 %v15844_v3  ;;  %13200 = vmatprep.mubr.msk.bf16.mxu1 %vm1523_vm2, %v15034_v7  ;;  %v1177_v7 = vld [vmem:[%s15272_s9 + $0x188] sm:$0xff] }
 0x5f9   : > { %13198 = vmatprep.subr.bf16.mxu1 %v15851_v8  ;;  %1424 = vmatmul.mubr.f32.gmra.mrb[46].mxu0 %v1174_v4 }
 0x5fa   : > { %1428 = vmatprep.mubr.f32.mxu0 %v1177_v7 }
 0x5fc   : > { %13199 = vmatpush3.bf16.msra.mxu1 %v15851_v8 }
 0x5fd   : > { %13204 = vmatprep.subr.bf16.mxu1 %v15856_v12 }
 0x603   : > { %13201 = vmatmul.mubr.msk.bf16.vlgmr.msra.gmra.mrb[12].mxu1 %vm1523_vm2, %v15035_v13  ;;  %v1176_v13 = vld [vmem:[%s15272_s9 + $0x180] sm:$0xff] }
 0x604   : > { %13205 = vmatpush3.bf16.msra.mxu1 %v15856_v12  ;;  %13208 = vmatprep.mubr.msk.bf16.mxu1 %vm1523_vm2, %v15036_v14  ;;  %v1179_v14 = vld [vmem:[%s15272_s9 + $0x198] sm:$0xff] }
 0x605   : > { %13206 = vmatprep.subr.bf16.mxu1 %v15866_v19  ;;  %1429 = vmatmul.mubr.f32.gmra.mrb[48].mxu0 %v1176_v13  ;;  %v15056_v13 = vld [vmem:[%s15322_s24 + $0x120] sm:$0xff]  }
 0x606   : > { %1433 = vmatprep.mubr.f32.mxu0 %v1179_v14 }
 0x608   : > { %13207 = vmatpush3.bf16.msra.mxu1 %v15866_v19 }
 0x609   : > { %13212 = vmatprep.subr.bf16.mxu1 %v15767_v41  ;;  %1434 = vmatmul.mubr.f32.gmra.mrb[50].mxu0 %v1178_v15 }
 0x60a   : > { %1438 = vmatprep.mubr.f32.mxu0 %v1181_v17 }
 0x60d   : > { %1439 = vmatmul.mubr.f32.gmra.mrb[52].mxu0 %v1180_v21  ;;  %v15058_v21 = vld [vmem:[%s15322_s24 + $0x140] sm:$0xff]  }
 0x60e   : > { %1443 = vmatprep.mubr.f32.mxu0 %v1183_v33 }
 0x60f   : > { %13209 = vmatmul.mubr.msk.bf16.vlgmr.msra.gmra.mrb[12].mxu1 %vm1523_vm2, %v15037_v25  ;;  %v15047_v25 = vld [vmem:[%s15322_s24 + $0xd8] sm:$0xff]  }
 0x610   : > { %13213 = vmatpush3.bf16.msra.mxu1 %v15767_v41  ;;  %13216 = vmatprep.mubr.msk.bf16.mxu1 %vm1523_vm2, %v15038_v26  ;;  %v15048_v26 = vld [vmem:[%s15322_s24 + $0xe0] sm:$0xff]  }
 0x611   : > { %13214 = vmatprep.subr.bf16.mxu1 %v15771_v42  ;;  %1444 = vmatmul.mubr.f32.gmra.mrb[54].mxu0 %v1182_v36 }
 0x614   : > { %13215 = vmatpush3.bf16.msra.mxu1 %v15771_v42 }
 0x615   : > { %14921 = vmatprep.subr.msk.bf16.mxu1 %vm1491_vm1, %v15713_v23 }
 0x617   : > { %13217 = vmatmul.mubr.msk.bf16.vlgmr.msra.gmra.mrb[16].mxu1 %vm1523_vm2, %v15039_v31  ;;  %v15053_v31 = vld [vmem:[%s15322_s24 + $0x108] sm:$0xff]  }
 0x618   : > { %13221 = vmatpush3.bf16.msra.mxu1 %v15717_v34  ;;  %13224 = vmatprep.mubr.msk.bf16.mxu1 %vm1523_vm2, %v15040_v32  ;;  %v15054_v32 = vld [vmem:[%s15322_s24 + $0x110] sm:$0xff]  }
 0x619   : > { %14922 = vmatprep.subr.msk.bf16.mxu1 %vm1491_vm1, %v15724_v37 }
 0x61c   : > { %13223 = vmatpush3.bf16.msra.mxu1 %v15728_v24 }
 0x61d   : > { %13228 = vmatprep.subr.bf16.mxu1 %v15784_v45 }
 0x623   : > { %13225 = vmatmul.mubr.msk.bf16.vlgmr.msra.gmra.mrb[16].mxu1 %vm1523_vm2, %v15041_v43  ;;  %v14194_v43 = vpack.c.bf16 %v11934_v39, %v11933_v38  ;;  %v15061_v38 = vld [vmem:[%s15322_s24 + $0x158] sm:$0xff]  }
 0x624   : > { %13229 = vmatpush3.bf16.msra.mxu1 %v15784_v45  ;;  %13232 = vmatprep.mubr.msk.bf16.mxu1 %vm1523_vm2, %v15042_v44  ;;  %v11935_v44 = vld [vmem:[%s15332_s6 + $0x48] sm:$0xf] }
 0x625   : > { %13230 = vmatprep.subr.bf16.mxu1 %v15791_v50  ;;  %v15914_v52 = vpop.f32.mrb[8].mxu1 }
 0x626   : > { %v13139_v55 = vpop.f32.mrb[9].mxu1 }
 0x628   : > { %13231 = vmatpush3.bf16.msra.mxu1 %v15791_v50 }
 0x629   : > { %13236 = vmatprep.subr.bf16.mxu1 %v15796_v49 }
 0x62f   : > { %13233 = vmatmul.mubr.msk.bf16.vlgmr.msra.gmra.mrb[16].mxu1 %vm1523_vm2, %v15043_v63  ;;  %v15992_v63 = vpop.f32.mrb[28].mxu0 }
 0x630   : > { %13237 = vmatpush3.bf16.msra.mxu1 %v15796_v49  ;;  %13240 = vmatprep.mubr.msk.bf16.mxu1 %vm1523_vm2, %v15044_v0  ;;  %v1382_v4 = vpop.f32.mrb[29].mxu0 }
 0x631   : > { %13238 = vmatprep.subr.bf16.mxu1 %v15803_v47  ;;  %v15995_v7 = vpop.f32.mrb[30].mxu0 }
 0x632   : > { %v1387_v14 = vpop.f32.mrb[31].mxu0 }
 0x633   : > { %v16002_v15 = vpop.f32.mrb[32].mxu0 }
 0x634   : > { %13239 = vmatpush3.bf16.msra.mxu1 %v15803_v47  ;;  %v1392_v17 = vpop.f32.mrb[33].mxu0 }
 0x635   : > { %13244 = vmatprep.subr.bf16.mxu1 %v15808_v53  ;;  %v15065_v17 = vld [vmem:[%s15322_s24 + $0x178] sm:$0xff]  }
 0x63b   : > { %13241 = vmatmul.mubr.msk.bf16.vlgmr.msra.gmra.mrb[16].mxu1 %vm1523_vm2, %v15045_v18  ;;  %v15057_v18 = vld [vmem:[%s15322_s24 + $0x128] sm:$0xff]  }
 0x63c   : > { %13245 = vmatpush3.bf16.msra.mxu1 %v15808_v53  ;;  %13248 = vmatprep.mubr.msk.bf16.mxu1 %vm1523_vm2, %v15046_v20  ;;  %v16006_v20 = vpop.f32.mrb[34].mxu0 }
 0x63d   : > { %13246 = vmatprep.subr.bf16.mxu1 %v15815_v56  ;;  %v1397_v33 = vpop.f32.mrb[35].mxu0 }
 0x63e   : > { %v16013_v36 = vpop.f32.mrb[36].mxu0  ;;  %v15068_v33 = vld [vmem:[%s15322_s24 + $0x190] sm:$0xff]  }
 0x640   : > { %13247 = vmatpush3.bf16.msra.mxu1 %v15815_v56 }
 0x641   : > { %13252 = vmatprep.subr.bf16.mxu1 %v15820_v58 }
 0x647   : > { %13249 = vmatmul.mubr.msk.bf16.vlgmr.msra.gmra.mrb[16].mxu1 %vm1523_vm2, %v15047_v25  ;;  %v1402_v25 = vpop.f32.mrb[37].mxu0 }
 0x648   : > { %13253 = vmatpush3.bf16.msra.mxu1 %v15820_v58  ;;  %13256 = vmatprep.mubr.msk.bf16.mxu1 %vm1523_vm2, %v15048_v26  ;;  %v16018_v26 = vpop.f32.mrb[38].mxu0  ;;  %v15069_v25 = vld [vmem:[%s15322_s24 + $0x198] sm:$0xff]  }
 0x649   : > { %13254 = vmatprep.subr.bf16.mxu1 %v15827_v61 }
 0x64c   : > { %13255 = vmatpush3.bf16.msra.mxu1 %v15827_v61 }
 0x64d   : > { %13260 = vmatprep.subr.bf16.mxu1 %v15832_v62 }
 0x653   : > { %13257 = vmatmul.mubr.msk.bf16.vlgmr.msra.gmra.mrb[16].mxu1 %vm1523_vm2, %v15049_v27  ;;  %v1407_v27 = vpop.f32.mrb[39].mxu0 }
 0x654   : > { %13261 = vmatpush3.bf16.msra.mxu1 %v15832_v62  ;;  %13264 = vmatprep.mubr.msk.bf16.mxu1 %vm1523_vm2, %v15050_v28  ;;  %v15059_v28 = vld [vmem:[%s15322_s24 + $0x148] sm:$0xff]   ;;  %v15070_v27 = vld [vmem:[%s15322_s24 + $0x1a0] sm:$0xff]  }
 0x655   : > { %13262 = vmatprep.subr.bf16.mxu1 %v15839_v2 }
 0x658   : > { %13263 = vmatpush3.bf16.msra.mxu1 %v15839_v2 }
 0x659   : > { %13268 = vmatprep.subr.bf16.mxu1 %v15844_v3 }
 0x65f   : > { %13265 = vmatmul.mubr.msk.bf16.vlgmr.msra.gmra.mrb[16].mxu1 %vm1523_vm2, %v15051_v29 }
 0x660   : > { %13269 = vmatpush3.bf16.msra.mxu1 %v15844_v3  ;;  %13272 = vmatprep.mubr.msk.bf16.mxu1 %vm1523_vm2, %v15052_v30  ;;  %v15060_v30 = vld [vmem:[%s15322_s24 + $0x150] sm:$0xff]  }
 0x661   : > { %13270 = vmatprep.subr.bf16.mxu1 %v15851_v8 }
 0x664   : > { %13271 = vmatpush3.bf16.msra.mxu1 %v15851_v8 }
 0x665   : > { %13276 = vmatprep.subr.bf16.mxu1 %v15856_v12 }
 0x66b   : > { %13273 = vmatmul.mubr.msk.bf16.vlgmr.msra.gmra.mrb[16].mxu1 %vm1523_vm2, %v15053_v31 }
 0x66c   : > { %13277 = vmatpush3.bf16.msra.mxu1 %v15856_v12  ;;  %13280 = vmatprep.mubr.msk.bf16.mxu1 %vm1523_vm2, %v15054_v32 }
 0x66d   : > { %13278 = vmatprep.subr.bf16.mxu1 %v15866_v19 }
 0x670   : > { %13279 = vmatpush3.bf16.msra.mxu1 %v15866_v19 }
 0x671   : > { %14191 = vmatprep.subr.bf16.mxu1 %v14190_v16 }
 0x677   : > { %13281 = vmatmul.mubr.msk.bf16.vlgmr.msra.gmra.mrb[16].mxu1 %vm1523_vm2, %v15055_v40  ;;  %v15062_v40 = vld [vmem:[%s15322_s24 + $0x160] sm:$0xff]  }
 0x678   : > { %14193 = vmatpush3.bf16.msra.mxu1 %v14190_v16 }
 0x679   : > { %14195 = vmatprep.subr.bf16.mxu1 %v14194_v43 }
 0x67c   : > { %14197 = vmatpush3.bf16.msra.mxu1 %v14194_v43 }
 0x67d   : > { %13292 = vmatprep.subr.msk.mxu1 %vm3937_vm3, %v11935_v44 }
 0x680   : > { %13293 = vmatpush3.msk.msra.mxu1 %vm3937_vm3, %v11935_v44 }
 0x681   : > { %13316 = vmatprep.subr.bf16.mxu1 %v15767_v41 }
 0x690   : > { %v16023_v29 = vpop.f32.mrb[40].mxu0 }
 0x691   : > { %v1412_v31 = vpop.f32.mrb[41].mxu0 }
 0x69c   : > { %v16027_v32 = vpop.f32.mrb[42].mxu0 }
 0x69d   : > { %v1417_v9 = vpop.f32.mrb[43].mxu0 }
 0x69e   : > { %v1240_v9 = vld [vmem:[%s15277_s13 + $0xc0] sm:$0xff] }
 0x6b4   : > { %v16032_v35 = vpop.f32.mrb[44].mxu0 }
 0x6b5   : > { %v1422_v16 = vpop.f32.mrb[45].mxu0 }
 0x6b6   : > { %v1241_v16 = vld [vmem:[%s15277_s13 + $0xc8] sm:$0xff] }
 0x6cc   : > { %v16037_v39 = vpop.f32.mrb[46].mxu0 }
 0x6cd   : > { %v1427_v43 = vpop.f32.mrb[47].mxu0 }
 0x6ce   : > { %v12102_v43 = vld [vmem:[%s15332_s6 + $0x88] sm:$0xff] }
 0x6d8   : > { %v1430_v44 = vpop.f32.mrb[48].mxu0 }
 0x6d9   : > { %v1432_v48 = vpop.f32.mrb[49].mxu0 }
 0x6da   : > { %v12103_v48 = vld [vmem:[%s15332_s6 + $0x90] sm:$0xff] }
 0x6e2   : > { %v13210_v51 = vpop.f32.mrb[12].mxu1 }
 0x6e3   : > { %v3236_v55 = vpop.f32.mrb[13].mxu1 }
 0x6e4   : > { %v13211_v60 = vpop.f32.mrb[14].mxu1  ;;  %13310 = vmatprep.mubr.msk.f32.mxu0 %vm3924_vm9, %v3236_v55 }
 0x6e5   : > { %v3239_v0 = vpop.f32.mrb[15].mxu1 }
 0x6e6   : > { %13311 = vmatmul.mubr.msk.f32.vlgmr.msra.gmra.mrb[56].mxu0 %vm3924_vm9, %v3239_v0  ;;  %v15064_v0 = vld [vmem:[%s15322_s24 + $0x170] sm:$0xff]  }
 0x6e7   : > { %13325 = vmatpush3.bf16.msra.mxu0 %v15717_v34  ;;  %13313 = vmatprep.mubr.msk.f32.mxu0 %vm3924_vm9, %v13210_v51  ;;  %v1435_v51 = vpop.f32.mrb[50].mxu0 }
 0x6e8   : > { %14924 = vmatprep.subr.msk.bf16.mxu0 %vm1491_vm1, %v15724_v37  ;;  %v1437_v55 = vpop.f32.mrb[51].mxu0 }
 0x6e9   : > { %v15071_v55 = vld [vmem:[%s15322_s24 + $0x1a8] sm:$0xff]  }
 0x6ea   : > { %13314 = vmatmul.mubr.msk.f32.gmra.mrb[58].mxu0 %vm3924_vm9, %v13211_v60  ;;  %v16047_v60 = vpop.f32.mrb[52].mxu0 }
 0x6eb   : > { %13327 = vmatpush3.bf16.msra.mxu0 %v15728_v24  ;;  %13328 = vmatprep.mubr.msk.bf16.mxu0 %vm1523_vm2, %v15056_v13  ;;  %v1442_v4 = vpop.f32.mrb[53].mxu0 }
 0x6ec   : > { %13332 = vmatprep.subr.bf16.mxu0 %v15784_v45  ;;  %v16051_v13 = vpop.f32.mrb[54].mxu0  ;;  %v14218_v4 = vpack.c.bf16 %v12103_v48, %v12102_v43  ;;  %v12022_v48 = vld [vmem:[%s15332_s6 + $0x70] sm:$0xf] }
 0x6ed   : > { %v1447_v14 = vpop.f32.mrb[55].mxu0 }
 0x6ee   : > { %13329 = vmatmul.mubr.msk.bf16.vlgmr.msra.gmra.mrb[60].mxu0 %vm1523_vm2, %v15057_v18  ;;  %v15066_v18 = vld [vmem:[%s15322_s24 + $0x180] sm:$0xff]  }
 0x6ef   : > { %13333 = vmatpush3.bf16.msra.mxu0 %v15784_v45  ;;  %13336 = vmatprep.mubr.msk.bf16.mxu0 %vm1523_vm2, %v15058_v21  ;;  %v15067_v21 = vld [vmem:[%s15322_s24 + $0x188] sm:$0xff]  }
 0x6f0   : > { %13334 = vmatprep.subr.bf16.mxu0 %v15791_v50 }
 0x6f3   : > { %13335 = vmatpush3.bf16.msra.mxu0 %v15791_v50 }
 0x6f4   : > { %13340 = vmatprep.subr.bf16.mxu0 %v15796_v49 }
 0x6fa   : > { %13337 = vmatmul.mubr.msk.bf16.vlgmr.msra.gmra.mrb[60].mxu0 %vm1523_vm2, %v15059_v28  ;;  %v12100_v28 = vld [vmem:[%s15332_s6 + $0x78] sm:$0xff] }
 0x6fb   : > { %13341 = vmatpush3.bf16.msra.mxu0 %v15796_v49  ;;  %13344 = vmatprep.mubr.msk.bf16.mxu0 %vm1523_vm2, %v15060_v30  ;;  %v12101_v30 = vld [vmem:[%s15332_s6 + $0x80] sm:$0xff] }
 0x6fc   : > { %13342 = vmatprep.subr.bf16.mxu0 %v15803_v47  ;;  %v14214_v31 = vpack.c.bf16 %v12101_v30, %v12100_v28  ;;  %v15072_v28 = vld [vmem:[%s15322_s24 + $0x130] sm:$0xff]  }
 0x6ff   : > { %13343 = vmatpush3.bf16.msra.mxu0 %v15803_v47 }
 0x700   : > { %13348 = vmatprep.subr.bf16.mxu0 %v15808_v53 }
 0x706   : > { %13345 = vmatmul.mubr.msk.bf16.vlgmr.msra.gmra.mrb[60].mxu0 %vm1523_vm2, %v15061_v38  ;;  %v16085_v38 = vadd.f32 %v1430_v44, %v1240_v9  ;;  %v12104_v44 = vld [vmem:[%s15332_s6 + $0x98] sm:$0xf]  ;;  %v12021_v9 = vld [vmem:[%s15332_s6 + $0x68] sm:$0xff] }
 0x707   : > { %13349 = vmatpush3.bf16.msra.mxu0 %v15808_v53  ;;  %13352 = vmatprep.mubr.msk.bf16.mxu0 %vm1523_vm2, %v15062_v40  ;;  %v16087_v40 = vadd.f32 %v1435_v51, %v1241_v16  ;;  %v5666_v51 = vmul.f32 %v15677_v6, %v15677_v6  ;;  %v15073_v16 = vld [vmem:[%s15322_s24 + $0x138] sm:$0xff]  }
 0x708   : > { %13350 = vmatprep.subr.bf16.mxu0 %v15815_v56 }
 0x70b   : > { %13351 = vmatpush3.bf16.msra.mxu0 %v15815_v56 }
 0x70c   : > { %13356 = vmatprep.subr.bf16.mxu0 %v15820_v58 }
 0x712   : > { %13353 = vmatmul.mubr.msk.bf16.vlgmr.msra.gmra.mrb[60].mxu0 %vm1523_vm2, %v15063_v59  ;;  %v11075_v59 = vmul.f32 %v16085_v38, %v16085_v38 }
 0x713   : > { %13357 = vmatpush3.bf16.msra.mxu0 %v15820_v58  ;;  %13360 = vmatprep.mubr.msk.bf16.mxu0 %vm1523_vm2, %v15064_v0  ;;  %v11076_v0 = vmul.f32 %v16087_v40, %v16087_v40 }
 0x714   : > { %13358 = vmatprep.subr.bf16.mxu0 %v15827_v61 }
 0x715   : > { %v16097_v14 = vpack.c.bf16 %v11076_v0, %v11075_v59 }
 0x717   : > { %13359 = vmatpush3.bf16.msra.mxu0 %v15827_v61 }
 0x718   : > { %13364 = vmatprep.subr.bf16.mxu0 %v15832_v62 }
 0x71e   : > { %13361 = vmatmul.mubr.msk.bf16.vlgmr.msra.gmra.mrb[60].mxu0 %vm1523_vm2, %v15065_v17  ;;  %v5667_v17 = vmul.f32 %v15675_v5, %v15675_v5  ;;  %v12018_v5 = vld [vmem:[%s15332_s6 + $0x50] sm:$0xff] }
 0x71f   : > { %13365 = vmatpush3.bf16.msra.mxu0 %v15832_v62  ;;  %13368 = vmatprep.mubr.msk.bf16.mxu0 %vm1523_vm2, %v15066_v18 }
 0x720   : > { %13366 = vmatprep.subr.bf16.mxu0 %v15839_v2 }
 0x723   : > { %13367 = vmatpush3.bf16.msra.mxu0 %v15839_v2 }
 0x724   : > { %13372 = vmatprep.subr.bf16.mxu0 %v15844_v3 }
 0x72a   : > { %13369 = vmatmul.mubr.msk.bf16.vlgmr.msra.gmra.mrb[60].mxu0 %vm1523_vm2, %v15067_v21  ;;  %v16105_v21 = vpack.c.bf16 %v5667_v17, %v5666_v51 }
 0x72b   : > { %13373 = vmatpush3.bf16.msra.mxu0 %v15844_v3  ;;  %13376 = vmatprep.mubr.msk.bf16.mxu0 %vm1523_vm2, %v15068_v33 }
 0x72c   : > { %13374 = vmatprep.subr.bf16.mxu0 %v15851_v8 }
 0x72f   : > { %13375 = vmatpush3.bf16.msra.mxu0 %v15851_v8 }
 0x730   : > { %13380 = vmatprep.subr.bf16.mxu0 %v15856_v12 }
 0x736   : > { %13377 = vmatmul.mubr.msk.bf16.vlgmr.msra.gmra.mrb[60].mxu0 %vm1523_vm2, %v15069_v25 }
 0x737   : > { %13381 = vmatpush3.bf16.msra.mxu0 %v15856_v12  ;;  %13384 = vmatprep.mubr.msk.bf16.mxu0 %vm1523_vm2, %v15070_v27  ;;  %v12019_v27 = vld [vmem:[%s15332_s6 + $0x58] sm:$0xff] }
 0x738   : > { %13382 = vmatprep.subr.bf16.mxu0 %v15866_v19  ;;  %v14206_v30 = vpack.c.bf16 %v12019_v27, %v12018_v5 }
 0x73b   : > { %13383 = vmatpush3.bf16.msra.mxu0 %v15866_v19 }
 0x73c   : > { %14215 = vmatprep.subr.bf16.mxu0 %v14214_v31 }
 0x742   : > { %13385 = vmatmul.mubr.msk.bf16.vlgmr.msra.gmra.mrb[60].mxu0 %vm1523_vm2, %v15071_v55 }
 0x743   : > { %14217 = vmatpush3.bf16.msra.mxu0 %v14214_v31  ;;  %v12020_v31 = vld [vmem:[%s15332_s6 + $0x60] sm:$0xff] }
 0x744   : > { %14219 = vmatprep.subr.bf16.mxu0 %v14218_v4  ;;  %v14210_v43 = vpack.c.bf16 %v12021_v9, %v12020_v31 }
 0x747   : > { %14221 = vmatpush3.bf16.msra.mxu0 %v14218_v4 }
 0x748   : > { %13484 = vmatprep.subr.msk.mxu0 %vm3937_vm3, %v12104_v44 }
 0x74a   : > { %v13282_v18 = vpop.f32.mrb[16].mxu1 }
 0x74b   : > { %13485 = vmatpush3.msk.msra.mxu0 %vm3937_vm3, %v12104_v44  ;;  %v3899_v33 = vpop.f32.mrb[17].mxu1 }
 0x74c   : > { %14223 = vmatprep.subr.bf16.mxu0 %v16105_v21  ;;  %v13283_v25 = vpop.f32.mrb[18].mxu1  ;;  %13294 = vmatprep.mubr.msk.f32.mxu1 %vm3924_vm9, %v3899_v33 }
 0x74d   : > { %v3902_v6 = vpop.f32.mrb[19].mxu1 }
 0x74e   : > { %13295 = vmatmul.mubr.msk.f32.vlgmr.msra.gmra.mrb[10].mxu1 %vm3924_vm9, %v3902_v6 }
 0x74f   : > { %13317 = vmatpush3.bf16.msra.mxu1 %v15767_v41  ;;  %13297 = vmatprep.mubr.msk.f32.mxu1 %vm3924_vm9, %v13282_v18 }
 0x750   : > { %13318 = vmatprep.subr.bf16.mxu1 %v15771_v42 }
 0x752   : > { %13298 = vmatmul.mubr.msk.f32.gmra.mrb[20].mxu1 %vm3924_vm9, %v13283_v25 }
 0x753   : > { %13319 = vmatpush3.bf16.msra.mxu1 %v15771_v42  ;;  %13320 = vmatprep.mubr.msk.bf16.mxu1 %vm1523_vm2, %v15072_v28 }
 0x754   : > { %14207 = vmatprep.subr.bf16.mxu1 %v14206_v30 }
 0x756   : > { %13321 = vmatmul.mubr.msk.bf16.vlgmr.msra.gmra.mrb[24].mxu1 %vm1523_vm2, %v15073_v16 }
 0x757   : > { %14209 = vmatpush3.bf16.msra.mxu1 %v14206_v30 }
 0x758   : > { %14211 = vmatprep.subr.bf16.mxu1 %v14210_v43 }
 0x75b   : > { %14213 = vmatpush3.bf16.msra.mxu1 %v14210_v43 }
 0x75c   : > { %13396 = vmatprep.subr.msk.mxu1 %vm3937_vm3, %v12022_v48 }
 0x75f   : > { %13397 = vmatpush3.msk.msra.mxu1 %vm3937_vm3, %v12022_v48 }
 0x760   : > { %13404 = vmatprep.subr.bf16.mxu1 %v15767_v41 }
 0x7b9   : > { %v13312_v55 = vpop.f32.mrb[56].mxu0 }
 0x7ba   : > { %v4107_v59 = vpop.f32.mrb[57].mxu0 }
 0x7bd   : > { %v13315_v0 = vpop.f32.mrb[58].mxu0 }
 0x7be   : > { %v4117_v4 = vpop.f32.mrb[59].mxu0 }
 0x815   : > { %v13386_v44 = vpop.f32.mrb[60].mxu0 }
 0x816   : > { %v4765_v51 = vpop.f32.mrb[61].mxu0 }
 0x817   : > { %v13387_v17 = vpop.f32.mrb[62].mxu0 }
 0x818   : > { %v4768_v18 = vpop.f32.mrb[63].mxu0 }
 0x821   : > { %v13296_v33 = vpop.f32.mrb[10].mxu1 }
 0x822   : > { %v16128_v25 = vadd.f32 %v13312_v55, %v13296_v33  ;;  %v4007_v6 = vpop.f32.mrb[11].mxu1 }
 0x823   : > { %v16130_v5 = vadd.f32 %v4107_v59, %v4007_v6  ;;  %v15074_v59 = vld [vmem:[%s15322_s24 + $0x1c0] sm:$0xff]   ;;  %v15091_v6 = vld [vmem:[%s15322_s24 + $0x238] sm:$0xff]  }
 0x825   : > { %v13299_v27 = vpop.f32.mrb[20].mxu1 }
 0x826   : > { %v16132_v28 = vadd.f32 %v13315_v0, %v13299_v27  ;;  %v4017_v30 = vpop.f32.mrb[21].mxu1  ;;  %v15075_v0 = vld [vmem:[%s15322_s24 + $0x1c8] sm:$0xff]  }
 0x827   : > { %v16134_v31 = vadd.f32 %v4117_v4, %v4017_v30  ;;  %v15090_v4 = vld [vmem:[%s15322_s24 + $0x230] sm:$0xff]  }
 0x829   : > { %v13322_v9 = vpop.f32.mrb[24].mxu1 }
 0x82a   : > { %v14515_v16 = vadd.f32 %v13386_v44, %v13322_v9  ;;  %v4186_v43 = vpop.f32.mrb[25].mxu1 }
 0x82b   : > { %v14516_v48 = vadd.f32 %v4765_v51, %v4186_v43  ;;  %v13323_v57 = vpop.f32.mrb[26].mxu1  ;;  %v1231_v51 = vld [vmem:[%s15277_s13 + $0x78] sm:$0xff] }
 0x82c   : > { %v14517_v22 = vadd.f32 %v13387_v17, %v13323_v57  ;;  %v4189_v55 = vpop.f32.mrb[27].mxu1  ;;  %v15076_v57 = vld [vmem:[%s15322_s24 + $0x1b0] sm:$0xff]  }
 0x82d   : > { %v14518_v33 = vadd.f32 %v4768_v18, %v4189_v55  ;;  %13398 = vmatprep.mubr.msk.f32.mxu1 %vm3924_vm9, %v14516_v48  ;;  %v5668_v55 = vmul.f32 %v15685_v11, %v15685_v11  ;;  %v5663_v11 = vld [vmem:[%s15327_s30 + $0x8] sm:$0xff] }
 0x82f   : > { %13399 = vmatmul.mubr.msk.f32.vlgmr.msra.gmra.mrb[22].mxu1 %vm3924_vm9, %v14518_v33  ;;  %v5669_v33 = vmul.f32 %v15683_v10, %v15683_v10  ;;  %v5662_v10 = vld [vmem:[%s15327_s30] sm:$0xff] }
 0x830   : > { %13405 = vmatpush3.bf16.msra.mxu1 %v15767_v41  ;;  %13401 = vmatprep.mubr.msk.f32.mxu1 %vm3924_vm9, %v14515_v16  ;;  %v15078_v41 = vld [vmem:[%s15322_s24 + $0x1d0] sm:$0xff]  }
 0x831   : > { %13406 = vmatprep.subr.bf16.mxu1 %v15771_v42 }
 0x833   : > { %13402 = vmatmul.mubr.msk.f32.gmra.mrb[28].mxu1 %vm3924_vm9, %v14517_v22  ;;  %v15077_v22 = vld [vmem:[%s15322_s24 + $0x1b8] sm:$0xff]  }
 0x834   : > { %13407 = vmatpush3.bf16.msra.mxu1 %v15771_v42  ;;  %13408 = vmatprep.mubr.msk.bf16.mxu1 %vm1523_vm2, %v15074_v59  ;;  %v15083_v42 = vld [vmem:[%s15322_s24 + $0x1f8] sm:$0xff]  }
 0x835   : > { %14925 = vmatprep.subr.msk.bf16.mxu1 %vm1491_vm1, %v15713_v23  ;;  %v15079_v23 = vld [vmem:[%s15322_s24 + $0x1d8] sm:$0xff]  }
 0x837   : > { %13409 = vmatmul.mubr.msk.bf16.vlgmr.msra.gmra.mrb[32].mxu1 %vm1523_vm2, %v15075_v0 }
 0x838   : > { %13413 = vmatpush3.bf16.msra.mxu1 %v15717_v34  ;;  %13416 = vmatprep.mubr.msk.bf16.mxu1 %vm1523_vm2, %v15076_v57  ;;  %v15080_v34 = vld [vmem:[%s15322_s24 + $0x1e0] sm:$0xff]   ;;  %v5665_v57 = vld [vmem:[%s15327_s30 + $0x18] sm:$0xff] }
 0x839   : > { %14926 = vmatprep.subr.msk.bf16.mxu1 %vm1491_vm1, %v15724_v37  ;;  %v15081_v37 = vld [vmem:[%s15322_s24 + $0x1e8] sm:$0xff]  }
 0x83c   : > { %13415 = vmatpush3.bf16.msra.mxu1 %v15728_v24  ;;  %v15082_v24 = vld [vmem:[%s15322_s24 + $0x1f0] sm:$0xff]  }
 0x83d   : > { %13420 = vmatprep.subr.bf16.mxu1 %v15784_v45 }
 0x843   : > { %13417 = vmatmul.mubr.msk.bf16.vlgmr.msra.gmra.mrb[32].mxu1 %vm1523_vm2, %v15077_v22  ;;  %v6611_v22 = vld [vmem:[%s17350_s0 + $0x8] sm:$0xff] }
 0x844   : > { %13421 = vmatpush3.bf16.msra.mxu1 %v15784_v45  ;;  %13424 = vmatprep.mubr.msk.bf16.mxu1 %vm1523_vm2, %v15078_v41  ;;  %v15084_v45 = vld [vmem:[%s15322_s24 + $0x200] sm:$0xff]   ;;  %v6612_v41 = vld [vmem:[%s17350_s0 + $0x10] sm:$0xff] }
 0x845   : > { %13422 = vmatprep.subr.bf16.mxu1 %v15791_v50 }
 0x848   : > { %13423 = vmatpush3.bf16.msra.mxu1 %v15791_v50  ;;  %v15085_v50 = vld [vmem:[%s15322_s24 + $0x208] sm:$0xff]  }
 0x849   : > { %13428 = vmatprep.subr.bf16.mxu1 %v15796_v49 }
 0x84f   : > { %13425 = vmatmul.mubr.msk.bf16.vlgmr.msra.gmra.mrb[32].mxu1 %vm1523_vm2, %v15079_v23  ;;  %v6613_v23 = vld [vmem:[%s17350_s0 + $0x18] sm:$0xff] }
 0x850   : > { %13429 = vmatpush3.bf16.msra.mxu1 %v15796_v49  ;;  %13432 = vmatprep.mubr.msk.bf16.mxu1 %vm1523_vm2, %v15080_v34  ;;  %v15086_v49 = vld [vmem:[%s15322_s24 + $0x210] sm:$0xff]   ;;  %v17351_v34 = vmov 0.0  }
 0x851   : > { %13430 = vmatprep.subr.bf16.mxu1 %v15803_v47 }
 0x854   : > { %13431 = vmatpush3.bf16.msra.mxu1 %v15803_v47  ;;  %v15087_v47 = vld [vmem:[%s15322_s24 + $0x218] sm:$0xff]  }
 0x855   : > { %13436 = vmatprep.subr.bf16.mxu1 %v15808_v53 }
 0x85b   : > { %13433 = vmatmul.mubr.msk.bf16.vlgmr.msra.gmra.mrb[32].mxu1 %vm1523_vm2, %v15081_v37 }
 0x85c   : > { %13437 = vmatpush3.bf16.msra.mxu1 %v15808_v53  ;;  %13440 = vmatprep.mubr.msk.bf16.mxu1 %vm1523_vm2, %v15082_v24  ;;  %v15088_v53 = vld [vmem:[%s15322_s24 + $0x220] sm:$0xff]  }
 0x85d   : > { %13438 = vmatprep.subr.bf16.mxu1 %v15815_v56 }
 0x860   : > { %13439 = vmatpush3.bf16.msra.mxu1 %v15815_v56  ;;  %v1228_v56 = vld [vmem:[%s15277_s13 + $0x60] sm:$0xff] }
 0x861   : > { %13444 = vmatprep.subr.bf16.mxu1 %v15820_v58 }
 0x867   : > { %13441 = vmatmul.mubr.msk.bf16.vlgmr.msra.gmra.mrb[32].mxu1 %vm1523_vm2, %v15083_v42 }
 0x868   : > { %13445 = vmatpush3.bf16.msra.mxu1 %v15820_v58  ;;  %13448 = vmatprep.mubr.msk.bf16.mxu1 %vm1523_vm2, %v15084_v45  ;;  %v1229_v58 = vld [vmem:[%s15277_s13 + $0x68] sm:$0xff] }
 0x869   : > { %13446 = vmatprep.subr.bf16.mxu1 %v15827_v61 }
 0x86c   : > { %13447 = vmatpush3.bf16.msra.mxu1 %v15827_v61  ;;  %v16207_v61 = vadd.f32 %v15987_v46, %v1228_v56 }
 0x86d   : > { %13452 = vmatprep.subr.bf16.mxu1 %v15832_v62 }
 0x873   : > { %13449 = vmatmul.mubr.msk.bf16.vlgmr.msra.gmra.mrb[32].mxu1 %vm1523_vm2, %v15085_v50 }
 0x874   : > { %13453 = vmatpush3.bf16.msra.mxu1 %v15832_v62  ;;  %13456 = vmatprep.mubr.msk.bf16.mxu1 %vm1523_vm2, %v15086_v49  ;;  %v16210_v62 = vadd.f32 %v15989_v54, %v1229_v58  ;;  %v16228_v54 = vadd.f32 %v15995_v7, %v1231_v51 }
 0x875   : > { %13454 = vmatprep.subr.bf16.mxu1 %v15839_v2 }
 0x876   : > { %v6615_v44 = vmul.f32 %v16210_v62, %v16210_v62 }
 0x878   : > { %13455 = vmatpush3.bf16.msra.mxu1 %v15839_v2  ;;  %v15089_v2 = vld [vmem:[%s15322_s24 + $0x228] sm:$0xff]  }
 0x879   : > { %13460 = vmatprep.subr.bf16.mxu1 %v15844_v3 }
 0x87f   : > { %13457 = vmatmul.mubr.msk.bf16.vlgmr.msra.gmra.mrb[32].mxu1 %vm1523_vm2, %v15087_v47 }
 0x880   : > { %13461 = vmatpush3.bf16.msra.mxu1 %v15844_v3  ;;  %13464 = vmatprep.mubr.msk.bf16.mxu1 %vm1523_vm2, %v15088_v53  ;;  %v6614_v3 = vmul.f32 %v16207_v61, %v16207_v61 }
 0x881   : > { %13462 = vmatprep.subr.bf16.mxu1 %v15851_v8 }
 0x882   : > { %v14230_v17 = vpack.c.bf16 %v6615_v44, %v6614_v3 }
 0x884   : > { %13463 = vmatpush3.bf16.msra.mxu1 %v15851_v8  ;;  %v1230_v8 = vld [vmem:[%s15277_s13 + $0x70] sm:$0xff] }
 0x885   : > { %13468 = vmatprep.subr.bf16.mxu1 %v15856_v12  ;;  %v16225_v46 = vadd.f32 %v15992_v63, %v1230_v8 }
 0x887   : > { %v6616_v18 = vmul.f32 %v16225_v46, %v16225_v46 }
 0x88b   : > { %13465 = vmatmul.mubr.msk.bf16.vlgmr.msra.gmra.mrb[32].mxu1 %vm1523_vm2, %v15089_v2 }
 0x88c   : > { %13469 = vmatpush3.bf16.msra.mxu1 %v15856_v12  ;;  %13472 = vmatprep.mubr.msk.bf16.mxu1 %vm1523_vm2, %v15090_v4  ;;  %v6617_v12 = vmul.f32 %v16228_v54, %v16228_v54 }
 0x88d   : > { %13470 = vmatprep.subr.bf16.mxu1 %v15866_v19 }
 0x88e   : > { %v14234_v27 = vpack.c.bf16 %v6617_v12, %v6616_v18 }
 0x890   : > { %13471 = vmatpush3.bf16.msra.mxu1 %v15866_v19 }
 0x891   : > { %14231 = vmatprep.subr.bf16.mxu1 %v14230_v17 }
 0x897   : > { %13473 = vmatmul.mubr.msk.bf16.vlgmr.msra.gmra.mrb[32].mxu1 %vm1523_vm2, %v15091_v6 }
 0x898   : > { %14233 = vmatpush3.bf16.msra.mxu1 %v14230_v17 }
 0x899   : > { %14235 = vmatprep.subr.bf16.mxu1 %v14234_v27 }
 0x89c   : > { %14237 = vmatpush3.bf16.msra.mxu1 %v14234_v27  ;;  %v5809_v27 = vld [vmem:[%s15342_s20 + $0x18] sm:$0xff] }
 0x89d   : > { %14238 = vmatprep.subr.bf16.mxu1 %v15234_v1 }
 0x902   : > { %v13400_v63 = vpop.f32.mrb[22].mxu1 }
 0x903   : > { %v4891_v7 = vadd.f32 %v13400_v63, %v16128_v25  ;;  %v4871_v19 = vpop.f32.mrb[23].mxu1  ;;  %v5808_v63 = vld [vmem:[%s15342_s20 + $0x10] sm:$0xff] }
 0x904   : > { %v4890_v30 = vadd.f32 %v4871_v19, %v16130_v5  ;;  %v5813_v19 = vpop.permute.xlu0 %5812 }
 0x906   : > { %v13403_v9 = vpop.f32.mrb[28].mxu1 }
 0x907   : > { %v4893_v16 = vadd.f32 %v13403_v9, %v16132_v28  ;;  %v4881_v43 = vpop.f32.mrb[29].mxu1  ;;  %v14226_v28 = vpack.c.bf16 %v5669_v33, %v5668_v55 }
 0x908   : > { %v4892_v48 = vadd.f32 %v4881_v43, %v16134_v31  ;;  %v5664_v31 = vld [vmem:[%s15327_s30 + $0x10] sm:$0xff] }
 0x96a   : > { %v13474_v59 = vpop.f32.mrb[32].mxu1 }
 0x96b   : > { %v5533_v25 = vpop.f32.mrb[33].mxu1 }
 0x96c   : > { %v13475_v0 = vpop.f32.mrb[34].mxu1  ;;  %13486 = vmatprep.mubr.msk.f32.mxu0 %vm3924_vm9, %v5533_v25 }
 0x96d   : > { %v5536_v5 = vpop.f32.mrb[35].mxu1 }
 0x96e   : > { %13487 = vmatmul.mubr.msk.f32.vlgmr.msra.gmra.mrb[64].mxu0 %vm3924_vm9, %v5536_v5 }
 0x96f   : > { %14225 = vmatpush3.bf16.msra.mxu0 %v16105_v21  ;;  %13489 = vmatprep.mubr.msk.f32.mxu0 %vm3924_vm9, %v13474_v59  ;;  %v6610_v21 = vld [vmem:[%s17350_s0] sm:$0xff]  ;;  %s17370_s0 = smov 127  }
 0x970   : > { %14227 = vmatprep.subr.bf16.mxu0 %v14226_v28  ;;  %13586 = vmatprep.mubr.msk.f32.mxu1 %vm1523_vm2, %v6610_v21 }
 0x971   : > { %13587 = vmatmul.mubr.msk.f32.vlgmr.msra.gmra.mrb[30].mxu1 %vm1523_vm2, %v6611_v22  ;;  %v16277_v22 = vld [vmem:[%s17353_s15] ss:$0 sm:$0xff] }
 0x972   : > { %13490 = vmatmul.mubr.msk.f32.gmra.mrb[66].mxu0 %vm3924_vm9, %v13475_v0  ;;  %13589 = vmatprep.mubr.msk.f32.mxu1 %vm1523_vm2, %v6612_v41 }
 0x973   : > { %14229 = vmatpush3.bf16.msra.mxu0 %v14226_v28  ;;  %13500 = vmatprep.mubr.msk.f32.mxu0 %vm1523_vm2, %v5662_v10 }
 0x975   : > { %13590 = vmatmul.mubr.msk.f32.gmra.mrb[36].mxu1 %vm1523_vm2, %v6613_v23 }
 0x976   : > { %13501 = vmatmul.mubr.msk.f32.vlgmr.msra.gmra.mrb[68].mxu0 %vm1523_vm2, %v5663_v11  ;;  %13600 = vmatprep.mubr.msk.f32.mxu1 %vm15245_vm8, %v17351_v34 }
 0x977   : > { %13503 = vmatprep.mubr.msk.f32.mxu0 %vm1523_vm2, %v5664_v31 }
 0x97a   : > { %13504 = vmatmul.mubr.msk.f32.gmra.mrb[70].mxu0 %vm1523_vm2, %v5665_v57 }
 0xa41   : > { %v13488_v37 = vpop.f32.mrb[64].mxu0 }
 0xa42   : > { %v5659_v24 = vadd.f32 %v13488_v37, %v4891_v7  ;;  %v5639_v42 = vpop.f32.mrb[65].mxu0  ;;  %v5818_v7 = vpop.permute.xlu1 %5817 }
 0xa43   : > { %v5658_v45 = vadd.f32 %v5639_v42, %v4890_v30  ;;  %v12114_v30 = vld [vmem:[%s17352_s11] ss:$0 sm:$0xff]  ;;  %s17355_s11 = sld [smem:[#allocation9_spill]] }
 0xa45   : > { %v13491_v50 = vpop.f32.mrb[66].mxu0 }
 0xa46   : > { %v5661_v49 = vadd.f32 %v13491_v50, %v4893_v16  ;;  %v5649_v47 = vpop.f32.mrb[67].mxu0 }
 0xa47   : > { %v5660_v53 = vadd.f32 %v5649_v47, %v4892_v48 }
 0xa49   : > { %v13502_v56 = vpop.f32.mrb[68].mxu0 }
 0xa4a   : > { %v5754_v58 = vadd.f32 1e-08, %v13502_v56  ;;  %v5748_v2 = vpop.f32.mrb[69].mxu0 }
 0xa4b   : > { %v5749_v4 = vadd.f32 1e-08, %v5748_v2 }
 0xa4c   : > { %15163 = vrsqrt.f32 %v5754_v58 }
 0xa4d   : > { %15165 = vrsqrt.f32 %v5749_v4  ;;  %v13505_v3 = vpop.f32.mrb[70].mxu0 }
 0xa4e   : > { %v5764_v44 = vadd.f32 1e-08, %v13505_v3  ;;  %v5758_v8 = vpop.f32.mrb[71].mxu0 }
 0xa4f   : > { %v5759_v51 = vadd.f32 1e-08, %v5758_v8 }
 0xa50   : > { %15167 = vrsqrt.f32 %v5764_v44 }
 0xa51   : > { %15169 = vrsqrt.f32 %v5759_v51 }
 0xa56   : > { %v15164_v17 = vpop.eup %15163 }
 0xa57   : > { %v15166_v18 = vpop.eup %15165  ;;  %5778 = vperm.xlu1 %15001, %v15164_v17  }
 0xa58   : > { %5773 = vperm.xlu0 %15000, %v15166_v18  }
 0xa5a   : > { %v15168_v12 = vpop.eup %15167 }
 0xa5b   : > { %v15170_v6 = vpop.eup %15169  ;;  %5788 = vperm.xlu1 %15001, %v15168_v12  }
 0xa5c   : > { %5783 = vperm.xlu0 %15000, %v15170_v6  }
 0xa5f   : > { %5827 = vperm.xlu1 %15001, %v5809_v27  }
 0xa60   : > { %5822 = vperm.xlu0 %15000, %v5808_v63  }
 0xa63   : > { %5868 = vperm.xlu1 %15001, %v16210_v62  }
 0xa64   : > { %5863 = vperm.xlu0 %15000, %v16207_v61  }
 0xa67   : > { %5878 = vperm.xlu1 %15001, %v16228_v54  }
 0xa68   : > { %5873 = vperm.xlu0 %15000, %v16225_v46  }
 0xad6   : > { %v5779_v9 = vpop.permute.xlu1 %5778 }
 0xad7   : > { %v5792_v16 = vmul.f32 %v5779_v9, %v5659_v24  ;;  %v5774_v43 = vpop.permute.xlu0 %5773 }
 0xad8   : > { %v5791_v48 = vmul.f32 %v5774_v43, %v5658_v45 }
 0xad9   : > { %v5803_v55 = vadd.f32 %v12114_v30, %v5792_v16  ;;  %v15092_v16 = vld [vmem:[%s17354_s22 + $0x10] sm:$0xff]  }
 0xada   : > { %v5802_v33 = vadd.f32 %v12114_v30, %v5791_v48  ;;  %v5789_v59 = vpop.permute.xlu1 %5788  ;;  %13510 = vmatprep.mubr.msk.bf16.mxu0 %vm1523_vm2, %v15092_v16 }
 0xadb   : > { %v5831_v25 = vadd.f32 %v5818_v7, %v5803_v55  ;;  %v5794_v0 = vmul.f32 %v5789_v59, %v5661_v49  ;;  %v5784_v62 = vpop.permute.xlu0 %5783  ;;  %v13588_v7 = vpop.f32.mrb[30].mxu1 }
 0xadc   : > { %v5830_v5 = vadd.f32 %v5813_v19, %v5802_v33  ;;  %v5793_v61 = vmul.f32 %v5784_v62, %v5660_v53  ;;  %v6696_v19 = vpop.f32.mrb[31].mxu1  ;;  %v6702_v62 = vadd.f32 1e-08, %v13588_v7 }
 0xadd   : > { %v5805_v28 = vadd.f32 %v12114_v30, %v5794_v0  ;;  %vm5835_vm10 = vcmp.ge.f32.partialorder %v5831_v25, 0.0  ;;  %v5839_v54 = vmul.f32 0.2, %v5831_v25  ;;  %v6697_v0 = vadd.f32 1e-08, %v6696_v19  ;;  %v15103_v19 = vld [vmem:[%s17354_s22 + $0x58] sm:$0xff]  }
 0xade   : > { %v5828_v46 = vpop.permute.xlu1 %5827  ;;  %v5804_v10 = vadd.f32 %v12114_v30, %v5793_v61  ;;  %vm5834_vm11 = vcmp.ge.f32.partialorder %v5830_v5, 0.0  ;;  %v5838_v11 = vmul.f32 0.2, %v5830_v5  ;;  %v13591_v30 = vpop.f32.mrb[36].mxu1 }
 0xadf   : > { %v5833_v31 = vadd.f32 %v5828_v46, %v5805_v28  ;;  %v5823_v57 = vpop.permute.xlu0 %5822  ;;  %v5843_v21 = vsel %vm5835_vm10, %v5831_v25, %v5839_v54  ;;  %v6706_v9 = vpop.f32.mrb[37].mxu1  ;;  %15171 = vrsqrt.f32 %v6697_v0  ;;  %v6712_v61 = vadd.f32 1e-08, %v13591_v30  ;;  %v15104_v30 = vld [vmem:[%s17354_s22 + $0x60] sm:$0xff]  }
 0xae0   : > { %v5832_v41 = vadd.f32 %v5823_v57, %v5804_v10  ;;  %v5847_v23 = vmul.f32 1.4142135, %v5843_v21  ;;  %v5842_v37 = vsel %vm5834_vm11, %v5830_v5, %v5838_v11  ;;  %v6707_v5 = vadd.f32 1e-08, %v6706_v9  ;;  %v6754_v11 = vld [vmem:[%s17355_s11] sm:$0xff]  ;;  %v6756_v57 = vld [vmem:[%s17355_s11 + $0x10] sm:$0xff] }
 0xae1   : > { %vm5837_vm12 = vcmp.ge.f32.partialorder %v5833_v31, 0.0  ;;  %v5841_v24 = vmul.f32 0.2, %v5833_v31  ;;  %v5846_v42 = vmul.f32 1.4142135, %v5842_v37  ;;  %15173 = vrsqrt.f32 %v6702_v62  ;;  %v1236_v21 = vld [vmem:[%s15277_s13 + $0xa0] sm:$0xff] }
 0xae2   : > { %vm5836_vm13 = vcmp.ge.f32.partialorder %v5832_v41, 0.0  ;;  %v5840_v45 = vmul.f32 0.2, %v5832_v41  ;;  %v5858_v50 = vmul.f32 %v16277_v22, %v5847_v23  ;;  %v5869_v49 = vpop.permute.xlu1 %5868  ;;  %15175 = vrsqrt.f32 %v6707_v5  ;;  %v1237_v37 = vld [vmem:[%s15277_s13 + $0xa8] sm:$0xff] }
 0xae3   : > { %v5857_v47 = vmul.f32 %v16277_v22, %v5846_v42  ;;  %v5864_v53 = vpop.permute.xlu0 %5863  ;;  %v5845_v56 = vsel %vm5837_vm12, %v5833_v31, %v5841_v24  ;;  %15177 = vrsqrt.f32 %v6712_v61  ;;  %v6755_v31 = vld [vmem:[%s17355_s11 + $0x8] sm:$0xff]  ;;  %v16339_v23 = vadd.f32 %v16023_v29, %v1236_v21  ;;  %v1238_v24 = vld [vmem:[%s15277_s13 + $0xb0] sm:$0xff] }
 0xae4   : > { %v5882_v58 = vmul.f32 %v5869_v49, %v5858_v50  ;;  %v5849_v2 = vmul.f32 1.4142135, %v5845_v56  ;;  %v5844_v4 = vsel %vm5836_vm13, %v5832_v41, %v5840_v45  ;;  %v6757_v41 = vld [vmem:[%s17355_s11 + $0x18] sm:$0xff]  ;;  %v16345_v42 = vadd.f32 %v16027_v32, %v1237_v37  ;;  %v15096_v56 = vld [vmem:[%s17354_s22 + $0x20] sm:$0xff]   ;;  %v15109_v62 = vld [vmem:[%s17354_s22 + $0x88] sm:$0xff]  }
 0xae5   : > { %v5881_v3 = vmul.f32 %v5864_v53, %v5857_v47  ;;  %v5848_v44 = vmul.f32 1.4142135, %v5844_v4  ;;  %v16348_v45 = vadd.f32 %v16032_v35, %v1238_v24  ;;  %v1239_v50 = vld [vmem:[%s15277_s13 + $0xb8] sm:$0xff]  ;;  %v15094_v35 = vld [vmem:[%s17354_s22] sm:$0xff]   ;;  %v15095_v53 = vld [vmem:[%s17354_s22 + $0x8] sm:$0xff]  }
 0xae6   : > { %v5860_v8 = vmul.f32 %v16277_v22, %v5849_v2  ;;  %v5879_v51 = vpop.permute.xlu1 %5878  ;;  %v16354_v29 = vadd.f32 %v16037_v39, %v1239_v50  ;;  %v15093_v47 = vld [vmem:[%s17354_s22 + $0x18] sm:$0xff]   ;;  %v15097_v4 = vld [vmem:[%s17354_s22 + $0x28] sm:$0xff]  }
 0xae7   : > { %v5885_v17 = vpack.c.bf16 %v5882_v58, %v5881_v3  ;;  %v5859_v18 = vmul.f32 %v16277_v22, %v5848_v44  ;;  %v5874_v12 = vpop.permute.xlu0 %5873  ;;  %v15098_v3 = vld [vmem:[%s17354_s22 + $0x30] sm:$0xff]  }
 0xae8   : > { %v5884_v6 = vmul.f32 %v5879_v51, %v5860_v8  ;;  %v15099_v51 = vld [vmem:[%s17354_s22 + $0x38] sm:$0xff]  }
 0xae9   : > { %v5883_v27 = vmul.f32 %v5874_v12, %v5859_v18  ;;  %5889 = vrot.lane.b32.xlu0 %v5885_v17, %s15247_s23  ;;  %v15172_v28 = vpop.eup %15171  ;;  %v15100_v17 = vld [vmem:[%s17354_s22 + $0x40] sm:$0xff]  }
 0xaeb   : > { %v5886_v63 = vpack.c.bf16 %v5884_v6, %v5883_v27  ;;  %v15174_v54 = vpop.eup %15173  ;;  %v15101_v6 = vld [vmem:[%s17354_s22 + $0x48] sm:$0xff]   ;;  %v15102_v27 = vld [vmem:[%s17354_s22 + $0x50] sm:$0xff]  }
 0xaec   : > { %v15176_v46 = vpop.eup %15175 }
 0xaed   : > { %5891 = vrot.lane.b32.xlu1 %v5886_v63, %s15247_s23  ;;  %v15178_v10 = vpop.eup %15177 }
 0xb5b   : > { %v5890_v43 = vpop.permute.xlu0 %5889 }
 0xb5c   : > { %v16288_v48 = vsel %vm5893_vm14, 0, %v5890_v43  ;;  %v15105_v43 = vld [vmem:[%s17354_s22 + $0x68] sm:$0xff]  }
 0xb5d   : > { %v16292_v55 = vsel %vm5898_vm15, %v16288_v48, 0 }
 0xb5e   : > { %5924 = vrot.lane.b32.xlu0 %v16292_v55, %s17320_s16 }
 0xb5f   : > { %v5892_v33 = vpop.permute.xlu1 %5891 }
 0xb60   : > { %v16297_v59 = vsel %vm5893_vm14, 0, %v5892_v33 }
 0xb61   : > { %v16301_v25 = vsel %vm5898_vm15, %v16297_v59, 0 }
 0xb62   : > { %5926 = vrot.lane.b32.xlu1 %v16301_v25, %s17320_s16  ;;  %6065 = vrot.lane.b32.xlu0 %v16292_v55, %s17316_s18 }
 0xb66   : > { %6067 = vrot.lane.b32.xlu1 %v16301_v25, %s17316_s18  ;;  %6145 = vrot.lane.b32.xlu0 %v16292_v55, %s15248_s26 }
 0xb6a   : > { %6147 = vrot.lane.b32.xlu1 %v16301_v25, %s15248_s26  ;;  %6225 = vrot.lane.b32.xlu0 %v16292_v55, %s17310_s1 }
 0xb6e   : > { %6227 = vrot.lane.b32.xlu1 %v16301_v25, %s17310_s1  ;;  %6305 = vrot.lane.b32.xlu0 %v16292_v55, %s17312_s28  ;;  %s15251_s1 = smov 107  }
 0xb72   : > { %6307 = vrot.lane.b32.xlu1 %v16301_v25, %s17312_s28  ;;  %6385 = vrot.lane.b32.xlu0 %v16292_v55, %s17318_s2  ;;  %s17314_s28 = smov 106  }
 0xb76   : > { %6387 = vrot.lane.b32.xlu1 %v16301_v25, %s17318_s2  ;;  %6465 = vrot.lane.b32.xlu0 %v16292_v55, %s15251_s1 }
 0xb7a   : > { %6467 = vrot.lane.b32.xlu1 %v16301_v25, %s15251_s1  ;;  %6545 = vrot.lane.b32.xlu0 %v16292_v55, %s17314_s28 }
 0xb7e   : > { %6547 = vrot.lane.b32.xlu1 %v16301_v25, %s17314_s28  ;;  %6721 = vperm.xlu0 %15000, %v15172_v28   ;;  %s17356_s28 = sld [smem:[#allocation8_spill]] }
 0xb82   : > { %6726 = vperm.xlu1 %15001, %v15174_v54   ;;  %6731 = vperm.xlu0 %15000, %v15176_v46  }
 0xb86   : > { %6736 = vperm.xlu1 %15001, %v15178_v10   ;;  %6760 = vperm.xlu0 %15000, %v6754_v11  }
 0xb8a   : > { %6765 = vperm.xlu1 %15001, %v6755_v31   ;;  %6770 = vperm.xlu0 %15000, %v6756_v57   ;;  %v12188_v31 = vld [vmem:[%s17356_s28] ss:$0 sm:$0xff]  ;;  %s17357_s28 = smov 117  }
 0xb8e   : > { %6775 = vperm.xlu1 %15001, %v6757_v41   ;;  %6990 = vperm.xlu0 %15000, %v16339_v23  }
 0xb92   : > { %6995 = vperm.xlu1 %15001, %v16345_v42   ;;  %7000 = vperm.xlu0 %15000, %v16348_v45  }
 0xb96   : > { %7005 = vperm.xlu1 %15001, %v16354_v29  }
 0xbd0   : > { %v5925_v49 = vpop.permute.xlu0 %5924 }
 0xbd1   : > { %13506 = vmatprep.subr.bf16.mxu0 %v5925_v49 }
 0xbd2   : > { %13507 = vmatpush3.bf16.msra.mxu0 %v5925_v49 }
 0xbd4   : > { %v5927_v32 = vpop.permute.xlu1 %5926  ;;  %v6066_v39 = vpop.permute.xlu0 %6065 }
 0xbd5   : > { %13508 = vmatprep.subr.bf16.mxu0 %v5927_v32 }
 0xbd6   : > { %13509 = vmatpush3.bf16.msra.mxu0 %v5927_v32 }
 0xbd7   : > { %14927 = vmatprep.subr.msk.bf16.mxu0 %vm5898_vm15, %v16288_v48  ;;  %v15106_v48 = vld [vmem:[%s17354_s22 + $0x70] sm:$0xff]  }
 0xbd8   : > { %v6068_v58 = vpop.permute.xlu1 %6067  ;;  %v6146_v2 = vpop.permute.xlu0 %6145 }
 0xbd9   : > { %13511 = vmatmul.mubr.msk.bf16.vlgmr.msra.gmra.mrb[72].mxu0 %vm1523_vm2, %v15093_v47 }
 0xbda   : > { %13515 = vmatpush3.bf16.msra.mxu0 %v16292_v55  ;;  %13518 = vmatprep.mubr.msk.bf16.mxu0 %vm1523_vm2, %v15094_v35 }
 0xbdb   : > { %14928 = vmatprep.subr.msk.bf16.mxu0 %vm5898_vm15, %v16297_v59  ;;  %v15107_v59 = vld [vmem:[%s17354_s22 + $0x78] sm:$0xff]  }
 0xbdc   : > { %v6148_v44 = vpop.permute.xlu1 %6147  ;;  %v6226_v8 = vpop.permute.xlu0 %6225 }
 0xbde   : > { %13517 = vmatpush3.bf16.msra.mxu0 %v16301_v25  ;;  %v15108_v25 = vld [vmem:[%s17354_s22 + $0x80] sm:$0xff]  }
 0xbdf   : > { %13522 = vmatprep.subr.bf16.mxu0 %v6066_v39 }
 0xbe0   : > { %v6228_v18 = vpop.permute.xlu1 %6227  ;;  %v6306_v12 = vpop.permute.xlu0 %6305 }
 0xbe4   : > { %v6308_v63 = vpop.permute.xlu1 %6307  ;;  %v6386_v7 = vpop.permute.xlu0 %6385 }
 0xbe5   : > { %13519 = vmatmul.mubr.msk.bf16.vlgmr.msra.gmra.mrb[72].mxu0 %vm1523_vm2, %v15095_v53 }
 0xbe6   : > { %13523 = vmatpush3.bf16.msra.mxu0 %v6066_v39  ;;  %13526 = vmatprep.mubr.msk.bf16.mxu0 %vm1523_vm2, %v15096_v56 }
 0xbe7   : > { %13524 = vmatprep.subr.bf16.mxu0 %v6068_v58 }
 0xbe8   : > { %v6388_v9 = vpop.permute.xlu1 %6387  ;;  %v6466_v16 = vpop.permute.xlu0 %6465 }
 0xbea   : > { %13525 = vmatpush3.bf16.msra.mxu0 %v6068_v58 }
 0xbeb   : > { %13530 = vmatprep.subr.bf16.mxu0 %v6146_v2 }
 0xbec   : > { %v6468_v55 = vpop.permute.xlu1 %6467  ;;  %v6546_v33 = vpop.permute.xlu0 %6545 }
 0xbf0   : > { %v6548_v0 = vpop.permute.xlu1 %6547 }
 0xbf1   : > { %13527 = vmatmul.mubr.msk.bf16.vlgmr.msra.gmra.mrb[72].mxu0 %vm1523_vm2, %v15097_v4 }
 0xbf2   : > { %13531 = vmatpush3.bf16.msra.mxu0 %v6146_v2  ;;  %13534 = vmatprep.mubr.msk.bf16.mxu0 %vm1523_vm2, %v15098_v3 }
 0xbf3   : > { %13532 = vmatprep.subr.bf16.mxu0 %v6148_v44 }
 0xbf6   : > { %13533 = vmatpush3.bf16.msra.mxu0 %v6148_v44 }
 0xbf7   : > { %13538 = vmatprep.subr.bf16.mxu0 %v6226_v8 }
 0xbfd   : > { %13535 = vmatmul.mubr.msk.bf16.vlgmr.msra.gmra.mrb[72].mxu0 %vm1523_vm2, %v15099_v51  ;;  %v6722_v5 = vpop.permute.xlu0 %6721 }
 0xbfe   : > { %13539 = vmatpush3.bf16.msra.mxu0 %v6226_v8  ;;  %13542 = vmatprep.mubr.msk.bf16.mxu0 %vm1523_vm2, %v15100_v17 }
 0xbff   : > { %13540 = vmatprep.subr.bf16.mxu0 %v6228_v18 }
 0xc01   : > { %v6727_v61 = vpop.permute.xlu1 %6726  ;;  %v6732_v28 = vpop.permute.xlu0 %6731 }
 0xc02   : > { %13541 = vmatpush3.bf16.msra.mxu0 %v6228_v18 }
 0xc03   : > { %13546 = vmatprep.subr.bf16.mxu0 %v6306_v12 }
 0xc05   : > { %v6737_v54 = vpop.permute.xlu1 %6736  ;;  %v6761_v46 = vpop.permute.xlu0 %6760 }
 0xc09   : > { %13543 = vmatmul.mubr.msk.bf16.vlgmr.msra.gmra.mrb[72].mxu0 %vm1523_vm2, %v15101_v6  ;;  %v6766_v10 = vpop.permute.xlu1 %6765  ;;  %v6771_v41 = vpop.permute.xlu0 %6770 }
 0xc0a   : > { %13547 = vmatpush3.bf16.msra.mxu0 %v6306_v12  ;;  %13550 = vmatprep.mubr.msk.bf16.mxu0 %vm1523_vm2, %v15102_v27 }
 0xc0b   : > { %13548 = vmatprep.subr.bf16.mxu0 %v6308_v63 }
 0xc0d   : > { %v6776_v50 = vpop.permute.xlu1 %6775  ;;  %v6991_v51 = vpop.permute.xlu0 %6990 }
 0xc0e   : > { %13549 = vmatpush3.bf16.msra.mxu0 %v6308_v63 }
 0xc0f   : > { %13554 = vmatprep.subr.bf16.mxu0 %v6386_v7 }
 0xc11   : > { %v6996_v17 = vpop.permute.xlu1 %6995 }
 0xc15   : > { %13551 = vmatmul.mubr.msk.bf16.vlgmr.msra.gmra.mrb[72].mxu0 %vm1523_vm2, %v15103_v19 }
 0xc16   : > { %13555 = vmatpush3.bf16.msra.mxu0 %v6386_v7  ;;  %13558 = vmatprep.mubr.msk.bf16.mxu0 %vm1523_vm2, %v15104_v30 }
 0xc17   : > { %13556 = vmatprep.subr.bf16.mxu0 %v6388_v9 }
 0xc1a   : > { %13557 = vmatpush3.bf16.msra.mxu0 %v6388_v9 }
 0xc1b   : > { %13562 = vmatprep.subr.bf16.mxu0 %v6466_v16 }
 0xc21   : > { %13559 = vmatmul.mubr.msk.bf16.vlgmr.msra.gmra.mrb[72].mxu0 %vm1523_vm2, %v15105_v43 }
 0xc22   : > { %13563 = vmatpush3.bf16.msra.mxu0 %v6466_v16  ;;  %13566 = vmatprep.mubr.msk.bf16.mxu0 %vm1523_vm2, %v15106_v48 }
 0xc23   : > { %13564 = vmatprep.subr.bf16.mxu0 %v6468_v55 }
 0xc26   : > { %13565 = vmatpush3.bf16.msra.mxu0 %v6468_v55 }
 0xc27   : > { %13570 = vmatprep.subr.bf16.mxu0 %v6546_v33 }
 0xc2d   : > { %13567 = vmatmul.mubr.msk.bf16.vlgmr.msra.gmra.mrb[72].mxu0 %vm1523_vm2, %v15107_v59  ;;  %v7006_v59 = vpop.permute.xlu1 %7005 }
 0xc2e   : > { %13571 = vmatpush3.bf16.msra.mxu0 %v6546_v33  ;;  %13574 = vmatprep.mubr.msk.bf16.mxu0 %vm1523_vm2, %v15108_v25  ;;  %v7001_v33 = vpop.permute.xlu0 %7000 }
 0xc2f   : > { %13572 = vmatprep.subr.bf16.mxu0 %v6548_v0 }
 0xc32   : > { %13573 = vmatpush3.bf16.msra.mxu0 %v6548_v0 }
 0xc33   : > { %13688 = vmatprep.subr.bf16.mxu0 %v17351_v34 }
 0xc39   : > { %13575 = vmatmul.mubr.msk.bf16.vlgmr.msra.gmra.mrb[72].mxu0 %vm1523_vm2, %v15109_v62 }
 0xc3a   : > { %13692 = vmatprep.mubr.msk.bf16.mxu0 %vm15245_vm8, %v17351_v34 }
 0xd0c   : > { %v13576_v11 = vpop.f32.mrb[72].mxu0 }
 0xd0d   : > { %v6741_v57 = vmul.f32 %v13576_v11, %v6732_v28  ;;  %v6591_v21 = vpop.f32.mrb[73].mxu0 }
 0xd0e   : > { %v6739_v37 = vmul.f32 %v6722_v5, %v6591_v21  ;;  %v13577_v24 = vpop.f32.mrb[74].mxu0  ;;  %v1232_v21 = vld [vmem:[%s15277_s13 + $0x80] sm:$0xff] }
 0xd0f   : > { %v6752_v49 = vadd.f32 %v12188_v31, %v6741_v57  ;;  %v6742_v32 = vmul.f32 %v13577_v24, %v6737_v54  ;;  %v6594_v47 = vpop.f32.mrb[75].mxu0 }
 0xd10   : > { %v6750_v35 = vadd.f32 %v12188_v31, %v6739_v37  ;;  %v6740_v39 = vmul.f32 %v6727_v61, %v6594_v47  ;;  %v1233_v37 = vld [vmem:[%s15277_s13 + $0x88] sm:$0xff] }
 0xd11   : > { %v6780_v53 = vadd.f32 %v6771_v41, %v6752_v49  ;;  %v6753_v56 = vadd.f32 %v12188_v31, %v6742_v32  ;;  %v1391_v41 = vadd.f32 %v16002_v15, %v1232_v21  ;;  %v1396_v24 = vadd.f32 %v16006_v20, %v1233_v37  ;;  %v1234_v49 = vld [vmem:[%s15277_s13 + $0x90] sm:$0xff] }
 0xd12   : > { %v6778_v58 = vadd.f32 %v6761_v46, %v6750_v35  ;;  %v6751_v2 = vadd.f32 %v12188_v31, %v6740_v39  ;;  %v1401_v47 = vadd.f32 %v16013_v36, %v1234_v49 }
 0xd13   : > { %vm6784_vm0 = vcmp.ge.f32.partialorder %v6780_v53, 0.0  ;;  %v6788_v4 = vmul.f32 0.2, %v6780_v53  ;;  %v6781_v3 = vadd.f32 %v6776_v50, %v6753_v56  ;;  %v1235_v50 = vld [vmem:[%s15277_s13 + $0x98] sm:$0xff] }
 0xd14   : > { %vm6782_vm1 = vcmp.ge.f32.partialorder %v6778_v58, 0.0  ;;  %v6786_v44 = vmul.f32 0.2, %v6778_v58  ;;  %v6779_v8 = vadd.f32 %v6766_v10, %v6751_v2  ;;  %v1406_v32 = vadd.f32 %v16018_v26, %v1235_v50 }
 0xd15   : > { %v6792_v18 = vsel %vm6784_vm0, %v6780_v53, %v6788_v4  ;;  %vm6785_vm4 = vcmp.ge.f32.partialorder %v6781_v3, 0.0  ;;  %v6789_v12 = vmul.f32 0.2, %v6781_v3  ;;  %vm10096_vm0 = vcmask 1039360  }
 0xd16   : > { %v6796_v6 = vmul.f32 1.4142135, %v6792_v18  ;;  %v6790_v27 = vsel %vm6782_vm1, %v6778_v58, %v6786_v44  ;;  %vm6783_vm5 = vcmp.ge.f32.partialorder %v6779_v8, 0.0  ;;  %v6787_v63 = vmul.f32 0.2, %v6779_v8 }
 0xd17   : > { %v6794_v7 = vmul.f32 1.4142135, %v6790_v27  ;;  %v6793_v19 = vsel %vm6785_vm4, %v6781_v3, %v6789_v12  ;;  %vm10296_vm4 = vcmask 1031168  }
 0xd18   : > { %v16402_v30 = vmul.f32 %v16277_v22, %v6796_v6  ;;  %v6797_v9 = vmul.f32 1.4142135, %v6793_v19  ;;  %v6791_v16 = vsel %vm6783_vm5, %v6779_v8, %v6787_v63  ;;  %vm10409_vm5 = vcmask 900096  }
 0xd19   : > { %v16405_v43 = vmul.f32 %v16277_v22, %v6794_v7  ;;  %v6795_v48 = vmul.f32 1.4142135, %v6791_v16 }
 0xd1a   : > { %v16408_v55 = vmul.f32 %v16277_v22, %v6797_v9  ;;  %v7010_v0 = vmul.f32 %v7001_v33, %v16402_v30 }
 0xd1b   : > { %v16411_v25 = vmul.f32 %v16277_v22, %v6795_v48  ;;  %v7008_v5 = vmul.f32 %v6991_v51, %v16405_v43 }
 0xd1c   : > { %v7011_v62 = vmul.f32 %v7006_v59, %v16408_v55 }
 0xd1d   : > { %v7009_v61 = vmul.f32 %v6996_v17, %v16411_v25 }
 0xd1e   : > { %v7013_v28 = vpack.c.bf16 %v7011_v62, %v7010_v0 }
 0xd1f   : > { %v7012_v54 = vpack.c.bf16 %v7009_v61, %v7008_v5 }
 0xd20   : > { %7018 = vrot.lane.b32.xlu1 %v7013_v28, %s15247_s23 }
 0xd21   : > { %7016 = vrot.lane.b32.xlu0 %v7012_v54, %s15247_s23  ;;  %s17358_s23 = smov 116  }
 0xd92   : > { %v7019_v46 = vpop.permute.xlu1 %7018 }
 0xd93   : > { %v7023_v10 = vsel %vm5893_vm14, 0, %v7019_v46  ;;  %v7017_v22 = vpop.permute.xlu0 %7016 }
 0xd94   : > { %v16421_v11 = vsel %vm5898_vm15, %v7023_v10, 0  ;;  %v7021_v31 = vsel %vm5893_vm14, 0, %v7017_v22  ;;  %v15187_v10 = vld [vmem:[%s15317_s19] ss:$0 sm:$0xff]  ;;  %vm10066_vm14 = vcmask 154624  }
 0xd95   : > { %v16425_v57 = vsel %vm5898_vm15, %v7021_v31, 0  ;;  %7042 = vrot.lane.b32.xlu1 %v16421_v11, %s17320_s16  ;;  %vm10074_vm15 = vcmask 711680   ;;  %vm12487_vm1 = vmneg %vm10066_vm14 }
 0xd96   : > { %7040 = vrot.lane.b32.xlu0 %v16425_v57, %s17320_s16  ;;  %s17369_s16 = sld [smem:[#allocation17_spill]] }
 0xd99   : > { %7149 = vrot.lane.b32.xlu1 %v16421_v11, %s17316_s18 }
 0xd9a   : > { %7147 = vrot.lane.b32.xlu0 %v16425_v57, %s17316_s18  ;;  %s17359_s18 = sld [smem:[#allocation4_spill]] }
 0xd9d   : > { %7209 = vrot.lane.b32.xlu1 %v16421_v11, %s15248_s26 }
 0xd9e   : > { %7207 = vrot.lane.b32.xlu0 %v16425_v57, %s15248_s26  ;;  %s17360_s26 = sld [smem:[#allocation14_spill]] }
 0xda0   : > { %v2428_v15 = vld [vmem:[%s17359_s18] sm:$0x7]  ;;  %s17362_s18 = sld [smem:[#allocation13_spill]] }
 0xda1   : > { %7269 = vrot.lane.b32.xlu1 %v16421_v11, %s17357_s28 }
 0xda2   : > { %7267 = vrot.lane.b32.xlu0 %v16425_v57, %s17357_s28  ;;  %s17361_s28 = smov 106  }
 0xda4   : > { %v15110_v26 = vld [vmem:[%s17360_s26 + $0x50] sm:$0xff]   ;;  %v15111_v58 = vld [vmem:[%s17360_s26 + $0x48] sm:$0xff]   ;;  %v15112_v8 = vld [vmem:[%s17360_s26 + $0x58] sm:$0xff]  }
 0xda5   : > { %7329 = vrot.lane.b32.xlu1 %v16421_v11, %s17358_s23  ;;  %v15113_v19 = vld [vmem:[%s17360_s26 + $0x60] sm:$0xff]   ;;  %v15114_v28 = vld [vmem:[%s17360_s26 + $0x68] sm:$0xff]   ;;  %v15116_v31 = vld [vmem:[%s17360_s26 + $0x70] sm:$0xff]  }
 0xda6   : > { %7327 = vrot.lane.b32.xlu0 %v16425_v57, %s17358_s23  ;;  %v6802_v33 = vld [vmem:[%s17362_s18] sm:$0xff]  ;;  %v6804_v0 = vld [vmem:[%s17362_s18 + $0x10] sm:$0xff]  ;;  %v6805_v62 = vld [vmem:[%s17362_s18 + $0x18] sm:$0xff]  ;;  %s17364_s23 = sld [smem:[#allocation16_spill]] }
 0xda7   : > { %v14248_v61 = vpack.c.bf16 %v6805_v62, %v6804_v0  ;;  %v6806_v46 = vld [vmem:[%s17362_s18 + $0x20] sm:$0xf] }
 0xda8   : > { %v15117_v21 = vld [vmem:[%s17360_s26] sm:$0xff]  }
 0xda9   : > { %6810 = vperm.xlu1 %15001, %v1391_v41   ;;  %v15118_v41 = vld [vmem:[%s17360_s26 + $0x78] sm:$0xff]   ;;  %v15120_v50 = vld [vmem:[%s17360_s26 + $0x80] sm:$0xff]  }
 0xdaa   : > { %7387 = vrot.lane.b32.xlu0 %v16425_v57, %s17318_s2 }
 0xdac   : > { %v12268_v62 = vld [vmem:[%s17364_s23 + $0x168] sm:$0xff] }
 0xdad   : > { %7389 = vrot.lane.b32.xlu1 %v16421_v11, %s17318_s2  ;;  %s17368_s2 = sld [smem:[#allocation20_spill]] }
 0xdae   : > { %6815 = vperm.xlu0 %15000, %v1396_v24   ;;  %v15119_v24 = vld [vmem:[%s17360_s26 + $0x10] sm:$0xff]  }
 0xdb1   : > { %6825 = vperm.xlu1 %15001, %v1406_v32  }
 0xdb2   : > { %6820 = vperm.xlu0 %15000, %v1401_v47   ;;  %v15121_v47 = vld [vmem:[%s17360_s26 + $0x18] sm:$0xff]  }
 0xdb5   : > { %7449 = vrot.lane.b32.xlu1 %v16421_v11, %s15251_s1 }
 0xdb6   : > { %7447 = vrot.lane.b32.xlu0 %v16425_v57, %s15251_s1  ;;  %s17363_s1 = sld [smem:[#allocation10_spill]] }
 0xdb9   : > { %7507 = vrot.lane.b32.xlu1 %v16425_v57, %s17361_s28 }
 0xdba   : > { %2431 = vperm.xlu0 %15000, %v2428_v15   ;;  %v15122_v15 = vld [vmem:[%s17360_s26 + $0x88] sm:$0xff]  }
 0xdbe   : > { %7509 = vrot.lane.b32.xlu0 %v16421_v11, %s17361_s28  ;;  %s17365_s28 = sld [smem:[#allocation15_spill]] }
 0xe07   : > { %v16472_v36 = vpop.permute.xlu1 %7042 }
 0xe08   : > { %v16468_v20 = vpop.permute.xlu0 %7040 }
 0xe09   : > { %13689 = vmatpush3.bf16.msra.mxu0 %v16468_v20 }
 0xe0a   : > { %13690 = vmatprep.subr.bf16.mxu0 %v17351_v34 }
 0xe0b   : > { %v16483_v39 = vpop.permute.xlu1 %7149 }
 0xe0c   : > { %v16478_v35 = vpop.permute.xlu0 %7147 }
 0xe0d   : > { %13691 = vmatpush3.bf16.msra.mxu0 %v16472_v36 }
 0xe0e   : > { %13696 = vmatprep.subr.bf16.mxu0 %v17351_v34 }
 0xe0f   : > { %v16490_v56 = vpop.permute.xlu1 %7209 }
 0xe10   : > { %13693 = vmatmul.mubr.msk.bf16.vlgmr.msra.gmra.mrb[76].mxu0 %vm1523_vm2, %v15110_v26  ;;  %v16488_v53 = vpop.permute.xlu0 %7207  ;;  %v15123_v26 = vld [vmem:[%s17360_s26 + $0x98] sm:$0xff]  }
 0xe11   : > { %13697 = vmatpush3.bf16.msra.mxu0 %v16425_v57  ;;  %13700 = vmatprep.mubr.msk.bf16.mxu0 %vm15245_vm8, %v17351_v34 }
 0xe12   : > { %13698 = vmatprep.subr.bf16.mxu0 %v17351_v34 }
 0xe13   : > { %v16499_v4 = vpop.permute.xlu1 %7269 }
 0xe14   : > { %v16494_v2 = vpop.permute.xlu0 %7267 }
 0xe15   : > { %13699 = vmatpush3.bf16.msra.mxu0 %v16421_v11 }
 0xe16   : > { %13704 = vmatprep.subr.bf16.mxu0 %v17351_v34 }
 0xe17   : > { %v16506_v44 = vpop.permute.xlu1 %7329 }
 0xe18   : > { %v16504_v3 = vpop.permute.xlu0 %7327 }
 0xe1c   : > { %13701 = vmatmul.mubr.msk.bf16.vlgmr.msra.gmra.mrb[76].mxu0 %vm1523_vm2, %v15111_v58  ;;  %v16510_v17 = vpop.permute.xlu0 %7387  ;;  %v15124_v58 = vld [vmem:[%s17360_s26 + $0x20] sm:$0xff]  }
 0xe1d   : > { %13705 = vmatpush3.bf16.msra.mxu0 %v16478_v35  ;;  %13708 = vmatprep.mubr.msk.bf16.mxu0 %vm15245_vm8, %v17351_v34 }
 0xe1e   : > { %13706 = vmatprep.subr.bf16.mxu0 %v17351_v34 }
 0xe21   : > { %13707 = vmatpush3.bf16.msra.mxu0 %v16483_v39 }
 0xe22   : > { %13712 = vmatprep.subr.bf16.mxu0 %v17351_v34 }
 0xe28   : > { %v6811_v51 = vpop.permute.xlu1 %6810  ;;  %13709 = vmatmul.mubr.msk.bf16.vlgmr.msra.gmra.mrb[76].mxu0 %vm1523_vm2, %v15112_v8  ;;  %v15125_v8 = vld [vmem:[%s17360_s26 + $0x90] sm:$0xff]  }
 0xe29   : > { %13713 = vmatpush3.bf16.msra.mxu0 %v16488_v53  ;;  %13716 = vmatprep.mubr.msk.bf16.mxu0 %vm15245_vm8, %v17351_v34  ;;  %v6828_v6 = vmul.f32 %v6811_v51, %v16405_v43  ;;  %v6803_v43 = vld [vmem:[%s17362_s18 + $0x8] sm:$0xff] }
 0xe2a   : > { %13714 = vmatprep.subr.bf16.mxu0 %v17351_v34  ;;  %v15126_v51 = vld [vmem:[%s17360_s26 + $0x28] sm:$0xff]  }
 0xe2c   : > { %v16516_v18 = vpop.permute.xlu1 %7389 }
 0xe2d   : > { %13715 = vmatpush3.bf16.msra.mxu0 %v16490_v56  ;;  %v6816_v12 = vpop.permute.xlu0 %6815 }
 0xe2e   : > { %v6829_v27 = vmul.f32 %v6816_v12, %v16411_v25  ;;  %13720 = vmatprep.subr.bf16.mxu0 %v17351_v34  ;;  %v15127_v12 = vld [vmem:[%s17360_s26 + $0xa0] sm:$0xff]  }
 0xe30   : > { %v14239_v63 = vpack.c.bf16 %v6829_v27, %v6828_v6  ;;  %v6826_v7 = vpop.permute.xlu1 %6825  ;;  %v15128_v6 = vld [vmem:[%s17360_s26 + $0x30] sm:$0xff]   ;;  %v15129_v27 = vld [vmem:[%s17360_s26 + $0xa8] sm:$0xff]  }
 0xe31   : > { %v6831_v9 = vmul.f32 %v6826_v7, %v16408_v55  ;;  %v6821_v16 = vpop.permute.xlu0 %6820  ;;  %v14245_v55 = vpack.c.bf16 %v6803_v43, %v6802_v33  ;;  %v15131_v7 = vld [vmem:[%s17360_s26 + $0xb0] sm:$0xff]   ;;  %v12262_v33 = vld [vmem:[%s17364_s23 + $0x138] sm:$0xff] }
 0xe32   : > { %v6830_v48 = vmul.f32 %v6821_v16, %v16402_v30  ;;  %14240 = vmatpush3.bf16.msra.mxu1 %v14239_v63  ;;  %v6807_v30 = vld [vmem:[%s17363_s1] sm:$0x7]  ;;  %v15130_v63 = vld [vmem:[%s17360_s26 + $0x38] sm:$0xff]   ;;  %v12265_v43 = vld [vmem:[%s17364_s23 + $0x150] sm:$0xff]  ;;  %s17367_s1 = sld [smem:[#allocation18_spill]] }
 0xe33   : > { %14241 = vmatprep.subr.bf16.mxu1 %v15234_v1  ;;  %v12266_v16 = vld [vmem:[%s17364_s23 + $0x158] sm:$0xff] }
 0xe34   : > { %v14242_v59 = vpack.c.bf16 %v6831_v9, %v6830_v48  ;;  %13717 = vmatmul.mubr.msk.bf16.vlgmr.msra.gmra.mrb[76].mxu0 %vm1523_vm2, %v15113_v19  ;;  %v16594_v37 = vpop.permute.xlu1 %7449  ;;  %v15132_v19 = vld [vmem:[%s17360_s26 + $0x40] sm:$0xff]  }
 0xe35   : > { %13721 = vmatpush3.bf16.msra.mxu0 %v16494_v2  ;;  %v16530_v25 = vpop.permute.xlu0 %7447  ;;  %13724 = vmatprep.mubr.msk.bf16.mxu0 %vm15245_vm8, %v17351_v34  ;;  %v12263_v9 = vld [vmem:[%s17364_s23 + $0x140] sm:$0xff] }
 0xe36   : > { %14243 = vmatpush3.bf16.msra.mxu1 %v14242_v59  ;;  %13722 = vmatprep.subr.bf16.mxu0 %v17351_v34  ;;  %v14250_v48 = vpack.c.bf16 %v12266_v16, %v12263_v9  ;;  %v14252_v59 = vpack.c.bf16 %v12265_v43, %v12262_v33  ;;  %v12295_v9 = vld [vmem:[%s17364_s23 + $0x240] sm:$0xff]  ;;  %v12264_v43 = vld [vmem:[%s17364_s23 + $0x148] sm:$0xff] }
 0xe37   : > { %14244 = vmatprep.subr.bf16.mxu1 %v15234_v1  ;;  %v15134_v16 = vld [vmem:[%s17360_s26 + $0xc0] sm:$0xff]  }
 0xe38   : > { %v16603_v49 = vpop.permute.xlu1 %7507  ;;  %v12299_v33 = vld [vmem:[%s17364_s23 + $0x260] sm:$0xf] }
 0xe39   : > { %13723 = vmatpush3.bf16.msra.mxu0 %v16499_v4  ;;  %13601 = vmatmul.mubr.msk.f32.vlgmr.msra.gmra.mrb[38].mxu1 %vm1523_vm2, %v6807_v30  ;;  %v2432_v5 = vpop.permute.xlu0 %2431  ;;  %v12269_v30 = vld [vmem:[%s17364_s23 + $0x170] sm:$0xff] }
 0xe3a   : > { %14246 = vmatpush3.bf16.msra.mxu1 %v14245_v55  ;;  %13728 = vmatprep.subr.bf16.mxu0 %v17351_v34  ;;  %v2504_v54 = vadd.f32 %v15914_v52, %v2432_v5  ;;  %v15115_v52 = vld [vmem:[%s17360_s26 + $0x8] sm:$0xff]   ;;  %v12271_v5 = vld [vmem:[%s17364_s23 + $0x180] sm:$0xff] }
 0xe3b   : > { %14247 = vmatprep.subr.bf16.mxu1 %v15234_v1  ;;  %13613 = vmatprep.mubr.msk.f32.mxu1 %vm15245_vm8, %v17351_v34  ;;  %v12272_v55 = vld [vmem:[%s17364_s23 + $0x188] sm:$0xff] }
 0xe3c   : > { %v2507_v22 = vmul.f32 %v15187_v10, %v2504_v54  ;;  %v14254_v0 = vpack.c.bf16 %v12272_v55, %v12269_v30  ;;  %v12278_v54 = vld [vmem:[%s17364_s23 + $0x1b8] sm:$0xff] }
 0xe3d   : > { %v16614_v32 = vpop.permute.xlu0 %7509  ;;  %v12298_v30 = vld [vmem:[%s17364_s23 + $0x258] sm:$0xf] }
 0xe3e   : > { %14249 = vmatpush3.bf16.msra.mxu1 %v14248_v61  ;;  %v14256_v61 = vpack.c.bf16 %v12271_v5, %v12268_v62  ;;  %v15136_v62 = vld [vmem:[%s17360_s26 + $0xd0] sm:$0xff]   ;;  %v15137_v5 = vld [vmem:[%s17360_s26 + $0xe0] sm:$0xff]  }
 0xe3f   : > { %13611 = vmatprep.subr.mxu1 %v17351_v34 }
 0xe40   : > { %13725 = vmatmul.mubr.msk.bf16.vlgmr.msra.gmra.mrb[76].mxu0 %vm1523_vm2, %v15114_v28  ;;  %v12275_v28 = vld [vmem:[%s17364_s23 + $0x1a0] sm:$0xff] }
 0xe41   : > { %13729 = vmatpush3.bf16.msra.mxu0 %v16504_v3  ;;  %13732 = vmatprep.mubr.msk.bf16.mxu0 %vm15245_vm8, %v17351_v34  ;;  %v14258_v10 = vpack.c.bf16 %v12278_v54, %v12275_v28  ;;  %v12276_v54 = vld [vmem:[%s17364_s23 + $0x1a8] sm:$0xff] }
 0xe42   : > { %13612 = vmatpush3.msk.msra.mxu1 %vm3937_vm3, %v6806_v46  ;;  %13730 = vmatprep.subr.bf16.mxu0 %v17351_v34  ;;  %v12274_v46 = vld [vmem:[%s17364_s23 + $0x198] sm:$0xff] }
 0xe43   : > { %13614 = vmatmul.mubr.msk.f32.vlgmr.msra.gmra.mrb[40].mxu1 %vm3924_vm9, %v2507_v22  ;;  %13616 = vmatprep.subr.bf16.mxu1 %v17351_v34  ;;  %v12277_v22 = vld [vmem:[%s17364_s23 + $0x1b0] sm:$0xff] }
 0xe44   : > { %13617 = vmatpush3.bf16.msra.mxu1 %v16468_v20  ;;  %13620 = vmatprep.mubr.msk.bf16.mxu1 %vm15245_vm8, %v17351_v34 }
 0xe45   : > { %13731 = vmatpush3.bf16.msra.mxu0 %v16506_v44  ;;  %13618 = vmatprep.subr.bf16.mxu1 %v17351_v34 }
 0xe46   : > { %13736 = vmatprep.subr.bf16.mxu0 %v17351_v34 }
 0xe48   : > { %13619 = vmatpush3.bf16.msra.mxu1 %v16472_v36 }
 0xe49   : > { %13624 = vmatprep.subr.bf16.mxu1 %v17351_v34 }
 0xe4b   : > { %13621 = vmatmul.mubr.msk.bf16.vlgmr.msra.gmra.mrb[44].mxu1 %vm1523_vm2, %v15115_v52  ;;  %v15133_v52 = vld [vmem:[%s17360_s26 + $0xb8] sm:$0xff]  }
 0xe4c   : > { %13625 = vmatpush3.bf16.msra.mxu1 %v16425_v57  ;;  %13733 = vmatmul.mubr.msk.bf16.vlgmr.msra.gmra.mrb[76].mxu0 %vm1523_vm2, %v15116_v31  ;;  %v14260_v31 = vpack.c.bf16 %v12277_v22, %v12274_v46  ;;  %v12279_v46 = vld [vmem:[%s17364_s23 + $0x1c0] sm:$0xff]  ;;  %v9846_v22 = vld [vmem:[%s17365_s28 + $0x8] sm:$0xff] }
 0xe4d   : > { %13737 = vmatpush3.bf16.msra.mxu0 %v16510_v17  ;;  %13626 = vmatprep.subr.bf16.mxu1 %v17351_v34 }
 0xe4e   : > { %13738 = vmatprep.subr.bf16.mxu0 %v17351_v34  ;;  %13628 = vmatprep.mubr.msk.bf16.mxu1 %vm15245_vm8, %v17351_v34 }
 0xe4f   : > { %13740 = vmatprep.mubr.msk.bf16.mxu0 %vm15245_vm8, %v17351_v34 }
 0xe50   : > { %13627 = vmatpush3.bf16.msra.mxu1 %v16421_v11 }
 0xe51   : > { %13739 = vmatpush3.bf16.msra.mxu0 %v16516_v18  ;;  %13632 = vmatprep.subr.bf16.mxu1 %v17351_v34 }
 0xe52   : > { %13744 = vmatprep.subr.bf16.mxu0 %v17351_v34 }
 0xe57   : > { %13629 = vmatmul.mubr.msk.bf16.vlgmr.msra.gmra.mrb[44].mxu1 %vm1523_vm2, %v15117_v21  ;;  %v12281_v21 = vld [vmem:[%s17364_s23 + $0x1d0] sm:$0xff] }
 0xe58   : > { %13633 = vmatpush3.bf16.msra.mxu1 %v16478_v35  ;;  %13741 = vmatmul.mubr.msk.bf16.vlgmr.msra.gmra.mrb[76].mxu0 %vm1523_vm2, %v15118_v41  ;;  %v12284_v41 = vld [vmem:[%s17364_s23 + $0x1e8] sm:$0xff] }
 0xe59   : > { %13745 = vmatpush3.bf16.msra.mxu0 %v16530_v25  ;;  %13634 = vmatprep.subr.bf16.mxu1 %v17351_v34 }
 0xe5a   : > { %13746 = vmatprep.subr.bf16.mxu0 %v17351_v34  ;;  %13636 = vmatprep.mubr.msk.bf16.mxu1 %vm15245_vm8, %v17351_v34 }
 0xe5b   : > { %13748 = vmatprep.mubr.msk.bf16.mxu0 %vm15245_vm8, %v17351_v34 }
 0xe5c   : > { %13635 = vmatpush3.bf16.msra.mxu1 %v16483_v39 }
 0xe5d   : > { %13747 = vmatpush3.bf16.msra.mxu0 %v16594_v37  ;;  %13640 = vmatprep.subr.bf16.mxu1 %v17351_v34 }
 0xe5e   : > { %13752 = vmatprep.subr.bf16.mxu0 %v17351_v34 }
 0xe63   : > { %13637 = vmatmul.mubr.msk.bf16.vlgmr.msra.gmra.mrb[44].mxu1 %vm1523_vm2, %v15119_v24  ;;  %v14262_v24 = vpack.c.bf16 %v12284_v41, %v12281_v21  ;;  %v12282_v21 = vld [vmem:[%s17364_s23 + $0x1d8] sm:$0xff]  ;;  %v12285_v41 = vld [vmem:[%s17364_s23 + $0x1f0] sm:$0xff] }
 0xe64   : > { %13641 = vmatpush3.bf16.msra.mxu1 %v16488_v53  ;;  %13749 = vmatmul.mubr.msk.bf16.vlgmr.msra.gmra.mrb[76].mxu0 %vm1523_vm2, %v15120_v50  ;;  %v12280_v50 = vld [vmem:[%s17364_s23 + $0x1c8] sm:$0xff] }
 0xe65   : > { %13753 = vmatpush3.bf16.msra.mxu0 %v16603_v49  ;;  %13642 = vmatprep.subr.bf16.mxu1 %v17351_v34 }
 0xe66   : > { %13754 = vmatprep.subr.bf16.mxu0 %v17351_v34  ;;  %13644 = vmatprep.mubr.msk.bf16.mxu1 %vm15245_vm8, %v17351_v34 }
 0xe67   : > { %13756 = vmatprep.mubr.msk.bf16.mxu0 %vm15245_vm8, %v17351_v34 }
 0xe68   : > { %13643 = vmatpush3.bf16.msra.mxu1 %v16490_v56 }
 0xe69   : > { %13755 = vmatpush3.bf16.msra.mxu0 %v16614_v32  ;;  %13648 = vmatprep.subr.bf16.mxu1 %v17351_v34 }
 0xe6a   : > { %13818 = vmatprep.subr.bf16.mxu0 %v17351_v34 }
 0xe6f   : > { %13645 = vmatmul.mubr.msk.bf16.vlgmr.msra.gmra.mrb[44].mxu1 %vm1523_vm2, %v15121_v47  ;;  %v12283_v47 = vld [vmem:[%s17364_s23 + $0x1e0] sm:$0xff] }
 0xe70   : > { %13649 = vmatpush3.bf16.msra.mxu1 %v16494_v2  ;;  %13757 = vmatmul.mubr.msk.bf16.vlgmr.msra.gmra.mrb[76].mxu0 %vm1523_vm2, %v15122_v15  ;;  %v14264_v15 = vpack.c.bf16 %v12283_v47, %v12280_v50  ;;  %v17366_v50 = vmov 0   ;;  %v12288_v47 = vld [vmem:[%s17364_s23 + $0x208] sm:$0xff] }
 0xe71   : > { %13819 = vmatpush3.bf16.msra.mxu0 %v16468_v20  ;;  %13650 = vmatprep.subr.bf16.mxu1 %v17351_v34 }
 0xe72   : > { %13820 = vmatprep.subr.bf16.mxu0 %v17351_v34  ;;  %13822 = vmatprep.mubr.msk.bf16.mxu0 %vm15245_vm8, %v17351_v34 }
 0xe73   : > { %13652 = vmatprep.mubr.msk.bf16.mxu1 %vm15245_vm8, %v17351_v34 }
 0xe74   : > { %13651 = vmatpush3.bf16.msra.mxu1 %v16499_v4 }
 0xe75   : > { %13821 = vmatpush3.bf16.msra.mxu0 %v16472_v36  ;;  %13656 = vmatprep.subr.bf16.mxu1 %v17351_v34 }
 0xe76   : > { %13826 = vmatprep.subr.bf16.mxu0 %v17351_v34 }
 0xe78   : > { %13823 = vmatmul.mubr.msk.bf16.vlgmr.msra.gmra.mrb[80].mxu0 %vm1523_vm2, %v15123_v26  ;;  %v12287_v26 = vld [vmem:[%s17364_s23 + $0x200] sm:$0xff] }
 0xe79   : > { %13827 = vmatpush3.bf16.msra.mxu0 %v16425_v57  ;;  %13830 = vmatprep.mubr.msk.bf16.mxu0 %vm15245_vm8, %v17351_v34 }
 0xe7a   : > { %13828 = vmatprep.subr.bf16.mxu0 %v17351_v34 }
 0xe7b   : > { %13653 = vmatmul.mubr.msk.bf16.vlgmr.msra.gmra.mrb[44].mxu1 %vm1523_vm2, %v15124_v58  ;;  %v12290_v58 = vld [vmem:[%s17364_s23 + $0x218] sm:$0xff] }
 0xe7c   : > { %13657 = vmatpush3.bf16.msra.mxu1 %v16504_v3  ;;  %13660 = vmatprep.mubr.msk.bf16.mxu1 %vm15245_vm8, %v17351_v34 }
 0xe7d   : > { %13829 = vmatpush3.bf16.msra.mxu0 %v16421_v11  ;;  %13658 = vmatprep.subr.bf16.mxu1 %v17351_v34 }
 0xe7e   : > { %13834 = vmatprep.subr.bf16.mxu0 %v17351_v34 }
 0xe80   : > { %13659 = vmatpush3.bf16.msra.mxu1 %v16506_v44 }
 0xe81   : > { %13664 = vmatprep.subr.bf16.mxu1 %v17351_v34 }
 0xe84   : > { %13831 = vmatmul.mubr.msk.bf16.vlgmr.msra.gmra.mrb[80].mxu0 %vm1523_vm2, %v15125_v8  ;;  %v14266_v8 = vpack.c.bf16 %v12290_v58, %v12287_v26  ;;  %v12294_v58 = vld [vmem:[%s17364_s23 + $0x238] sm:$0xff] }
 0xe85   : > { %13835 = vmatpush3.bf16.msra.mxu0 %v16478_v35  ;;  %13838 = vmatprep.mubr.msk.bf16.mxu0 %vm15245_vm8, %v17351_v34 }
 0xe86   : > { %13836 = vmatprep.subr.bf16.mxu0 %v17351_v34 }
 0xe87   : > { %13661 = vmatmul.mubr.msk.bf16.vlgmr.msra.gmra.mrb[44].mxu1 %vm1523_vm2, %v15126_v51  ;;  %v12286_v51 = vld [vmem:[%s17364_s23 + $0x1f8] sm:$0xff] }
 0xe88   : > { %13665 = vmatpush3.bf16.msra.mxu1 %v16510_v17  ;;  %13668 = vmatprep.mubr.msk.bf16.mxu1 %vm15245_vm8, %v17351_v34 }
 0xe89   : > { %13837 = vmatpush3.bf16.msra.mxu0 %v16483_v39  ;;  %13666 = vmatprep.subr.bf16.mxu1 %v17351_v34 }
 0xe8a   : > { %13842 = vmatprep.subr.bf16.mxu0 %v17351_v34 }
 0xe8c   : > { %13667 = vmatpush3.bf16.msra.mxu1 %v16516_v18 }
 0xe8d   : > { %13672 = vmatprep.subr.bf16.mxu1 %v17351_v34 }
 0xe90   : > { %13839 = vmatmul.mubr.msk.bf16.vlgmr.msra.gmra.mrb[80].mxu0 %vm1523_vm2, %v15127_v12  ;;  %v12289_v12 = vld [vmem:[%s17364_s23 + $0x210] sm:$0xff] }
 0xe91   : > { %13843 = vmatpush3.bf16.msra.mxu0 %v16488_v53  ;;  %13846 = vmatprep.mubr.msk.bf16.mxu0 %vm15245_vm8, %v17351_v34 }
 0xe92   : > { %13844 = vmatprep.subr.bf16.mxu0 %v17351_v34 }
 0xe93   : > { %13669 = vmatmul.mubr.msk.bf16.vlgmr.msra.gmra.mrb[44].mxu1 %vm1523_vm2, %v15128_v6  ;;  %v14268_v6 = vpack.c.bf16 %v12289_v12, %v12286_v51  ;;  %v12300_v12 = vld [vmem:[%s17364_s23 + $0x268] sm:$0xf] }
 0xe94   : > { %13673 = vmatpush3.bf16.msra.mxu1 %v16530_v25  ;;  %13676 = vmatprep.mubr.msk.bf16.mxu1 %vm15245_vm8, %v17351_v34 }
 0xe95   : > { %13845 = vmatpush3.bf16.msra.mxu0 %v16490_v56  ;;  %13674 = vmatprep.subr.bf16.mxu1 %v17351_v34 }
 0xe96   : > { %13850 = vmatprep.subr.bf16.mxu0 %v17351_v34 }
 0xe98   : > { %13675 = vmatpush3.bf16.msra.mxu1 %v16594_v37 }
 0xe99   : > { %13680 = vmatprep.subr.bf16.mxu1 %v17351_v34 }
 0xe9c   : > { %13847 = vmatmul.mubr.msk.bf16.vlgmr.msra.gmra.mrb[80].mxu0 %vm1523_vm2, %v15129_v27  ;;  %v12293_v27 = vld [vmem:[%s17364_s23 + $0x230] sm:$0xff] }
 0xe9d   : > { %13851 = vmatpush3.bf16.msra.mxu0 %v16494_v2  ;;  %13854 = vmatprep.mubr.msk.bf16.mxu0 %vm15245_vm8, %v17351_v34 }
 0xe9e   : > { %13852 = vmatprep.subr.bf16.mxu0 %v17351_v34 }
 0xe9f   : > { %13677 = vmatmul.mubr.msk.bf16.vlgmr.msra.gmra.mrb[44].mxu1 %vm1523_vm2, %v15130_v63  ;;  %v12296_v63 = vld [vmem:[%s17364_s23 + $0x248] sm:$0xff] }
 0xea0   : > { %13681 = vmatpush3.bf16.msra.mxu1 %v16603_v49  ;;  %13684 = vmatprep.mubr.msk.bf16.mxu1 %vm15245_vm8, %v17351_v34 }
 0xea1   : > { %13853 = vmatpush3.bf16.msra.mxu0 %v16499_v4  ;;  %13682 = vmatprep.subr.bf16.mxu1 %v17351_v34 }
 0xea2   : > { %13858 = vmatprep.subr.bf16.mxu0 %v17351_v34 }
 0xea4   : > { %13683 = vmatpush3.bf16.msra.mxu1 %v16614_v32 }
 0xea5   : > { %14251 = vmatprep.subr.bf16.mxu1 %v14250_v48 }
 0xea8   : > { %13855 = vmatmul.mubr.msk.bf16.vlgmr.msra.gmra.mrb[80].mxu0 %vm1523_vm2, %v15131_v7  ;;  %v12292_v7 = vld [vmem:[%s17364_s23 + $0x228] sm:$0xff] }
 0xea9   : > { %13859 = vmatpush3.bf16.msra.mxu0 %v16504_v3  ;;  %13862 = vmatprep.mubr.msk.bf16.mxu0 %vm15245_vm8, %v17351_v34  ;;  %v14272_v48 = vpack.c.bf16 %v12295_v9, %v12292_v7  ;;  %v7562_v7 = vld [vmem:[%s17364_s23 + $0x18] sm:$0xff]  ;;  %v7569_v9 = vld [vmem:[%s17364_s23 + $0x50] sm:$0xff] }
 0xeaa   : > { %13860 = vmatprep.subr.bf16.mxu0 %v17351_v34 }
 0xeab   : > { %13685 = vmatmul.mubr.msk.bf16.vlgmr.msra.gmra.mrb[44].mxu1 %vm1523_vm2, %v15132_v19  ;;  %v14270_v19 = vpack.c.bf16 %v12296_v63, %v12293_v27  ;;  %v7563_v27 = vld [vmem:[%s17364_s23 + $0x20] sm:$0xff] }
 0xeac   : > { %14253 = vmatpush1.bf16.msra.mxu1 %v14252_v59  ;;  %8200 = vmatprep.mubr.f32.mxu1 %v17351_v34  ;;  %v12267_v59 = vld [vmem:[%s17364_s23 + $0x160] sm:$0xff] }
 0xead   : > { %13861 = vmatpush3.bf16.msra.mxu0 %v16506_v44  ;;  %14255 = vmatprep.subr.bf16.mxu1 %v14254_v0  ;;  %v16753_v55 = vpack.c.bf16 %v12267_v59, %v12264_v43  ;;  %v15135_v0 = vld [vmem:[%s17360_s26 + $0xc8] sm:$0xff]   ;;  %v7559_v63 = vld [vmem:[%s17364_s23] sm:$0xff]  ;;  %v7565_v43 = vld [vmem:[%s17364_s23 + $0x30] sm:$0xff] }
 0xeae   : > { %13866 = vmatprep.subr.bf16.mxu0 %v17351_v34  ;;  %v7568_v59 = vld [vmem:[%s17364_s23 + $0x48] sm:$0xff] }
 0xeb0   : > { %14257 = vmatpush1.bf16.msra.mxu1 %v14256_v61  ;;  %v12273_v61 = vld [vmem:[%s17364_s23 + $0x190] sm:$0xff] }
 0xeb1   : > { %14259 = vmatprep.subr.bf16.mxu1 %v14258_v10 }
 0xeb4   : > { %13863 = vmatmul.mubr.msk.bf16.vlgmr.msra.gmra.mrb[80].mxu0 %vm1523_vm2, %v15133_v52  ;;  %14261 = vmatpush1.bf16.msra.mxu1 %v14260_v31  ;;  %v14282_v31 = vpack.c.bf16 %v12279_v46, %v12276_v54  ;;  %v7561_v54 = vld [vmem:[%s17364_s23 + $0x10] sm:$0xff]  ;;  %v7564_v46 = vld [vmem:[%s17364_s23 + $0x28] sm:$0xff] }
 0xeb5   : > { %13867 = vmatpush3.bf16.msra.mxu0 %v16510_v17  ;;  %13870 = vmatprep.mubr.msk.bf16.mxu0 %vm15245_vm8, %v17351_v34 }
 0xeb6   : > { %13868 = vmatprep.subr.bf16.mxu0 %v17351_v34  ;;  %14263 = vmatprep.subr.bf16.mxu1 %v14262_v24  ;;  %v14286_v24 = vpack.c.bf16 %v12285_v41, %v12282_v21  ;;  %v7573_v41 = vld [vmem:[%s17364_s23 + $0x70] sm:$0xff] }
 0xeb8   : > { %14265 = vmatpush1.bf16.msra.mxu1 %v14264_v15  ;;  %v12291_v15 = vld [vmem:[%s17364_s23 + $0x220] sm:$0xff] }
 0xeb9   : > { %13869 = vmatpush3.bf16.msra.mxu0 %v16516_v18  ;;  %14267 = vmatprep.subr.bf16.mxu1 %v14266_v8  ;;  %v14290_v26 = vpack.c.bf16 %v12291_v15, %v12288_v47  ;;  %v12297_v8 = vld [vmem:[%s17364_s23 + $0x250] sm:$0xff] }
 0xeba   : > { %13874 = vmatprep.subr.bf16.mxu0 %v17351_v34  ;;  %v14294_v51 = vpack.c.bf16 %v12297_v8, %v12294_v58  ;;  %v7579_v8 = vld [vmem:[%s17364_s23 + $0xa0] sm:$0xff] }
 0xebc   : > { %14269 = vmatpush1.bf16.msra.mxu1 %v14268_v6  ;;  %v7560_v6 = vld [vmem:[%s17364_s23 + $0x8] sm:$0xff] }
 0xebd   : > { %14271 = vmatprep.subr.bf16.mxu1 %v14270_v19  ;;  %v7566_v19 = vld [vmem:[%s17364_s23 + $0x38] sm:$0xff] }
 0xec0   : > { %13871 = vmatmul.mubr.msk.bf16.vlgmr.msra.gmra.mrb[80].mxu0 %vm1523_vm2, %v15134_v16  ;;  %14273 = vmatpush1.bf16.msra.mxu1 %v14272_v48  ;;  %v14298_v16 = vpack.c.bf16 %v7563_v27, %v7560_v6  ;;  %v14300_v48 = vpack.c.bf16 %v7562_v7, %v7559_v63  ;;  %v7585_v6 = vld [vmem:[%s17364_s23 + $0xd0] sm:$0xff]  ;;  %v7588_v27 = vld [vmem:[%s17364_s23 + $0xe8] sm:$0xff]  ;;  %v7591_v7 = vld [vmem:[%s17364_s23 + $0x100] sm:$0xff] }
 0xec1   : > { %13875 = vmatpush3.bf16.msra.mxu0 %v16530_v25  ;;  %13878 = vmatprep.mubr.msk.bf16.mxu0 %vm15245_vm8, %v17351_v34  ;;  %v14338_v63 = vpack.c.bf16 %v7588_v27, %v7585_v6  ;;  %v12365_v27 = vld [vmem:[%s17364_s23 + $0x2e0] sm:$0xff] }
 0xec2   : > { %13876 = vmatprep.subr.bf16.mxu0 %v17351_v34  ;;  %12301 = vmatprep.subr.msk.mxu1 %vm3937_vm3, %v12299_v33  ;;  %v14302_v33 = vpack.c.bf16 %v7569_v9, %v7566_v19  ;;  %v7594_v19 = vld [vmem:[%s17364_s23 + $0x118] sm:$0xff] }
 0xec3   : > { %v14342_v9 = vpack.c.bf16 %v7594_v19, %v7591_v7  ;;  %v12371_v19 = vld [vmem:[%s17364_s23 + $0x310] sm:$0xff] }
 0xec4   : > { %12302 = vmatpush1.msk.msra.mxu1 %vm3937_vm3, %v12298_v30  ;;  %v7572_v30 = vld [vmem:[%s17364_s23 + $0x68] sm:$0xff] }
 0xec5   : > { %13877 = vmatpush3.bf16.msra.mxu0 %v16594_v37  ;;  %14275 = vmatprep.subr.bf16.mxu1 %v16753_v55 }
 0xec6   : > { %13882 = vmatprep.subr.bf16.mxu0 %v17351_v34 }
 0xecc   : > { %13879 = vmatmul.mubr.msk.bf16.vlgmr.msra.gmra.mrb[80].mxu0 %vm1523_vm2, %v15135_v0  ;;  %v14304_v0 = vpack.c.bf16 %v7568_v59, %v7565_v43  ;;  %v12351_v43 = vld [vmem:[%s17364_s23 + $0x270] sm:$0xff]  ;;  %v12354_v59 = vld [vmem:[%s17364_s23 + $0x288] sm:$0xff] }
 0xecd   : > { %13883 = vmatpush3.bf16.msra.mxu0 %v16603_v49  ;;  %13886 = vmatprep.mubr.msk.bf16.mxu0 %vm15245_vm8, %v17351_v34 }
 0xece   : > { %13884 = vmatprep.subr.bf16.mxu0 %v17351_v34 }
 0xed1   : > { %13885 = vmatpush3.bf16.msra.mxu0 %v16614_v32 }
 0xed2   : > { %13919 = vmatprep.subr.bf16.mxu0 %v17351_v34 }
 0xed8   : > { %13887 = vmatmul.mubr.msk.bf16.vlgmr.msra.gmra.mrb[80].mxu0 %vm1523_vm2, %v15136_v62 }
 0xed9   : > { %13920 = vmatpush3.bf16.msra.mxu0 %v16468_v20  ;;  %13923 = vmatprep.mubr.msk.bf16.mxu0 %vm15245_vm8, %v17351_v34  ;;  %v15138_v20 = vld [vmem:[%s17360_s26 + $0xd8] sm:$0xff]  }
 0xeda   : > { %13921 = vmatprep.subr.bf16.mxu0 %v17351_v34 }
 0xedd   : > { %13922 = vmatpush3.bf16.msra.mxu0 %v16472_v36  ;;  %v15141_v36 = vld [vmem:[%s17360_s26 + $0xf8] sm:$0xff]  }
 0xede   : > { %13927 = vmatprep.subr.bf16.mxu0 %v17351_v34 }
 0xee0   : > { %13924 = vmatmul.mubr.msk.bf16.vlgmr.msra.gmra.mrb[84].mxu0 %vm1523_vm2, %v15137_v5  ;;  %v7571_v5 = vld [vmem:[%s17364_s23 + $0x60] sm:$0xff] }
 0xee1   : > { %13928 = vmatpush3.bf16.msra.mxu0 %v16425_v57  ;;  %13931 = vmatprep.mubr.msk.bf16.mxu0 %vm15245_vm8, %v17351_v34  ;;  %v15139_v57 = vld [vmem:[%s17360_s26 + $0xe8] sm:$0xff]  }
 0xee2   : > { %13929 = vmatprep.subr.bf16.mxu0 %v17351_v34 }
 0xee5   : > { %13930 = vmatpush3.bf16.msra.mxu0 %v16421_v11  ;;  %v15140_v11 = vld [vmem:[%s17360_s26 + $0xf0] sm:$0xff]  }
 0xee6   : > { %13935 = vmatprep.subr.bf16.mxu0 %v17351_v34 }
 0xeec   : > { %13932 = vmatmul.mubr.msk.bf16.vlgmr.msra.gmra.mrb[84].mxu0 %vm1523_vm2, %v15138_v20  ;;  %v7574_v20 = vld [vmem:[%s17364_s23 + $0x78] sm:$0xff] }
 0xeed   : > { %13936 = vmatpush3.bf16.msra.mxu0 %v16478_v35  ;;  %13939 = vmatprep.mubr.msk.bf16.mxu0 %vm15245_vm8, %v17351_v34 }
 0xeee   : > { %13937 = vmatprep.subr.bf16.mxu0 %v17351_v34 }
 0xef1   : > { %13938 = vmatpush3.bf16.msra.mxu0 %v16483_v39 }
 0xef2   : > { %13943 = vmatprep.subr.bf16.mxu0 %v17351_v34 }
 0xef8   : > { %13940 = vmatmul.mubr.msk.bf16.vlgmr.msra.gmra.mrb[84].mxu0 %vm1523_vm2, %v15139_v57  ;;  %v7578_v57 = vld [vmem:[%s17364_s23 + $0x98] sm:$0xff] }
 0xef9   : > { %13944 = vmatpush3.bf16.msra.mxu0 %v16488_v53  ;;  %13947 = vmatprep.mubr.msk.bf16.mxu0 %vm15245_vm8, %v17351_v34 }
 0xefa   : > { %13945 = vmatprep.subr.bf16.mxu0 %v17351_v34 }
 0xefd   : > { %13946 = vmatpush3.bf16.msra.mxu0 %v16490_v56 }
 0xefe   : > { %13951 = vmatprep.subr.bf16.mxu0 %v17351_v34 }
 0xf04   : > { %13948 = vmatmul.mubr.msk.bf16.vlgmr.msra.gmra.mrb[84].mxu0 %vm1523_vm2, %v15140_v11  ;;  %v7581_v11 = vld [vmem:[%s17364_s23 + $0xb0] sm:$0xff] }
 0xf05   : > { %13952 = vmatpush3.bf16.msra.mxu0 %v16494_v2  ;;  %13955 = vmatprep.mubr.msk.bf16.mxu0 %vm15245_vm8, %v17351_v34  ;;  %v15142_v2 = vld [vmem:[%s17360_s26 + $0x100] sm:$0xff]  }
 0xf06   : > { %13953 = vmatprep.subr.bf16.mxu0 %v17351_v34 }
 0xf09   : > { %13954 = vmatpush3.bf16.msra.mxu0 %v16499_v4  ;;  %v15143_v4 = vld [vmem:[%s17360_s26 + $0x108] sm:$0xff]  }
 0xf0a   : > { %13959 = vmatprep.subr.bf16.mxu0 %v17351_v34 }
 0xf0c   : > { %v16808_v35 = vpop.f32.mrb[38].mxu1 }
 0xf0d   : > { %v13602_v39 = vpop.f32.mrb[39].mxu1 }
 0xf0e   : > { %v14310_v39 = vpack.c.bf16 %v7581_v11, %v7578_v57  ;;  %v12360_v57 = vld [vmem:[%s17364_s23 + $0x2b8] sm:$0xff] }
 0xf0f   : > { %v12364_v11 = vld [vmem:[%s17364_s23 + $0x2d8] sm:$0xff] }
 0xf10   : > { %13956 = vmatmul.mubr.msk.bf16.vlgmr.msra.gmra.mrb[84].mxu0 %vm1523_vm2, %v15141_v36  ;;  %v14308_v36 = vpack.c.bf16 %v7574_v20, %v7571_v5  ;;  %v12357_v20 = vld [vmem:[%s17364_s23 + $0x2a0] sm:$0xff] }
 0xf11   : > { %13960 = vmatpush3.bf16.msra.mxu0 %v16504_v3  ;;  %13963 = vmatprep.mubr.msk.bf16.mxu0 %vm15245_vm8, %v17351_v34  ;;  %v15144_v3 = vld [vmem:[%s17360_s26 + $0x110] sm:$0xff]  }
 0xf12   : > { %13961 = vmatprep.subr.bf16.mxu0 %v17351_v34 }
 0xf15   : > { %13962 = vmatpush3.bf16.msra.mxu0 %v16506_v44  ;;  %v9847_v44 = vmul.f32 %v16339_v23, %v16339_v23  ;;  %v9849_v23 = vmul.f32 %v16348_v45, %v16348_v45 }
 0xf16   : > { %v16816_v53 = vpop.f32.mrb[40].mxu1  ;;  %13967 = vmatprep.subr.bf16.mxu0 %v17351_v34 }
 0xf17   : > { %v13615_v56 = vpop.f32.mrb[41].mxu1 }
 0xf18   : > { %v7577_v56 = vld [vmem:[%s17364_s23 + $0x90] sm:$0xff] }
 0xf1c   : > { %13964 = vmatmul.mubr.msk.bf16.vlgmr.msra.gmra.mrb[84].mxu0 %vm1523_vm2, %v15142_v2  ;;  %v7580_v2 = vld [vmem:[%s17364_s23 + $0xa8] sm:$0xff] }
 0xf1d   : > { %13968 = vmatpush3.bf16.msra.mxu0 %v16510_v17  ;;  %13971 = vmatprep.mubr.msk.bf16.mxu0 %vm15245_vm8, %v17351_v34  ;;  %v9848_v17 = vmul.f32 %v16345_v42, %v16345_v42  ;;  %v9850_v42 = vmul.f32 %v16354_v29, %v16354_v29 }
 0xf1e   : > { %13969 = vmatprep.subr.bf16.mxu0 %v17351_v34 }
 0xf1f   : > { %v14446_v28 = vpack.c.bf16 %v9850_v42, %v9849_v23  ;;  %v7586_v23 = vld [vmem:[%s17364_s23 + $0xd8] sm:$0xff] }
 0xf20   : > { %v7590_v42 = vld [vmem:[%s17364_s23 + $0xf8] sm:$0xff] }
 0xf21   : > { %13970 = vmatpush3.bf16.msra.mxu0 %v16516_v18  ;;  %v14442_v18 = vpack.c.bf16 %v9848_v17, %v9847_v44  ;;  %v14312_v44 = vpack.c.bf16 %v7580_v2, %v7577_v56  ;;  %v12363_v2 = vld [vmem:[%s17364_s23 + $0x2d0] sm:$0xff] }
 0xf22   : > { %13975 = vmatprep.subr.bf16.mxu0 %v17351_v34 }
 0xf28   : > { %13972 = vmatmul.mubr.msk.bf16.vlgmr.msra.gmra.mrb[84].mxu0 %vm1523_vm2, %v15143_v4  ;;  %v7584_v4 = vld [vmem:[%s17364_s23 + $0xc8] sm:$0xff] }
 0xf29   : > { %13976 = vmatpush3.bf16.msra.mxu0 %v16530_v25  ;;  %13979 = vmatprep.mubr.msk.bf16.mxu0 %vm15245_vm8, %v17351_v34  ;;  %v15145_v25 = vld [vmem:[%s17360_s26 + $0x118] sm:$0xff]  }
 0xf2a   : > { %13977 = vmatprep.subr.bf16.mxu0 %v17351_v34 }
 0xf2d   : > { %13978 = vmatpush3.bf16.msra.mxu0 %v16594_v37  ;;  %v9845_v37 = vld [vmem:[%s17365_s28] sm:$0xff] }
 0xf2e   : > { %13983 = vmatprep.subr.bf16.mxu0 %v17351_v34 }
 0xf34   : > { %13980 = vmatmul.mubr.msk.bf16.vlgmr.msra.gmra.mrb[84].mxu0 %vm1523_vm2, %v15144_v3  ;;  %v7587_v3 = vld [vmem:[%s17364_s23 + $0xe0] sm:$0xff] }
 0xf35   : > { %13984 = vmatpush3.bf16.msra.mxu0 %v16603_v49  ;;  %13987 = vmatprep.mubr.msk.bf16.mxu0 %vm15245_vm8, %v17351_v34  ;;  %v12270_v49 = vld [vmem:[%s17364_s23 + $0x178] sm:$0xff]  ;;  %v14314_v17 = vpack.c.bf16 %v7587_v3, %v7584_v4  ;;  %v12366_v4 = vld [vmem:[%s17364_s23 + $0x2e8] sm:$0xff] }
 0xf36   : > { %13985 = vmatprep.subr.bf16.mxu0 %v17351_v34  ;;  %v12370_v3 = vld [vmem:[%s17364_s23 + $0x308] sm:$0xff] }
 0xf39   : > { %13986 = vmatpush3.bf16.msra.mxu0 %v16614_v32  ;;  %v14278_v32 = vpack.c.bf16 %v12273_v61, %v12270_v49  ;;  %v7589_v61 = vld [vmem:[%s17364_s23 + $0xf0] sm:$0xff] }
 0xf3a   : > { %14443 = vmatprep.subr.bf16.mxu0 %v14442_v18 }
 0xf40   : > { %13988 = vmatmul.mubr.msk.bf16.vlgmr.msra.gmra.mrb[84].mxu0 %vm1523_vm2, %v15145_v25  ;;  %v7593_v25 = vld [vmem:[%s17364_s23 + $0x110] sm:$0xff] }
 0xf41   : > { %14445 = vmatpush3.bf16.msra.mxu0 %v14442_v18  ;;  %14028 = vmatprep.mubr.msk.f32.mxu0 %vm1523_vm2, %v9845_v37  ;;  %v7583_v18 = vld [vmem:[%s17364_s23 + $0xc0] sm:$0xff]  ;;  %v14318_v49 = vpack.c.bf16 %v7593_v25, %v7590_v42  ;;  %v12372_v42 = vld [vmem:[%s17364_s23 + $0x318] sm:$0xff] }
 0xf42   : > { %14447 = vmatprep.subr.bf16.mxu0 %v14446_v28  ;;  %v14316_v37 = vpack.c.bf16 %v7586_v23, %v7583_v18  ;;  %v12369_v23 = vld [vmem:[%s17364_s23 + $0x300] sm:$0xff]  ;;  %v12376_v25 = vld [vmem:[%s17364_s23 + $0x338] sm:$0xff] }
 0xf43   : > { %v8071_v45 = vpop.f32.mrb[76].mxu0 }
 0xf44   : > { %v13758_v29 = vpop.f32.mrb[77].mxu0  ;;  %12303 = vmatmul.mubr.msk.f32.vlgmr.msra.gmra.mrb[42].mxu1 %vm8120_vm6, %v8071_v45 }
 0xf45   : > { %14277 = vmatpush3.bf16.msra.mxu1 %v16753_v55  ;;  %14449 = vmatpush3.bf16.msra.mxu0 %v14446_v28  ;;  %v8074_v10 = vpop.f32.mrb[78].mxu0  ;;  %v7575_v55 = vld [vmem:[%s17364_s23 + $0x80] sm:$0xff]  ;;  %v7592_v28 = vld [vmem:[%s17364_s23 + $0x108] sm:$0xff] }
 0xf46   : > { %v13759_v52 = vpop.f32.mrb[79].mxu0  ;;  %8206 = vmatprep.mubr.f32.mxu1 %v17351_v34  ;;  %14279 = vmatprep.subr.bf16.mxu1 %v14278_v32  ;;  %v14306_v62 = vpack.c.bf16 %v7575_v55, %v7572_v30  ;;  %v7595_v29 = vld [vmem:[%s17364_s23 + $0x120] sm:$0xf]  ;;  %v12358_v30 = vld [vmem:[%s17364_s23 + $0x2a8] sm:$0xff] }
 0xf47   : > { %v7570_v52 = vld [vmem:[%s17364_s23 + $0x58] sm:$0xff]  ;;  %v12361_v55 = vld [vmem:[%s17364_s23 + $0x2c0] sm:$0xff] }
 0xf48   : > { %12304 = vmatmul.mubr.msk.f32.gmra.mrb[48].mxu1 %vm8120_vm6, %v8074_v10  ;;  %14029 = vmatmul.mubr.msk.f32.vlgmr.msra.gmra.mrb[88].mxu0 %vm1523_vm2, %v9846_v22  ;;  %v7567_v22 = vld [vmem:[%s17364_s23 + $0x40] sm:$0xff]  ;;  %v14350_v5 = vpack.c.bf16 %v12361_v55, %v12358_v30  ;;  %v12386_v30 = vld [vmem:[%s17364_s23 + $0x388] sm:$0xff]  ;;  %vm10102_vm2 = vcmask 130048  }
 0xf49   : > { %14281 = vmatpush3.bf16.msra.mxu1 %v14278_v32  ;;  %13786 = vmatprep.mubr.msk.f32.mxu1 %vm8120_vm6, %v8071_v45  ;;  %v14320_v32 = vpack.c.bf16 %v7592_v28, %v7589_v61  ;;  %v7596_v45 = vld [vmem:[%s17364_s23 + $0x128] sm:$0xf]  ;;  %v12375_v28 = vld [vmem:[%s17364_s23 + $0x330] sm:$0xff] }
 0xf4a   : > { %14283 = vmatprep.subr.bf16.mxu1 %v14282_v31  ;;  %10138 = vmatprep.mubr.bf16.mxu0 %v17366_v50 }
 0xf4d   : > { %14285 = vmatpush3.bf16.msra.mxu1 %v14282_v31  ;;  %v14326_v31 = vpack.c.bf16 %v7570_v52, %v7567_v22  ;;  %v12384_v22 = vld [vmem:[%s17364_s23 + $0x378] sm:$0xff] }
 0xf4e   : > { %14287 = vmatprep.subr.bf16.mxu1 %v14286_v24 }
 0xf51   : > { %14289 = vmatpush3.bf16.msra.mxu1 %v14286_v24  ;;  %v7576_v24 = vld [vmem:[%s17364_s23 + $0x88] sm:$0xff] }
 0xf52   : > { %14291 = vmatprep.subr.bf16.mxu1 %v14290_v26  ;;  %v14330_v58 = vpack.c.bf16 %v7576_v24, %v7573_v41  ;;  %v12388_v41 = vld [vmem:[%s17364_s23 + $0x398] sm:$0xf]  ;;  %v12353_v24 = vld [vmem:[%s17364_s23 + $0x280] sm:$0xff] }
 0xf55   : > { %14293 = vmatpush3.bf16.msra.mxu1 %v14290_v26 }
 0xf56   : > { %14295 = vmatprep.subr.bf16.mxu1 %v14294_v51 }
 0xf59   : > { %14297 = vmatpush3.bf16.msra.mxu1 %v14294_v51  ;;  %v7582_v51 = vld [vmem:[%s17364_s23 + $0xb8] sm:$0xff] }
 0xf5a   : > { %13784 = vmatprep.subr.msk.mxu1 %vm3937_vm3, %v12300_v12 }
 0xf5d   : > { %13785 = vmatpush3.msk.msra.mxu1 %vm3937_vm3, %v12300_v12  ;;  %v14334_v12 = vpack.c.bf16 %v7582_v51, %v7579_v8  ;;  %v12362_v8 = vld [vmem:[%s17364_s23 + $0x2c8] sm:$0xff]  ;;  %v12387_v51 = vld [vmem:[%s17364_s23 + $0x390] sm:$0xf] }
 0xf5e   : > { %13787 = vmatmul.mubr.msk.f32.vlgmr.msra.gmra.mrb[50].mxu1 %vm8120_vm6, %v8074_v10  ;;  %14299 = vmatprep.subr.bf16.mxu1 %v14298_v16  ;;  %v14322_v10 = vpack.c.bf16 %v7564_v46, %v7561_v54  ;;  %v7597_v16 = vld [vmem:[%s17364_s23 + $0x130] sm:$0xf]  ;;  %v12385_v54 = vld [vmem:[%s17364_s23 + $0x380] sm:$0xff] }
 0xf5f   : > { %14301 = vmatpush1.bf16.msra.mxu1 %v14300_v48  ;;  %8367 = vmatprep.mubr.f32.mxu1 %v17351_v34  ;;  %v12352_v48 = vld [vmem:[%s17364_s23 + $0x278] sm:$0xff] }
 0xf60   : > { %14303 = vmatprep.subr.bf16.mxu1 %v14302_v33  ;;  %v12355_v33 = vld [vmem:[%s17364_s23 + $0x290] sm:$0xff] }
 0xf63   : > { %14305 = vmatpush1.bf16.msra.mxu1 %v14304_v0  ;;  %v14346_v0 = vpack.c.bf16 %v12355_v33, %v12352_v48  ;;  %v12377_v48 = vld [vmem:[%s17364_s23 + $0x340] sm:$0xff]  ;;  %v12380_v33 = vld [vmem:[%s17364_s23 + $0x358] sm:$0xff] }
 0xf64   : > { %14307 = vmatprep.subr.bf16.mxu1 %v14306_v62  ;;  %v14348_v62 = vpack.c.bf16 %v12354_v59, %v12351_v43  ;;  %v14386_v43 = vpack.c.bf16 %v12380_v33, %v12377_v48  ;;  %v12383_v59 = vld [vmem:[%s17364_s23 + $0x370] sm:$0xff] }
 0xf65   : > { %v14390_v55 = vpack.c.bf16 %v12386_v30, %v12383_v59  ;;  %v12453_v30 = vld [vmem:[%s17364_s23 + $0x448] sm:$0xff] }
 0xf67   : > { %14309 = vmatpush1.bf16.msra.mxu1 %v14308_v36  ;;  %v12367_v36 = vld [vmem:[%s17364_s23 + $0x2f0] sm:$0xff] }
 0xf68   : > { %14311 = vmatprep.subr.bf16.mxu1 %v14310_v39  ;;  %v14352_v39 = vpack.c.bf16 %v12360_v57, %v12357_v20  ;;  %v14354_v56 = vpack.c.bf16 %v12367_v36, %v12364_v11  ;;  %v12433_v20 = vld [vmem:[%s17364_s23 + $0x3a8] sm:$0xff]  ;;  %v12436_v57 = vld [vmem:[%s17364_s23 + $0x3c0] sm:$0xff]  ;;  %v12443_v36 = vld [vmem:[%s17364_s23 + $0x3f8] sm:$0xff] }
 0xf69   : > { %v12440_v11 = vld [vmem:[%s17364_s23 + $0x3e0] sm:$0xff] }
 0xf6b   : > { %14313 = vmatpush1.bf16.msra.mxu1 %v14312_v44  ;;  %v12373_v44 = vld [vmem:[%s17364_s23 + $0x320] sm:$0xff] }
 0xf6c   : > { %14315 = vmatprep.subr.bf16.mxu1 %v14314_v17  ;;  %v14356_v17 = vpack.c.bf16 %v12366_v4, %v12363_v2  ;;  %v14358_v18 = vpack.c.bf16 %v12373_v44, %v12370_v3  ;;  %v14398_v2 = vpack.c.bf16 %v12443_v36, %v12440_v11  ;;  %v12439_v4 = vld [vmem:[%s17364_s23 + $0x3d8] sm:$0xff]  ;;  %v12442_v3 = vld [vmem:[%s17364_s23 + $0x3f0] sm:$0xff] }
 0xf6d   : > { %v12446_v44 = vld [vmem:[%s17364_s23 + $0x410] sm:$0xff] }
 0xf6f   : > { %14317 = vmatpush1.bf16.msra.mxu1 %v14316_v37  ;;  %v12379_v37 = vld [vmem:[%s17364_s23 + $0x350] sm:$0xff] }
 0xf70   : > { %14319 = vmatprep.subr.bf16.mxu1 %v14318_v49  ;;  %v14360_v49 = vpack.c.bf16 %v12372_v42, %v12369_v23  ;;  %v14362_v61 = vpack.c.bf16 %v12379_v37, %v12376_v25  ;;  %v12445_v42 = vld [vmem:[%s17364_s23 + $0x408] sm:$0xff]  ;;  %v12448_v25 = vld [vmem:[%s17364_s23 + $0x420] sm:$0xff] }
 0xf71   : > { %v12452_v37 = vld [vmem:[%s17364_s23 + $0x440] sm:$0xff] }
 0xf73   : > { %14321 = vmatpush1.bf16.msra.mxu1 %v14320_v32  ;;  %v12378_v32 = vld [vmem:[%s17364_s23 + $0x348] sm:$0xff] }
 0xf74   : > { %12308 = vmatprep.subr.msk.mxu1 %vm3937_vm3, %v7596_v45  ;;  %v12382_v45 = vld [vmem:[%s17364_s23 + $0x368] sm:$0xff]  ;;  %v14364_v46 = vpack.c.bf16 %v12378_v32, %v12375_v28  ;;  %v12451_v32 = vld [vmem:[%s17364_s23 + $0x438] sm:$0xff] }
 0xf77   : > { %12309 = vmatpush1.msk.msra.mxu1 %vm3937_vm3, %v7595_v29  ;;  %v14366_v29 = vpack.c.bf16 %v12385_v54, %v12382_v45  ;;  %v12454_v45 = vld [vmem:[%s17364_s23 + $0x450] sm:$0xff] }
 0xf78   : > { %14323 = vmatprep.subr.bf16.mxu1 %v14322_v10  ;;  %v12458_v54 = vld [vmem:[%s17364_s23 + $0x470] sm:$0xff] }
 0xf7e   : > { %v7550_v21 = vpop.f32.mrb[44].mxu1 }
 0xf7f   : > { %v13686_v47 = vpop.f32.mrb[45].mxu1  ;;  %12310 = vmatmul.mubr.msk.f32.vlgmr.msra.gmra.mrb[42].mxu1 %vm8120_vm6, %v7550_v21 }
 0xf80   : > { %14325 = vmatpush3.bf16.msra.mxu1 %v14322_v10  ;;  %v7553_v15 = vpop.f32.mrb[46].mxu1  ;;  %8373 = vmatprep.mubr.f32.mxu1 %v17351_v34  ;;  %v12381_v10 = vld [vmem:[%s17364_s23 + $0x360] sm:$0xff]  ;;  %v12356_v47 = vld [vmem:[%s17364_s23 + $0x298] sm:$0xff] }
 0xf81   : > { %v13687_v26 = vpop.f32.mrb[47].mxu1  ;;  %14327 = vmatprep.subr.bf16.mxu1 %v14326_v31  ;;  %v14368_v52 = vpack.c.bf16 %v12384_v22, %v12381_v10  ;;  %v12457_v22 = vld [vmem:[%s17364_s23 + $0x468] sm:$0xff] }
 0xf83   : > { %12311 = vmatmul.mubr.msk.f32.gmra.mrb[48].mxu1 %vm8120_vm6, %v7553_v15 }
 0xf84   : > { %14329 = vmatpush3.bf16.msra.mxu1 %v14326_v31  ;;  %13815 = vmatprep.mubr.msk.f32.mxu1 %vm8120_vm6, %v7550_v21 }
 0xf85   : > { %14331 = vmatprep.subr.bf16.mxu1 %v14330_v58 }
 0xf88   : > { %14333 = vmatpush3.bf16.msra.mxu1 %v14330_v58  ;;  %v12359_v58 = vld [vmem:[%s17364_s23 + $0x2b0] sm:$0xff] }
 0xf89   : > { %14335 = vmatprep.subr.bf16.mxu1 %v14334_v12  ;;  %v14374_v6 = vpack.c.bf16 %v12362_v8, %v12359_v58  ;;  %v12470_v58 = vld [vmem:[%s17364_s23 + $0x4d0] sm:$0xf]  ;;  %v12435_v8 = vld [vmem:[%s17364_s23 + $0x3b8] sm:$0xff] }
 0xf8c   : > { %14337 = vmatpush3.bf16.msra.mxu1 %v14334_v12  ;;  %v14370_v12 = vpack.c.bf16 %v12356_v47, %v12353_v24  ;;  %v12463_v47 = vld [vmem:[%s17364_s23 + $0x498] sm:$0xff] }
 0xf8d   : > { %14339 = vmatprep.subr.bf16.mxu1 %v14338_v63 }
 0xf90   : > { %14341 = vmatpush3.bf16.msra.mxu1 %v14338_v63  ;;  %v12368_v63 = vld [vmem:[%s17364_s23 + $0x2f8] sm:$0xff] }
 0xf91   : > { %14343 = vmatprep.subr.bf16.mxu1 %v14342_v9  ;;  %v14378_v7 = vpack.c.bf16 %v12368_v63, %v12365_v27  ;;  %v12441_v27 = vld [vmem:[%s17364_s23 + $0x3e8] sm:$0xff]  ;;  %v12444_v63 = vld [vmem:[%s17364_s23 + $0x400] sm:$0xff] }
 0xf94   : > { %14345 = vmatpush3.bf16.msra.mxu1 %v14342_v9  ;;  %v12374_v9 = vld [vmem:[%s17364_s23 + $0x328] sm:$0xff] }
 0xf95   : > { %13813 = vmatprep.subr.msk.mxu1 %vm3937_vm3, %v7597_v16 }
 0xf98   : > { %13814 = vmatpush3.msk.msra.mxu1 %vm3937_vm3, %v7597_v16  ;;  %v14382_v16 = vpack.c.bf16 %v12374_v9, %v12371_v19  ;;  %v12447_v9 = vld [vmem:[%s17364_s23 + $0x418] sm:$0xff] }
 0xf99   : > { %13816 = vmatmul.mubr.msk.f32.vlgmr.msra.gmra.mrb[50].mxu1 %vm8120_vm6, %v7553_v15  ;;  %14347 = vmatprep.subr.bf16.mxu1 %v14346_v0  ;;  %v12389_v0 = vld [vmem:[%s17364_s23 + $0x3a0] sm:$0xf] }
 0xf9a   : > { %14349 = vmatpush1.bf16.msra.mxu1 %v14348_v62  ;;  %9056 = vmatprep.mubr.f32.mxu1 %v17351_v34  ;;  %v12434_v62 = vld [vmem:[%s17364_s23 + $0x3b0] sm:$0xff] }
 0xf9b   : > { %14351 = vmatprep.subr.bf16.mxu1 %v14350_v5  ;;  %v12437_v5 = vld [vmem:[%s17364_s23 + $0x3c8] sm:$0xff] }
 0xf9e   : > { %14353 = vmatpush1.bf16.msra.mxu1 %v14352_v39  ;;  %v14394_v39 = vpack.c.bf16 %v12437_v5, %v12434_v62  ;;  %v12459_v5 = vld [vmem:[%s17364_s23 + $0x478] sm:$0xff] }
 0xf9f   : > { %14355 = vmatprep.subr.bf16.mxu1 %v14354_v56  ;;  %v14396_v56 = vpack.c.bf16 %v12436_v57, %v12433_v20  ;;  %v12462_v20 = vld [vmem:[%s17364_s23 + $0x490] sm:$0xff] }
 0xfa2   : > { %14357 = vmatpush1.bf16.msra.mxu1 %v14356_v17  ;;  %v12449_v17 = vld [vmem:[%s17364_s23 + $0x428] sm:$0xff] }
 0xfa3   : > { %14359 = vmatprep.subr.bf16.mxu1 %v14358_v18  ;;  %v14400_v18 = vpack.c.bf16 %v12442_v3, %v12439_v4  ;;  %v14402_v23 = vpack.c.bf16 %v12449_v17, %v12446_v44  ;;  %v12471_v3 = vld [vmem:[%s17364_s23 + $0x4d8] sm:$0xf] }
 0xfa6   : > { %14361 = vmatpush1.bf16.msra.mxu1 %v14360_v49  ;;  %v12455_v49 = vld [vmem:[%s17364_s23 + $0x458] sm:$0xff] }
 0xfa7   : > { %14363 = vmatprep.subr.bf16.mxu1 %v14362_v61  ;;  %v14404_v61 = vpack.c.bf16 %v12448_v25, %v12445_v42  ;;  %v14406_v28 = vpack.c.bf16 %v12455_v49, %v12452_v37  ;;  %v11073_v42 = vld [vmem:[%s17368_s2] sm:$0xff]  ;;  %v11074_v25 = vld [vmem:[%s17368_s2 + $0x8] sm:$0xff]  ;;  %v9952_v37 = vlaneseq  ;;  %s15255_s2 = smov 109  }
 0xfa9   : > { %v9953_v49 = vshrl.u32 %v9952_v37, 7 }
 0xfaa   : > { %14365 = vmatpush1.bf16.msra.mxu1 %v14364_v46  ;;  %v12461_v46 = vld [vmem:[%s17364_s23 + $0x488] sm:$0xff] }
 0xfab   : > { %v8928_v31 = vpop.f32.mrb[80].mxu0  ;;  %14367 = vmatprep.subr.bf16.mxu1 %v14366_v29  ;;  %v14408_v29 = vpack.c.bf16 %v12454_v45, %v12451_v32  ;;  %v14410_v10 = vpack.c.bf16 %v12461_v46, %v12458_v54  ;;  %v17037_v32 = vsub.s32 1, %v9953_v49 }
 0xfac   : > { %v13888_v21 = vpop.f32.mrb[81].mxu0 }
 0xfad   : > { %v8931_v15 = vpop.f32.mrb[82].mxu0  ;;  %v12467_v21 = vld [vmem:[%s17364_s23 + $0x4b8] sm:$0xff] }
 0xfae   : > { %14369 = vmatpush1.bf16.msra.mxu1 %v14368_v52  ;;  %v13889_v26 = vpop.f32.mrb[83].mxu0  ;;  %v12460_v52 = vld [vmem:[%s17364_s23 + $0x480] sm:$0xff] }
 0xfaf   : > { %12390 = vmatprep.subr.msk.mxu1 %vm3937_vm3, %v12388_v41  ;;  %v14412_v41 = vpack.c.bf16 %v12460_v52, %v12457_v22 }
 0xfb2   : > { %12391 = vmatpush1.msk.msra.mxu1 %vm3937_vm3, %v12387_v51  ;;  %v12438_v51 = vld [vmem:[%s17364_s23 + $0x3d0] sm:$0xff] }
 0xfb3   : > { %12392 = vmatmul.mubr.msk.f32.vlgmr.msra.gmra.mrb[42].mxu1 %vm8120_vm6, %v8928_v31  ;;  %14371 = vmatprep.subr.bf16.mxu1 %v14370_v12 }
 0xfb4   : > { %14373 = vmatpush3.bf16.msra.mxu1 %v14370_v12  ;;  %9062 = vmatprep.mubr.f32.mxu1 %v17351_v34  ;;  %v12469_v12 = vld [vmem:[%s17364_s23 + $0x4c8] sm:$0xf] }
 0xfb5   : > { %14375 = vmatprep.subr.bf16.mxu1 %v14374_v6 }
 0xfb7   : > { %12393 = vmatmul.mubr.msk.f32.gmra.mrb[48].mxu1 %vm8120_vm6, %v8931_v15 }
 0xfb8   : > { %14377 = vmatpush3.bf16.msra.mxu1 %v14374_v6  ;;  %13916 = vmatprep.mubr.msk.f32.mxu1 %vm8120_vm6, %v8928_v31  ;;  %v12464_v31 = vld [vmem:[%s17364_s23 + $0x4a0] sm:$0xff]  ;;  %v14418_v6 = vpack.c.bf16 %v12438_v51, %v12435_v8 }
 0xfb9   : > { %14379 = vmatprep.subr.bf16.mxu1 %v14378_v7  ;;  %v14414_v24 = vpack.c.bf16 %v12467_v21, %v12464_v31  ;;  %v10015_v8 = vld [vmem:[%s15442_s12] sm:$0x7] }
 0xfbc   : > { %14381 = vmatpush3.bf16.msra.mxu1 %v14378_v7  ;;  %v14422_v7 = vpack.c.bf16 %v12444_v63, %v12441_v27 }
 0xfbd   : > { %14383 = vmatprep.subr.bf16.mxu1 %v14382_v16 }
 0xfc0   : > { %14385 = vmatpush3.bf16.msra.mxu1 %v14382_v16  ;;  %v12450_v16 = vld [vmem:[%s17364_s23 + $0x430] sm:$0xff] }
 0xfc1   : > { %14387 = vmatprep.subr.bf16.mxu1 %v14386_v43  ;;  %v14426_v59 = vpack.c.bf16 %v12450_v16, %v12447_v9 }
 0xfc4   : > { %14389 = vmatpush3.bf16.msra.mxu1 %v14386_v43 }
 0xfc5   : > { %14391 = vmatprep.subr.bf16.mxu1 %v14390_v55 }
 0xfc8   : > { %14393 = vmatpush3.bf16.msra.mxu1 %v14390_v55  ;;  %v12456_v55 = vld [vmem:[%s17364_s23 + $0x460] sm:$0xff] }
 0xfc9   : > { %13914 = vmatprep.subr.msk.mxu1 %vm3937_vm3, %v12389_v0 }
 0xfcc   : > { %13915 = vmatpush3.msk.msra.mxu1 %vm3937_vm3, %v12389_v0  ;;  %v14430_v0 = vpack.c.bf16 %v12456_v55, %v12453_v30 }
 0xfcd   : > { %13917 = vmatmul.mubr.msk.f32.vlgmr.msra.gmra.mrb[50].mxu1 %vm8120_vm6, %v8931_v15  ;;  %14395 = vmatprep.subr.bf16.mxu1 %v14394_v39  ;;  %v12466_v15 = vld [vmem:[%s17364_s23 + $0x4b0] sm:$0xff]  ;;  %v14434_v39 = vpack.c.bf16 %v12462_v20, %v12459_v5 }
 0xfce   : > { %14397 = vmatpush1.bf16.msra.mxu1 %v14396_v56  ;;  %9751 = vmatprep.mubr.f32.mxu1 %v17351_v34  ;;  %v14416_v26 = vpack.c.bf16 %v12466_v15, %v12463_v47  ;;  %v12465_v56 = vld [vmem:[%s17364_s23 + $0x4a8] sm:$0xff] }
 0xfcf   : > { %14399 = vmatprep.subr.bf16.mxu1 %v14398_v2  ;;  %v12468_v2 = vld [vmem:[%s17364_s23 + $0x4c0] sm:$0xff] }
 0xfd0   : > { %v14438_v4 = vpack.c.bf16 %v12468_v2, %v12465_v56 }
 0xfd2   : > { %14401 = vmatpush1.bf16.msra.mxu1 %v14400_v18  ;;  %v9974_v18 = vld [vmem:[%s17367_s1 + $0x8] sm:$0xff] }
 0xfd3   : > { %14403 = vmatprep.subr.bf16.mxu1 %v14402_v23  ;;  %v9973_v23 = vld [vmem:[%s17367_s1] sm:$0xff]  ;;  %s15254_s1 = smov 110  }
 0xfd6   : > { %14405 = vmatpush1.bf16.msra.mxu1 %v14404_v61  ;;  %v17034_v61 = vsub.s32 0, %v9953_v49 }
 0xfd7   : > { %14407 = vmatprep.subr.bf16.mxu1 %v14406_v28  ;;  %v9950_v28 = vld [vmem:[%s17369_s16] sm:$0x7]  ;;  %s15253_s16 = smov 19  }
 0xfd8   : > { %v9959_v54 = vrot.slane %v9950_v28, %v17037_v32  ;;  %v17043_v9 = vrot.slane %v10015_v8, %v17034_v61 }
 0xfda   : > { %14409 = vmatpush1.bf16.msra.mxu1 %v14408_v29 }
 0xfdb   : > { %14411 = vmatprep.subr.bf16.mxu1 %v14410_v10 }
 0xfde   : > { %14413 = vmatpush1.bf16.msra.mxu1 %v14412_v41 }
 0xfdf   : > { %14415 = vmatprep.subr.bf16.mxu1 %v14414_v24 }
 0xfe2   : > { %14417 = vmatpush1.bf16.msra.mxu1 %v14416_v26 }
 0xfe3   : > { %12472 = vmatprep.subr.msk.mxu1 %vm3937_vm3, %v12470_v58 }
 0xfe6   : > { %12473 = vmatpush1.msk.msra.mxu1 %vm3937_vm3, %v12469_v12 }
 0xfe7   : > { %14419 = vmatprep.subr.bf16.mxu1 %v14418_v6 }
0x1013   : > { %v9623_v19 = vpop.f32.mrb[84].mxu0 }
0x1014   : > { %v13989_v48 = vpop.f32.mrb[85].mxu0  ;;  %12474 = vmatmul.mubr.msk.f32.vlgmr.msra.gmra.mrb[42].mxu1 %vm8120_vm6, %v9623_v19 }
0x1015   : > { %14421 = vmatpush3.bf16.msra.mxu1 %v14418_v6  ;;  %v9626_v33 = vpop.f32.mrb[86].mxu0  ;;  %9757 = vmatprep.mubr.f32.mxu1 %v17351_v34 }
0x1016   : > { %v13990_v43 = vpop.f32.mrb[87].mxu0  ;;  %14423 = vmatprep.subr.bf16.mxu1 %v14422_v7 }
0x1017   : > { %v17046_v43 = vrot.slane %v10015_v8, %v17037_v32 }
0x1018   : > { %12475 = vmatmul.mubr.msk.f32.gmra.mrb[48].mxu1 %vm8120_vm6, %v9626_v33 }
0x1019   : > { %14425 = vmatpush3.bf16.msra.mxu1 %v14422_v7  ;;  %14017 = vmatprep.mubr.msk.f32.mxu1 %vm8120_vm6, %v9623_v19 }
0x101a   : > { %14427 = vmatprep.subr.bf16.mxu1 %v14426_v59 }
0x101b   : > { %v14030_v62 = vpop.f32.mrb[88].mxu0 }
0x101c   : > { %v9929_v57 = vadd.f32 1e-08, %v14030_v62  ;;  %v9923_v11 = vpop.f32.mrb[89].mxu0 }
0x101d   : > { %14429 = vmatpush3.bf16.msra.mxu1 %v14426_v59  ;;  %v9924_v36 = vadd.f32 1e-08, %v9923_v11 }
0x101e   : > { %15179 = vrsqrt.f32 %v9929_v57  ;;  %14431 = vmatprep.subr.bf16.mxu1 %v14430_v0 }
0x101f   : > { %15181 = vrsqrt.f32 %v9924_v36 }
0x1021   : > { %14433 = vmatpush3.bf16.msra.mxu1 %v14430_v0 }
0x1022   : > { %14435 = vmatprep.subr.bf16.mxu1 %v14434_v39 }
0x1025   : > { %14437 = vmatpush3.bf16.msra.mxu1 %v14434_v39 }
0x1026   : > { %14439 = vmatprep.subr.bf16.mxu1 %v14438_v4 }
0x1028   : > { %v15180_v44 = vpop.eup %15179 }
0x1029   : > { %v15182_v17 = vpop.eup %15181  ;;  %14441 = vmatpush3.bf16.msra.mxu1 %v14438_v4  ;;  %9941 = vperm.xlu0 %15000, %v15180_v44  }
0x102a   : > { %9936 = vperm.xlu1 %15001, %v15182_v17   ;;  %14015 = vmatprep.subr.msk.mxu1 %vm3937_vm3, %v12471_v3 }
0x102d   : > { %14016 = vmatpush3.msk.msra.mxu1 %vm3937_vm3, %v12471_v3  ;;  %9982 = vperm.xlu0 %15000, %v9974_v18  }
0x102e   : > { %14018 = vmatmul.mubr.msk.f32.vlgmr.msra.gmra.mrb[50].mxu1 %vm8120_vm6, %v9626_v33  ;;  %14451 = vmatprep.subr.bf16.mxu1 %v16097_v14 }
0x102f   : > { %9977 = vperm.xlu1 %15001, %v9973_v23   ;;  %14453 = vmatpush3.bf16.msra.mxu1 %v16097_v14  ;;  %v17052_v23 = vsub.s32 2, %v9953_v49 }
0x1030   : > { %14089 = vmatprep.mubr.msk.f32.mxu1 %vm10102_vm2, %v11073_v42 }
0x1031   : > { %10045 = vperm.xlu0 %15000, %v16087_v40   ;;  %v9955_v40 = vrot.slane %v9950_v28, %v17034_v61  ;;  %v9963_v42 = vrot.slane %v9950_v28, %v17052_v23 }
0x1032   : > { %14090 = vmatmul.mubr.msk.f32.vlgmr.msra.gmra.mrb[52].mxu1 %vm10102_vm2, %v11074_v25 }
0x1033   : > { %10040 = vperm.xlu1 %15001, %v16085_v38   ;;  %11376 = vmatprep.mubr.f32.mxu1 %v17351_v34 }
0x10a8   : > { %v9942_v29 = vpop.permute.xlu0 %9941 }
0x10a9   : > { %v9937_v14 = vpop.permute.xlu1 %9936 }
0x10ac   : > { %v9983_v12 = vpop.permute.xlu0 %9982 }
0x10ae   : > { %v9978_v52 = vpop.permute.xlu1 %9977 }
0x10b0   : > { %v10046_v36 = vpop.permute.xlu0 %10045 }
0x10b2   : > { %v10041_v39 = vpop.permute.xlu1 %10040 }
0x10e7   : > { %v9753_v45 = vpop.f32.mrb[42].mxu1 }
0x10e8   : > { %v9944_v38 = vmul.f32 %v9937_v14, %v9753_v45  ;;  %v9755_v46 = vpop.f32.mrb[43].mxu1 }
0x10e9   : > { %v9945_v10 = vmul.f32 %v9937_v14, %v9755_v46 }
0x10ea   : > { %v9967_v22 = vadd.f32 %v9955_v40, %v9944_v38 }
0x10eb   : > { %v9968_v31 = vadd.f32 %v9959_v54, %v9945_v10  ;;  %v9759_v21 = vpop.f32.mrb[48].mxu1 }
0x10ec   : > { %v9985_v41 = vadd.f32 %v9978_v52, %v9967_v22  ;;  %v9947_v24 = vmul.f32 %v9942_v29, %v9759_v21  ;;  %v9761_v47 = vpop.f32.mrb[49].mxu1 }
0x10ed   : > { %v9986_v15 = vadd.f32 %v9978_v52, %v9968_v31  ;;  %v9948_v26 = vmul.f32 %v9942_v29, %v9761_v47  ;;  %v17056_v31 = vrot.slane %v10015_v8, %v17052_v23 }
0x10ee   : > { %vm9991_vm7 = vcmp.ge.f32.partialorder %v9985_v41, 0.0  ;;  %v9997_v58 = vmul.f32 0.2, %v9985_v41  ;;  %v9970_v51 = vadd.f32 %v9955_v40, %v9947_v24 }
0x10ef   : > { %vm9992_vm9 = vcmp.ge.f32.partialorder %v9986_v15, 0.0  ;;  %v9998_v6 = vmul.f32 0.2, %v9986_v15  ;;  %v9971_v27 = vadd.f32 %v9959_v54, %v9948_v26 }
0x10f0   : > { %v10003_v63 = vsel %vm9991_vm7, %v9985_v41, %v9997_v58  ;;  %v9988_v7 = vadd.f32 %v9983_v12, %v9970_v51  ;;  %vm10522_vm7 = vcmask 891904  }
0x10f1   : > { %v10009_v19 = vmul.f32 1.4142135, %v10003_v63  ;;  %v10004_v16 = vsel %vm9992_vm9, %v9986_v15, %v9998_v6  ;;  %v9989_v48 = vadd.f32 %v9983_v12, %v9971_v27  ;;  %vm10635_vm9 = vcmask 883712  }
0x10f2   : > { %v10010_v33 = vmul.f32 1.4142135, %v10004_v16  ;;  %vm9994_vm10 = vcmp.ge.f32.partialorder %v9988_v7, 0.0  ;;  %v10000_v59 = vmul.f32 0.2, %v9988_v7 }
0x10f3   : > { %vm9995_vm11 = vcmp.ge.f32.partialorder %v9989_v48, 0.0  ;;  %v10001_v30 = vmul.f32 0.2, %v9989_v48  ;;  %v10032_v0 = vmul.f32 %v17043_v9, %v10009_v19 }
0x10f4   : > { %v10006_v55 = vsel %vm9994_vm10, %v9988_v7, %v10000_v59  ;;  %v10033_v20 = vmul.f32 %v17046_v43, %v10010_v33  ;;  %v1242_v59 = vld [vmem:[%s15277_s13 + $0xd0] sm:$0xff]  ;;  %vm10748_vm10 = vcmask 752640  }
0x10f5   : > { %v10012_v62 = vmul.f32 1.4142135, %v10006_v55  ;;  %v10007_v5 = vsel %vm9995_vm11, %v9989_v48, %v10001_v30  ;;  %v10048_v2 = vmul.f32 %v10041_v39, %v10032_v0  ;;  %v1441_v55 = vadd.f32 %v16047_v60, %v1242_v59 }
0x10f6   : > { %v10013_v57 = vmul.f32 1.4142135, %v10007_v5  ;;  %v10049_v3 = vmul.f32 %v10041_v39, %v10033_v20  ;;  %v1243_v5 = vld [vmem:[%s15277_s13 + $0xd8] sm:$0xff]  ;;  %vm10861_vm11 = vcmask 744448  }
0x10f7   : > { %v10035_v11 = vmul.f32 %v17043_v9, %v10012_v62  ;;  %v1446_v20 = vadd.f32 %v16051_v13, %v1243_v5 }
0x10f8   : > { %v10036_v56 = vmul.f32 %v17046_v43, %v10013_v57  ;;  %v11303_v57 = vld [vmem:[%s15437_s14] sm:$0x7] }
0x10f9   : > { %v10051_v4 = vmul.f32 %v10046_v36, %v10035_v11 }
0x10fa   : > { %v10052_v44 = vmul.f32 %v10046_v36, %v10036_v56 }
0x10fb   : > { %v10054_v17 = vpack.c.bf16 %v10051_v4, %v10048_v2 }
0x10fc   : > { %v10055_v18 = vpack.c.bf16 %v10052_v44, %v10049_v3 }
0x10fe   : > { %10062 = vrot.lane.b32.xlu1 %v10055_v18, %s15253_s16 }
0x1101   : > { %v14019_v25 = vpop.f32.mrb[50].mxu1 }
0x1102   : > { %v9949_v37 = vmul.f32 %v14019_v25, %v9942_v29  ;;  %v9830_v40 = vpop.f32.mrb[51].mxu1  ;;  %10060 = vrot.lane.b32.xlu1 %v10054_v17, %s15253_s16 }
0x1103   : > { %v9946_v45 = vmul.f32 %v9937_v14, %v9830_v40 }
0x1104   : > { %v9972_v54 = vadd.f32 %v9963_v42, %v9949_v37 }
0x1105   : > { %v9969_v38 = vadd.f32 %v9963_v42, %v9946_v45 }
0x1106   : > { %v9990_v46 = vadd.f32 %v9983_v12, %v9972_v54 }
0x1107   : > { %v9987_v10 = vadd.f32 %v9978_v52, %v9969_v38  ;;  %v14091_v52 = vpop.f32.mrb[52].mxu1 }
0x1108   : > { %vm9996_vm12 = vcmp.ge.f32.partialorder %v9990_v46, 0.0  ;;  %v10002_v22 = vmul.f32 0.2, %v9990_v46  ;;  %v11149_v58 = vpop.f32.mrb[53].mxu1  ;;  %v11155_v16 = vadd.f32 1e-08, %v14091_v52 }
0x1109   : > { %vm9993_vm13 = vcmp.ge.f32.partialorder %v9987_v10, 0.0  ;;  %v9999_v49 = vmul.f32 0.2, %v9987_v10  ;;  %v11150_v19 = vadd.f32 1e-08, %v11149_v58 }
0x110a   : > { %v10008_v21 = vsel %vm9996_vm12, %v9990_v46, %v10002_v22  ;;  %vm10974_vm12 = vcmask 736256  }
0x110b   : > { %v10014_v41 = vmul.f32 1.4142135, %v10008_v21  ;;  %v10005_v24 = vsel %vm9993_vm13, %v9987_v10, %v9999_v49  ;;  %15183 = vrsqrt.f32 %v11150_v19 }
0x110c   : > { %v10011_v28 = vmul.f32 1.4142135, %v10005_v24  ;;  %15185 = vrsqrt.f32 %v11155_v16 }
0x110d   : > { %v10037_v29 = vmul.f32 %v17056_v31, %v10014_v41 }
0x110e   : > { %v10034_v47 = vmul.f32 %v17056_v31, %v10011_v28 }
0x110f   : > { %v10053_v14 = vmul.f32 %v10046_v36, %v10037_v29 }
0x1110   : > { %v10050_v15 = vmul.f32 %v10041_v39, %v10034_v47 }
0x1112   : > { %v10056_v26 = vpack.c.bf16 %v10053_v14, %v10050_v15 }
0x1114   : > { %10064 = vrot.lane.b32.xlu0 %v10056_v26, %s15253_s16  ;;  %s17371_s16 = smov 126  }
0x1115   : > { %v15184_v48 = vpop.eup %15183 }
0x1116   : > { %v15186_v30 = vpop.eup %15185 }
0x1170   : > { %v10063_v51 = vpop.permute.xlu1 %10062 }
0x1174   : > { %v17060_v8 = vpop.permute.xlu1 %10060 }
0x1175   : > { %v17064_v12 = vsel %vm10066_vm14, %v17060_v8, %v10063_v51  ;;  %v10072_v6 = vsel %vm10066_vm14, 0, %v17060_v8 }
0x1176   : > { %10092 = vrot.lane.b32.xlu0 %v17064_v12, %s17370_s0 }
0x117a   : > { %10090 = vrot.lane.b32.xlu0 %v10072_v6, %s17370_s0 }
0x1186   : > { %v10065_v27 = vpop.permute.xlu0 %10064 }
0x1187   : > { %v10068_v63 = vsel %vm10066_vm14, %v10063_v51, %v10065_v27 }
0x1188   : > { %v17072_v7 = vsel %vm10074_vm15, %v10068_v63, 0 }
0x1189   : > { %10294 = vrot.lane.b32.xlu0 %v17072_v7, %s17371_s16  ;;  %10094 = vrot.lane.b32.xlu1 %v17072_v7, %s17370_s0  ;;  %s15256_s0 = smov 92  }
0x118d   : > { %10405 = vrot.lane.b32.xlu0 %v17064_v12, %s15254_s1  ;;  %10292 = vrot.lane.b32.xlu1 %v17064_v12, %s17371_s16 }
0x1191   : > { %10403 = vrot.lane.b32.xlu0 %v10072_v6, %s15254_s1  ;;  %10290 = vrot.lane.b32.xlu1 %v10072_v6, %s17371_s16  ;;  %s17373_s16 = sld [smem:[#allocation22_spill]] }
0x1195   : > { %10520 = vrot.lane.b32.xlu0 %v17072_v7, %s15255_s2  ;;  %10407 = vrot.lane.b32.xlu1 %v17072_v7, %s15254_s1  ;;  %s17374_s1 = sld [smem:[#allocation11_spill]] }
0x1197   : > { %v11199_v33 = vld [vmem:[%s17373_s16] sm:$0xff]  ;;  %v11200_v62 = vld [vmem:[%s17373_s16 + $0x8] sm:$0xff] }
0x1199   : > { %10631 = vrot.lane.b32.xlu0 %v17064_v12, %s17372_s3  ;;  %10518 = vrot.lane.b32.xlu1 %v17064_v12, %s15255_s2 }
0x119b   : > { %v6832_v0 = vld [vmem:[%s17374_s1] sm:$0x7]  ;;  %s14929_s1 = smul.u32 12, %s17379_s10 }
0x119d   : > { %10629 = vrot.lane.b32.xlu0 %v10072_v6, %s17372_s3  ;;  %10516 = vrot.lane.b32.xlu1 %v10072_v6, %s15255_s2  ;;  %s15258_s2 = smov 90  }
0x11a1   : > { %10746 = vrot.lane.b32.xlu0 %v17072_v7, %s15256_s0  ;;  %10633 = vrot.lane.b32.xlu1 %v17072_v7, %s17372_s3  ;;  %s17375_s3 = sld [smem:[#allocation19_spill]] }
0x11a5   : > { %10857 = vrot.lane.b32.xlu0 %v17064_v12, %s15257_s5  ;;  %10744 = vrot.lane.b32.xlu1 %v17064_v12, %s15256_s0 }
0x11a7   : > { %v15146_v4 = vld [vmem:[%s17375_s3 + $0x8] sm:$0xff]   ;;  %v15147_v17 = vld [vmem:[%s17375_s3] sm:$0xff]   ;;  %v15148_v38 = vld [vmem:[%s17375_s3 + $0x10] sm:$0xff]  }
0x11a8   : > { %v15149_v24 = vld [vmem:[%s17375_s3 + $0x18] sm:$0xff]   ;;  %v15152_v59 = vld [vmem:[%s17375_s3 + $0x30] sm:$0xff]  }
0x11a9   : > { %10855 = vrot.lane.b32.xlu0 %v10072_v6, %s15257_s5  ;;  %10742 = vrot.lane.b32.xlu1 %v10072_v6, %s15256_s0  ;;  %s17377_s0 = sld [smem:[#allocation23_spill]] }
0x11ad   : > { %10972 = vrot.lane.b32.xlu0 %v17072_v7, %s15258_s2  ;;  %10859 = vrot.lane.b32.xlu1 %v17072_v7, %s15257_s5  ;;  %s17376_s5 = sld [smem:[#allocation21_spill]] }
0x11b1   : > { %11162 = vperm.xlu0 %15000, %v15184_v48   ;;  %10970 = vrot.lane.b32.xlu1 %v17064_v12, %s15258_s2 }
0x11b5   : > { %11203 = vperm.xlu0 %15000, %v11199_v33   ;;  %10968 = vrot.lane.b32.xlu1 %v10072_v6, %s15258_s2  ;;  %v15188_v6 = vld [vmem:[%s17353_s15] ss:$0 sm:$0xff]  ;;  %s1126_s2 = scalar_lea.vmem %s15452_s4, %s14929_s1 }
0x11b9   : > { %11289 = vperm.xlu0 %15000, %v1441_v55   ;;  %11167 = vperm.xlu1 %15001, %v15186_v30  }
0x11bd   : > { %6835 = vperm.xlu0 %15000, %v6832_v0   ;;  %11208 = vperm.xlu1 %15001, %v11200_v62   ;;  %v15153_v62 = vld [vmem:[%s17375_s3 + $0x38] sm:$0xff]  }
0x11c1   : > { %11294 = vperm.xlu1 %15001, %v1446_v20  }
0x11c5   : > { %11306 = vperm.xlu1 %15001, %v11303_v57  }
0x11e8   : > { %v10093_v11 = vpop.permute.xlu0 %10092 }
0x11ec   : > { %v10091_v36 = vpop.permute.xlu0 %10090 }
0x11ed   : > { %v10097_v60 = vsel %vm10096_vm0, %v10091_v36, %v10093_v11  ;;  %v15154_v36 = vld [vmem:[%s17375_s3 + $0x40] sm:$0xff]  }
0x11fb   : > { %v10095_v39 = vpop.permute.xlu1 %10094  ;;  %v10295_v56 = vpop.permute.xlu0 %10294 }
0x11fc   : > { %v10098_v2 = vsel %vm10096_vm0, %v10093_v11, %v10095_v39 }
0x11fd   : > { %10106 = vmatprep.subr.bf16.mxu0 %v10098_v2 }
0x11fe   : > { %10107 = vmatpush1.bf16.msra.mxu0 %v10097_v60 }
0x11ff   : > { %v10406_v3 = vpop.permute.xlu0 %10405  ;;  %14031 = vmatprep.subr.bf16.mxu0 %v17351_v34  ;;  %v10293_v42 = vpop.permute.xlu1 %10292 }
0x1200   : > { %v10298_v25 = vsel %vm10296_vm4, %v10293_v42, %v10295_v56 }
0x1201   : > { %12484 = vmatmul.mubr.msk.bf16.vlgmr.msra.gmra.mrb[92].mxu0 %vm10102_vm2, %v15146_v4 }
0x1202   : > { %14032 = vmatpush3.bf16.msra.mxu0 %v10095_v39  ;;  %14033 = vmatprep.mubr.msk.bf16.mxu0 %vm15245_vm8, %v17351_v34  ;;  %v11176_v39 = vld [vmem:[%s17376_s5] sm:$0x7] }
0x1203   : > { %10198 = vmatprep.subr.bf16.mxu0 %v17064_v12  ;;  %v10404_v13 = vpop.permute.xlu0 %10403  ;;  %v10291_v40 = vpop.permute.xlu1 %10290 }
0x1204   : > { %v10297_v45 = vsel %vm10296_vm4, %v10291_v40, %v10293_v42  ;;  %v10410_v21 = vsel %vm10409_vm5, %v10404_v13, %v10406_v3 }
0x1207   : > { %v17111_v44 = vpop.permute.xlu0 %10520  ;;  %v10408_v46 = vpop.permute.xlu1 %10407 }
0x1208   : > { %v10411_v22 = vsel %vm10409_vm5, %v10406_v3, %v10408_v46 }
0x1209   : > { %14034 = vmatmul.mubr.msk.bf16.vlgmr.msra.gmra.mrb[96].mxu0 %vm10102_vm2, %v15146_v4  ;;  %v11185_v4 = vrot.slane %v11176_v39, %v17037_v32 }
0x120a   : > { %12488 = vmatpush1.bf16.msk.msra.mxu0 %vm12487_vm1, %v17060_v8  ;;  %10230 = vmatprep.mubr.bf16.mxu0 %v17366_v50  ;;  %v15150_v8 = vld [vmem:[%s17375_s3 + $0x20] sm:$0xff]  }
0x120b   : > { %14037 = vmatprep.subr.bf16.mxu0 %v17351_v34  ;;  %v17118_v18 = vpop.permute.xlu0 %10631  ;;  %v10519_v28 = vpop.permute.xlu1 %10518 }
0x120c   : > { %v10524_v47 = vsel %vm10522_vm7, %v10519_v28, %v17111_v44 }
0x120f   : > { %v10630_v37 = vpop.permute.xlu0 %10629  ;;  %v10517_v15 = vpop.permute.xlu1 %10516 }
0x1210   : > { %v10523_v52 = vsel %vm10522_vm7, %v10517_v15, %v10519_v28 }
0x1211   : > { %12489 = vmatmul.mubr.msk.bf16.vlgmr.msra.gmra.mrb[92].mxu0 %vm10102_vm2, %v15147_v17 }
0x1212   : > { %14038 = vmatpush3.bf16.msra.mxu0 %v17072_v7  ;;  %14039 = vmatprep.mubr.msk.bf16.mxu0 %vm15245_vm8, %v17351_v34 }
0x1213   : > { %10305 = vmatprep.subr.bf16.mxu0 %v10298_v25  ;;  %v17125_v54 = vpop.permute.xlu0 %10746  ;;  %v10634_v12 = vpop.permute.xlu1 %10633 }
0x1214   : > { %v10637_v7 = vsel %vm10635_vm9, %v17118_v18, %v10634_v12 }
0x1217   : > { %v17130_v10 = vpop.permute.xlu0 %10857  ;;  %v10745_v19 = vpop.permute.xlu1 %10744 }
0x1218   : > { %v10750_v16 = vsel %vm10748_vm10, %v10745_v19, %v17125_v54 }
0x1219   : > { %14040 = vmatmul.mubr.msk.bf16.vlgmr.msra.gmra.mrb[96].mxu0 %vm10102_vm2, %v15147_v17 }
0x121a   : > { %10306 = vmatpush1.bf16.msra.mxu0 %v10297_v45  ;;  %10337 = vmatprep.mubr.bf16.mxu0 %v17366_v50 }
0x121b   : > { %14043 = vmatprep.subr.bf16.mxu0 %v17351_v34  ;;  %v17135_v49 = vpop.permute.xlu0 %10855  ;;  %v10743_v48 = vpop.permute.xlu1 %10742 }
0x121c   : > { %v10749_v33 = vsel %vm10748_vm10, %v10743_v48, %v10745_v19  ;;  %v10862_v0 = vsel %vm10861_vm11, %v17135_v49, %v17130_v10 }
0x121f   : > { %v17140_v41 = vpop.permute.xlu0 %10972  ;;  %v10860_v30 = vpop.permute.xlu1 %10859 }
0x1220   : > { %v10863_v55 = vsel %vm10861_vm11, %v17130_v10, %v10860_v30  ;;  %v11189_v10 = vrot.slane %v11176_v39, %v17052_v23 }
0x1221   : > { %12494 = vmatmul.mubr.msk.bf16.vlgmr.msra.gmra.mrb[92].mxu0 %vm10102_vm2, %v15148_v38 }
0x1222   : > { %14044 = vmatpush3.bf16.msra.mxu0 %v10295_v56  ;;  %14045 = vmatprep.mubr.msk.bf16.mxu0 %vm15245_vm8, %v17351_v34  ;;  %v11181_v56 = vrot.slane %v11176_v39, %v17034_v61 }
0x1223   : > { %10418 = vmatprep.subr.bf16.mxu0 %v10411_v22  ;;  %v10971_v5 = vpop.permute.xlu1 %10970 }
0x1224   : > { %v10976_v20 = vsel %vm10974_vm12, %v10971_v5, %v17140_v41 }
0x1227   : > { %v10969_v57 = vpop.permute.xlu1 %10968 }
0x1228   : > { %v10975_v11 = vsel %vm10974_vm12, %v10969_v57, %v10971_v5 }
0x1229   : > { %14046 = vmatmul.mubr.msk.bf16.vlgmr.msra.gmra.mrb[96].mxu0 %vm10102_vm2, %v15148_v38 }
0x122a   : > { %10419 = vmatpush1.bf16.msra.mxu0 %v10410_v21  ;;  %10450 = vmatprep.mubr.bf16.mxu0 %v17366_v50 }
0x122b   : > { %14049 = vmatprep.subr.bf16.mxu0 %v17351_v34 }
0x1230   : > { %v17143_v29 = vpop.permute.xlu0 %11162 }
0x1231   : > { %12499 = vmatmul.mubr.msk.bf16.vlgmr.msra.gmra.mrb[92].mxu0 %vm10102_vm2, %v15149_v24 }
0x1232   : > { %14050 = vmatpush3.bf16.msra.mxu0 %v10408_v46  ;;  %14051 = vmatprep.mubr.msk.bf16.mxu0 %vm15245_vm8, %v17351_v34 }
0x1233   : > { %10531 = vmatprep.subr.bf16.mxu0 %v10524_v47 }
0x1234   : > { %v17149_v14 = vpop.permute.xlu0 %11203 }
0x1238   : > { %v17151_v26 = vpop.permute.xlu0 %11289  ;;  %v11168_v2 = vpop.permute.xlu1 %11167 }
0x1239   : > { %14052 = vmatmul.mubr.msk.bf16.vlgmr.msra.gmra.mrb[96].mxu0 %vm10102_vm2, %v15149_v24 }
0x123a   : > { %10532 = vmatpush1.bf16.msra.mxu0 %v10523_v52  ;;  %10563 = vmatprep.mubr.bf16.mxu0 %v17366_v50 }
0x123b   : > { %14055 = vmatprep.subr.bf16.mxu0 %v17351_v34 }
0x123c   : > { %v6836_v58 = vpop.permute.xlu0 %6835 }
0x123d   : > { %v6908_v51 = vadd.f32 %v16808_v35, %v6836_v58  ;;  %v10636_v35 = vsel %vm10635_vm9, %v10630_v37, %v17118_v18 }
0x123f   : > { %v6911_v27 = vmul.f32 %v15188_v6, %v6908_v51 }
0x1241   : > { %v17160_v63 = vadd.f32 %v16816_v53, %v6911_v27  ;;  %12504 = vmatmul.mubr.msk.bf16.vlgmr.msra.gmra.mrb[92].mxu0 %vm10102_vm2, %v15150_v8  ;;  %v15151_v53 = vld [vmem:[%s17375_s3 + $0x28] sm:$0xff]  }
0x1242   : > { %14056 = vmatpush3.bf16.msra.mxu0 %v17111_v44  ;;  %14057 = vmatprep.mubr.msk.bf16.mxu0 %vm15245_vm8, %v17351_v34 }
0x1243   : > { %10644 = vmatprep.subr.bf16.mxu0 %v10637_v7 }
0x1249   : > { %14058 = vmatmul.mubr.msk.bf16.vlgmr.msra.gmra.mrb[96].mxu0 %vm10102_vm2, %v15150_v8 }
0x124a   : > { %10645 = vmatpush1.bf16.msra.mxu0 %v10636_v35  ;;  %10676 = vmatprep.mubr.bf16.mxu0 %v17366_v50 }
0x124b   : > { %14061 = vmatprep.subr.bf16.mxu0 %v17351_v34 }
0x1251   : > { %12509 = vmatmul.mubr.msk.bf16.vlgmr.msra.gmra.mrb[92].mxu0 %vm10102_vm2, %v15151_v53 }
0x1252   : > { %14062 = vmatpush3.bf16.msra.mxu0 %v10634_v12  ;;  %14063 = vmatprep.mubr.msk.bf16.mxu0 %vm15245_vm8, %v17351_v34 }
0x1253   : > { %10757 = vmatprep.subr.bf16.mxu0 %v10750_v16 }
0x1259   : > { %14064 = vmatmul.mubr.msk.bf16.vlgmr.msra.gmra.mrb[96].mxu0 %vm10102_vm2, %v15151_v53 }
0x125a   : > { %10758 = vmatpush1.bf16.msra.mxu0 %v10749_v33  ;;  %10789 = vmatprep.mubr.bf16.mxu0 %v17366_v50 }
0x125b   : > { %14067 = vmatprep.subr.bf16.mxu0 %v17351_v34 }
0x1261   : > { %12514 = vmatmul.mubr.msk.bf16.vlgmr.msra.gmra.mrb[92].mxu0 %vm10102_vm2, %v15152_v59 }
0x1262   : > { %14068 = vmatpush3.bf16.msra.mxu0 %v17125_v54  ;;  %14069 = vmatprep.mubr.msk.bf16.mxu0 %vm15245_vm8, %v17351_v34  ;;  %v11209_v54 = vpop.permute.xlu1 %11208 }
0x1263   : > { %10870 = vmatprep.subr.bf16.mxu0 %v10863_v55 }
0x1269   : > { %14070 = vmatmul.mubr.msk.bf16.vlgmr.msra.gmra.mrb[96].mxu0 %vm10102_vm2, %v15152_v59  ;;  %v11295_v59 = vpop.permute.xlu1 %11294 }
0x126a   : > { %10871 = vmatpush1.bf16.msra.mxu0 %v10862_v0  ;;  %10902 = vmatprep.mubr.bf16.mxu0 %v17366_v50 }
0x126b   : > { %14073 = vmatprep.subr.bf16.mxu0 %v17351_v34 }
0x1271   : > { %12519 = vmatmul.mubr.msk.bf16.vlgmr.msra.gmra.mrb[92].mxu0 %vm10102_vm2, %v15153_v62 }
0x1272   : > { %14074 = vmatpush3.bf16.msra.mxu0 %v10860_v30  ;;  %14075 = vmatprep.mubr.msk.bf16.mxu0 %vm15245_vm8, %v17351_v34 }
0x1273   : > { %10983 = vmatprep.subr.bf16.mxu0 %v10976_v20 }
0x1279   : > { %14076 = vmatmul.mubr.msk.bf16.vlgmr.msra.gmra.mrb[96].mxu0 %vm10102_vm2, %v15153_v62 }
0x127a   : > { %10984 = vmatpush1.bf16.msra.mxu0 %v10975_v11  ;;  %11015 = vmatprep.mubr.bf16.mxu0 %v17366_v50 }
0x127b   : > { %14079 = vmatprep.subr.bf16.mxu0 %v17351_v34 }
0x1281   : > { %12524 = vmatmul.mubr.msk.bf16.vlgmr.msra.gmra.mrb[92].mxu0 %vm10102_vm2, %v15154_v36 }
0x1282   : > { %14080 = vmatpush3.bf16.msra.mxu0 %v17140_v41  ;;  %14081 = vmatprep.mubr.msk.bf16.mxu0 %vm15245_vm8, %v17351_v34 }
0x1289   : > { %14082 = vmatmul.mubr.msk.bf16.vlgmr.msra.gmra.mrb[96].mxu0 %vm10102_vm2, %v15154_v36 }
0x1354   : > { %v11017_v60 = vpop.f32.mrb[92].mxu0 }
0x1355   : > { %v11170_v50 = vmul.f32 %v17143_v29, %v11017_v60  ;;  %v11019_v3 = vpop.f32.mrb[93].mxu0 }
0x1356   : > { %v11171_v13 = vmul.f32 %v17143_v29, %v11019_v3  ;;  %v11021_v44 = vpop.f32.mrb[94].mxu0  ;;  %v11286_v3 = vld [vmem:[%s17377_s0] sm:$0x7] }
0x1357   : > { %v11193_v17 = vadd.f32 %v11181_v56, %v11170_v50  ;;  %v11173_v18 = vmul.f32 %v11168_v2, %v11021_v44  ;;  %v11023_v42 = vpop.f32.mrb[95].mxu0  ;;  %v11251_v44 = vld [vmem:[%s15447_s27 + $0x20] sm:$0xff] }
0x1358   : > { %v11194_v25 = vadd.f32 %v11185_v4, %v11171_v13  ;;  %v11174_v37 = vmul.f32 %v11168_v2, %v11023_v42  ;;  %v11248_v13 = vld [vmem:[%s15447_s27 + $0x8] sm:$0xff] }
0x1359   : > { %v11211_v40 = vadd.f32 %v17149_v14, %v11193_v17  ;;  %v11196_v45 = vadd.f32 %v11181_v56, %v11173_v18  ;;  %v14461_v42 = vpack.c.bf16 %v11251_v44, %v11248_v13  ;;  %v11285_v44 = vld [vmem:[%s15447_s27 + $0x130] sm:$0xf] }
0x135a   : > { %v11212_v61 = vadd.f32 %v17149_v14, %v11194_v25  ;;  %v11197_v38 = vadd.f32 %v11185_v4, %v11174_v37  ;;  %v11247_v25 = vld [vmem:[%s15447_s27] sm:$0xff]  ;;  %v11250_v37 = vld [vmem:[%s15447_s27 + $0x18] sm:$0xff] }
0x135b   : > { %vm11217_vm13 = vcmp.ge.f32.partialorder %v11211_v40, 0.0  ;;  %v11223_v32 = vmul.f32 0.2, %v11211_v40  ;;  %v11214_v46 = vadd.f32 %v11209_v54, %v11196_v45  ;;  %v11254_v45 = vld [vmem:[%s15447_s27 + $0x38] sm:$0xff] }
0x135c   : > { %vm11218_vm14 = vcmp.ge.f32.partialorder %v11212_v61, 0.0  ;;  %v11224_v22 = vmul.f32 0.2, %v11212_v61  ;;  %v11215_v49 = vadd.f32 %v11209_v54, %v11197_v38  ;;  %v11060_v21 = vpop.f32.mrb[96].mxu0  ;;  %v11253_v38 = vld [vmem:[%s15447_s27 + $0x30] sm:$0xff] }
0x135d   : > { %v11229_v41 = vsel %vm11217_vm13, %v11211_v40, %v11223_v32  ;;  %vm11220_vm15 = vcmp.ge.f32.partialorder %v11214_v46, 0.0  ;;  %v11226_v24 = vmul.f32 0.2, %v11214_v46  ;;  %v11172_v28 = vmul.f32 %v17143_v29, %v11060_v21  ;;  %v14083_v47 = vpop.f32.mrb[97].mxu0  ;;  %v11256_v32 = vld [vmem:[%s15447_s27 + $0x48] sm:$0xff]  ;;  %v11259_v21 = vld [vmem:[%s15447_s27 + $0x60] sm:$0xff] }
0x135e   : > { %v11235_v15 = vmul.f32 1.4142135, %v11229_v41  ;;  %v11230_v52 = vsel %vm11218_vm14, %v11212_v61, %v11224_v22  ;;  %vm11221_vm0 = vcmp.ge.f32.partialorder %v11215_v49, 0.0  ;;  %v11227_v58 = vmul.f32 0.2, %v11215_v49  ;;  %v11063_v51 = vpop.f32.mrb[98].mxu0 }
0x135f   : > { %v11236_v8 = vmul.f32 1.4142135, %v11230_v52  ;;  %v11232_v12 = vsel %vm11220_vm15, %v11214_v46, %v11226_v24  ;;  %v11195_v6 = vadd.f32 %v11189_v10, %v11172_v28  ;;  %v11175_v27 = vmul.f32 %v11168_v2, %v11063_v51  ;;  %v14084_v23 = vpop.f32.mrb[99].mxu0  ;;  %v11260_v46 = vld [vmem:[%s15447_s27 + $0x68] sm:$0xff]  ;;  %v11262_v41 = vld [vmem:[%s15447_s27 + $0x78] sm:$0xff]  ;;  %v11269_v28 = vld [vmem:[%s15447_s27 + $0xb0] sm:$0xff] }
0x1360   : > { %v11241_v7 = vmul.f32 %v11235_v15, %v17043_v9  ;;  %v11238_v35 = vmul.f32 1.4142135, %v11232_v12  ;;  %v11233_v53 = vsel %vm11221_vm0, %v11215_v49, %v11227_v58  ;;  %v14463_v61 = vpack.c.bf16 %v11250_v37, %v11247_v25  ;;  %v11266_v24 = vld [vmem:[%s15447_s27 + $0x98] sm:$0xff]  ;;  %v11265_v52 = vld [vmem:[%s15447_s27 + $0x90] sm:$0xff]  ;;  %v11268_v58 = vld [vmem:[%s15447_s27 + $0xa8] sm:$0xff]  ;;  %v11307_v37 = vpop.permute.xlu1 %11306 }
0x1361   : > { %v11239_v19 = vmul.f32 1.4142135, %v11233_v53  ;;  %v11213_v16 = vadd.f32 %v17149_v14, %v11195_v6  ;;  %v11198_v48 = vadd.f32 %v11189_v10, %v11175_v27  ;;  %v11242_v29 = vmul.f32 %v11236_v8, %v17046_v43  ;;  %v11263_v10 = vld [vmem:[%s15447_s27 + $0x80] sm:$0xff]  ;;  %v11272_v51 = vld [vmem:[%s15447_s27 + $0xc8] sm:$0xff]  ;;  %v11274_v23 = vld [vmem:[%s15447_s27 + $0xd8] sm:$0xff] }
0x1362   : > { %v11244_v33 = vmul.f32 %v11238_v35, %v17043_v9  ;;  %v11297_v5 = vmul.f32 %v17151_v26, %v11241_v7  ;;  %v14467_v22 = vpack.c.bf16 %v11256_v32, %v11253_v38  ;;  %v14469_v49 = vpack.c.bf16 %v11263_v10, %v11260_v46  ;;  %v11275_v8 = vld [vmem:[%s15447_s27 + $0xe0] sm:$0xff]  ;;  %v11278_v7 = vld [vmem:[%s15447_s27 + $0xf8] sm:$0xff]  ;;  %v11281_v35 = vld [vmem:[%s15447_s27 + $0x110] sm:$0xff] }
0x1363   : > { %vm11219_vm1 = vcmp.ge.f32.partialorder %v11213_v16, 0.0  ;;  %v11225_v30 = vmul.f32 0.2, %v11213_v16  ;;  %v11216_v55 = vadd.f32 %v11209_v54, %v11198_v48  ;;  %v11245_v0 = vmul.f32 %v11239_v19, %v17046_v43  ;;  %v11257_v54 = vld [vmem:[%s15447_s27 + $0x50] sm:$0xff]  ;;  %v11271_v27 = vld [vmem:[%s15447_s27 + $0xc0] sm:$0xff]  ;;  %v11280_v48 = vld [vmem:[%s15447_s27 + $0x108] sm:$0xff] }
0x1364   : > { %v11298_v62 = vmul.f32 %v17151_v26, %v11242_v29  ;;  %v11300_v20 = vmul.f32 %v11295_v59, %v11244_v33  ;;  %v14471_v47 = vpack.c.bf16 %v11262_v41, %v11259_v21  ;;  %v14473_v15 = vpack.c.bf16 %v11269_v28, %v11266_v24  ;;  %v11284_v33 = vld [vmem:[%s15447_s27 + $0x128] sm:$0xf] }
0x1365   : > { %v11231_v14 = vsel %vm11219_vm1, %v11213_v16, %v11225_v30  ;;  %vm11222_vm4 = vcmp.ge.f32.partialorder %v11216_v55, 0.0  ;;  %v11228_v57 = vmul.f32 0.2, %v11216_v55  ;;  %v11301_v11 = vmul.f32 %v11295_v59, %v11245_v0  ;;  %v11277_v16 = vld [vmem:[%s15447_s27 + $0xf0] sm:$0xff]  ;;  %v11252_v30 = vld [vmem:[%s15447_s27 + $0x28] sm:$0xff] }
0x1366   : > { %v11237_v36 = vmul.f32 1.4142135, %v11231_v14  ;;  %v14456_v39 = vpack.c.bf16 %v11300_v20, %v11297_v5  ;;  %v14475_v12 = vpack.c.bf16 %v11268_v58, %v11265_v52  ;;  %v14477_v6 = vpack.c.bf16 %v11275_v8, %v11272_v51  ;;  %v11258_v5 = vld [vmem:[%s15447_s27 + $0x58] sm:$0xff]  ;;  %v11261_v14 = vld [vmem:[%s15447_s27 + $0x70] sm:$0xff] }
0x1367   : > { %v11234_v56 = vsel %vm11222_vm4, %v11216_v55, %v11228_v57  ;;  %v14454_v2 = vpack.c.bf16 %v11301_v11, %v11298_v62  ;;  %v14479_v53 = vpack.c.bf16 %v11274_v23, %v11271_v27  ;;  %v14481_v19 = vpack.c.bf16 %v11281_v35, %v11278_v7  ;;  %v11283_v55 = vld [vmem:[%s15447_s27 + $0x120] sm:$0xf]  ;;  %v11264_v57 = vld [vmem:[%s15447_s27 + $0x88] sm:$0xff] }
0x1368   : > { %v11243_v60 = vmul.f32 %v11237_v36, %v17056_v31  ;;  %v11240_v4 = vmul.f32 1.4142135, %v11234_v56  ;;  %v14483_v29 = vpack.c.bf16 %v11280_v48, %v11277_v16  ;;  %v11255_v62 = vld [vmem:[%s15447_s27 + $0x40] sm:$0xff]  ;;  %v14492_v11 = vpack.c.bf16 %v11264_v57, %v11261_v14 }
0x1369   : > { %14455 = vmatprep.subr.bf16.mxu1 %v14454_v2  ;;  %v14489_v20 = vpack.c.bf16 %v11258_v5, %v11255_v62  ;;  %v11267_v36 = vld [vmem:[%s15447_s27 + $0xa0] sm:$0xff]  ;;  %v11273_v2 = vld [vmem:[%s15447_s27 + $0xd0] sm:$0xff] }
0x136a   : > { %v11246_v50 = vmul.f32 %v11240_v4, %v17056_v31  ;;  %14457 = vmatpush1.bf16.msra.mxu1 %v14456_v39  ;;  %v11299_v17 = vmul.f32 %v17151_v26, %v11243_v60  ;;  %v14465_v26 = vpack.c.bf16 %v11257_v54, %v11254_v45  ;;  %v11270_v39 = vld [vmem:[%s15447_s27 + $0xb8] sm:$0xff]  ;;  %v11276_v60 = vld [vmem:[%s15447_s27 + $0xe8] sm:$0xff] }
0x136b   : > { %14458 = vmatprep.subr.bf16.mxu1 %v15234_v1  ;;  %v14495_v56 = vpack.c.bf16 %v11270_v39, %v11267_v36  ;;  %v14498_v4 = vpack.c.bf16 %v11276_v60, %v11273_v2 }
0x136c   : > { %v11302_v18 = vmul.f32 %v11295_v59, %v11246_v50  ;;  %v11249_v59 = vld [vmem:[%s15447_s27 + $0x10] sm:$0xff]  ;;  %v11279_v50 = vld [vmem:[%s15447_s27 + $0x100] sm:$0xff] }
0x136d   : > { %12528 = vmatmul.mubr.msk.f32.vlgmr.msra.gmra.mrb[54].mxu1 %vm10102_vm2, %v11286_v3  ;;  %v14486_v0 = vpack.c.bf16 %v11252_v30, %v11249_v59 }
0x136e   : > { %v14459_v40 = vpack.c.bf16 %v11302_v18, %v11299_v17  ;;  %14096 = vmatprep.mubr.msk.f32.mxu1 %vm15245_vm8, %v17351_v34 }
0x1370   : > { %14460 = vmatpush3.bf16.msra.mxu1 %v14459_v40 }
0x1371   : > { %14462 = vmatprep.subr.bf16.mxu1 %v14461_v42 }
0x1373   : > { %14097 = vmatmul.mubr.msk.f32.vlgmr.msra.gmra.mrb[56].mxu1 %vm10102_vm2, %v11286_v3  ;;  %v11282_v3 = vld [vmem:[%s15447_s27 + $0x118] sm:$0xff] }
0x1374   : > { %14464 = vmatpush1.bf16.msra.mxu1 %v14463_v61  ;;  %11532 = vmatprep.mubr.f32.mxu1 %v17351_v34  ;;  %v14501_v13 = vpack.c.bf16 %v11282_v3, %v11279_v50 }
0x1375   : > { %14466 = vmatprep.subr.bf16.mxu1 %v14465_v26 }
0x1378   : > { %14468 = vmatpush1.bf16.msra.mxu1 %v14467_v22 }
0x1379   : > { %14470 = vmatprep.subr.bf16.mxu1 %v14469_v49 }
0x137c   : > { %14472 = vmatpush1.bf16.msra.mxu1 %v14471_v47 }
0x137d   : > { %14474 = vmatprep.subr.bf16.mxu1 %v14473_v15 }
0x1380   : > { %14476 = vmatpush1.bf16.msra.mxu1 %v14475_v12 }
0x1381   : > { %14478 = vmatprep.subr.bf16.mxu1 %v14477_v6 }
0x1384   : > { %14480 = vmatpush1.bf16.msra.mxu1 %v14479_v53 }
0x1385   : > { %14482 = vmatprep.subr.bf16.mxu1 %v14481_v19 }
0x1388   : > { %14484 = vmatpush1.bf16.msra.mxu1 %v14483_v29 }
0x1389   : > { %12530 = vmatprep.subr.msk.mxu1 %vm3937_vm3, %v11284_v33 }
0x138c   : > { %12531 = vmatpush1.msk.msra.mxu1 %vm3937_vm3, %v11283_v55 }
0x138d   : > { %12532 = vmatmul.mubr.msk.f32.vlgmr.msra.gmra.mrb[58].mxu1 %vm8120_vm6, %v17160_v63  ;;  %14485 = vmatprep.subr.bf16.mxu1 %v15234_v1 }
0x138e   : > { %14487 = vmatpush3.bf16.msra.mxu1 %v14486_v0  ;;  %14125 = vmatprep.mubr.msk.f32.mxu1 %vm15245_vm8, %v17351_v34 }
0x138f   : > { %14488 = vmatprep.subr.bf16.mxu1 %v15234_v1 }
0x1392   : > { %14490 = vmatpush3.bf16.msra.mxu1 %v14489_v20 }
0x1393   : > { %14491 = vmatprep.subr.bf16.mxu1 %v15234_v1 }
0x1396   : > { %14493 = vmatpush3.bf16.msra.mxu1 %v14492_v11 }
0x1397   : > { %14494 = vmatprep.subr.bf16.mxu1 %v15234_v1 }
0x139a   : > { %14496 = vmatpush3.bf16.msra.mxu1 %v14495_v56 }
0x139b   : > { %14497 = vmatprep.subr.bf16.mxu1 %v15234_v1 }
0x139e   : > { %14499 = vmatpush3.bf16.msra.mxu1 %v14498_v4 }
0x139f   : > { %14500 = vmatprep.subr.bf16.mxu1 %v15234_v1 }
0x13a2   : > { %14502 = vmatpush3.bf16.msra.mxu1 %v14501_v13 }
0x13a3   : > { %14123 = vmatprep.subr.mxu1 %v17351_v34 }
0x13a6   : > { %14124 = vmatpush3.msk.msra.mxu1 %vm3937_vm3, %v11285_v44  ;;  %vm11614_vm3 = vcmask 550912  }
0x13a7   : > { %14126 = vmatmul.mubr.msk.f32.vlgmr.msra.gmra.mrb[60].mxu1 %vm8120_vm6, %v17160_v63 }
0x1440   : > { %v11378_v17 = vpop.f32.mrb[54].mxu1 }
0x1441   : > { %v11380_v18 = vpop.f32.mrb[55].mxu1  ;;  %v11379_v40 = vadd.f32 %v11378_v17, %v11307_v37 }
0x1442   : > { %v11381_v45 = vadd.f32 %v11380_v18, %v11307_v37 }
0x1443   : > { %v11453_v54 = vmul.f32 %v11379_v40, %v17043_v9 }
0x1444   : > { %v11454_v34 = vmul.f32 %v11381_v45, %v17046_v43 }
0x1446   : > { %v11449_v42 = vpop.f32.mrb[56].mxu1 }
0x1447   : > { %v14098_v25 = vpop.f32.mrb[57].mxu1  ;;  %v11450_v63 = vadd.f32 %v11449_v42, %v11307_v37 }
0x1449   : > { %v11455_v46 = vmul.f32 %v11450_v63, %v17056_v31 }
0x1460   : > { %v11534_v1 = vpop.f32.mrb[58].mxu1 }
0x1461   : > { %v11535_v61 = vadd.f32 %v11534_v1, %v11453_v54  ;;  %v11536_v26 = vpop.f32.mrb[59].mxu1 }
0x1462   : > { %v11537_v38 = vadd.f32 %v11536_v26, %v11454_v34 }
0x1464   : > { %v11611_v32 = vcombine.low %v11535_v61, %v11537_v38 }
0x1466   : > { %11613 = vst [vmem:[%s1126_s2] sm:$0x77] %v11611_v32 }
0x147a   : > { %v11605_v10 = vpop.f32.mrb[60].mxu1 }
0x147b   : > { %v11606_v22 = vadd.f32 %v11605_v10, %v11455_v46  ;;  %v14127_v49 = vpop.f32.mrb[61].mxu1 }
0x147d   : > { %11615 = vst.msk [vmem:[%s1126_s2 + $0x8] sm:$0x7] %vm11614_vm3, %v11606_v22 }
0x147e PF: > { %s85_s7 = sadd.s32 1, %s15195_s7  }
0x147f   : > { %p82_p4 = scmp.ge.s32.totalorder %s85_s7, 4  }
0x1481   :  { %84 = sbr.rel (!%p82_p4) target bundleno = 65 (0x41), region = 335 }

</bundles_post_ra>
